<compile_context>
chip_gen: v5e
topology: v5e:2x2
jax: 0.10.0
libtpu: 0.0.40
codegen_flags: <defaults>
</compile_context>

<pallas_src>
from functools import partial

import jax
import jax.numpy as jnp
from jax.experimental import pallas as pl
from jax.experimental.pallas import tpu as pltpu


_BN_EPS = 1e-5


# ----------------------------------------------------------------------------------
# Pallas kernels
# ----------------------------------------------------------------------------------
def _apply_act(y, act):
    if act == "relu":
        return jnp.maximum(y, 0.0)
    if act == "tanh":
        return jnp.tanh(y)
    return y


def _matmul_kernel(a_ref, w_ref, o_ref):
    # o = A @ W   (bf16 operands, f32 accumulation on the MXU)
    o_ref[...] = jnp.dot(a_ref[...], w_ref[...], preferred_element_type=jnp.float32)


def _matmul_stats_kernel(a_ref, w_ref, o_ref, s_ref, ss_ref):
    # o = A @ W, plus per-column sum / sum-of-squares accumulated across the row grid
    # (fused BatchNorm statistics; padded A rows are all-zero so they do not bias them).
    y = jnp.dot(a_ref[...], w_ref[...], preferred_element_type=jnp.float32)
    o_ref[...] = y

    @pl.when(pl.program_id(0) == 0)
    def _():
        s_ref[...] = jnp.zeros_like(s_ref)
        ss_ref[...] = jnp.zeros_like(ss_ref)

    s_ref[...] += jnp.sum(y, axis=0, keepdims=True)
    ss_ref[...] += jnp.sum(y * y, axis=0, keepdims=True)


def _colstats_kernel(x_ref, s_ref, ss_ref):
    # Per-column sum / sum-of-squares accumulated across the row grid (BN statistics).
    x = x_ref[...]

    @pl.when(pl.program_id(0) == 0)
    def _():
        s_ref[...] = jnp.zeros_like(s_ref)
        ss_ref[...] = jnp.zeros_like(ss_ref)

    s_ref[...] += jnp.sum(x, axis=0, keepdims=True)
    ss_ref[...] += jnp.sum(x * x, axis=0, keepdims=True)


def _affine_act_kernel(x_ref, a_ref, c_ref, o_ref, *, act):
    # o = act(x * a + c) with per-column a/c; math in f32, store in o_ref.dtype.
    y = x_ref[...] * a_ref[...] + c_ref[...]
    o_ref[...] = _apply_act(y, act).astype(o_ref.dtype)


# ----------------------------------------------------------------------------------
# pallas_call wrappers
# ----------------------------------------------------------------------------------
def _round_up(x, m):
    return ((x + m - 1) // m) * m


_TILE_CANDIDATES = (1024, 768, 512, 384, 256, 128)


def _row_tiling(M, max_tile=1024):
    """Pad rows to a multiple of 16 and pick a large row tile (amortize pipeline cost)."""
    m16 = _round_up(M, 16)
    if m16 <= max_tile:
        return m16, m16
    tile = min(_TILE_CANDIDATES, key=lambda t: (_round_up(M, t) - M, -t))
    return _round_up(M, tile), tile


def _pad_rows(x, m_pad):
    M = x.shape[0]
    if m_pad == M:
        return x
    return jnp.pad(x, ((0, m_pad - M), (0, 0)))


def pallas_matmul(a, w, emit_colstats=False):
    """A @ W on the MXU (bf16 operands, f32 accumulation).

    a: (M, K), w: (K, N).  With emit_colstats=True additionally returns the per-column
    sum and sum-of-squares of the product, accumulated inside the kernel across the
    row grid (fused BatchNorm statistics)."""
    M, K = a.shape
    N = w.shape[1]
    m_pad, tm = _row_tiling(M)
    a_p = _pad_rows(a.astype(jnp.bfloat16), m_pad)
    w_b = w.astype(jnp.bfloat16)
    grid = (m_pad // tm,)

    a_spec = pl.BlockSpec((tm, K), lambda i: (i, 0))
    w_spec = pl.BlockSpec((K, N), lambda i: (0, 0))
    o_spec = pl.BlockSpec((tm, N), lambda i: (i, 0))

    if not emit_colstats:
        out = pl.pallas_call(
            _matmul_kernel,
            out_shape=jax.ShapeDtypeStruct((m_pad, N), jnp.float32),
            grid_spec=pltpu.PrefetchScalarGridSpec(
                num_scalar_prefetch=0, grid=grid,
                in_specs=[a_spec, w_spec], out_specs=o_spec),
            compiler_params=pltpu.CompilerParams(dimension_semantics=("parallel",)),
        )(a_p, w_b)
        return out[:M]

    stat_spec = pl.BlockSpec((1, N), lambda i: (0, 0))
    out, s, ss = pl.pallas_call(
        _matmul_stats_kernel,
        out_shape=(jax.ShapeDtypeStruct((m_pad, N), jnp.float32),
                   jax.ShapeDtypeStruct((1, N), jnp.float32),
                   jax.ShapeDtypeStruct((1, N), jnp.float32)),
        grid_spec=pltpu.PrefetchScalarGridSpec(
            num_scalar_prefetch=0, grid=grid,
            in_specs=[a_spec, w_spec],
            out_specs=(o_spec, stat_spec, stat_spec)),
        compiler_params=pltpu.CompilerParams(dimension_semantics=("arbitrary",)),
    )(a_p, w_b)
    return out[:M], s[0], ss[0]


def pallas_colstats(x2d):
    """Per-column sum and sum-of-squares of x2d (rows reduced inside the kernel)."""
    M, L = x2d.shape
    m_pad, tm = _row_tiling(M)
    x_p = _pad_rows(x2d.astype(jnp.float32), m_pad)
    stat_spec = pl.BlockSpec((1, L), lambda i: (0, 0))
    s, ss = pl.pallas_call(
        _colstats_kernel,
        out_shape=(jax.ShapeDtypeStruct((1, L), jnp.float32),
                   jax.ShapeDtypeStruct((1, L), jnp.float32)),
        grid_spec=pltpu.PrefetchScalarGridSpec(
            num_scalar_prefetch=0, grid=(m_pad // tm,),
            in_specs=[pl.BlockSpec((tm, L), lambda i: (i, 0))],
            out_specs=(stat_spec, stat_spec)),
        compiler_params=pltpu.CompilerParams(dimension_semantics=("arbitrary",)),
    )(x_p)
    return s[0], ss[0]


def pallas_affine_act(x2d, scale, shift, act, out_dtype=jnp.float32):
    """act(x * scale + shift) with per-column scale/shift on a lane-dense 2-D view."""
    M, L = x2d.shape
    m_pad, tm = _row_tiling(M)
    x_p = _pad_rows(x2d.astype(jnp.float32), m_pad)
    out = pl.pallas_call(
        partial(_affine_act_kernel, act=act),
        out_shape=jax.ShapeDtypeStruct((m_pad, L), out_dtype),
        grid_spec=pltpu.PrefetchScalarGridSpec(
            num_scalar_prefetch=0, grid=(m_pad // tm,),
            in_specs=[pl.BlockSpec((tm, L), lambda i: (i, 0)),
                      pl.BlockSpec((1, L), lambda i: (0, 0)),
                      pl.BlockSpec((1, L), lambda i: (0, 0))],
            out_specs=pl.BlockSpec((tm, L), lambda i: (i, 0))),
        compiler_params=pltpu.CompilerParams(dimension_semantics=("parallel",)),
    )(x_p,
      scale.reshape(1, L).astype(jnp.float32),
      shift.reshape(1, L).astype(jnp.float32))
    return out[:M]


# ----------------------------------------------------------------------------------
# Generator layers (ConvTranspose2d lowered to lane-dense Pallas matmuls)
# ----------------------------------------------------------------------------------
def _bn_coeffs(ch_sum, ch_sumsq, count, gamma, beta):
    mean = ch_sum / count
    var = ch_sumsq / count - mean * mean           # biased variance (PyTorch train mode)
    a = gamma * jax.lax.rsqrt(var + _BN_EPS)
    c = beta - mean * a
    return a, c


def _first_deconv_bn_relu(x, W, gamma, beta):
    """ConvTranspose2d(Cin, Cout, 4, 1, 0) on 1x1 inputs + BatchNorm(train) + ReLU.

    x: (B, Cin) -> (B, 4, 4, Cout) bf16 (channels-last).  The conv bias is omitted:
    train-mode BatchNorm subtracts the batch mean, which cancels it exactly."""
    Cin, Cout, kh, kw = W.shape
    Wmat = W.transpose(0, 2, 3, 1).reshape(Cin, kh * kw * Cout)    # cols = (ky, kx, co)
    B = x.shape[0]
    raw, col_s, col_ss = pallas_matmul(x, Wmat, emit_colstats=True)  # (B, 16*Cout) f32
    ch_sum = col_s.reshape(kh * kw, Cout).sum(0)
    ch_sumsq = col_ss.reshape(kh * kw, Cout).sum(0)
    a, c = _bn_coeffs(ch_sum, ch_sumsq, B * kh * kw, gamma, beta)
    act = pallas_affine_act(raw, jnp.tile(a, kh * kw), jnp.tile(c, kh * kw),
                            act="relu", out_dtype=jnp.bfloat16)
    return act.reshape(B, kh, kw, Cout)                             # channels-last


def _col2im_stride2(contrib, B, H, W, Cout, k=4, s=2, p=1):
    """Overlap-add for ConvTranspose2d(k=4, s=2, p=1), channels-last, no scatters.

    contrib: (B*H*W, k*k*Cout) f32 with column order (ky, kx, co).
    Output pixel: oy = s*iy + ky - p."""
    c6 = contrib.reshape(B, H, W, k, k, Cout)
    J, L = H + 1, W + 1
    rows = []
    for ry in range(s):
        cols = []
        for rx in range(s):
            acc = jnp.zeros((B, J, L, Cout), jnp.float32)
            for qy in range(k // s):
                for qx in range(k // s):
                    tap = c6[:, :, :, s * qy + ry, s * qx + rx, :]
                    acc = acc + jnp.pad(tap, ((0, 0), (qy, 1 - qy), (qx, 1 - qx), (0, 0)))
            cols.append(acc)
        rows.append(jnp.stack(cols, axis=0))
    yf = jnp.stack(rows, axis=0)                                    # (ry, rx, B, J, L, C)
    yf = yf.transpose(2, 3, 0, 4, 1, 5).reshape(B, s * J, s * L, Cout)
    return yf[:, p:p + s * H, p:p + s * W, :]                       # (B, 2H, 2W, Cout)


def _deconv_s2(x_nhwc, W):
    """ConvTranspose2d(Cin, Cout, 4, 2, 1) via a lane-dense Cin-contraction matmul."""
    B, H, Wd, Cin = x_nhwc.shape
    _, Cout, k, _ = W.shape
    Wmat = W.transpose(0, 2, 3, 1).reshape(Cin, k * k * Cout)       # cols = (ky, kx, co)
    contrib = pallas_matmul(x_nhwc.reshape(B * H * Wd, Cin), Wmat)  # (B*H*W, k*k*Cout)
    return _col2im_stride2(contrib, B, H, Wd, Cout, k=k)


def _deconv_s2_bn_relu(x_nhwc, W, gamma, beta):
    y = _deconv_s2(x_nhwc, W)                  # conv bias cancelled by train-mode BN
    B, Ho, Wo, Cout = y.shape
    y2d = y.reshape(B, Ho * Wo * Cout)         # lane-dense elementwise view (pure reshape)
    col_s, col_ss = pallas_colstats(y2d)
    ch_sum = col_s.reshape(Ho * Wo, Cout).sum(0)
    ch_sumsq = col_ss.reshape(Ho * Wo, Cout).sum(0)
    a, c = _bn_coeffs(ch_sum, ch_sumsq, B * Ho * Wo, gamma, beta)
    act = pallas_affine_act(y2d, jnp.tile(a, Ho * Wo), jnp.tile(c, Ho * Wo),
                            act="relu", out_dtype=jnp.bfloat16)
    return act.reshape(B, Ho, Wo, Cout)


def _deconv_s2_bias_tanh(x_nhwc, W, b):
    y = _deconv_s2(x_nhwc, W)
    B, Ho, Wo, Cout = y.shape
    y2d = y.reshape(B, Ho * Wo * Cout)
    scale = jnp.ones((Ho * Wo * Cout,), jnp.float32)
    shift = jnp.tile(b.astype(jnp.float32), Ho * Wo)                # bias + tanh fused
    out = pallas_affine_act(y2d, scale, shift, act="tanh", out_dtype=jnp.float32)
    return out.reshape(B, Ho, Wo, Cout)


def generator_forward(params, z, label_onehot):
    """cDCGAN generator: z (B, nz), label_onehot (B, class_num) -> (B, 3, 32, 32) NCHW."""
    x = _first_deconv_bn_relu(z, params["d11_w"], params["bn11_g"], params["bn11_b"])
    y = _first_deconv_bn_relu(label_onehot, params["d12_w"],
                              params["bn12_g"], params["bn12_b"])
    h = jnp.concatenate([x, y], axis=-1)                            # (B, 4, 4, 4d) bf16
    h = _deconv_s2_bn_relu(h, params["d2_w"], params["bn2_g"], params["bn2_b"])
    h = _deconv_s2_bn_relu(h, params["d3_w"], params["bn3_g"], params["bn3_b"])
    out = _deconv_s2_bias_tanh(h, params["d4_w"], params["d4_b"])   # (B, 32, 32, 3)
    return out.transpose(0, 3, 1, 2)                                # NCHW (PyTorch layout)


# ----------------------------------------------------------------------------------
# DivCo_DCGAN forward-pass wrapper
# ----------------------------------------------------------------------------------
def init_generator_params(key, nz, class_num, d):
    ks = jax.random.split(key, 5)

    def conv_w(k, shape):
        return 0.02 * jax.random.normal(k, shape, jnp.float32)      # normal_init(0, 0.02)

    # NOTE: d11_b / d12_b / d2_b / d3_b are kept for parameter fidelity but are not used
    # in compute: train-mode BatchNorm subtracts the batch mean, cancelling them exactly.
    return dict(
        d11_w=conv_w(ks[0], (nz, d * 2, 4, 4)), d11_b=jnp.zeros((d * 2,), jnp.float32),
        bn11_g=jnp.ones((d * 2,), jnp.float32), bn11_b=jnp.zeros((d * 2,), jnp.float32),
        d12_w=conv_w(ks[1], (class_num, d * 2, 4, 4)), d12_b=jnp.zeros((d * 2,), jnp.float32),
        bn12_g=jnp.ones((d * 2,), jnp.float32), bn12_b=jnp.zeros((d * 2,), jnp.float32),
        d2_w=conv_w(ks[2], (d * 4, d * 2, 4, 4)), d2_b=jnp.zeros((d * 2,), jnp.float32),
        bn2_g=jnp.ones((d * 2,), jnp.float32), bn2_b=jnp.zeros((d * 2,), jnp.float32),
        d3_w=conv_w(ks[3], (d * 2, d, 4, 4)), d3_b=jnp.zeros((d,), jnp.float32),
        bn3_g=jnp.ones((d,), jnp.float32), bn3_b=jnp.zeros((d,), jnp.float32),
        d4_w=conv_w(ks[4], (d, 3, 4, 4)), d4_b=jnp.zeros((3,), jnp.float32),
    )


class DivCoDCGANPallas:
    """Forward pass of DivCo_DCGAN (generator path).  Discriminator / losses /
    optimizers / checkpoint I/O are training machinery and are not ported."""

    def __init__(self, nz, class_num, d, num_negative, radius, key):
        self.nz = nz
        self.class_num = class_num
        self.num_negative = num_negative
        self.radius = float(radius)
        self.params = init_generator_params(key, nz, class_num, d)

        nz_, cn_, nneg_, rad_ = nz, class_num, num_negative, self.radius

        def _fwd(params, key, real_image, label):
            B = real_image.shape[0]
            label_one_hot = jax.nn.one_hot(label, cn_, dtype=jnp.float32)   # (B, cn)
            key, kz, kq, kp = jax.random.split(key, 4)
            z_random = jax.random.normal(kz, (B, nz_), jnp.float32)

            # latent_augmented_sampling: query / pos / negatives with device-side
            # rejection resampling (lax.while_loop) -- no host sync, fully jittable.
            query = jax.random.normal(kq, (B, nz_), jnp.float32)
            pos = query + jax.random.uniform(kp, (B, nz_), jnp.float32, -rad_, rad_)
            negs = []
            for _ in range(nneg_):
                key, kn = jax.random.split(key)
                neg0 = jax.random.normal(kn, (B, nz_), jnp.float32)

                def _cond(carry):
                    return jnp.min(jnp.abs(carry[1] - query)) < rad_

                def _body(carry):
                    k, _ = carry
                    k, ks = jax.random.split(k)
                    return k, jax.random.normal(ks, (B, nz_), jnp.float32)

                key, neg = jax.lax.while_loop(_cond, _body, (key, neg0))
                negs.append(neg)

            z_conc = jnp.concatenate([z_random, query, pos] + negs, axis=0)
            label_conc = jnp.concatenate([label_one_hot] * (nneg_ + 3), axis=0)

            fake_image = generator_forward(params, z_conc, label_conc)      # NCHW f32
            fake_image1 = fake_image[:B]
            fake_image2 = fake_image[B:]
            image_display = jnp.concatenate(
                [real_image, fake_image1, fake_image2[:B]], axis=2)         # concat along H
            return fake_image, fake_image1, fake_image2, image_display

        self._fwd = jax.jit(_fwd)

    def forward(self, key, real_image, label):
        B = real_image.shape[0]
        fake, fake1, fake2, display = self._fwd(self.params, key, real_image, label)
        # bookkeeping lists from the PyTorch forward (pure Python, shape-derived)
        batch_idx_lists = [list(range(i, fake2.shape[0], B)) for i in range(B)]
        return fake, fake1, fake2, display, batch_idx_lists


# ----------------------------------------------------------------------------------
if __name__ == "__main__":
    key = jax.random.PRNGKey(0)
    kparam, kimg, klab, kfwd = jax.random.split(key, 4)

    # small, shape-consistent configuration
    nz, class_num, d = 16, 4, 8
    B, num_negative, radius = 2, 2, 0.01

    model = DivCoDCGANPallas(nz, class_num, d, num_negative, radius, kparam)

    real_image = jax.random.normal(kimg, (B, 3, 32, 32), jnp.float32)       # NCHW
    label = jax.random.randint(klab, (B,), 0, class_num)

    fake, fake1, fake2, display, idx_lists = model.forward(kfwd, real_image, label)
    jax.block_until_ready((fake, fake1, fake2, display))

    Btot = (num_negative + 3) * B
    assert fake.shape == (Btot, 3, 32, 32), fake.shape
    assert fake1.shape == (B, 3, 32, 32), fake1.shape
    assert fake2.shape == (Btot - B, 3, 32, 32), fake2.shape
    assert display.shape == (B, 3, 3 * 32, 32), display.shape
    assert bool(jnp.all(jnp.isfinite(fake)))
    assert bool(jnp.all(jnp.abs(fake) <= 1.0 + 1e-4))   # tanh output range

    print("KERNEL_OK")
</pallas_src>

<mosaic_0001>
module attributes {stable_mosaic.version = 11 : i64} {
  func.func @_matmul_stats_kernel(%arg0: i32, %arg1: memref<16x16xbf16, #tpu.memory_space<vmem>>, %arg2: memref<16x256xbf16, #tpu.memory_space<vmem>>, %arg3: memref<16x256xf32, #tpu.memory_space<vmem>>, %arg4: memref<1x256xf32, #tpu.memory_space<vmem>>, %arg5: memref<1x256xf32, #tpu.memory_space<vmem>>) attributes {dimension_semantics = [#tpu.dimension_semantics<arbitrary>], iteration_bounds = array<i64: 1>, scalar_prefetch = 0 : i64, scratch_operands = 0 : i64, tpu.core_type = #tpu.core_type<tc>, window_params = [{transform_indices = @transform_0, window_bounds = array<i64: 16, 16>}, {pipeline_mode = #tpu.pipeline_mode<synchronous>, transform_indices = @transform_1, window_bounds = array<i64: 16, 256>}, {transform_indices = @transform_2, window_bounds = array<i64: 16, 256>}, {pipeline_mode = #tpu.pipeline_mode<synchronous>, transform_indices = @transform_3, window_bounds = array<i64: 1, 256>}, {pipeline_mode = #tpu.pipeline_mode<synchronous>, transform_indices = @transform_4, window_bounds = array<i64: 1, 256>}]} {
    %c0 = arith.constant 0 : index
    %c0_0 = arith.constant 0 : index
    %0 = vector.load %arg1[%c0, %c0_0] : memref<16x16xbf16, #tpu.memory_space<vmem>>, vector<16x16xbf16>
    %c0_1 = arith.constant 0 : index
    %c0_2 = arith.constant 0 : index
    %1 = vector.load %arg2[%c0_1, %c0_2] : memref<16x256xbf16, #tpu.memory_space<vmem>>, vector<16x256xbf16>
    %cst = arith.constant dense<0.000000e+00> : vector<16x256xf32>
    %2 = tpu.matmul %0, %1, %cst {dimension_numbers = #tpu.dot_dimension_numbers<[1], [0], [0], [1], [0, 0, 1, 1], [], []>} : vector<16x16xbf16>, vector<16x256xbf16>, vector<16x256xf32> -> vector<16x256xf32>
    %c0_3 = arith.constant 0 : index
    %c0_4 = arith.constant 0 : index
    %3 = vector.load %arg3[%c0_3, %c0_4] : memref<16x256xf32, #tpu.memory_space<vmem>>, vector<16x256xf32>
    tpu.vector_store %arg3[%c0_3, %c0_4], %2 {strides = array<i32>} : memref<16x256xf32, #tpu.memory_space<vmem>>, vector<16x256xf32>,
    %c0_i32 = arith.constant 0 : i32
    %4 = arith.cmpi eq, %arg0, %c0_i32 : i32
    %5 = arith.extui %4 : i1 to i32
    %c0_i32_5 = arith.constant 0 : i32
    %6 = arith.cmpi ne, %5, %c0_i32_5 : i32
    scf.if %6 {
      %cst_16 = arith.constant 0.000000e+00 : f32
      %18 = vector.broadcast %cst_16 : f32 to vector<1x256xf32>
      %c0_17 = arith.constant 0 : index
      %c0_18 = arith.constant 0 : index
      %19 = vector.load %arg4[%c0_17, %c0_18] : memref<1x256xf32, #tpu.memory_space<vmem>>, vector<1x256xf32>
      tpu.vector_store %arg4[%c0_17, %c0_18], %18 {strides = array<i32>} : memref<1x256xf32, #tpu.memory_space<vmem>>, vector<1x256xf32>,
      %cst_19 = arith.constant 0.000000e+00 : f32
      %20 = vector.broadcast %cst_19 : f32 to vector<1x256xf32>
      %c0_20 = arith.constant 0 : index
      %c0_21 = arith.constant 0 : index
      %21 = vector.load %arg5[%c0_20, %c0_21] : memref<1x256xf32, #tpu.memory_space<vmem>>, vector<1x256xf32>
      tpu.vector_store %arg5[%c0_20, %c0_21], %20 {strides = array<i32>} : memref<1x256xf32, #tpu.memory_space<vmem>>, vector<1x256xf32>,
    } else {
    }
    %c0_6 = arith.constant 0 : index
    %c0_7 = arith.constant 0 : index
    %7 = vector.load %arg4[%c0_6, %c0_7] : memref<1x256xf32, #tpu.memory_space<vmem>>, vector<1x256xf32>
    %cst_8 = arith.constant dense<0.000000e+00> : vector<256xf32>
    %8 = vector.multi_reduction <add>, %2, %cst_8 [0] : vector<16x256xf32> to vector<256xf32>
    %9 = vector.shape_cast %8 : vector<256xf32> to vector<1x256xf32>
    %10 = arith.addf %7, %9 : vector<1x256xf32>
    %c0_9 = arith.constant 0 : index
    %c0_10 = arith.constant 0 : index
    %11 = vector.load %arg4[%c0_9, %c0_10] : memref<1x256xf32, #tpu.memory_space<vmem>>, vector<1x256xf32>
    tpu.vector_store %arg4[%c0_9, %c0_10], %10 {strides = array<i32>} : memref<1x256xf32, #tpu.memory_space<vmem>>, vector<1x256xf32>,
    %c0_11 = arith.constant 0 : index
    %c0_12 = arith.constant 0 : index
    %12 = vector.load %arg5[%c0_11, %c0_12] : memref<1x256xf32, #tpu.memory_space<vmem>>, vector<1x256xf32>
    %13 = arith.mulf %2, %2 : vector<16x256xf32>
    %cst_13 = arith.constant dense<0.000000e+00> : vector<256xf32>
    %14 = vector.multi_reduction <add>, %13, %cst_13 [0] : vector<16x256xf32> to vector<256xf32>
    %15 = vector.shape_cast %14 : vector<256xf32> to vector<1x256xf32>
    %16 = arith.addf %12, %15 : vector<1x256xf32>
    %c0_14 = arith.constant 0 : index
    %c0_15 = arith.constant 0 : index
    %17 = vector.load %arg5[%c0_14, %c0_15] : memref<1x256xf32, #tpu.memory_space<vmem>>, vector<1x256xf32>
    tpu.vector_store %arg5[%c0_14, %c0_15], %16 {strides = array<i32>} : memref<1x256xf32, #tpu.memory_space<vmem>>, vector<1x256xf32>,
    return
  }
  func.func @transform_0(%arg0: i32) -> (i32, i32) {
    %c0_i32 = arith.constant 0 : i32
    %c0_i32_0 = arith.constant 0 : i32
    return %arg0, %c0_i32 : i32, i32
  }
  func.func @transform_1(%arg0: i32) -> (i32, i32) {
    %c0_i32 = arith.constant 0 : i32
    %c0_i32_0 = arith.constant 0 : i32
    %c0_i32_1 = arith.constant 0 : i32
    return %c0_i32, %c0_i32_0 : i32, i32
  }
  func.func @transform_2(%arg0: i32) -> (i32, i32) {
    %c0_i32 = arith.constant 0 : i32
    %c0_i32_0 = arith.constant 0 : i32
    return %arg0, %c0_i32 : i32, i32
  }
  func.func @transform_3(%arg0: i32) -> (i32, i32) {
    %c0_i32 = arith.constant 0 : i32
    %c0_i32_0 = arith.constant 0 : i32
    %c0_i32_1 = arith.constant 0 : i32
    return %c0_i32, %c0_i32_0 : i32, i32
  }
  func.func @transform_4(%arg0: i32) -> (i32, i32) {
    %c0_i32 = arith.constant 0 : i32
    %c0_i32_0 = arith.constant 0 : i32
    %c0_i32_1 = arith.constant 0 : i32
    return %c0_i32, %c0_i32_0 : i32, i32
  }
}

module attributes {stable_mosaic.version = 11 : i64} {
  func.func @_matmul_stats_kernel(%arg0: i32, %arg1: memref<16x4xbf16, #tpu.memory_space<vmem>>, %arg2: memref<4x256xbf16, #tpu.memory_space<vmem>>, %arg3: memref<16x256xf32, #tpu.memory_space<vmem>>, %arg4: memref<1x256xf32, #tpu.memory_space<vmem>>, %arg5: memref<1x256xf32, #tpu.memory_space<vmem>>) attributes {dimension_semantics = [#tpu.dimension_semantics<arbitrary>], iteration_bounds = array<i64: 1>, scalar_prefetch = 0 : i64, scratch_operands = 0 : i64, tpu.core_type = #tpu.core_type<tc>, window_params = [{transform_indices = @transform_0, window_bounds = array<i64: 16, 4>}, {pipeline_mode = #tpu.pipeline_mode<synchronous>, transform_indices = @transform_1, window_bounds = array<i64: 4, 256>}, {transform_indices = @transform_2, window_bounds = array<i64: 16, 256>}, {pipeline_mode = #tpu.pipeline_mode<synchronous>, transform_indices = @transform_3, window_bounds = array<i64: 1, 256>}, {pipeline_mode = #tpu.pipeline_mode<synchronous>, transform_indices = @transform_4, window_bounds = array<i64: 1, 256>}]} {
    %c0 = arith.constant 0 : index
    %c0_0 = arith.constant 0 : index
    %0 = vector.load %arg1[%c0, %c0_0] : memref<16x4xbf16, #tpu.memory_space<vmem>>, vector<16x4xbf16>
    %c0_1 = arith.constant 0 : index
    %c0_2 = arith.constant 0 : index
    %1 = vector.load %arg2[%c0_1, %c0_2] : memref<4x256xbf16, #tpu.memory_space<vmem>>, vector<4x256xbf16>
    %cst = arith.constant dense<0.000000e+00> : vector<16x256xf32>
    %2 = tpu.matmul %0, %1, %cst {dimension_numbers = #tpu.dot_dimension_numbers<[1], [0], [0], [1], [0, 0, 1, 1], [], []>} : vector<16x4xbf16>, vector<4x256xbf16>, vector<16x256xf32> -> vector<16x256xf32>
    %c0_3 = arith.constant 0 : index
    %c0_4 = arith.constant 0 : index
    %3 = vector.load %arg3[%c0_3, %c0_4] : memref<16x256xf32, #tpu.memory_space<vmem>>, vector<16x256xf32>
    tpu.vector_store %arg3[%c0_3, %c0_4], %2 {strides = array<i32>} : memref<16x256xf32, #tpu.memory_space<vmem>>, vector<16x256xf32>,
    %c0_i32 = arith.constant 0 : i32
    %4 = arith.cmpi eq, %arg0, %c0_i32 : i32
    %5 = arith.extui %4 : i1 to i32
    %c0_i32_5 = arith.constant 0 : i32
    %6 = arith.cmpi ne, %5, %c0_i32_5 : i32
    scf.if %6 {
      %cst_16 = arith.constant 0.000000e+00 : f32
      %18 = vector.broadcast %cst_16 : f32 to vector<1x256xf32>
      %c0_17 = arith.constant 0 : index
      %c0_18 = arith.constant 0 : index
      %19 = vector.load %arg4[%c0_17, %c0_18] : memref<1x256xf32, #tpu.memory_space<vmem>>, vector<1x256xf32>
      tpu.vector_store %arg4[%c0_17, %c0_18], %18 {strides = array<i32>} : memref<1x256xf32, #tpu.memory_space<vmem>>, vector<1x256xf32>,
      %cst_19 = arith.constant 0.000000e+00 : f32
      %20 = vector.broadcast %cst_19 : f32 to vector<1x256xf32>
      %c0_20 = arith.constant 0 : index
      %c0_21 = arith.constant 0 : index
      %21 = vector.load %arg5[%c0_20, %c0_21] : memref<1x256xf32, #tpu.memory_space<vmem>>, vector<1x256xf32>
      tpu.vector_store %arg5[%c0_20, %c0_21], %20 {strides = array<i32>} : memref<1x256xf32, #tpu.memory_space<vmem>>, vector<1x256xf32>,
    } else {
    }
    %c0_6 = arith.constant 0 : index
    %c0_7 = arith.constant 0 : index
    %7 = vector.load %arg4[%c0_6, %c0_7] : memref<1x256xf32, #tpu.memory_space<vmem>>, vector<1x256xf32>
    %cst_8 = arith.constant dense<0.000000e+00> : vector<256xf32>
    %8 = vector.multi_reduction <add>, %2, %cst_8 [0] : vector<16x256xf32> to vector<256xf32>
    %9 = vector.shape_cast %8 : vector<256xf32> to vector<1x256xf32>
    %10 = arith.addf %7, %9 : vector<1x256xf32>
    %c0_9 = arith.constant 0 : index
    %c0_10 = arith.constant 0 : index
    %11 = vector.load %arg4[%c0_9, %c0_10] : memref<1x256xf32, #tpu.memory_space<vmem>>, vector<1x256xf32>
    tpu.vector_store %arg4[%c0_9, %c0_10], %10 {strides = array<i32>} : memref<1x256xf32, #tpu.memory_space<vmem>>, vector<1x256xf32>,
    %c0_11 = arith.constant 0 : index
    %c0_12 = arith.constant 0 : index
    %12 = vector.load %arg5[%c0_11, %c0_12] : memref<1x256xf32, #tpu.memory_space<vmem>>, vector<1x256xf32>
    %13 = arith.mulf %2, %2 : vector<16x256xf32>
    %cst_13 = arith.constant dense<0.000000e+00> : vector<256xf32>
    %14 = vector.multi_reduction <add>, %13, %cst_13 [0] : vector<16x256xf32> to vector<256xf32>
    %15 = vector.shape_cast %14 : vector<256xf32> to vector<1x256xf32>
    %16 = arith.addf %12, %15 : vector<1x256xf32>
    %c0_14 = arith.constant 0 : index
    %c0_15 = arith.constant 0 : index
    %17 = vector.load %arg5[%c0_14, %c0_15] : memref<1x256xf32, #tpu.memory_space<vmem>>, vector<1x256xf32>
    tpu.vector_store %arg5[%c0_14, %c0_15], %16 {strides = array<i32>} : memref<1x256xf32, #tpu.memory_space<vmem>>, vector<1x256xf32>,
    return
  }
  func.func @transform_0(%arg0: i32) -> (i32, i32) {
    %c0_i32 = arith.constant 0 : i32
    %c0_i32_0 = arith.constant 0 : i32
    return %arg0, %c0_i32 : i32, i32
  }
  func.func @transform_1(%arg0: i32) -> (i32, i32) {
    %c0_i32 = arith.constant 0 : i32
    %c0_i32_0 = arith.constant 0 : i32
    %c0_i32_1 = arith.constant 0 : i32
    return %c0_i32, %c0_i32_0 : i32, i32
  }
  func.func @transform_2(%arg0: i32) -> (i32, i32) {
    %c0_i32 = arith.constant 0 : i32
    %c0_i32_0 = arith.constant 0 : i32
    return %arg0, %c0_i32 : i32, i32
  }
  func.func @transform_3(%arg0: i32) -> (i32, i32) {
    %c0_i32 = arith.constant 0 : i32
    %c0_i32_0 = arith.constant 0 : i32
    %c0_i32_1 = arith.constant 0 : i32
    return %c0_i32, %c0_i32_0 : i32, i32
  }
  func.func @transform_4(%arg0: i32) -> (i32, i32) {
    %c0_i32 = arith.constant 0 : i32
    %c0_i32_0 = arith.constant 0 : i32
    %c0_i32_1 = arith.constant 0 : i32
    return %c0_i32, %c0_i32_0 : i32, i32
  }
}

module attributes {stable_mosaic.version = 11 : i64} {
  func.func @_affine_act_kernel(%arg0: i32, %arg1: memref<16x256xf32, #tpu.memory_space<vmem>>, %arg2: memref<1x256xf32, #tpu.memory_space<vmem>>, %arg3: memref<1x256xf32, #tpu.memory_space<vmem>>, %arg4: memref<16x256xbf16, #tpu.memory_space<vmem>>) attributes {dimension_semantics = [#tpu.dimension_semantics<parallel>], iteration_bounds = array<i64: 1>, scalar_prefetch = 0 : i64, scratch_operands = 0 : i64, tpu.core_type = #tpu.core_type<tc>, window_params = [{transform_indices = @transform_0, window_bounds = array<i64: 16, 256>}, {pipeline_mode = #tpu.pipeline_mode<synchronous>, transform_indices = @transform_1, window_bounds = array<i64: 1, 256>}, {pipeline_mode = #tpu.pipeline_mode<synchronous>, transform_indices = @transform_2, window_bounds = array<i64: 1, 256>}, {transform_indices = @transform_3, window_bounds = array<i64: 16, 256>}]} {
    %c0 = arith.constant 0 : index
    %c0_0 = arith.constant 0 : index
    %0 = vector.load %arg1[%c0, %c0_0] : memref<16x256xf32, #tpu.memory_space<vmem>>, vector<16x256xf32>
    %c0_1 = arith.constant 0 : index
    %c0_2 = arith.constant 0 : index
    %1 = vector.load %arg2[%c0_1, %c0_2] : memref<1x256xf32, #tpu.memory_space<vmem>>, vector<1x256xf32>
    %2 = vector.broadcast %1 : vector<1x256xf32> to vector<16x256xf32>
    %3 = arith.mulf %0, %2 : vector<16x256xf32>
    %c0_3 = arith.constant 0 : index
    %c0_4 = arith.constant 0 : index
    %4 = vector.load %arg3[%c0_3, %c0_4] : memref<1x256xf32, #tpu.memory_space<vmem>>, vector<1x256xf32>
    %5 = vector.broadcast %4 : vector<1x256xf32> to vector<16x256xf32>
    %6 = arith.addf %3, %5 : vector<16x256xf32>
    %cst = arith.constant 0.000000e+00 : f32
    %7 = vector.broadcast %cst : f32 to vector<16x256xf32>
    %8 = arith.maximumf %6, %7 : vector<16x256xf32>
    %9 = arith.truncf %8 : vector<16x256xf32> to vector<16x256xbf16>
    %c0_5 = arith.constant 0 : index
    %c0_6 = arith.constant 0 : index
    %10 = vector.load %arg4[%c0_5, %c0_6] : memref<16x256xbf16, #tpu.memory_space<vmem>>, vector<16x256xbf16>
    tpu.vector_store %arg4[%c0_5, %c0_6], %9 {strides = array<i32>} : memref<16x256xbf16, #tpu.memory_space<vmem>>, vector<16x256xbf16>,
    return
  }
  func.func @transform_0(%arg0: i32) -> (i32, i32) {
    %c0_i32 = arith.constant 0 : i32
    %c0_i32_0 = arith.constant 0 : i32
    return %arg0, %c0_i32 : i32, i32
  }
  func.func @transform_1(%arg0: i32) -> (i32, i32) {
    %c0_i32 = arith.constant 0 : i32
    %c0_i32_0 = arith.constant 0 : i32
    %c0_i32_1 = arith.constant 0 : i32
    return %c0_i32, %c0_i32_0 : i32, i32
  }
  func.func @transform_2(%arg0: i32) -> (i32, i32) {
    %c0_i32 = arith.constant 0 : i32
    %c0_i32_0 = arith.constant 0 : i32
    %c0_i32_1 = arith.constant 0 : i32
    return %c0_i32, %c0_i32_0 : i32, i32
  }
  func.func @transform_3(%arg0: i32) -> (i32, i32) {
    %c0_i32 = arith.constant 0 : i32
    %c0_i32_0 = arith.constant 0 : i32
    return %arg0, %c0_i32 : i32, i32
  }
}

module attributes {stable_mosaic.version = 11 : i64} {
  func.func @_matmul_kernel(%arg0: i32, %arg1: memref<160x32xbf16, #tpu.memory_space<vmem>>, %arg2: memref<32x256xbf16, #tpu.memory_space<vmem>>, %arg3: memref<160x256xf32, #tpu.memory_space<vmem>>) attributes {dimension_semantics = [#tpu.dimension_semantics<parallel>], iteration_bounds = array<i64: 1>, scalar_prefetch = 0 : i64, scratch_operands = 0 : i64, tpu.core_type = #tpu.core_type<tc>, window_params = [{transform_indices = @transform_0, window_bounds = array<i64: 160, 32>}, {pipeline_mode = #tpu.pipeline_mode<synchronous>, transform_indices = @transform_1, window_bounds = array<i64: 32, 256>}, {transform_indices = @transform_2, window_bounds = array<i64: 160, 256>}]} {
    %c0 = arith.constant 0 : index
    %c0_0 = arith.constant 0 : index
    %0 = vector.load %arg1[%c0, %c0_0] : memref<160x32xbf16, #tpu.memory_space<vmem>>, vector<160x32xbf16>
    %c0_1 = arith.constant 0 : index
    %c0_2 = arith.constant 0 : index
    %1 = vector.load %arg2[%c0_1, %c0_2] : memref<32x256xbf16, #tpu.memory_space<vmem>>, vector<32x256xbf16>
    %cst = arith.constant dense<0.000000e+00> : vector<160x256xf32>
    %2 = tpu.matmul %0, %1, %cst {dimension_numbers = #tpu.dot_dimension_numbers<[1], [0], [0], [1], [0, 0, 1, 1], [], []>} : vector<160x32xbf16>, vector<32x256xbf16>, vector<160x256xf32> -> vector<160x256xf32>
    %c0_3 = arith.constant 0 : index
    %c0_4 = arith.constant 0 : index
    %3 = vector.load %arg3[%c0_3, %c0_4] : memref<160x256xf32, #tpu.memory_space<vmem>>, vector<160x256xf32>
    tpu.vector_store %arg3[%c0_3, %c0_4], %2 {strides = array<i32>} : memref<160x256xf32, #tpu.memory_space<vmem>>, vector<160x256xf32>,
    return
  }
  func.func @transform_0(%arg0: i32) -> (i32, i32) {
    %c0_i32 = arith.constant 0 : i32
    %c0_i32_0 = arith.constant 0 : i32
    return %arg0, %c0_i32 : i32, i32
  }
  func.func @transform_1(%arg0: i32) -> (i32, i32) {
    %c0_i32 = arith.constant 0 : i32
    %c0_i32_0 = arith.constant 0 : i32
    %c0_i32_1 = arith.constant 0 : i32
    return %c0_i32, %c0_i32_0 : i32, i32
  }
  func.func @transform_2(%arg0: i32) -> (i32, i32) {
    %c0_i32 = arith.constant 0 : i32
    %c0_i32_0 = arith.constant 0 : i32
    return %arg0, %c0_i32 : i32, i32
  }
}

module attributes {stable_mosaic.version = 11 : i64} {
  func.func @_colstats_kernel(%arg0: i32, %arg1: memref<16x1024xf32, #tpu.memory_space<vmem>>, %arg2: memref<1x1024xf32, #tpu.memory_space<vmem>>, %arg3: memref<1x1024xf32, #tpu.memory_space<vmem>>) attributes {dimension_semantics = [#tpu.dimension_semantics<arbitrary>], iteration_bounds = array<i64: 1>, scalar_prefetch = 0 : i64, scratch_operands = 0 : i64, tpu.core_type = #tpu.core_type<tc>, window_params = [{transform_indices = @transform_0, window_bounds = array<i64: 16, 1024>}, {pipeline_mode = #tpu.pipeline_mode<synchronous>, transform_indices = @transform_1, window_bounds = array<i64: 1, 1024>}, {pipeline_mode = #tpu.pipeline_mode<synchronous>, transform_indices = @transform_2, window_bounds = array<i64: 1, 1024>}]} {
    %c0 = arith.constant 0 : index
    %c0_0 = arith.constant 0 : index
    %0 = vector.load %arg1[%c0, %c0_0] : memref<16x1024xf32, #tpu.memory_space<vmem>>, vector<16x1024xf32>
    %c0_i32 = arith.constant 0 : i32
    %1 = arith.cmpi eq, %arg0, %c0_i32 : i32
    %2 = arith.extui %1 : i1 to i32
    %c0_i32_1 = arith.constant 0 : i32
    %3 = arith.cmpi ne, %2, %c0_i32_1 : i32
    scf.if %3 {
      %cst_11 = arith.constant 0.000000e+00 : f32
      %15 = vector.broadcast %cst_11 : f32 to vector<1x1024xf32>
      %c0_12 = arith.constant 0 : index
      %c0_13 = arith.constant 0 : index
      %16 = vector.load %arg2[%c0_12, %c0_13] : memref<1x1024xf32, #tpu.memory_space<vmem>>, vector<1x1024xf32>
      tpu.vector_store %arg2[%c0_12, %c0_13], %15 {strides = array<i32>} : memref<1x1024xf32, #tpu.memory_space<vmem>>, vector<1x1024xf32>,
      %cst_14 = arith.constant 0.000000e+00 : f32
      %17 = vector.broadcast %cst_14 : f32 to vector<1x1024xf32>
      %c0_15 = arith.constant 0 : index
      %c0_16 = arith.constant 0 : index
      %18 = vector.load %arg3[%c0_15, %c0_16] : memref<1x1024xf32, #tpu.memory_space<vmem>>, vector<1x1024xf32>
      tpu.vector_store %arg3[%c0_15, %c0_16], %17 {strides = array<i32>} : memref<1x1024xf32, #tpu.memory_space<vmem>>, vector<1x1024xf32>,
    } else {
    }
    %c0_2 = arith.constant 0 : index
    %c0_3 = arith.constant 0 : index
    %4 = vector.load %arg2[%c0_2, %c0_3] : memref<1x1024xf32, #tpu.memory_space<vmem>>, vector<1x1024xf32>
    %cst = arith.constant dense<0.000000e+00> : vector<1024xf32>
    %5 = vector.multi_reduction <add>, %0, %cst [0] : vector<16x1024xf32> to vector<1024xf32>
    %6 = vector.shape_cast %5 : vector<1024xf32> to vector<1x1024xf32>
    %7 = arith.addf %4, %6 : vector<1x1024xf32>
    %c0_4 = arith.constant 0 : index
    %c0_5 = arith.constant 0 : index
    %8 = vector.load %arg2[%c0_4, %c0_5] : memref<1x1024xf32, #tpu.memory_space<vmem>>, vector<1x1024xf32>
    tpu.vector_store %arg2[%c0_4, %c0_5], %7 {strides = array<i32>} : memref<1x1024xf32, #tpu.memory_space<vmem>>, vector<1x1024xf32>,
    %c0_6 = arith.constant 0 : index
    %c0_7 = arith.constant 0 : index
    %9 = vector.load %arg3[%c0_6, %c0_7] : memref<1x1024xf32, #tpu.memory_space<vmem>>, vector<1x1024xf32>
    %10 = arith.mulf %0, %0 : vector<16x1024xf32>
    %cst_8 = arith.constant dense<0.000000e+00> : vector<1024xf32>
    %11 = vector.multi_reduction <add>, %10, %cst_8 [0] : vector<16x1024xf32> to vector<1024xf32>
    %12 = vector.shape_cast %11 : vector<1024xf32> to vector<1x1024xf32>
    %13 = arith.addf %9, %12 : vector<1x1024xf32>
    %c0_9 = arith.constant 0 : index
    %c0_10 = arith.constant 0 : index
    %14 = vector.load %arg3[%c0_9, %c0_10] : memref<1x1024xf32, #tpu.memory_space<vmem>>, vector<1x1024xf32>
    tpu.vector_store %arg3[%c0_9, %c0_10], %13 {strides = array<i32>} : memref<1x1024xf32, #tpu.memory_space<vmem>>, vector<1x1024xf32>,
    return
  }
  func.func @transform_0(%arg0: i32) -> (i32, i32) {
    %c0_i32 = arith.constant 0 : i32
    %c0_i32_0 = arith.constant 0 : i32
    return %arg0, %c0_i32 : i32, i32
  }
  func.func @transform_1(%arg0: i32) -> (i32, i32) {
    %c0_i32 = arith.constant 0 : i32
    %c0_i32_0 = arith.constant 0 : i32
    %c0_i32_1 = arith.constant 0 : i32
    return %c0_i32, %c0_i32_0 : i32, i32
  }
  func.func @transform_2(%arg0: i32) -> (i32, i32) {
    %c0_i32 = arith.constant 0 : i32
    %c0_i32_0 = arith.constant 0 : i32
    %c0_i32_1 = arith.constant 0 : i32
    return %c0_i32, %c0_i32_0 : i32, i32
  }
}

module attributes {stable_mosaic.version = 11 : i64} {
  func.func @_affine_act_kernel(%arg0: i32, %arg1: memref<16x1024xf32, #tpu.memory_space<vmem>>, %arg2: memref<1x1024xf32, #tpu.memory_space<vmem>>, %arg3: memref<1x1024xf32, #tpu.memory_space<vmem>>, %arg4: memref<16x1024xbf16, #tpu.memory_space<vmem>>) attributes {dimension_semantics = [#tpu.dimension_semantics<parallel>], iteration_bounds = array<i64: 1>, scalar_prefetch = 0 : i64, scratch_operands = 0 : i64, tpu.core_type = #tpu.core_type<tc>, window_params = [{transform_indices = @transform_0, window_bounds = array<i64: 16, 1024>}, {pipeline_mode = #tpu.pipeline_mode<synchronous>, transform_indices = @transform_1, window_bounds = array<i64: 1, 1024>}, {pipeline_mode = #tpu.pipeline_mode<synchronous>, transform_indices = @transform_2, window_bounds = array<i64: 1, 1024>}, {transform_indices = @transform_3, window_bounds = array<i64: 16, 1024>}]} {
    %c0 = arith.constant 0 : index
    %c0_0 = arith.constant 0 : index
    %0 = vector.load %arg1[%c0, %c0_0] : memref<16x1024xf32, #tpu.memory_space<vmem>>, vector<16x1024xf32>
    %c0_1 = arith.constant 0 : index
    %c0_2 = arith.constant 0 : index
    %1 = vector.load %arg2[%c0_1, %c0_2] : memref<1x1024xf32, #tpu.memory_space<vmem>>, vector<1x1024xf32>
    %2 = vector.broadcast %1 : vector<1x1024xf32> to vector<16x1024xf32>
    %3 = arith.mulf %0, %2 : vector<16x1024xf32>
    %c0_3 = arith.constant 0 : index
    %c0_4 = arith.constant 0 : index
    %4 = vector.load %arg3[%c0_3, %c0_4] : memref<1x1024xf32, #tpu.memory_space<vmem>>, vector<1x1024xf32>
    %5 = vector.broadcast %4 : vector<1x1024xf32> to vector<16x1024xf32>
    %6 = arith.addf %3, %5 : vector<16x1024xf32>
    %cst = arith.constant 0.000000e+00 : f32
    %7 = vector.broadcast %cst : f32 to vector<16x1024xf32>
    %8 = arith.maximumf %6, %7 : vector<16x1024xf32>
    %9 = arith.truncf %8 : vector<16x1024xf32> to vector<16x1024xbf16>
    %c0_5 = arith.constant 0 : index
    %c0_6 = arith.constant 0 : index
    %10 = vector.load %arg4[%c0_5, %c0_6] : memref<16x1024xbf16, #tpu.memory_space<vmem>>, vector<16x1024xbf16>
    tpu.vector_store %arg4[%c0_5, %c0_6], %9 {strides = array<i32>} : memref<16x1024xbf16, #tpu.memory_space<vmem>>, vector<16x1024xbf16>,
    return
  }
  func.func @transform_0(%arg0: i32) -> (i32, i32) {
    %c0_i32 = arith.constant 0 : i32
    %c0_i32_0 = arith.constant 0 : i32
    return %arg0, %c0_i32 : i32, i32
  }
  func.func @transform_1(%arg0: i32) -> (i32, i32) {
    %c0_i32 = arith.constant 0 : i32
    %c0_i32_0 = arith.constant 0 : i32
    %c0_i32_1 = arith.constant 0 : i32
    return %c0_i32, %c0_i32_0 : i32, i32
  }
  func.func @transform_2(%arg0: i32) -> (i32, i32) {
    %c0_i32 = arith.constant 0 : i32
    %c0_i32_0 = arith.constant 0 : i32
    %c0_i32_1 = arith.constant 0 : i32
    return %c0_i32, %c0_i32_0 : i32, i32
  }
  func.func @transform_3(%arg0: i32) -> (i32, i32) {
    %c0_i32 = arith.constant 0 : i32
    %c0_i32_0 = arith.constant 0 : i32
    return %arg0, %c0_i32 : i32, i32
  }
}

module attributes {stable_mosaic.version = 11 : i64} {
  func.func @_matmul_kernel(%arg0: i32, %arg1: memref<640x16xbf16, #tpu.memory_space<vmem>>, %arg2: memref<16x128xbf16, #tpu.memory_space<vmem>>, %arg3: memref<640x128xf32, #tpu.memory_space<vmem>>) attributes {dimension_semantics = [#tpu.dimension_semantics<parallel>], iteration_bounds = array<i64: 1>, scalar_prefetch = 0 : i64, scratch_operands = 0 : i64, tpu.core_type = #tpu.core_type<tc>, window_params = [{transform_indices = @transform_0, window_bounds = array<i64: 640, 16>}, {pipeline_mode = #tpu.pipeline_mode<synchronous>, transform_indices = @transform_1, window_bounds = array<i64: 16, 128>}, {transform_indices = @transform_2, window_bounds = array<i64: 640, 128>}]} {
    %c0 = arith.constant 0 : index
    %c0_0 = arith.constant 0 : index
    %0 = vector.load %arg1[%c0, %c0_0] : memref<640x16xbf16, #tpu.memory_space<vmem>>, vector<640x16xbf16>
    %c0_1 = arith.constant 0 : index
    %c0_2 = arith.constant 0 : index
    %1 = vector.load %arg2[%c0_1, %c0_2] : memref<16x128xbf16, #tpu.memory_space<vmem>>, vector<16x128xbf16>
    %cst = arith.constant dense<0.000000e+00> : vector<640x128xf32>
    %2 = tpu.matmul %0, %1, %cst {dimension_numbers = #tpu.dot_dimension_numbers<[1], [0], [0], [1], [0, 0, 1, 1], [], []>} : vector<640x16xbf16>, vector<16x128xbf16>, vector<640x128xf32> -> vector<640x128xf32>
    %c0_3 = arith.constant 0 : index
    %c0_4 = arith.constant 0 : index
    %3 = vector.load %arg3[%c0_3, %c0_4] : memref<640x128xf32, #tpu.memory_space<vmem>>, vector<640x128xf32>
    tpu.vector_store %arg3[%c0_3, %c0_4], %2 {strides = array<i32>} : memref<640x128xf32, #tpu.memory_space<vmem>>, vector<640x128xf32>,
    return
  }
  func.func @transform_0(%arg0: i32) -> (i32, i32) {
    %c0_i32 = arith.constant 0 : i32
    %c0_i32_0 = arith.constant 0 : i32
    return %arg0, %c0_i32 : i32, i32
  }
  func.func @transform_1(%arg0: i32) -> (i32, i32) {
    %c0_i32 = arith.constant 0 : i32
    %c0_i32_0 = arith.constant 0 : i32
    %c0_i32_1 = arith.constant 0 : i32
    return %c0_i32, %c0_i32_0 : i32, i32
  }
  func.func @transform_2(%arg0: i32) -> (i32, i32) {
    %c0_i32 = arith.constant 0 : i32
    %c0_i32_0 = arith.constant 0 : i32
    return %arg0, %c0_i32 : i32, i32
  }
}

module attributes {stable_mosaic.version = 11 : i64} {
  func.func @_colstats_kernel(%arg0: i32, %arg1: memref<16x2048xf32, #tpu.memory_space<vmem>>, %arg2: memref<1x2048xf32, #tpu.memory_space<vmem>>, %arg3: memref<1x2048xf32, #tpu.memory_space<vmem>>) attributes {dimension_semantics = [#tpu.dimension_semantics<arbitrary>], iteration_bounds = array<i64: 1>, scalar_prefetch = 0 : i64, scratch_operands = 0 : i64, tpu.core_type = #tpu.core_type<tc>, window_params = [{transform_indices = @transform_0, window_bounds = array<i64: 16, 2048>}, {pipeline_mode = #tpu.pipeline_mode<synchronous>, transform_indices = @transform_1, window_bounds = array<i64: 1, 2048>}, {pipeline_mode = #tpu.pipeline_mode<synchronous>, transform_indices = @transform_2, window_bounds = array<i64: 1, 2048>}]} {
    %c0 = arith.constant 0 : index
    %c0_0 = arith.constant 0 : index
    %0 = vector.load %arg1[%c0, %c0_0] : memref<16x2048xf32, #tpu.memory_space<vmem>>, vector<16x2048xf32>
    %c0_i32 = arith.constant 0 : i32
    %1 = arith.cmpi eq, %arg0, %c0_i32 : i32
    %2 = arith.extui %1 : i1 to i32
    %c0_i32_1 = arith.constant 0 : i32
    %3 = arith.cmpi ne, %2, %c0_i32_1 : i32
    scf.if %3 {
      %cst_11 = arith.constant 0.000000e+00 : f32
      %15 = vector.broadcast %cst_11 : f32 to vector<1x2048xf32>
      %c0_12 = arith.constant 0 : index
      %c0_13 = arith.constant 0 : index
      %16 = vector.load %arg2[%c0_12, %c0_13] : memref<1x2048xf32, #tpu.memory_space<vmem>>, vector<1x2048xf32>
      tpu.vector_store %arg2[%c0_12, %c0_13], %15 {strides = array<i32>} : memref<1x2048xf32, #tpu.memory_space<vmem>>, vector<1x2048xf32>,
      %cst_14 = arith.constant 0.000000e+00 : f32
      %17 = vector.broadcast %cst_14 : f32 to vector<1x2048xf32>
      %c0_15 = arith.constant 0 : index
      %c0_16 = arith.constant 0 : index
      %18 = vector.load %arg3[%c0_15, %c0_16] : memref<1x2048xf32, #tpu.memory_space<vmem>>, vector<1x2048xf32>
      tpu.vector_store %arg3[%c0_15, %c0_16], %17 {strides = array<i32>} : memref<1x2048xf32, #tpu.memory_space<vmem>>, vector<1x2048xf32>,
    } else {
    }
    %c0_2 = arith.constant 0 : index
    %c0_3 = arith.constant 0 : index
    %4 = vector.load %arg2[%c0_2, %c0_3] : memref<1x2048xf32, #tpu.memory_space<vmem>>, vector<1x2048xf32>
    %cst = arith.constant dense<0.000000e+00> : vector<2048xf32>
    %5 = vector.multi_reduction <add>, %0, %cst [0] : vector<16x2048xf32> to vector<2048xf32>
    %6 = vector.shape_cast %5 : vector<2048xf32> to vector<1x2048xf32>
    %7 = arith.addf %4, %6 : vector<1x2048xf32>
    %c0_4 = arith.constant 0 : index
    %c0_5 = arith.constant 0 : index
    %8 = vector.load %arg2[%c0_4, %c0_5] : memref<1x2048xf32, #tpu.memory_space<vmem>>, vector<1x2048xf32>
    tpu.vector_store %arg2[%c0_4, %c0_5], %7 {strides = array<i32>} : memref<1x2048xf32, #tpu.memory_space<vmem>>, vector<1x2048xf32>,
    %c0_6 = arith.constant 0 : index
    %c0_7 = arith.constant 0 : index
    %9 = vector.load %arg3[%c0_6, %c0_7] : memref<1x2048xf32, #tpu.memory_space<vmem>>, vector<1x2048xf32>
    %10 = arith.mulf %0, %0 : vector<16x2048xf32>
    %cst_8 = arith.constant dense<0.000000e+00> : vector<2048xf32>
    %11 = vector.multi_reduction <add>, %10, %cst_8 [0] : vector<16x2048xf32> to vector<2048xf32>
    %12 = vector.shape_cast %11 : vector<2048xf32> to vector<1x2048xf32>
    %13 = arith.addf %9, %12 : vector<1x2048xf32>
    %c0_9 = arith.constant 0 : index
    %c0_10 = arith.constant 0 : index
    %14 = vector.load %arg3[%c0_9, %c0_10] : memref<1x2048xf32, #tpu.memory_space<vmem>>, vector<1x2048xf32>
    tpu.vector_store %arg3[%c0_9, %c0_10], %13 {strides = array<i32>} : memref<1x2048xf32, #tpu.memory_space<vmem>>, vector<1x2048xf32>,
    return
  }
  func.func @transform_0(%arg0: i32) -> (i32, i32) {
    %c0_i32 = arith.constant 0 : i32
    %c0_i32_0 = arith.constant 0 : i32
    return %arg0, %c0_i32 : i32, i32
  }
  func.func @transform_1(%arg0: i32) -> (i32, i32) {
    %c0_i32 = arith.constant 0 : i32
    %c0_i32_0 = arith.constant 0 : i32
    %c0_i32_1 = arith.constant 0 : i32
    return %c0_i32, %c0_i32_0 : i32, i32
  }
  func.func @transform_2(%arg0: i32) -> (i32, i32) {
    %c0_i32 = arith.constant 0 : i32
    %c0_i32_0 = arith.constant 0 : i32
    %c0_i32_1 = arith.constant 0 : i32
    return %c0_i32, %c0_i32_0 : i32, i32
  }
}

module attributes {stable_mosaic.version = 11 : i64} {
  func.func @_affine_act_kernel(%arg0: i32, %arg1: memref<16x2048xf32, #tpu.memory_space<vmem>>, %arg2: memref<1x2048xf32, #tpu.memory_space<vmem>>, %arg3: memref<1x2048xf32, #tpu.memory_space<vmem>>, %arg4: memref<16x2048xbf16, #tpu.memory_space<vmem>>) attributes {dimension_semantics = [#tpu.dimension_semantics<parallel>], iteration_bounds = array<i64: 1>, scalar_prefetch = 0 : i64, scratch_operands = 0 : i64, tpu.core_type = #tpu.core_type<tc>, window_params = [{transform_indices = @transform_0, window_bounds = array<i64: 16, 2048>}, {pipeline_mode = #tpu.pipeline_mode<synchronous>, transform_indices = @transform_1, window_bounds = array<i64: 1, 2048>}, {pipeline_mode = #tpu.pipeline_mode<synchronous>, transform_indices = @transform_2, window_bounds = array<i64: 1, 2048>}, {transform_indices = @transform_3, window_bounds = array<i64: 16, 2048>}]} {
    %c0 = arith.constant 0 : index
    %c0_0 = arith.constant 0 : index
    %0 = vector.load %arg1[%c0, %c0_0] : memref<16x2048xf32, #tpu.memory_space<vmem>>, vector<16x2048xf32>
    %c0_1 = arith.constant 0 : index
    %c0_2 = arith.constant 0 : index
    %1 = vector.load %arg2[%c0_1, %c0_2] : memref<1x2048xf32, #tpu.memory_space<vmem>>, vector<1x2048xf32>
    %2 = vector.broadcast %1 : vector<1x2048xf32> to vector<16x2048xf32>
    %3 = arith.mulf %0, %2 : vector<16x2048xf32>
    %c0_3 = arith.constant 0 : index
    %c0_4 = arith.constant 0 : index
    %4 = vector.load %arg3[%c0_3, %c0_4] : memref<1x2048xf32, #tpu.memory_space<vmem>>, vector<1x2048xf32>
    %5 = vector.broadcast %4 : vector<1x2048xf32> to vector<16x2048xf32>
    %6 = arith.addf %3, %5 : vector<16x2048xf32>
    %cst = arith.constant 0.000000e+00 : f32
    %7 = vector.broadcast %cst : f32 to vector<16x2048xf32>
    %8 = arith.maximumf %6, %7 : vector<16x2048xf32>
    %9 = arith.truncf %8 : vector<16x2048xf32> to vector<16x2048xbf16>
    %c0_5 = arith.constant 0 : index
    %c0_6 = arith.constant 0 : index
    %10 = vector.load %arg4[%c0_5, %c0_6] : memref<16x2048xbf16, #tpu.memory_space<vmem>>, vector<16x2048xbf16>
    tpu.vector_store %arg4[%c0_5, %c0_6], %9 {strides = array<i32>} : memref<16x2048xbf16, #tpu.memory_space<vmem>>, vector<16x2048xbf16>,
    return
  }
  func.func @transform_0(%arg0: i32) -> (i32, i32) {
    %c0_i32 = arith.constant 0 : i32
    %c0_i32_0 = arith.constant 0 : i32
    return %arg0, %c0_i32 : i32, i32
  }
  func.func @transform_1(%arg0: i32) -> (i32, i32) {
    %c0_i32 = arith.constant 0 : i32
    %c0_i32_0 = arith.constant 0 : i32
    %c0_i32_1 = arith.constant 0 : i32
    return %c0_i32, %c0_i32_0 : i32, i32
  }
  func.func @transform_2(%arg0: i32) -> (i32, i32) {
    %c0_i32 = arith.constant 0 : i32
    %c0_i32_0 = arith.constant 0 : i32
    %c0_i32_1 = arith.constant 0 : i32
    return %c0_i32, %c0_i32_0 : i32, i32
  }
  func.func @transform_3(%arg0: i32) -> (i32, i32) {
    %c0_i32 = arith.constant 0 : i32
    %c0_i32_0 = arith.constant 0 : i32
    return %arg0, %c0_i32 : i32, i32
  }
}

module attributes {stable_mosaic.version = 11 : i64} {
  func.func @_matmul_kernel(%arg0: i32, %arg1: memref<512x8xbf16, #tpu.memory_space<vmem>>, %arg2: memref<8x48xbf16, #tpu.memory_space<vmem>>, %arg3: memref<512x48xf32, #tpu.memory_space<vmem>>) attributes {dimension_semantics = [#tpu.dimension_semantics<parallel>], iteration_bounds = array<i64: 5>, scalar_prefetch = 0 : i64, scratch_operands = 0 : i64, tpu.core_type = #tpu.core_type<tc>, window_params = [{transform_indices = @transform_0, window_bounds = array<i64: 512, 8>}, {pipeline_mode = #tpu.pipeline_mode<synchronous>, transform_indices = @transform_1, window_bounds = array<i64: 8, 48>}, {transform_indices = @transform_2, window_bounds = array<i64: 512, 48>}]} {
    %c0 = arith.constant 0 : index
    %c0_0 = arith.constant 0 : index
    %0 = vector.load %arg1[%c0, %c0_0] : memref<512x8xbf16, #tpu.memory_space<vmem>>, vector<512x8xbf16>
    %c0_1 = arith.constant 0 : index
    %c0_2 = arith.constant 0 : index
    %1 = vector.load %arg2[%c0_1, %c0_2] : memref<8x48xbf16, #tpu.memory_space<vmem>>, vector<8x48xbf16>
    %cst = arith.constant dense<0.000000e+00> : vector<512x48xf32>
    %2 = tpu.matmul %0, %1, %cst {dimension_numbers = #tpu.dot_dimension_numbers<[1], [0], [0], [1], [0, 0, 1, 1], [], []>} : vector<512x8xbf16>, vector<8x48xbf16>, vector<512x48xf32> -> vector<512x48xf32>
    %c0_3 = arith.constant 0 : index
    %c0_4 = arith.constant 0 : index
    %3 = vector.load %arg3[%c0_3, %c0_4] : memref<512x48xf32, #tpu.memory_space<vmem>>, vector<512x48xf32>
    tpu.vector_store %arg3[%c0_3, %c0_4], %2 {strides = array<i32>} : memref<512x48xf32, #tpu.memory_space<vmem>>, vector<512x48xf32>,
    return
  }
  func.func @transform_0(%arg0: i32) -> (i32, i32) {
    %c0_i32 = arith.constant 0 : i32
    %c0_i32_0 = arith.constant 0 : i32
    return %arg0, %c0_i32 : i32, i32
  }
  func.func @transform_1(%arg0: i32) -> (i32, i32) {
    %c0_i32 = arith.constant 0 : i32
    %c0_i32_0 = arith.constant 0 : i32
    %c0_i32_1 = arith.constant 0 : i32
    return %c0_i32, %c0_i32_0 : i32, i32
  }
  func.func @transform_2(%arg0: i32) -> (i32, i32) {
    %c0_i32 = arith.constant 0 : i32
    %c0_i32_0 = arith.constant 0 : i32
    return %arg0, %c0_i32 : i32, i32
  }
}

module attributes {stable_mosaic.version = 11 : i64} {
  func.func @_affine_act_kernel(%arg0: i32, %arg1: memref<16x3072xf32, #tpu.memory_space<vmem>>, %arg2: memref<1x3072xf32, #tpu.memory_space<vmem>>, %arg3: memref<1x3072xf32, #tpu.memory_space<vmem>>, %arg4: memref<16x3072xf32, #tpu.memory_space<vmem>>) attributes {dimension_semantics = [#tpu.dimension_semantics<parallel>], iteration_bounds = array<i64: 1>, scalar_prefetch = 0 : i64, scratch_operands = 0 : i64, tpu.core_type = #tpu.core_type<tc>, window_params = [{transform_indices = @transform_0, window_bounds = array<i64: 16, 3072>}, {pipeline_mode = #tpu.pipeline_mode<synchronous>, transform_indices = @transform_1, window_bounds = array<i64: 1, 3072>}, {pipeline_mode = #tpu.pipeline_mode<synchronous>, transform_indices = @transform_2, window_bounds = array<i64: 1, 3072>}, {transform_indices = @transform_3, window_bounds = array<i64: 16, 3072>}]} {
    %c0 = arith.constant 0 : index
    %c0_0 = arith.constant 0 : index
    %0 = vector.load %arg1[%c0, %c0_0] : memref<16x3072xf32, #tpu.memory_space<vmem>>, vector<16x3072xf32>
    %c0_1 = arith.constant 0 : index
    %c0_2 = arith.constant 0 : index
    %1 = vector.load %arg2[%c0_1, %c0_2] : memref<1x3072xf32, #tpu.memory_space<vmem>>, vector<1x3072xf32>
    %2 = vector.broadcast %1 : vector<1x3072xf32> to vector<16x3072xf32>
    %3 = arith.mulf %0, %2 : vector<16x3072xf32>
    %c0_3 = arith.constant 0 : index
    %c0_4 = arith.constant 0 : index
    %4 = vector.load %arg3[%c0_3, %c0_4] : memref<1x3072xf32, #tpu.memory_space<vmem>>, vector<1x3072xf32>
    %5 = vector.broadcast %4 : vector<1x3072xf32> to vector<16x3072xf32>
    %6 = arith.addf %3, %5 : vector<16x3072xf32>
    %7 = math.tanh %6 : vector<16x3072xf32>
    %c0_5 = arith.constant 0 : index
    %c0_6 = arith.constant 0 : index
    %8 = vector.load %arg4[%c0_5, %c0_6] : memref<16x3072xf32, #tpu.memory_space<vmem>>, vector<16x3072xf32>
    tpu.vector_store %arg4[%c0_5, %c0_6], %7 {strides = array<i32>} : memref<16x3072xf32, #tpu.memory_space<vmem>>, vector<16x3072xf32>,
    return
  }
  func.func @transform_0(%arg0: i32) -> (i32, i32) {
    %c0_i32 = arith.constant 0 : i32
    %c0_i32_0 = arith.constant 0 : i32
    return %arg0, %c0_i32 : i32, i32
  }
  func.func @transform_1(%arg0: i32) -> (i32, i32) {
    %c0_i32 = arith.constant 0 : i32
    %c0_i32_0 = arith.constant 0 : i32
    %c0_i32_1 = arith.constant 0 : i32
    return %c0_i32, %c0_i32_0 : i32, i32
  }
  func.func @transform_2(%arg0: i32) -> (i32, i32) {
    %c0_i32 = arith.constant 0 : i32
    %c0_i32_0 = arith.constant 0 : i32
    %c0_i32_1 = arith.constant 0 : i32
    return %c0_i32, %c0_i32_0 : i32, i32
  }
  func.func @transform_3(%arg0: i32) -> (i32, i32) {
    %c0_i32 = arith.constant 0 : i32
    %c0_i32_0 = arith.constant 0 : i32
    return %arg0, %c0_i32 : i32, i32
  }
}

</mosaic_0001>

<bundles_post_ra>
// kernel: squeeze.101
= control target key start
LH: loop header
LB: loop body
LE: loop exit
PB: predicated region body
PF: predicated region fallthrough
CT: control target
= control target key end

     0   :  { %s66_s8 = smov 80   ;;  %s67_s9 = smov 48   ;;  %vm7_vm0 = vcmask 130048   ;;  %s117_s0 = inlined_call_operand.vmem [shape: f32[256], index: 0, kind: input, shape index: {}]   ;;  %s118_s1 = inlined_call_operand.vmem [shape: f32[16,16], index: 1, kind: output, shape index: {}]  }
   0x1   :  { %v4_v0 = vld [vmem:[%s117_s0] sm:$0x3]  ;;  %s65_s0 = smov 112   ;;  %s68_s10 = smov 96  }
   0x2   :  { %5 = vst [vmem:[#allocation0] sm:$0x3] %v4_v0  ;;  %s69_s11 = smov 64   ;;  %s70_s12 = smov 32  }
   0x3   :  { %s71_s13 = smov 16  }
   0x9   :  { %v9_v1 = vld [vmem:[#allocation0] sm:$0x3]  }
   0xa   :  { %v21_v2 = vld [vmem:[#allocation0] sm:$0x3]   ;;  %10 = vrot.lane.b32.xlu0 %v9_v1, %s65_s0 }
   0xb   :  { %22 = vrot.lane.b32.xlu1 %v21_v2, %s66_s8  ;;  %v33_v3 = vld [vmem:[#allocation0] sm:$0x3]  }
   0xc   :  { %34 = vrot.lane.b32.xlu2 %v33_v3, %s67_s9  ;;  %v15_v4 = vld [vmem:[#allocation0] sm:$0x3]  }
   0xd   :  { %v27_v5 = vld [vmem:[#allocation0] sm:$0x3]  }
   0xe   :  { %v39_v6 = vld [vmem:[#allocation0] sm:$0x3]  }
   0xf   :  { %v45_v7 = vld [vmem:[#allocation0] sm:$0x3]  }
  0x10   :  { %v6_v8 = vld [vmem:[#allocation0] sm:$0x3]  }
  0x11   :  { %8 = vst.msk [vmem:[%s118_s1] ss:$8 sm:$0x3] %vm7_vm0, %v6_v8  }
  0x12   :  { %16 = vrot.lane.b32.xlu0 %v15_v4, %s68_s10 }
  0x13   :  { %28 = vrot.lane.b32.xlu1 %v27_v5, %s69_s11 }
  0x14   :  { %40 = vrot.lane.b32.xlu2 %v39_v6, %s70_s12 }
  0x1a   :  { %46 = vrot.lane.b32.xlu0 %v45_v7, %s71_s13 }
  0x66   :  { %v35_v9 = vpop.permute.xlu2 %34  }
  0x67   :  { %55 = vst.msk [vmem:[%s118_s1 + $0x5] ss:$8 sm:$0x3] %vm7_vm0, %v35_v9  }
  0x6e   :  { %v41_v10 = vpop.permute.xlu2 %40  }
  0x6f   :  { %56 = vst.msk [vmem:[%s118_s1 + $0x6] ss:$8 sm:$0x3] %vm7_vm0, %v41_v10  }
  0x7c   :  { %v11_v11 = vpop.permute.xlu0 %10  }
  0x7d   :  { %v23_v12 = vpop.permute.xlu1 %22   ;;  %51 = vst.msk [vmem:[%s118_s1 + $0x1] ss:$8 sm:$0x3] %vm7_vm0, %v11_v11  }
  0x7e   :  { %53 = vst.msk [vmem:[%s118_s1 + $0x3] ss:$8 sm:$0x3] %vm7_vm0, %v23_v12  }
  0x84   :  { %v17_v13 = vpop.permute.xlu0 %16  }
  0x85   :  { %v29_v14 = vpop.permute.xlu1 %28   ;;  %52 = vst.msk [vmem:[%s118_s1 + $0x2] ss:$8 sm:$0x3] %vm7_vm0, %v17_v13  }
  0x86   :  { %54 = vst.msk [vmem:[%s118_s1 + $0x4] ss:$8 sm:$0x3] %vm7_vm0, %v29_v14  }
  0x8c   :  { %v47_v15 = vpop.permute.xlu0 %46  }
  0x8d   :  { %57 = vst.msk [vmem:[%s118_s1 + $0x7] ss:$8 sm:$0x3] %vm7_vm0, %v47_v15  }

// kernel: tile.48
= control target key start
LH: loop header
LB: loop body
LE: loop exit
PB: predicated region body
PF: predicated region fallthrough
CT: control target
= control target key end

     0   :  { %s28_s0 = inlined_call_operand.vmem [shape: f32[16], index: 0, kind: input, shape index: {}]   ;;  %s29_s1 = inlined_call_operand.vmem [shape: f32[16,16], index: 1, kind: output, shape index: {}]  }
   0x1   :  { %v4_v0 = vld [vmem:[%s28_s0] ss:$0 sm:$0xff] }
   0x2   :  { %5 = vst [vmem:[%s29_s1] sm:$0xff] %v4_v0 }
   0x3   :  { %8 = vst [vmem:[%s29_s1 + $0x8] sm:$0xff] %v4_v0 }

// kernel: tile.53
= control target key start
LH: loop header
LB: loop body
LE: loop exit
PB: predicated region body
PF: predicated region fallthrough
CT: control target
= control target key end

     0   :  { %s7_s6 = smov 3  ;;  %s21_s9 = smov 3  ;;  %vm4_vm0 = vcmask 130048   ;;  %vm11_vm1 = vcmask 1048448   ;;  %vm18_vm2 = vcmask 917248   ;;  %vm25_vm3 = vcmask 786048   ;;  %s129_s0 = inlined_call_operand.vmem [shape: f32[16,16], index: 0, kind: input, shape index: {}]   ;;  %s130_s1 = inlined_call_operand.vmem [shape: f32[1,256], index: 1, kind: output, shape index: {}]  }
   0x1   :  { %v67_v0 = vld [vmem:[%s129_s0 + $0x7] ss:$8 sm:%s7_s6]   ;;  %s82_s10 = smov 112   ;;  %v69_v1 = vld [vmem:[%s129_s0 + $0x5] ss:$8 sm:%s21_s9]   ;;  %s83_s13 = smov 80  }
   0x2   :  { %9 = vrot.lane.b32.xlu0 %v67_v0, %s82_s10  ;;  %23 = vrot.lane.b32.xlu1 %v69_v1, %s83_s13  ;;  %s14_s14 = smov 3  ;;  %s28_s15 = smov 3  ;;  %vm32_vm4 = vcmask 654848   ;;  %vm39_vm5 = vcmask 523648   ;;  %vm46_vm6 = vcmask 392448   ;;  %vm53_vm7 = vcmask 261248  }
   0x3   :  { %s35_s16 = smov 3  ;;  %v68_v3 = vld [vmem:[%s129_s0 + $0x6] ss:$8 sm:%s14_s14]   ;;  %s84_s21 = smov 48   ;;  %v70_v4 = vld [vmem:[%s129_s0 + $0x4] ss:$8 sm:%s28_s15]  }
   0x4   :  { %v71_v2 = vld [vmem:[%s129_s0 + $0x3] ss:$8 sm:%s35_s16]   ;;  %s42_s24 = smov 3  ;;  %s85_s25 = smov 96  }
   0x5   :  { %37 = vrot.lane.b32.xlu2 %v71_v2, %s84_s21  ;;  %s86_s26 = smov 64   ;;  %s49_s27 = smov 3  ;;  %v72_v5 = vld [vmem:[%s129_s0 + $0x2] ss:$8 sm:%s42_s24]  }
   0x6   :  { %v73_v6 = vld [vmem:[%s129_s0 + $0x1] ss:$8 sm:%s49_s27]   ;;  %s87_s3 = smov 32   ;;  %s88_s4 = smov 16  }
   0x7   :  { %s2_s5 = smov 3 }
   0x8   :  { %v3_v7 = vld [vmem:[%s129_s0] ss:$8 sm:%s2_s5]  }
   0x9   :  { %5 = vst.msk [vmem:[#allocation0] ss:$8 sm:$0x3] %vm4_vm0, %v3_v7  }
   0xa   :  { %16 = vrot.lane.b32.xlu0 %v68_v3, %s85_s25  ;;  %30 = vrot.lane.b32.xlu1 %v70_v4, %s86_s26 }
   0xd   :  { %44 = vrot.lane.b32.xlu2 %v72_v5, %s87_s3 }
  0x12   :  { %51 = vrot.lane.b32.xlu0 %v73_v6, %s88_s4 }
  0x5f   :  { %v38_v8 = vpop.permute.xlu2 %37  }
  0x67   :  { %v45_v9 = vpop.permute.xlu2 %44  }
  0x74   :  { %v10_v10 = vpop.permute.xlu0 %9   ;;  %v24_v11 = vpop.permute.xlu1 %23  }
  0x75   :  { %12 = vst.msk [vmem:[#allocation0] ss:$8 sm:$0x3] %vm11_vm1, %v10_v10  }
  0x7c   :  { %v17_v12 = vpop.permute.xlu0 %16   ;;  %v31_v13 = vpop.permute.xlu1 %30  }
  0x7d   :  { %19 = vst.msk [vmem:[#allocation0] ss:$8 sm:$0x3] %vm18_vm2, %v17_v12  }
  0x7e   :  { %26 = vst.msk [vmem:[#allocation0] ss:$8 sm:$0x3] %vm25_vm3, %v24_v11  }
  0x7f   :  { %33 = vst.msk [vmem:[#allocation0] ss:$8 sm:$0x3] %vm32_vm4, %v31_v13  }
  0x80   :  { %40 = vst.msk [vmem:[#allocation0] ss:$8 sm:$0x3] %vm39_vm5, %v38_v8  }
  0x81   :  { %47 = vst.msk [vmem:[#allocation0] ss:$8 sm:$0x3] %vm46_vm6, %v45_v9  }
  0x84   :  { %v52_v14 = vpop.permute.xlu0 %51  }
  0x85   :  { %54 = vst.msk [vmem:[#allocation0] ss:$8 sm:$0x3] %vm53_vm7, %v52_v14  }
  0x8c   :  { %v57_v15 = vld [vmem:[#allocation0] sm:$0x1]  ;;  %v62_v16 = vld [vmem:[#allocation0 + $0x8] sm:$0x1] }
  0x8d   :  { %60 = vst [vmem:[%s130_s1] sm:$0x1] %v57_v15 }
  0x8e   :  { %74 = vst [vmem:[%s130_s1 + $0x1] sm:$0x1] %v62_v16 }

// kernel: _fwd.12
= control target key start
LH: loop header
LB: loop body
LE: loop exit
PB: predicated region body
PF: predicated region fallthrough
CT: control target
= control target key end

     0   :  { %vm34_vm0 = vcmask 130048   ;;  %v74_v7 = vlaneseq  ;;  %v163_v9 = vmov 0.0   ;;  %vm98_vm2 = vcmask 1040384   ;;  %s246_s1 = inlined_call_operand.vmem [shape: bf16[16,256], index: 1, kind: input, shape index: {}]   ;;  %s247_s0 = inlined_call_operand.vmem [shape: bf16[16,16], index: 0, kind: input, shape index: {}]   ;;  %s248_s3 = inlined_call_operand.vmem [shape: f32[1,256], index: 3, kind: output, shape index: {1}]   ;;  %s249_s4 = inlined_call_operand.vmem [shape: f32[1,256], index: 4, kind: output, shape index: {2}]   ;;  %s250_s2 = inlined_call_operand.vmem [shape: f32[16,256], index: 2, kind: output, shape index: {0}]  }
   0x1   :  { %v151_v0 = vld [vmem:[%s246_s1] sm:$0xf]  ;;  %v161_v1 = vld [vmem:[%s246_s1 + $0x4] sm:$0xf0]  ;;  %v160_v2 = vld [vmem:[%s246_s1 + $0x4] sm:$0xf] }
   0x2   :  { %v152_v3 = vor.u32 %v161_v1, %v151_v0  ;;  %v153_v4 = vld [vmem:[%s246_s1 + $0x8] sm:$0xf0]  ;;  %v159_v6 = vld [vmem:[%s247_s0] sm:$0xff]  ;;  %vm204_vm1 = vcmp.lt.s32.totalorder %v74_v7, 256 }
   0x3   :  { %v156_v5 = vor.u32 %v160_v2, %v153_v4  ;;  %78 = vst.msk [vmem:[%s248_s3] sm:$0x3] %vm204_vm1, %v163_v9 }
   0x4   :  { %45 = vmatpush.bf16.msra.mxu0 %v152_v3  ;;  %79 = vst.msk [vmem:[%s249_s4] sm:$0x3] %vm204_vm1, %v163_v9 }
   0x5   :  { %59 = vmatpush.bf16.msra.mxu1 %v156_v5 }
   0x7   :  { %157 = vmatmul.msk.bf16.vlgmr.msra.gmra.mxu0 %vm34_vm0, %v159_v6 }
   0x8   :  { %158 = vmatmul.msk.bf16.vlgmr.msra.gmra.mxu1 %vm34_vm0, %v159_v6 }
   0xa   :  { %v80_v44 = vld [vmem:[%s248_s3] sm:$0x3] }
   0xb   :  { %v107_v49 = vld [vmem:[%s249_s4] sm:$0x3] }
  0x84   :  { %v47_v10 = vpop.f32.mrf.mxu0 }
  0x85   :  { %66 = vst [vmem:[%s250_s2] sm:$0xff] %v47_v10  ;;  %v61_v11 = vpop.f32.mrf.mxu1  ;;  %v108_v13 = vmul.f32 %v47_v10, %v47_v10 }
  0x86   :  { %67 = vst [vmem:[%s250_s2 + $0x8] sm:$0xff] %v61_v11  ;;  %v109_v17 = vmul.f32 %v61_v11, %v61_v11 }
  0x8c   :  { %v49_v12 = vpop.f32.mrf.mxu0 }
  0x8d   :  { %68 = vst [vmem:[%s250_s2 + $0x10] sm:$0xff] %v49_v12  ;;  %v81_v14 = vadd.f32 %v49_v12, %v47_v10  ;;  %v110_v15 = vmul.f32 %v49_v12, %v49_v12  ;;  %v63_v16 = vpop.f32.mrf.mxu1 }
  0x8e   :  { %69 = vst [vmem:[%s250_s2 + $0x18] sm:$0xff] %v63_v16  ;;  %v88_v18 = vadd.f32 %v63_v16, %v61_v11  ;;  %v111_v19 = vmul.f32 %v63_v16, %v63_v16 }
  0x8f   :  { %v82_v20 = vrot.slane %v81_v14, 4  ;;  %v112_v21 = vadd.f32 %v110_v15, %v108_v13 }
  0x90   :  { %v89_v22 = vrot.slane %v88_v18, 4  ;;  %v119_v23 = vadd.f32 %v111_v19, %v109_v17 }
  0x91   :  { %v83_v24 = vadd.f32 %v82_v20, %v81_v14  ;;  %v113_v25 = vrot.slane %v112_v21, 4 }
  0x92   :  { %v90_v26 = vadd.f32 %v89_v22, %v88_v18  ;;  %v120_v27 = vrot.slane %v119_v23, 4 }
  0x93   :  { %v84_v28 = vrot.slane %v83_v24, 2  ;;  %v114_v29 = vadd.f32 %v113_v25, %v112_v21 }
  0x94   :  { %v91_v30 = vrot.slane %v90_v26, 2  ;;  %v121_v31 = vadd.f32 %v120_v27, %v119_v23 }
  0x95   :  { %v85_v32 = vadd.f32 %v84_v28, %v83_v24  ;;  %v115_v33 = vrot.slane %v114_v29, 2 }
  0x96   :  { %v92_v34 = vadd.f32 %v91_v30, %v90_v26  ;;  %v122_v35 = vrot.slane %v121_v31, 2 }
  0x97   :  { %v116_v36 = vadd.f32 %v115_v33, %v114_v29  ;;  %v86_v37 = vrot.slane %v85_v32, 1 }
  0x98   :  { %v93_v38 = vrot.slane %v92_v34, 1  ;;  %v123_v39 = vadd.f32 %v122_v35, %v121_v31 }
  0x99   :  { %v117_v40 = vrot.slane %v116_v36, 1  ;;  %v87_v43 = vadd.f32 %v86_v37, %v85_v32 }
  0x9a   :  { %v94_v41 = vadd.f32 %v93_v38, %v92_v34  ;;  %v124_v42 = vrot.slane %v123_v39, 1 }
  0x9b   :  { %v118_v47 = vadd.f32 %v117_v40, %v116_v36 }
  0x9c   :  { %v97_v45 = vrot.slane %v94_v41, 7  ;;  %v125_v46 = vadd.f32 %v124_v42, %v123_v39 }
  0x9e   :  { %v99_v48 = vsel %vm98_vm2, %v87_v43, %v97_v45  ;;  %v128_v50 = vrot.slane %v125_v46, 7 }
  0x9f   :  { %v101_v51 = vadd.f32 %v99_v48, %v80_v44 }
  0xa0   :  { %v129_v52 = vsel %vm98_vm2, %v118_v47, %v128_v50 }
  0xa1   :  { %106 = vst.msk [vmem:[%s248_s3] sm:$0x3] %vm204_vm1, %v101_v51  ;;  %v131_v53 = vadd.f32 %v129_v52, %v107_v49 }
  0xa3   :  { %132 = vst.msk [vmem:[%s249_s4] sm:$0x3] %vm204_vm1, %v131_v53 }

// kernel: _fwd.14
= control target key start
LH: loop header
LB: loop body
LE: loop exit
PB: predicated region body
PF: predicated region fallthrough
CT: control target
= control target key end

     0   :  { %vm31_vm0 = vcmask 1041408   ;;  %vm27_vm1 = vcmask 31744   ;;  %v72_v6 = vlaneseq  ;;  %v151_v8 = vmov 0.0   ;;  %s225_s1 = inlined_call_operand.vmem [shape: bf16[4,256], index: 1, kind: input, shape index: {}]   ;;  %s226_s0 = inlined_call_operand.vmem [shape: bf16[16,4], index: 0, kind: input, shape index: {}]   ;;  %s227_s3 = inlined_call_operand.vmem [shape: f32[1,256], index: 3, kind: output, shape index: {1}]   ;;  %s228_s4 = inlined_call_operand.vmem [shape: f32[1,256], index: 4, kind: output, shape index: {2}]   ;;  %s229_s2 = inlined_call_operand.vmem [shape: f32[16,256], index: 2, kind: output, shape index: {0}]  }
   0x1   :  { %v17_v0 = vld [vmem:[%s225_s1] sm:$0xf]  ;;  %vm96_vm3 = vcmask 1040384  }
   0x2   :  { %24 = vst [vmem:[#allocation1] ss:$4 sm:$0xff] %v17_v0  ;;  %v149_v5 = vld [vmem:[%s226_s0] sm:$0xff]  ;;  %vm183_vm2 = vcmp.lt.s32.totalorder %v72_v6, 256 }
   0x3   :  { %76 = vst.msk [vmem:[%s227_s3] sm:$0x3] %vm183_vm2, %v151_v8 }
   0x4   :  { %77 = vst.msk [vmem:[%s228_s4] sm:$0x3] %vm183_vm2, %v151_v8 }
   0x9   :  { %v25_v1 = vld.sshfl [vmem:[#allocation1] sm:$0xff pattern:$0x73625140]  ;;  %v26_v2 = vld.sshfl [vmem:[#allocation1 + $0x8] sm:$0xff pattern:$0x73625140] }
   0xa   :  { %v32_v3 = vsel %vm31_vm0, %v25_v1, 0  ;;  %v34_v4 = vsel %vm31_vm0, %v26_v2, 0  ;;  %v78_v43 = vld [vmem:[%s227_s3] sm:$0x3] }
   0xb   :  { %43 = vmatpush.bf16.msra.mxu0 %v32_v3  ;;  %57 = vmatpush.bf16.msra.mxu1 %v34_v4  ;;  %v105_v48 = vld [vmem:[%s228_s4] sm:$0x3] }
   0xe   :  { %147 = vmatmul.msk.bf16.vlgmr.msra.gmra.mxu0 %vm27_vm1, %v149_v5  ;;  %148 = vmatmul.msk.bf16.vlgmr.msra.gmra.mxu1 %vm27_vm1, %v149_v5 }
  0x8b   :  { %v45_v9 = vpop.f32.mrf.mxu0  ;;  %v59_v10 = vpop.f32.mrf.mxu1 }
  0x8c   :  { %64 = vst [vmem:[%s229_s2] sm:$0xff] %v45_v9  ;;  %v106_v11 = vmul.f32 %v45_v9, %v45_v9  ;;  %v107_v12 = vmul.f32 %v59_v10, %v59_v10 }
  0x8d   :  { %65 = vst [vmem:[%s229_s2 + $0x8] sm:$0xff] %v59_v10 }
  0x93   :  { %v47_v13 = vpop.f32.mrf.mxu0  ;;  %v61_v14 = vpop.f32.mrf.mxu1 }
  0x94   :  { %66 = vst [vmem:[%s229_s2 + $0x10] sm:$0xff] %v47_v13  ;;  %v79_v15 = vadd.f32 %v47_v13, %v45_v9  ;;  %v108_v16 = vmul.f32 %v47_v13, %v47_v13  ;;  %v86_v17 = vadd.f32 %v61_v14, %v59_v10  ;;  %v109_v18 = vmul.f32 %v61_v14, %v61_v14 }
  0x95   :  { %67 = vst [vmem:[%s229_s2 + $0x18] sm:$0xff] %v61_v14 }
  0x96   :  { %v80_v19 = vrot.slane %v79_v15, 4  ;;  %v110_v20 = vadd.f32 %v108_v16, %v106_v11  ;;  %v87_v21 = vrot.slane %v86_v17, 4  ;;  %v117_v22 = vadd.f32 %v109_v18, %v107_v12 }
  0x98   :  { %v81_v23 = vadd.f32 %v80_v19, %v79_v15  ;;  %v111_v24 = vrot.slane %v110_v20, 4  ;;  %v88_v25 = vadd.f32 %v87_v21, %v86_v17  ;;  %v118_v26 = vrot.slane %v117_v22, 4 }
  0x9a   :  { %v82_v27 = vrot.slane %v81_v23, 2  ;;  %v112_v28 = vadd.f32 %v111_v24, %v110_v20  ;;  %v89_v29 = vrot.slane %v88_v25, 2  ;;  %v119_v30 = vadd.f32 %v118_v26, %v117_v22 }
  0x9c   :  { %v83_v31 = vadd.f32 %v82_v27, %v81_v23  ;;  %v113_v32 = vrot.slane %v112_v28, 2  ;;  %v90_v33 = vadd.f32 %v89_v29, %v88_v25  ;;  %v120_v34 = vrot.slane %v119_v30, 2 }
  0x9e   :  { %v84_v35 = vrot.slane %v83_v31, 1  ;;  %v114_v36 = vadd.f32 %v113_v32, %v112_v28  ;;  %v91_v37 = vrot.slane %v90_v33, 1  ;;  %v121_v38 = vadd.f32 %v120_v34, %v119_v30 }
  0xa0   :  { %v115_v39 = vrot.slane %v114_v36, 1  ;;  %v92_v40 = vadd.f32 %v91_v37, %v90_v33  ;;  %v122_v41 = vrot.slane %v121_v38, 1  ;;  %v85_v42 = vadd.f32 %v84_v35, %v83_v31 }
  0xa2   :  { %v95_v44 = vrot.slane %v92_v40, 7  ;;  %v123_v45 = vadd.f32 %v122_v41, %v121_v38  ;;  %v116_v46 = vadd.f32 %v115_v39, %v114_v36 }
  0xa4   :  { %v97_v47 = vsel %vm96_vm3, %v85_v42, %v95_v44  ;;  %v126_v49 = vrot.slane %v123_v45, 7 }
  0xa5   :  { %v99_v50 = vadd.f32 %v97_v47, %v78_v43 }
  0xa6   :  { %v127_v51 = vsel %vm96_vm3, %v116_v46, %v126_v49 }
  0xa7   :  { %104 = vst.msk [vmem:[%s227_s3] sm:$0x3] %vm183_vm2, %v99_v50  ;;  %v129_v52 = vadd.f32 %v127_v51, %v105_v48 }
  0xa9   :  { %130 = vst.msk [vmem:[%s228_s4] sm:$0x3] %vm183_vm2, %v129_v52 }

// kernel: _fwd.13
= control target key start
LH: loop header
LB: loop body
LE: loop exit
PB: predicated region body
PF: predicated region fallthrough
CT: control target
= control target key end

     0   :  { %s94_s0 = inlined_call_operand.vmem [shape: f32[16,256], index: 0, kind: input, shape index: {}]   ;;  %s95_s1 = inlined_call_operand.vmem [shape: f32[1,256], index: 1, kind: input, shape index: {}]   ;;  %s96_s2 = inlined_call_operand.vmem [shape: f32[1,256], index: 2, kind: input, shape index: {}]   ;;  %s97_s3 = inlined_call_operand.vmem [shape: bf16[16,256], index: 3, kind: output, shape index: {}]  }
   0x1   :  { %v14_v0 = vld [vmem:[%s94_s0] sm:$0xff]  ;;  %v15_v1 = vld [vmem:[%s94_s0 + $0x8] sm:$0xff]  ;;  %v16_v6 = vld [vmem:[%s94_s0 + $0x10] sm:$0xff] }
   0x2   :  { %v18_v2 = vld [vmem:[%s95_s1] sm:$0x3]  ;;  %v17_v7 = vld [vmem:[%s94_s0 + $0x18] sm:$0xff] }
   0x3   :  { %v20_v3 = vperm.slane %v18_v2, 0  ;;  %v21_v4 = vperm.slane %v18_v2, 1  ;;  %v28_v5 = vld [vmem:[%s96_s2] sm:$0x3] }
   0x4   :  { %v30_v8 = vperm.slane %v28_v5, 0  ;;  %v31_v9 = vperm.slane %v28_v5, 1 }
   0x5   :  { %v24_v10 = vmul.f32 %v20_v3, %v14_v0  ;;  %v25_v11 = vmul.f32 %v21_v4, %v15_v1  ;;  %v26_v12 = vmul.f32 %v20_v3, %v16_v6  ;;  %v27_v13 = vmul.f32 %v21_v4, %v17_v7 }
   0x7   :  { %v34_v14 = vadd.f32 %v30_v8, %v24_v10  ;;  %v35_v15 = vadd.f32 %v31_v9, %v25_v11  ;;  %v36_v16 = vadd.f32 %v30_v8, %v26_v12  ;;  %v37_v17 = vadd.f32 %v31_v9, %v27_v13 }
   0x9   :  { %v38_v18 = vmax.f32 %v34_v14, 0.0  ;;  %v39_v19 = vmax.f32 %v35_v15, 0.0  ;;  %v40_v20 = vmax.f32 %v36_v16, 0.0  ;;  %v41_v21 = vmax.f32 %v37_v17, 0.0 }
   0xb   :  { %v42_v22 = vpack.c.bf16 %v39_v19, %v38_v18  ;;  %v43_v23 = vpack.c.bf16 %v41_v21, %v40_v20 }
   0xd   :  { %44 = vst [vmem:[%s97_s3] sm:$0xff] %v42_v22 }
   0xe   :  { %45 = vst [vmem:[%s97_s3 + $0x8] sm:$0xff] %v43_v23 }

// kernel: _fwd.16
= control target key start
LH: loop header
LB: loop body
LE: loop exit
PB: predicated region body
PF: predicated region fallthrough
CT: control target
= control target key end

     0   :  { %vm106_vm0 = vcmask 261120   ;;  %s602_s1 = inlined_call_operand.vmem [shape: bf16[32,256], index: 1, kind: input, shape index: {}]   ;;  %s603_s0 = inlined_call_operand.vmem [shape: bf16[160,32], index: 0, kind: input, shape index: {}]   ;;  %s604_s2 = inlined_call_operand.vmem [shape: f32[160,256], index: 2, kind: output, shape index: {}]  }
   0x1   :  { %v349_v0 = vld [vmem:[%s602_s1 + $0x10] sm:$0xf]  ;;  %v388_v1 = vld [vmem:[%s602_s1 + $0x14] sm:$0xf0]  ;;  %v387_v2 = vld [vmem:[%s602_s1 + $0x14] sm:$0xf] }
   0x2   :  { %v350_v3 = vor.u32 %v388_v1, %v349_v0  ;;  %v351_v4 = vld [vmem:[%s602_s1 + $0x18] sm:$0xf0]  ;;  %v341_v5 = vld [vmem:[%s602_s1] sm:$0xf]  ;;  %v386_v6 = vld [vmem:[%s602_s1 + $0x4] sm:$0xf0] }
   0x3   :  { %v354_v7 = vor.u32 %v387_v2, %v351_v4  ;;  %v385_v8 = vld [vmem:[%s602_s1 + $0x4] sm:$0xf]  ;;  %v343_v9 = vld [vmem:[%s602_s1 + $0x8] sm:$0xf0]  ;;  %v342_v10 = vor.u32 %v386_v6, %v341_v5  ;;  %v381_v15 = vld [vmem:[%s603_s0 + $0x30] sm:$0xff] }
   0x4   :  { %143 = vmatpush.bf16.msra.mxu0 %v350_v3  ;;  %389 = vmatpush.bf16.msra.mxu2 %v350_v3  ;;  %v346_v11 = vor.u32 %v385_v8, %v343_v9  ;;  %v375_v12 = vld [vmem:[%s603_s0] sm:$0xff]  ;;  %v380_v13 = vld [vmem:[%s603_s0 + $0x28] sm:$0xff]  ;;  %v377_v16 = vld [vmem:[%s603_s0 + $0x10] sm:$0xff] }
   0x5   :  { %202 = vmatpush.bf16.msra.mxu1 %v354_v7  ;;  %391 = vmatpush.bf16.msra.mxu3 %v354_v7  ;;  %v376_v14 = vld [vmem:[%s603_s0 + $0x8] sm:$0xff]  ;;  %v382_v17 = vld [vmem:[%s603_s0 + $0x38] sm:$0xff]  ;;  %v383_v19 = vld [vmem:[%s603_s0 + $0x40] sm:$0xff] }
   0x6   :  { %v378_v18 = vld [vmem:[%s603_s0 + $0x18] sm:$0xff]  ;;  %v379_v20 = vld [vmem:[%s603_s0 + $0x20] sm:$0xff]  ;;  %v384_v21 = vld [vmem:[%s603_s0 + $0x48] sm:$0xff] }
   0x8   :  { %144 = vmatpush.bf16.msra.mxu0 %v342_v10  ;;  %390 = vmatpush.bf16.msra.mxu2 %v342_v10 }
   0x9   :  { %203 = vmatpush.bf16.msra.mxu1 %v346_v11  ;;  %392 = vmatpush.bf16.msra.mxu3 %v346_v11 }
   0xb   :  { %355 = vmatmul.msk.bf16.vlgmr.msra.gmra.mxu0 %vm106_vm0, %v375_v12  ;;  %360 = vmatmul.msk.bf16.vlgmr.msra.gmra.mxu2 %vm106_vm0, %v380_v13 }
   0xc   :  { %365 = vmatmul.msk.bf16.vlgmr.msra.gmra.mxu1 %vm106_vm0, %v375_v12  ;;  %370 = vmatmul.msk.bf16.vlgmr.msra.gmra.mxu3 %vm106_vm0, %v380_v13 }
  0x1b   :  { %356 = vmatmul.msk.bf16.gmra.mxu0 %vm106_vm0, %v376_v14  ;;  %361 = vmatmul.msk.bf16.gmra.mxu2 %vm106_vm0, %v381_v15 }
  0x1c   :  { %366 = vmatmul.msk.bf16.gmra.mxu1 %vm106_vm0, %v376_v14  ;;  %371 = vmatmul.msk.bf16.gmra.mxu3 %vm106_vm0, %v381_v15 }
  0x2b   :  { %357 = vmatmul.msk.bf16.gmra.mxu0 %vm106_vm0, %v377_v16  ;;  %362 = vmatmul.msk.bf16.gmra.mxu2 %vm106_vm0, %v382_v17 }
  0x2c   :  { %367 = vmatmul.msk.bf16.gmra.mxu1 %vm106_vm0, %v377_v16  ;;  %372 = vmatmul.msk.bf16.gmra.mxu3 %vm106_vm0, %v382_v17 }
  0x3b   :  { %358 = vmatmul.msk.bf16.gmra.mxu0 %vm106_vm0, %v378_v18  ;;  %363 = vmatmul.msk.bf16.gmra.mxu2 %vm106_vm0, %v383_v19 }
  0x3c   :  { %368 = vmatmul.msk.bf16.gmra.mxu1 %vm106_vm0, %v378_v18  ;;  %373 = vmatmul.msk.bf16.gmra.mxu3 %vm106_vm0, %v383_v19 }
  0x4b   :  { %359 = vmatmul.msk.bf16.gmra.mxu0 %vm106_vm0, %v379_v20  ;;  %364 = vmatmul.msk.bf16.gmra.mxu2 %vm106_vm0, %v384_v21 }
  0x4c   :  { %369 = vmatmul.msk.bf16.gmra.mxu1 %vm106_vm0, %v379_v20  ;;  %374 = vmatmul.msk.bf16.gmra.mxu3 %vm106_vm0, %v384_v21 }
  0x88   :  { %v146_v22 = vpop.f32.mrf.mxu0 }
  0x89   :  { %255 = vst [vmem:[%s604_s2] sm:$0xff] %v146_v22  ;;  %v205_v23 = vpop.f32.mrf.mxu1 }
  0x8a   :  { %256 = vst [vmem:[%s604_s2 + $0x8] sm:$0xff] %v205_v23 }
  0x8e   :  { %v171_v24 = vpop.f32.mrf.mxu2 }
  0x8f   :  { %275 = vst [vmem:[%s604_s2 + $0xa0] sm:$0xff] %v171_v24  ;;  %v230_v25 = vpop.f32.mrf.mxu3 }
  0x90   :  { %276 = vst [vmem:[%s604_s2 + $0xa8] sm:$0xff] %v230_v25  ;;  %v148_v26 = vpop.f32.mrf.mxu0 }
  0x91   :  { %257 = vst [vmem:[%s604_s2 + $0x10] sm:$0xff] %v148_v26  ;;  %v207_v27 = vpop.f32.mrf.mxu1 }
  0x92   :  { %258 = vst [vmem:[%s604_s2 + $0x18] sm:$0xff] %v207_v27 }
  0x96   :  { %v173_v28 = vpop.f32.mrf.mxu2 }
  0x97   :  { %277 = vst [vmem:[%s604_s2 + $0xb0] sm:$0xff] %v173_v28  ;;  %v232_v29 = vpop.f32.mrf.mxu3 }
  0x98   :  { %278 = vst [vmem:[%s604_s2 + $0xb8] sm:$0xff] %v232_v29  ;;  %v151_v30 = vpop.f32.mrf.mxu0 }
  0x99   :  { %259 = vst [vmem:[%s604_s2 + $0x20] sm:$0xff] %v151_v30  ;;  %v210_v31 = vpop.f32.mrf.mxu1 }
  0x9a   :  { %260 = vst [vmem:[%s604_s2 + $0x28] sm:$0xff] %v210_v31 }
  0x9e   :  { %v176_v32 = vpop.f32.mrf.mxu2 }
  0x9f   :  { %279 = vst [vmem:[%s604_s2 + $0xc0] sm:$0xff] %v176_v32  ;;  %v235_v33 = vpop.f32.mrf.mxu3 }
  0xa0   :  { %280 = vst [vmem:[%s604_s2 + $0xc8] sm:$0xff] %v235_v33  ;;  %v153_v34 = vpop.f32.mrf.mxu0 }
  0xa1   :  { %261 = vst [vmem:[%s604_s2 + $0x30] sm:$0xff] %v153_v34  ;;  %v212_v35 = vpop.f32.mrf.mxu1 }
  0xa2   :  { %262 = vst [vmem:[%s604_s2 + $0x38] sm:$0xff] %v212_v35 }
  0xa6   :  { %v178_v36 = vpop.f32.mrf.mxu2 }
  0xa7   :  { %281 = vst [vmem:[%s604_s2 + $0xd0] sm:$0xff] %v178_v36  ;;  %v237_v37 = vpop.f32.mrf.mxu3 }
  0xa8   :  { %282 = vst [vmem:[%s604_s2 + $0xd8] sm:$0xff] %v237_v37  ;;  %v156_v38 = vpop.f32.mrf.mxu0 }
  0xa9   :  { %263 = vst [vmem:[%s604_s2 + $0x40] sm:$0xff] %v156_v38  ;;  %v215_v39 = vpop.f32.mrf.mxu1 }
  0xaa   :  { %264 = vst [vmem:[%s604_s2 + $0x48] sm:$0xff] %v215_v39 }
  0xae   :  { %v181_v40 = vpop.f32.mrf.mxu2 }
  0xaf   :  { %283 = vst [vmem:[%s604_s2 + $0xe0] sm:$0xff] %v181_v40  ;;  %v240_v41 = vpop.f32.mrf.mxu3 }
  0xb0   :  { %284 = vst [vmem:[%s604_s2 + $0xe8] sm:$0xff] %v240_v41  ;;  %v158_v42 = vpop.f32.mrf.mxu0 }
  0xb1   :  { %265 = vst [vmem:[%s604_s2 + $0x50] sm:$0xff] %v158_v42  ;;  %v217_v43 = vpop.f32.mrf.mxu1 }
  0xb2   :  { %266 = vst [vmem:[%s604_s2 + $0x58] sm:$0xff] %v217_v43 }
  0xb6   :  { %v183_v44 = vpop.f32.mrf.mxu2 }
  0xb7   :  { %285 = vst [vmem:[%s604_s2 + $0xf0] sm:$0xff] %v183_v44  ;;  %v242_v45 = vpop.f32.mrf.mxu3 }
  0xb8   :  { %286 = vst [vmem:[%s604_s2 + $0xf8] sm:$0xff] %v242_v45  ;;  %v161_v46 = vpop.f32.mrf.mxu0 }
  0xb9   :  { %267 = vst [vmem:[%s604_s2 + $0x60] sm:$0xff] %v161_v46  ;;  %v220_v47 = vpop.f32.mrf.mxu1 }
  0xba   :  { %268 = vst [vmem:[%s604_s2 + $0x68] sm:$0xff] %v220_v47 }
  0xbe   :  { %v186_v48 = vpop.f32.mrf.mxu2 }
  0xbf   :  { %287 = vst [vmem:[%s604_s2 + $0x100] sm:$0xff] %v186_v48  ;;  %v245_v49 = vpop.f32.mrf.mxu3 }
  0xc0   :  { %288 = vst [vmem:[%s604_s2 + $0x108] sm:$0xff] %v245_v49  ;;  %v163_v50 = vpop.f32.mrf.mxu0 }
  0xc1   :  { %269 = vst [vmem:[%s604_s2 + $0x70] sm:$0xff] %v163_v50  ;;  %v222_v51 = vpop.f32.mrf.mxu1 }
  0xc2   :  { %270 = vst [vmem:[%s604_s2 + $0x78] sm:$0xff] %v222_v51 }
  0xc6   :  { %v188_v52 = vpop.f32.mrf.mxu2 }
  0xc7   :  { %289 = vst [vmem:[%s604_s2 + $0x110] sm:$0xff] %v188_v52  ;;  %v247_v53 = vpop.f32.mrf.mxu3 }
  0xc8   :  { %290 = vst [vmem:[%s604_s2 + $0x118] sm:$0xff] %v247_v53  ;;  %v166_v54 = vpop.f32.mrf.mxu0 }
  0xc9   :  { %271 = vst [vmem:[%s604_s2 + $0x80] sm:$0xff] %v166_v54  ;;  %v225_v55 = vpop.f32.mrf.mxu1 }
  0xca   :  { %272 = vst [vmem:[%s604_s2 + $0x88] sm:$0xff] %v225_v55 }
  0xce   :  { %v191_v56 = vpop.f32.mrf.mxu2 }
  0xcf   :  { %291 = vst [vmem:[%s604_s2 + $0x120] sm:$0xff] %v191_v56  ;;  %v250_v57 = vpop.f32.mrf.mxu3 }
  0xd0   :  { %292 = vst [vmem:[%s604_s2 + $0x128] sm:$0xff] %v250_v57  ;;  %v168_v58 = vpop.f32.mrf.mxu0 }
  0xd1   :  { %273 = vst [vmem:[%s604_s2 + $0x90] sm:$0xff] %v168_v58  ;;  %v227_v59 = vpop.f32.mrf.mxu1 }
  0xd2   :  { %274 = vst [vmem:[%s604_s2 + $0x98] sm:$0xff] %v227_v59 }
  0xd6   :  { %v193_v60 = vpop.f32.mrf.mxu2 }
  0xd7   :  { %293 = vst [vmem:[%s604_s2 + $0x130] sm:$0xff] %v193_v60  ;;  %v252_v61 = vpop.f32.mrf.mxu3 }
  0xd8   :  { %294 = vst [vmem:[%s604_s2 + $0x138] sm:$0xff] %v252_v61 }

// kernel: squeeze.121
= control target key start
LH: loop header
LB: loop body
LE: loop exit
PB: predicated region body
PF: predicated region fallthrough
CT: control target
= control target key end

     0   :  { %vm3_vm0 = vcmask 130048   ;;  %s84_s8 = smov 80   ;;  %s85_s13 = smov 48   ;;  %s167_s0 = inlined_call_operand.vmem [shape: f32[1024], index: 0, kind: input, shape index: {}]   ;;  %s168_s1 = inlined_call_operand.vmem [shape: f32[64,16], index: 1, kind: output, shape index: {}]  }
   0x1   :  { %v6_v0 = vld [vmem:[%s167_s0] sm:$0xff]   ;;  %s83_s0 = smov 112   ;;  %s86_s14 = smov 96  }
   0x2   :  { %7 = vrot.lane.b32.xlu0 %v6_v0, %s83_s0  ;;  %23 = vrot.lane.b32.xlu1 %v6_v0, %s84_s8  ;;  %4 = vst.msk [vmem:[%s168_s1] ss:$8 sm:$0xf] %vm3_vm0, %v6_v0   ;;  %s87_s15 = smov 64   ;;  %s88_s16 = smov 32  }
   0x3   :  { %5 = vst.msk [vmem:[%s168_s1] ss:$8 sm:$0xf0] %vm3_vm0, %v6_v0   ;;  %39 = vrot.lane.b32.xlu2 %v6_v0, %s85_s13  ;;  %s89_s17 = smov 16  }
   0xa   :  { %15 = vrot.lane.b32.xlu0 %v6_v0, %s86_s14  ;;  %31 = vrot.lane.b32.xlu1 %v6_v0, %s87_s15 }
   0xb   :  { %47 = vrot.lane.b32.xlu2 %v6_v0, %s88_s16 }
  0x12   :  { %55 = vrot.lane.b32.xlu0 %v6_v0, %s89_s17 }
  0x5d   :  { %v40_v1 = vpop.permute.xlu2 %39  }
  0x5e   :  { %70 = vst.msk [vmem:[%s168_s1 + $0x5] ss:$8 sm:$0xf] %vm3_vm0, %v40_v1  }
  0x5f   :  { %71 = vst.msk [vmem:[%s168_s1 + $0x5] ss:$8 sm:$0xf0] %vm3_vm0, %v40_v1  }
  0x65   :  { %v48_v2 = vpop.permute.xlu2 %47  }
  0x66   :  { %72 = vst.msk [vmem:[%s168_s1 + $0x6] ss:$8 sm:$0xf] %vm3_vm0, %v48_v2  }
  0x67   :  { %73 = vst.msk [vmem:[%s168_s1 + $0x6] ss:$8 sm:$0xf0] %vm3_vm0, %v48_v2  }
  0x74   :  { %v8_v3 = vpop.permute.xlu0 %7   ;;  %v24_v4 = vpop.permute.xlu1 %23  }
  0x75   :  { %62 = vst.msk [vmem:[%s168_s1 + $0x1] ss:$8 sm:$0xf] %vm3_vm0, %v8_v3  }
  0x76   :  { %63 = vst.msk [vmem:[%s168_s1 + $0x1] ss:$8 sm:$0xf0] %vm3_vm0, %v8_v3  }
  0x77   :  { %66 = vst.msk [vmem:[%s168_s1 + $0x3] ss:$8 sm:$0xf] %vm3_vm0, %v24_v4  }
  0x78   :  { %67 = vst.msk [vmem:[%s168_s1 + $0x3] ss:$8 sm:$0xf0] %vm3_vm0, %v24_v4  }
  0x7c   :  { %v16_v5 = vpop.permute.xlu0 %15   ;;  %v32_v6 = vpop.permute.xlu1 %31  }
  0x7d   :  { %64 = vst.msk [vmem:[%s168_s1 + $0x2] ss:$8 sm:$0xf] %vm3_vm0, %v16_v5  }
  0x7e   :  { %65 = vst.msk [vmem:[%s168_s1 + $0x2] ss:$8 sm:$0xf0] %vm3_vm0, %v16_v5  }
  0x7f   :  { %68 = vst.msk [vmem:[%s168_s1 + $0x4] ss:$8 sm:$0xf] %vm3_vm0, %v32_v6  }
  0x80   :  { %69 = vst.msk [vmem:[%s168_s1 + $0x4] ss:$8 sm:$0xf0] %vm3_vm0, %v32_v6  }
  0x84   :  { %v56_v7 = vpop.permute.xlu0 %55  }
  0x85   :  { %74 = vst.msk [vmem:[%s168_s1 + $0x7] ss:$8 sm:$0xf] %vm3_vm0, %v56_v7  }
  0x86   :  { %75 = vst.msk [vmem:[%s168_s1 + $0x7] ss:$8 sm:$0xf0] %vm3_vm0, %v56_v7  }

// kernel: tile.68
= control target key start
LH: loop header
LB: loop body
LE: loop exit
PB: predicated region body
PF: predicated region fallthrough
CT: control target
= control target key end

     0   :  { %s64_s0 = inlined_call_operand.vmem [shape: f32[16], index: 0, kind: input, shape index: {}]   ;;  %s65_s1 = inlined_call_operand.vmem [shape: f32[64,16], index: 1, kind: output, shape index: {}]  }
   0x1   :  { %v4_v0 = vld [vmem:[%s64_s0] ss:$0 sm:$0xff] }
   0x2   :  { %5 = vst [vmem:[%s65_s1] sm:$0xff] %v4_v0 }
   0x3   :  { %20 = vst [vmem:[%s65_s1 + $0x8] sm:$0xff] %v4_v0 }
   0x4   :  { %21 = vst [vmem:[%s65_s1 + $0x10] sm:$0xff] %v4_v0 }
   0x5   :  { %22 = vst [vmem:[%s65_s1 + $0x18] sm:$0xff] %v4_v0 }
   0x6   :  { %23 = vst [vmem:[%s65_s1 + $0x20] sm:$0xff] %v4_v0 }
   0x7   :  { %24 = vst [vmem:[%s65_s1 + $0x28] sm:$0xff] %v4_v0 }
   0x8   :  { %25 = vst [vmem:[%s65_s1 + $0x30] sm:$0xff] %v4_v0 }
   0x9   :  { %26 = vst [vmem:[%s65_s1 + $0x38] sm:$0xff] %v4_v0 }

// kernel: tile.73
= control target key start
LH: loop header
LB: loop body
LE: loop exit
PB: predicated region body
PF: predicated region fallthrough
CT: control target
= control target key end

     0   :  { %vm4_vm0 = vcmask 1047556   ;;  %s162_s14 = smov 112   ;;  %s163_s15 = smov 80   ;;  %vm6_vm1 = vcmask 130048   ;;  %vm17_vm2 = vcmask 1048448   ;;  %vm28_vm3 = vcmask 917248   ;;  %s259_s0 = inlined_call_operand.vmem [shape: f32[64,16], index: 0, kind: input, shape index: {}]   ;;  %s260_s1 = inlined_call_operand.vmem [shape: f32[1,1024], index: 1, kind: output, shape index: {}]  }
   0x1   :  { %v134_v0 = vld [vmem:[%s259_s0 + $0x7] ss:$8 sm:$0xf]   ;;  %v138_v2 = vld [vmem:[%s259_s0 + $0x5] ss:$8 sm:$0xf]  }
   0x2   :  { %v135_v1 = vld [vmem:[%s259_s0 + $0x7] ss:$8 sm:$0xf0]   ;;  %v139_v4 = vld [vmem:[%s259_s0 + $0x5] ss:$8 sm:$0xf0]  }
   0x3   :  { %v14_v3 = vsel %vm4_vm0, %v135_v1, %v134_v0  ;;  %v36_v5 = vsel %vm4_vm0, %v139_v4, %v138_v2  ;;  %v136_v6 = vld [vmem:[%s259_s0 + $0x6] ss:$8 sm:$0xf]   ;;  %v140_v8 = vld [vmem:[%s259_s0 + $0x4] ss:$8 sm:$0xf]  }
   0x4   :  { %15 = vrot.lane.b32.xlu0 %v14_v3, %s162_s14  ;;  %37 = vrot.lane.b32.xlu1 %v36_v5, %s163_s15  ;;  %v137_v7 = vld [vmem:[%s259_s0 + $0x6] ss:$8 sm:$0xf0]   ;;  %v141_v9 = vld [vmem:[%s259_s0 + $0x4] ss:$8 sm:$0xf0]  }
   0x5   :  { %v142_v10 = vld [vmem:[%s259_s0 + $0x3] ss:$8 sm:$0xf]   ;;  %v25_v12 = vsel %vm4_vm0, %v137_v7, %v136_v6  ;;  %v47_v14 = vsel %vm4_vm0, %v141_v9, %v140_v8  ;;  %s164_s28 = smov 48   ;;  %s165_s29 = smov 96   ;;  %vm39_vm4 = vcmask 786048  }
   0x6   :  { %v143_v11 = vld [vmem:[%s259_s0 + $0x3] ss:$8 sm:$0xf0]   ;;  %v144_v15 = vld [vmem:[%s259_s0 + $0x2] ss:$8 sm:$0xf]  }
   0x7   :  { %v58_v13 = vsel %vm4_vm0, %v143_v11, %v142_v10  ;;  %v145_v16 = vld [vmem:[%s259_s0 + $0x2] ss:$8 sm:$0xf0]   ;;  %s166_s5 = smov 64   ;;  %s167_s10 = smov 32   ;;  %vm50_vm5 = vcmask 654848  }
   0x8   :  { %59 = vrot.lane.b32.xlu2 %v58_v13, %s164_s28  ;;  %v146_v17 = vld [vmem:[%s259_s0 + $0x1] ss:$8 sm:$0xf]   ;;  %v69_v19 = vsel %vm4_vm0, %v145_v16, %v144_v15  ;;  %s168_s11 = smov 16   ;;  %vm61_vm6 = vcmask 523648   ;;  %vm72_vm7 = vcmask 392448  }
   0x9   :  { %v147_v18 = vld [vmem:[%s259_s0 + $0x1] ss:$8 sm:$0xf0]   ;;  %v2_v21 = vld [vmem:[%s259_s0] ss:$8 sm:$0xf]  }
   0xa   :  { %v80_v20 = vsel %vm4_vm0, %v147_v18, %v146_v17  ;;  %v3_v22 = vld [vmem:[%s259_s0] ss:$8 sm:$0xf0]   ;;  %vm83_vm8 = vcmask 261248  }
   0xb   :  { %v5_v23 = vsel %vm4_vm0, %v3_v22, %v2_v21 }
   0xc   :  { %26 = vrot.lane.b32.xlu0 %v25_v12, %s165_s29  ;;  %48 = vrot.lane.b32.xlu1 %v47_v14, %s166_s5  ;;  %7 = vst.msk [vmem:[#allocation0] ss:$8 sm:$0xf] %vm6_vm1, %v5_v23  }
   0xd   :  { %8 = vst.msk [vmem:[#allocation0] ss:$8 sm:$0xf0] %vm6_vm1, %v5_v23  }
  0x10   :  { %70 = vrot.lane.b32.xlu2 %v69_v19, %s167_s10 }
  0x14   :  { %81 = vrot.lane.b32.xlu0 %v80_v20, %s168_s11 }
  0x62   :  { %v60_v24 = vpop.permute.xlu2 %59  }
  0x6a   :  { %v71_v25 = vpop.permute.xlu2 %70  }
  0x76   :  { %v16_v26 = vpop.permute.xlu0 %15   ;;  %v38_v27 = vpop.permute.xlu1 %37  }
  0x77   :  { %18 = vst.msk [vmem:[#allocation0] ss:$8 sm:$0xf] %vm17_vm2, %v16_v26  }
  0x78   :  { %19 = vst.msk [vmem:[#allocation0] ss:$8 sm:$0xf0] %vm17_vm2, %v16_v26  }
  0x7e   :  { %v27_v28 = vpop.permute.xlu0 %26   ;;  %v49_v29 = vpop.permute.xlu1 %48  }
  0x7f   :  { %29 = vst.msk [vmem:[#allocation0] ss:$8 sm:$0xf] %vm28_vm3, %v27_v28  }
  0x80   :  { %30 = vst.msk [vmem:[#allocation0] ss:$8 sm:$0xf0] %vm28_vm3, %v27_v28  }
  0x81   :  { %40 = vst.msk [vmem:[#allocation0] ss:$8 sm:$0xf] %vm39_vm4, %v38_v27  }
  0x82   :  { %41 = vst.msk [vmem:[#allocation0] ss:$8 sm:$0xf0] %vm39_vm4, %v38_v27  }
  0x83   :  { %51 = vst.msk [vmem:[#allocation0] ss:$8 sm:$0xf] %vm50_vm5, %v49_v29  }
  0x84   :  { %52 = vst.msk [vmem:[#allocation0] ss:$8 sm:$0xf0] %vm50_vm5, %v49_v29  }
  0x85   :  { %62 = vst.msk [vmem:[#allocation0] ss:$8 sm:$0xf] %vm61_vm6, %v60_v24  }
  0x86   :  { %63 = vst.msk [vmem:[#allocation0] ss:$8 sm:$0xf0] %vm61_vm6, %v60_v24   ;;  %v82_v30 = vpop.permute.xlu0 %81  }
  0x87   :  { %73 = vst.msk [vmem:[#allocation0] ss:$8 sm:$0xf] %vm72_vm7, %v71_v25  }
  0x88   :  { %74 = vst.msk [vmem:[#allocation0] ss:$8 sm:$0xf0] %vm72_vm7, %v71_v25  }
  0x89   :  { %84 = vst.msk [vmem:[#allocation0] ss:$8 sm:$0xf] %vm83_vm8, %v82_v30  }
  0x8a   :  { %85 = vst.msk [vmem:[#allocation0] ss:$8 sm:$0xf0] %vm83_vm8, %v82_v30  }
  0x90   :  { %v88_v31 = vld [vmem:[#allocation0] sm:$0x1]  ;;  %v93_v32 = vld [vmem:[#allocation0 + $0x8] sm:$0x1]  ;;  %v99_v33 = vld [vmem:[#allocation0 + $0x10] sm:$0x1] }
  0x91   :  { %91 = vst [vmem:[%s260_s1] sm:$0x1] %v88_v31  ;;  %v105_v34 = vld [vmem:[#allocation0 + $0x18] sm:$0x1]  ;;  %v111_v35 = vld [vmem:[#allocation0 + $0x20] sm:$0x1] }
  0x92   :  { %148 = vst [vmem:[%s260_s1 + $0x1] sm:$0x1] %v93_v32  ;;  %v117_v36 = vld [vmem:[#allocation0 + $0x28] sm:$0x1]  ;;  %v123_v37 = vld [vmem:[#allocation0 + $0x30] sm:$0x1] }
  0x93   :  { %149 = vst [vmem:[%s260_s1 + $0x2] sm:$0x1] %v99_v33  ;;  %v129_v38 = vld [vmem:[#allocation0 + $0x38] sm:$0x1] }
  0x94   :  { %150 = vst [vmem:[%s260_s1 + $0x3] sm:$0x1] %v105_v34 }
  0x95   :  { %151 = vst [vmem:[%s260_s1 + $0x4] sm:$0x1] %v111_v35 }
  0x96   :  { %152 = vst [vmem:[%s260_s1 + $0x5] sm:$0x1] %v117_v36 }
  0x97   :  { %153 = vst [vmem:[%s260_s1 + $0x6] sm:$0x1] %v123_v37 }
  0x98   :  { %154 = vst [vmem:[%s260_s1 + $0x7] sm:$0x1] %v129_v38 }

// kernel: _fwd.17
= control target key start
LH: loop header
LB: loop body
LE: loop exit
PB: predicated region body
PF: predicated region fallthrough
CT: control target
= control target key end

     0   :  { %vm104_vm0 = vcmask 1040384   ;;  %vm106_vm1 = vcmask 1042434   ;;  %vm108_vm2 = vcmask 1041408   ;;  %vm110_vm3 = vcmask 1044484   ;;  %s371_s0 = inlined_call_operand.vmem [shape: f32[16,1024], index: 0, kind: input, shape index: {}]   ;;  %s372_s1 = inlined_call_operand.vmem [shape: f32[1,1024], index: 1, kind: output, shape index: {0}]   ;;  %s373_s2 = inlined_call_operand.vmem [shape: f32[1,1024], index: 2, kind: output, shape index: {1}]  }
   0x1   :  { %v10_v0 = vld [vmem:[%s371_s0] sm:$0xff]  ;;  %v11_v1 = vld [vmem:[%s371_s0 + $0x8] sm:$0xff]  ;;  %v12_v2 = vld [vmem:[%s371_s0 + $0x10] sm:$0xff]  ;;  %vm112_vm4 = vcmask 1046534   ;;  %vm114_vm5 = vcmask 1045508   ;;  %vm116_vm6 = vcmask 1043456  }
   0x2   :  { %v13_v3 = vld [vmem:[%s371_s0 + $0x18] sm:$0xff]  ;;  %v14_v4 = vld [vmem:[%s371_s0 + $0x20] sm:$0xff]  ;;  %v15_v5 = vld [vmem:[%s371_s0 + $0x28] sm:$0xff]  ;;  %v261_v6 = vmul.f32 %v10_v0, %v10_v0  ;;  %v263_v7 = vmul.f32 %v11_v1, %v11_v1  ;;  %v274_v11 = vmul.f32 %v12_v2, %v12_v2 }
   0x3   :  { %v16_v8 = vld [vmem:[%s371_s0 + $0x30] sm:$0xff]  ;;  %v17_v9 = vld [vmem:[%s371_s0 + $0x38] sm:$0xff]  ;;  %v18_v10 = vld [vmem:[%s371_s0 + $0x40] sm:$0xff]  ;;  %v276_v12 = vmul.f32 %v13_v3, %v13_v3  ;;  %v278_v13 = vmul.f32 %v14_v4, %v14_v4  ;;  %v280_v14 = vmul.f32 %v15_v5, %v15_v5 }
   0x4   :  { %v19_v15 = vld [vmem:[%s371_s0 + $0x48] sm:$0xff]  ;;  %v288_v16 = vld [vmem:[%s371_s0 + $0x50] sm:$0xff]  ;;  %v293_v17 = vld [vmem:[%s371_s0 + $0x58] sm:$0xff]  ;;  %v33_v18 = vadd.f32 %v18_v10, %v10_v0  ;;  %v295_v19 = vmul.f32 %v16_v8, %v16_v8  ;;  %v297_v20 = vmul.f32 %v17_v9, %v17_v9  ;;  %v299_v21 = vmul.f32 %v18_v10, %v18_v10 }
   0x5   :  { %v304_v22 = vld [vmem:[%s371_s0 + $0x60] sm:$0xff]  ;;  %v309_v23 = vld [vmem:[%s371_s0 + $0x68] sm:$0xff]  ;;  %v314_v24 = vld [vmem:[%s371_s0 + $0x70] sm:$0xff]  ;;  %v40_v25 = vadd.f32 %v19_v15, %v11_v1  ;;  %v47_v26 = vadd.f32 %v288_v16, %v12_v2  ;;  %v54_v27 = vadd.f32 %v293_v17, %v13_v3  ;;  %v318_v28 = vmul.f32 %v19_v15, %v19_v15 }
   0x6   :  { %v323_v29 = vld [vmem:[%s371_s0 + $0x78] sm:$0xff]  ;;  %v34_v30 = vrot.slane %v33_v18, 4  ;;  %v61_v31 = vadd.f32 %v304_v22, %v14_v4  ;;  %v68_v32 = vadd.f32 %v309_v23, %v15_v5  ;;  %v75_v33 = vadd.f32 %v314_v24, %v16_v8 }
   0x7   :  { %v41_v34 = vrot.slane %v40_v25, 4  ;;  %v48_v35 = vrot.slane %v47_v26, 4  ;;  %v55_v36 = vrot.slane %v54_v27, 4  ;;  %v82_v37 = vadd.f32 %v323_v29, %v17_v9 }
   0x8   :  { %v35_v38 = vadd.f32 %v34_v30, %v33_v18  ;;  %v62_v39 = vrot.slane %v61_v31, 4  ;;  %v69_v40 = vrot.slane %v68_v32, 4  ;;  %v76_v41 = vrot.slane %v75_v33, 4 }
   0x9   :  { %v42_v42 = vadd.f32 %v41_v34, %v40_v25  ;;  %v49_v43 = vadd.f32 %v48_v35, %v47_v26  ;;  %v56_v44 = vadd.f32 %v55_v36, %v54_v27  ;;  %v83_v45 = vrot.slane %v82_v37, 4 }
   0xa   :  { %v36_v46 = vrot.slane %v35_v38, 2  ;;  %v63_v47 = vadd.f32 %v62_v39, %v61_v31  ;;  %v70_v48 = vadd.f32 %v69_v40, %v68_v32  ;;  %v77_v49 = vadd.f32 %v76_v41, %v75_v33 }
   0xb   :  { %v43_v50 = vrot.slane %v42_v42, 2  ;;  %v50_v51 = vrot.slane %v49_v43, 2  ;;  %v57_v52 = vrot.slane %v56_v44, 2  ;;  %v84_v53 = vadd.f32 %v83_v45, %v82_v37 }
   0xc   :  { %v37_v54 = vadd.f32 %v36_v46, %v35_v38  ;;  %v64_v55 = vrot.slane %v63_v47, 2  ;;  %v71_v56 = vrot.slane %v70_v48, 2  ;;  %v78_v57 = vrot.slane %v77_v49, 2 }
   0xd   :  { %v44_v58 = vadd.f32 %v43_v50, %v42_v42  ;;  %v51_v59 = vadd.f32 %v50_v51, %v49_v43  ;;  %v58_v60 = vadd.f32 %v57_v52, %v56_v44  ;;  %v85_v61 = vrot.slane %v84_v53, 2 }
   0xe   :  { %v38_v62 = vrot.slane %v37_v54, 1  ;;  %v65_v63 = vadd.f32 %v64_v55, %v63_v47  ;;  %v72_v0 = vadd.f32 %v71_v56, %v70_v48  ;;  %v79_v1 = vadd.f32 %v78_v57, %v77_v49 }
   0xf   :  { %v45_v2 = vrot.slane %v44_v58, 1  ;;  %v52_v3 = vrot.slane %v51_v59, 1  ;;  %v59_v4 = vrot.slane %v58_v60, 1  ;;  %v86_v5 = vadd.f32 %v85_v61, %v84_v53 }
  0x10   :  { %v39_v8 = vadd.f32 %v38_v62, %v37_v54  ;;  %v66_v9 = vrot.slane %v65_v63, 1  ;;  %v73_v10 = vrot.slane %v72_v0, 1  ;;  %v80_v15 = vrot.slane %v79_v1, 1 }
  0x11   :  { %v46_v18 = vadd.f32 %v45_v2, %v44_v58  ;;  %v53_v25 = vadd.f32 %v52_v3, %v51_v59  ;;  %v60_v26 = vadd.f32 %v59_v4, %v58_v60  ;;  %v87_v27 = vrot.slane %v86_v5, 1 }
  0x12   :  { %v67_v30 = vadd.f32 %v66_v9, %v65_v63  ;;  %v74_v31 = vadd.f32 %v73_v10, %v72_v0  ;;  %v81_v32 = vadd.f32 %v80_v15, %v79_v1  ;;  %v132_v33 = vmul.f32 %v288_v16, %v288_v16 }
  0x13   :  { %v88_v34 = vadd.f32 %v87_v27, %v86_v5  ;;  %v97_v35 = vrot.slane %v46_v18, 7  ;;  %v98_v36 = vrot.slane %v53_v25, 6  ;;  %v99_v37 = vrot.slane %v60_v26, 5 }
  0x14   :  { %v100_v38 = vrot.slane %v67_v30, 4  ;;  %v101_v39 = vrot.slane %v74_v31, 3  ;;  %v102_v40 = vrot.slane %v81_v32, 2  ;;  %v133_v41 = vmul.f32 %v293_v17, %v293_v17 }
  0x15   :  { %v103_v42 = vrot.slane %v88_v34, 1  ;;  %v105_v43 = vsel %vm104_vm0, %v39_v8, %v97_v35  ;;  %v107_v44 = vsel %vm106_vm1, %v98_v36, %v99_v37  ;;  %v134_v45 = vmul.f32 %v304_v22, %v304_v22 }
  0x16   :  { %v109_v16 = vsel %vm108_vm2, %v105_v43, %v107_v44  ;;  %v111_v46 = vsel %vm110_vm3, %v100_v38, %v101_v39  ;;  %v135_v47 = vmul.f32 %v309_v23, %v309_v23  ;;  %v136_v48 = vmul.f32 %v314_v24, %v314_v24 }
  0x17   :  { %v113_v17 = vsel %vm112_vm4, %v102_v40, %v103_v42  ;;  %v137_v49 = vmul.f32 %v323_v29, %v323_v29  ;;  %v138_v50 = vadd.f32 %v299_v21, %v261_v6  ;;  %v145_v22 = vadd.f32 %v318_v28, %v263_v7 }
  0x18   :  { %v115_v51 = vsel %vm114_vm5, %v111_v46, %v113_v17  ;;  %v152_v52 = vadd.f32 %v132_v33, %v274_v11  ;;  %v159_v23 = vadd.f32 %v133_v41, %v276_v12  ;;  %v166_v53 = vadd.f32 %v134_v45, %v278_v13 }
  0x19   :  { %v117_v24 = vsel %vm116_vm6, %v109_v16, %v115_v51  ;;  %v139_v54 = vrot.slane %v138_v50, 4  ;;  %v146_v55 = vrot.slane %v145_v22, 4  ;;  %v173_v29 = vadd.f32 %v135_v47, %v280_v14 }
  0x1a   :  { %v153_v56 = vrot.slane %v152_v52, 4  ;;  %v160_v57 = vrot.slane %v159_v23, 4  ;;  %v167_v6 = vrot.slane %v166_v53, 4  ;;  %v180_v28 = vadd.f32 %v136_v48, %v295_v19  ;;  %120 = vst [vmem:[%s372_s1] sm:$0xff] %v117_v24 }
  0x1b   :  { %v140_v21 = vadd.f32 %v139_v54, %v138_v50  ;;  %v147_v58 = vadd.f32 %v146_v55, %v145_v22  ;;  %v174_v7 = vrot.slane %v173_v29, 4  ;;  %v187_v59 = vadd.f32 %v137_v49, %v297_v20 }
  0x1c   :  { %v154_v11 = vadd.f32 %v153_v56, %v152_v52  ;;  %v161_v12 = vadd.f32 %v160_v57, %v159_v23  ;;  %v168_v13 = vadd.f32 %v167_v6, %v166_v53  ;;  %v181_v62 = vrot.slane %v180_v28, 4 }
  0x1d   :  { %v141_v60 = vrot.slane %v140_v21, 2  ;;  %v148_v61 = vrot.slane %v147_v58, 2  ;;  %v175_v14 = vadd.f32 %v174_v7, %v173_v29  ;;  %v188_v2 = vrot.slane %v187_v59, 4 }
  0x1e   :  { %v155_v63 = vrot.slane %v154_v11, 2  ;;  %v162_v0 = vrot.slane %v161_v12, 2  ;;  %v169_v1 = vrot.slane %v168_v13, 2  ;;  %v182_v5 = vadd.f32 %v181_v62, %v180_v28 }
  0x1f   :  { %v142_v3 = vadd.f32 %v141_v60, %v140_v21  ;;  %v149_v4 = vadd.f32 %v148_v61, %v147_v58  ;;  %v176_v19 = vrot.slane %v175_v14, 2  ;;  %v189_v15 = vadd.f32 %v188_v2, %v187_v59 }
  0x20   :  { %v156_v8 = vadd.f32 %v155_v63, %v154_v11  ;;  %v163_v9 = vadd.f32 %v162_v0, %v161_v12  ;;  %v170_v10 = vadd.f32 %v169_v1, %v168_v13  ;;  %v183_v20 = vrot.slane %v182_v5, 2 }
  0x21   :  { %v143_v18 = vrot.slane %v142_v3, 1  ;;  %v150_v25 = vrot.slane %v149_v4, 1  ;;  %v177_v26 = vadd.f32 %v176_v19, %v175_v14  ;;  %v190_v32 = vrot.slane %v189_v15, 2 }
  0x22   :  { %v157_v27 = vrot.slane %v156_v8, 1  ;;  %v164_v30 = vrot.slane %v163_v9, 1  ;;  %v171_v31 = vrot.slane %v170_v10, 1  ;;  %v184_v36 = vadd.f32 %v183_v20, %v182_v5 }
  0x23   :  { %v144_v33 = vadd.f32 %v143_v18, %v142_v3  ;;  %v151_v34 = vadd.f32 %v150_v25, %v149_v4  ;;  %v178_v35 = vrot.slane %v177_v26, 1  ;;  %v191_v40 = vadd.f32 %v190_v32, %v189_v15 }
  0x24   :  { %v158_v37 = vadd.f32 %v157_v27, %v156_v8  ;;  %v165_v38 = vadd.f32 %v164_v30, %v163_v9  ;;  %v172_v39 = vadd.f32 %v171_v31, %v170_v10  ;;  %v185_v42 = vrot.slane %v184_v36, 1 }
  0x25   :  { %v179_v41 = vadd.f32 %v178_v35, %v177_v26  ;;  %v202_v43 = vrot.slane %v151_v34, 7  ;;  %v192_v44 = vrot.slane %v191_v40, 1 }
  0x26   :  { %v203_v45 = vrot.slane %v158_v37, 6  ;;  %v204_v16 = vrot.slane %v165_v38, 5  ;;  %v205_v46 = vrot.slane %v172_v39, 4  ;;  %v186_v47 = vadd.f32 %v185_v42, %v184_v36 }
  0x27   :  { %v206_v48 = vrot.slane %v179_v41, 3  ;;  %v193_v17 = vadd.f32 %v192_v44, %v191_v40  ;;  %v209_v49 = vsel %vm104_vm0, %v144_v33, %v202_v43 }
  0x28   :  { %v210_v50 = vsel %vm106_vm1, %v203_v45, %v204_v16  ;;  %v207_v22 = vrot.slane %v186_v47, 2 }
  0x29   :  { %v208_v51 = vrot.slane %v193_v17, 1  ;;  %v212_v52 = vsel %vm110_vm3, %v205_v46, %v206_v48  ;;  %v211_v23 = vsel %vm108_vm2, %v209_v49, %v210_v50 }
  0x2b   :  { %v213_v53 = vsel %vm112_vm4, %v207_v22, %v208_v51 }
  0x2c   :  { %v214_v24 = vsel %vm114_vm5, %v212_v52, %v213_v53 }
  0x2d   :  { %v215_v54 = vsel %vm116_vm6, %v211_v23, %v214_v24 }
  0x2e   :  { %218 = vst [vmem:[%s373_s2] sm:$0xff] %v215_v54 }

// kernel: _fwd.18
= control target key start
LH: loop header
LB: loop body
LE: loop exit
PB: predicated region body
PF: predicated region fallthrough
CT: control target
= control target key end

     0   :  { %s252_s0 = inlined_call_operand.vmem [shape: f32[16,1024], index: 0, kind: input, shape index: {}]   ;;  %s253_s1 = inlined_call_operand.vmem [shape: f32[1,1024], index: 1, kind: input, shape index: {}]   ;;  %s254_s2 = inlined_call_operand.vmem [shape: f32[1,1024], index: 2, kind: input, shape index: {}]   ;;  %s255_s3 = inlined_call_operand.vmem [shape: bf16[16,1024], index: 3, kind: output, shape index: {}]  }
   0x1   :  { %v14_v0 = vld [vmem:[%s252_s0] sm:$0xff]  ;;  %v15_v1 = vld [vmem:[%s252_s0 + $0x8] sm:$0xff]  ;;  %v16_v6 = vld [vmem:[%s252_s0 + $0x10] sm:$0xff] }
   0x2   :  { %v163_v2 = vld [vmem:[%s253_s1] sm:$0xff]  ;;  %v17_v7 = vld [vmem:[%s252_s0 + $0x18] sm:$0xff]  ;;  %v19_v18 = vld [vmem:[%s252_s0 + $0x28] sm:$0xff] }
   0x3   :  { %v32_v3 = vperm.slane %v163_v2, 0  ;;  %v33_v4 = vperm.slane %v163_v2, 1  ;;  %v170_v5 = vld [vmem:[%s254_s2] sm:$0xff]  ;;  %v34_v8 = vperm.slane %v163_v2, 2  ;;  %v35_v11 = vperm.slane %v163_v2, 3  ;;  %v20_v27 = vld [vmem:[%s252_s0 + $0x30] sm:$0xff] }
   0x4   :  { %v66_v9 = vperm.slane %v170_v5, 0  ;;  %v67_v10 = vperm.slane %v170_v5, 1  ;;  %v68_v12 = vperm.slane %v170_v5, 2  ;;  %v69_v16 = vperm.slane %v170_v5, 3  ;;  %v18_v17 = vld [vmem:[%s252_s0 + $0x20] sm:$0xff]  ;;  %v21_v31 = vld [vmem:[%s252_s0 + $0x38] sm:$0xff] }
   0x5   :  { %v48_v13 = vmul.f32 %v32_v3, %v14_v0  ;;  %v49_v14 = vmul.f32 %v33_v4, %v15_v1  ;;  %v50_v15 = vmul.f32 %v34_v8, %v16_v6  ;;  %v51_v19 = vmul.f32 %v35_v11, %v17_v7  ;;  %v22_v37 = vld [vmem:[%s252_s0 + $0x40] sm:$0xff]  ;;  %v23_v42 = vld [vmem:[%s252_s0 + $0x48] sm:$0xff]  ;;  %v24_v43 = vld [vmem:[%s252_s0 + $0x50] sm:$0xff] }
   0x6   :  { %v36_v20 = vperm.slane %v163_v2, 4  ;;  %v37_v21 = vperm.slane %v163_v2, 5  ;;  %v70_v22 = vperm.slane %v170_v5, 4  ;;  %v71_v26 = vperm.slane %v170_v5, 5  ;;  %v25_v48 = vld [vmem:[%s252_s0 + $0x58] sm:$0xff]  ;;  %v26_v49 = vld [vmem:[%s252_s0 + $0x60] sm:$0xff] }
   0x7   :  { %v82_v23 = vadd.f32 %v66_v9, %v48_v13  ;;  %v83_v24 = vadd.f32 %v67_v10, %v49_v14  ;;  %v84_v25 = vadd.f32 %v68_v12, %v50_v15  ;;  %v85_v28 = vadd.f32 %v69_v16, %v51_v19  ;;  %v27_v58 = vld [vmem:[%s252_s0 + $0x68] sm:$0xff]  ;;  %v28_v63 = vld [vmem:[%s252_s0 + $0x70] sm:$0xff] }
   0x8   :  { %v52_v29 = vmul.f32 %v36_v20, %v18_v17  ;;  %v53_v30 = vmul.f32 %v37_v21, %v19_v18  ;;  %v38_v32 = vperm.slane %v163_v2, 6  ;;  %v39_v36 = vperm.slane %v163_v2, 7 }
   0x9   :  { %v98_v33 = vmax.f32 %v82_v23, 0.0  ;;  %v99_v34 = vmax.f32 %v83_v24, 0.0  ;;  %v100_v35 = vmax.f32 %v84_v25, 0.0  ;;  %v101_v38 = vmax.f32 %v85_v28, 0.0 }
   0xa   :  { %v86_v39 = vadd.f32 %v70_v22, %v52_v29  ;;  %v87_v40 = vadd.f32 %v71_v26, %v53_v30  ;;  %v54_v41 = vmul.f32 %v38_v32, %v20_v27  ;;  %v55_v45 = vmul.f32 %v39_v36, %v21_v31 }
   0xb   :  { %v114_v44 = vpack.c.bf16 %v99_v34, %v98_v33  ;;  %v72_v46 = vperm.slane %v170_v5, 6  ;;  %v73_v47 = vperm.slane %v170_v5, 7  ;;  %v115_v50 = vpack.c.bf16 %v101_v38, %v100_v35 }
   0xc   :  { %v102_v51 = vmax.f32 %v86_v39, 0.0  ;;  %v103_v52 = vmax.f32 %v87_v40, 0.0  ;;  %v56_v53 = vmul.f32 %v32_v3, %v22_v37  ;;  %v57_v56 = vmul.f32 %v33_v4, %v23_v42  ;;  %v29_v4 = vld [vmem:[%s252_s0 + $0x78] sm:$0xff] }
   0xd   :  { %122 = vst [vmem:[%s255_s3] sm:$0xff] %v114_v44  ;;  %v88_v54 = vadd.f32 %v72_v46, %v54_v41  ;;  %v89_v55 = vadd.f32 %v73_v47, %v55_v45  ;;  %v58_v57 = vmul.f32 %v34_v8, %v24_v43  ;;  %v59_v61 = vmul.f32 %v35_v11, %v25_v48 }
   0xe   :  { %123 = vst [vmem:[%s255_s3 + $0x8] sm:$0xff] %v115_v50  ;;  %v116_v59 = vpack.c.bf16 %v103_v52, %v102_v51  ;;  %v90_v60 = vadd.f32 %v66_v9, %v56_v53  ;;  %v60_v62 = vmul.f32 %v36_v20, %v26_v49  ;;  %v91_v2 = vadd.f32 %v67_v10, %v57_v56 }
   0xf   :  { %v104_v0 = vmax.f32 %v88_v54, 0.0  ;;  %v105_v1 = vmax.f32 %v89_v55, 0.0  ;;  %v92_v3 = vadd.f32 %v68_v12, %v58_v57  ;;  %v93_v6 = vadd.f32 %v69_v16, %v59_v61 }
  0x10   :  { %124 = vst [vmem:[%s255_s3 + $0x10] sm:$0xff] %v116_v59  ;;  %v106_v5 = vmax.f32 %v90_v60, 0.0  ;;  %v61_v7 = vmul.f32 %v37_v21, %v27_v58  ;;  %v94_v8 = vadd.f32 %v70_v22, %v60_v62  ;;  %v107_v11 = vmax.f32 %v91_v2, 0.0 }
  0x11   :  { %v117_v9 = vpack.c.bf16 %v105_v1, %v104_v0  ;;  %v108_v13 = vmax.f32 %v92_v3, 0.0  ;;  %v62_v14 = vmul.f32 %v38_v32, %v28_v63  ;;  %v109_v15 = vmax.f32 %v93_v6, 0.0 }
  0x12   :  { %v95_v17 = vadd.f32 %v71_v26, %v61_v7  ;;  %v110_v10 = vmax.f32 %v94_v8, 0.0  ;;  %v63_v12 = vmul.f32 %v39_v36, %v29_v4  ;;  %v118_v18 = vpack.c.bf16 %v107_v11, %v106_v5 }
  0x13   :  { %125 = vst [vmem:[%s255_s3 + $0x18] sm:$0xff] %v117_v9  ;;  %v96_v19 = vadd.f32 %v72_v46, %v62_v14  ;;  %v119_v20 = vpack.c.bf16 %v109_v15, %v108_v13 }
  0x14   :  { %v111_v23 = vmax.f32 %v95_v17, 0.0  ;;  %v97_v24 = vadd.f32 %v73_v47, %v63_v12  ;;  %126 = vst [vmem:[%s255_s3 + $0x20] sm:$0xff] %v118_v18 }
  0x15   :  { %v112_v16 = vmax.f32 %v96_v19, 0.0  ;;  %127 = vst [vmem:[%s255_s3 + $0x28] sm:$0xff] %v119_v20 }
  0x16   :  { %v120_v21 = vpack.c.bf16 %v111_v23, %v110_v10  ;;  %v113_v22 = vmax.f32 %v97_v24, 0.0 }
  0x18   :  { %128 = vst [vmem:[%s255_s3 + $0x30] sm:$0xff] %v120_v21  ;;  %v121_v25 = vpack.c.bf16 %v113_v22, %v112_v16 }
  0x1a   :  { %129 = vst [vmem:[%s255_s3 + $0x38] sm:$0xff] %v121_v25 }

// kernel: _fwd.19
= control target key start
LH: loop header
LB: loop body
LE: loop exit
PB: predicated region body
PF: predicated region fallthrough
CT: control target
= control target key end

     0   :  { %vm300_vm0 = vcmask 130048   ;;  %s1380_s1 = inlined_call_operand.vmem [shape: bf16[16,128], index: 1, kind: input, shape index: {}]   ;;  %s1381_s0 = inlined_call_operand.vmem [shape: bf16[640,16], index: 0, kind: input, shape index: {}]   ;;  %s1382_s2 = inlined_call_operand.vmem [shape: f32[640,128], index: 2, kind: output, shape index: {}]  }
   0x1   :  { %v958_v0 = vld [vmem:[%s1380_s1] sm:$0xff]  ;;  %v928_v2 = vld [vmem:[%s1381_s0 + $0x50] sm:$0xff]  ;;  %v919_v5 = vld [vmem:[%s1381_s0 + $0x8] sm:$0xff] }
   0x2   :  { %v918_v1 = vld [vmem:[%s1381_s0] sm:$0xff]  ;;  %428 = vmatpush.bf16.msra.mxu0 %v958_v0  ;;  %959 = vmatpush.bf16.msra.mxu1 %v958_v0  ;;  %v948_v4 = vld [vmem:[%s1381_s0 + $0xf0] sm:$0xff]  ;;  %v929_v6 = vld [vmem:[%s1381_s0 + $0x58] sm:$0xff] }
   0x3   :  { %v938_v3 = vld [vmem:[%s1381_s0 + $0xa0] sm:$0xff]  ;;  %960 = vmatpush.bf16.msra.mxu2 %v958_v0  ;;  %961 = vmatpush.bf16.msra.mxu3 %v958_v0  ;;  %v939_v7 = vld [vmem:[%s1381_s0 + $0xa8] sm:$0xff]  ;;  %v949_v8 = vld [vmem:[%s1381_s0 + $0xf8] sm:$0xff] }
   0x4   :  { %v920_v9 = vld [vmem:[%s1381_s0 + $0x10] sm:$0xff]  ;;  %v930_v10 = vld [vmem:[%s1381_s0 + $0x60] sm:$0xff]  ;;  %v921_v13 = vld [vmem:[%s1381_s0 + $0x18] sm:$0xff] }
   0x5   :  { %878 = vmatmul.msk.bf16.vlgmr.msra.gmra.mxu0 %vm300_vm0, %v918_v1  ;;  %888 = vmatmul.msk.bf16.vlgmr.msra.gmra.mxu1 %vm300_vm0, %v928_v2  ;;  %v940_v11 = vld [vmem:[%s1381_s0 + $0xb0] sm:$0xff]  ;;  %v950_v12 = vld [vmem:[%s1381_s0 + $0x100] sm:$0xff]  ;;  %v931_v14 = vld [vmem:[%s1381_s0 + $0x68] sm:$0xff] }
   0x6   :  { %898 = vmatmul.msk.bf16.vlgmr.msra.gmra.mxu2 %vm300_vm0, %v938_v3  ;;  %908 = vmatmul.msk.bf16.vlgmr.msra.gmra.mxu3 %vm300_vm0, %v948_v4  ;;  %v941_v15 = vld [vmem:[%s1381_s0 + $0xb8] sm:$0xff]  ;;  %v951_v16 = vld [vmem:[%s1381_s0 + $0x108] sm:$0xff]  ;;  %v922_v17 = vld [vmem:[%s1381_s0 + $0x20] sm:$0xff] }
   0x7   :  { %v932_v18 = vld [vmem:[%s1381_s0 + $0x70] sm:$0xff]  ;;  %v942_v19 = vld [vmem:[%s1381_s0 + $0xc0] sm:$0xff]  ;;  %v923_v21 = vld [vmem:[%s1381_s0 + $0x28] sm:$0xff] }
   0x8   :  { %v952_v20 = vld [vmem:[%s1381_s0 + $0x110] sm:$0xff]  ;;  %v933_v22 = vld [vmem:[%s1381_s0 + $0x78] sm:$0xff]  ;;  %v943_v23 = vld [vmem:[%s1381_s0 + $0xc8] sm:$0xff] }
   0x9   :  { %v953_v24 = vld [vmem:[%s1381_s0 + $0x118] sm:$0xff]  ;;  %v924_v25 = vld [vmem:[%s1381_s0 + $0x30] sm:$0xff]  ;;  %v934_v26 = vld [vmem:[%s1381_s0 + $0x80] sm:$0xff] }
   0xa   :  { %v944_v27 = vld [vmem:[%s1381_s0 + $0xd0] sm:$0xff]  ;;  %v954_v28 = vld [vmem:[%s1381_s0 + $0x120] sm:$0xff]  ;;  %v925_v29 = vld [vmem:[%s1381_s0 + $0x38] sm:$0xff] }
   0xb   :  { %v935_v30 = vld [vmem:[%s1381_s0 + $0x88] sm:$0xff]  ;;  %v945_v31 = vld [vmem:[%s1381_s0 + $0xd8] sm:$0xff]  ;;  %v926_v33 = vld [vmem:[%s1381_s0 + $0x40] sm:$0xff] }
   0xc   :  { %v955_v32 = vld [vmem:[%s1381_s0 + $0x128] sm:$0xff]  ;;  %v936_v34 = vld [vmem:[%s1381_s0 + $0x90] sm:$0xff]  ;;  %v946_v37 = vld [vmem:[%s1381_s0 + $0xe0] sm:$0xff] }
   0xd   :  { %v956_v38 = vld [vmem:[%s1381_s0 + $0x130] sm:$0xff]  ;;  %v927_v45 = vld [vmem:[%s1381_s0 + $0x48] sm:$0xff]  ;;  %v937_v46 = vld [vmem:[%s1381_s0 + $0x98] sm:$0xff] }
   0xe   :  { %v947_v49 = vld [vmem:[%s1381_s0 + $0xe8] sm:$0xff]  ;;  %v957_v50 = vld [vmem:[%s1381_s0 + $0x138] sm:$0xff] }
  0x15   :  { %879 = vmatmul.msk.bf16.gmra.mxu0 %vm300_vm0, %v919_v5  ;;  %889 = vmatmul.msk.bf16.gmra.mxu1 %vm300_vm0, %v929_v6 }
  0x16   :  { %899 = vmatmul.msk.bf16.gmra.mxu2 %vm300_vm0, %v939_v7  ;;  %909 = vmatmul.msk.bf16.gmra.mxu3 %vm300_vm0, %v949_v8 }
  0x25   :  { %880 = vmatmul.msk.bf16.gmra.mxu0 %vm300_vm0, %v920_v9  ;;  %890 = vmatmul.msk.bf16.gmra.mxu1 %vm300_vm0, %v930_v10 }
  0x26   :  { %900 = vmatmul.msk.bf16.gmra.mxu2 %vm300_vm0, %v940_v11  ;;  %910 = vmatmul.msk.bf16.gmra.mxu3 %vm300_vm0, %v950_v12 }
  0x35   :  { %881 = vmatmul.msk.bf16.gmra.mxu0 %vm300_vm0, %v921_v13  ;;  %891 = vmatmul.msk.bf16.gmra.mxu1 %vm300_vm0, %v931_v14 }
  0x36   :  { %901 = vmatmul.msk.bf16.gmra.mxu2 %vm300_vm0, %v941_v15  ;;  %911 = vmatmul.msk.bf16.gmra.mxu3 %vm300_vm0, %v951_v16 }
  0x45   :  { %882 = vmatmul.msk.bf16.gmra.mxu0 %vm300_vm0, %v922_v17  ;;  %892 = vmatmul.msk.bf16.gmra.mxu1 %vm300_vm0, %v932_v18 }
  0x46   :  { %902 = vmatmul.msk.bf16.gmra.mxu2 %vm300_vm0, %v942_v19  ;;  %912 = vmatmul.msk.bf16.gmra.mxu3 %vm300_vm0, %v952_v20 }
  0x55   :  { %883 = vmatmul.msk.bf16.gmra.mxu0 %vm300_vm0, %v923_v21  ;;  %893 = vmatmul.msk.bf16.gmra.mxu1 %vm300_vm0, %v933_v22 }
  0x56   :  { %903 = vmatmul.msk.bf16.gmra.mxu2 %vm300_vm0, %v943_v23  ;;  %913 = vmatmul.msk.bf16.gmra.mxu3 %vm300_vm0, %v953_v24 }
  0x65   :  { %884 = vmatmul.msk.bf16.gmra.mxu0 %vm300_vm0, %v924_v25  ;;  %894 = vmatmul.msk.bf16.gmra.mxu1 %vm300_vm0, %v934_v26 }
  0x66   :  { %904 = vmatmul.msk.bf16.gmra.mxu2 %vm300_vm0, %v944_v27  ;;  %914 = vmatmul.msk.bf16.gmra.mxu3 %vm300_vm0, %v954_v28 }
  0x75   :  { %885 = vmatmul.msk.bf16.gmra.mxu0 %vm300_vm0, %v925_v29  ;;  %895 = vmatmul.msk.bf16.gmra.mxu1 %vm300_vm0, %v935_v30 }
  0x76   :  { %905 = vmatmul.msk.bf16.gmra.mxu2 %vm300_vm0, %v945_v31  ;;  %915 = vmatmul.msk.bf16.gmra.mxu3 %vm300_vm0, %v955_v32 }
  0x82   :  { %v430_v35 = vpop.f32.mrf.mxu0  ;;  %v480_v36 = vpop.f32.mrf.mxu1 }
  0x83   :  { %630 = vst [vmem:[%s1382_s2] sm:$0xff] %v430_v35 }
  0x84   :  { %650 = vst [vmem:[%s1382_s2 + $0xa0] sm:$0xff] %v480_v36 }
  0x85   :  { %886 = vmatmul.msk.bf16.gmra.mxu0 %vm300_vm0, %v926_v33  ;;  %896 = vmatmul.msk.bf16.gmra.mxu1 %vm300_vm0, %v936_v34 }
  0x86   :  { %906 = vmatmul.msk.bf16.gmra.mxu2 %vm300_vm0, %v946_v37  ;;  %916 = vmatmul.msk.bf16.gmra.mxu3 %vm300_vm0, %v956_v38 }
  0x89   :  { %v530_v39 = vpop.f32.mrf.mxu2  ;;  %v580_v40 = vpop.f32.mrf.mxu3 }
  0x8a   :  { %670 = vst [vmem:[%s1382_s2 + $0x140] sm:$0xff] %v530_v39  ;;  %v432_v41 = vpop.f32.mrf.mxu0  ;;  %v482_v42 = vpop.f32.mrf.mxu1 }
  0x8b   :  { %690 = vst [vmem:[%s1382_s2 + $0x1e0] sm:$0xff] %v580_v40 }
  0x8c   :  { %631 = vst [vmem:[%s1382_s2 + $0x8] sm:$0xff] %v432_v41 }
  0x8d   :  { %651 = vst [vmem:[%s1382_s2 + $0xa8] sm:$0xff] %v482_v42 }
  0x91   :  { %v532_v43 = vpop.f32.mrf.mxu2  ;;  %v582_v44 = vpop.f32.mrf.mxu3 }
  0x92   :  { %671 = vst [vmem:[%s1382_s2 + $0x148] sm:$0xff] %v532_v43  ;;  %v435_v47 = vpop.f32.mrf.mxu0  ;;  %v485_v48 = vpop.f32.mrf.mxu1 }
  0x93   :  { %691 = vst [vmem:[%s1382_s2 + $0x1e8] sm:$0xff] %v582_v44 }
  0x94   :  { %632 = vst [vmem:[%s1382_s2 + $0x10] sm:$0xff] %v435_v47 }
  0x95   :  { %652 = vst [vmem:[%s1382_s2 + $0xb0] sm:$0xff] %v485_v48  ;;  %887 = vmatmul.msk.bf16.gmra.mxu0 %vm300_vm0, %v927_v45  ;;  %897 = vmatmul.msk.bf16.gmra.mxu1 %vm300_vm0, %v937_v46 }
  0x96   :  { %907 = vmatmul.msk.bf16.gmra.mxu2 %vm300_vm0, %v947_v49  ;;  %917 = vmatmul.msk.bf16.gmra.mxu3 %vm300_vm0, %v957_v50 }
  0x99   :  { %v535_v51 = vpop.f32.mrf.mxu2  ;;  %v585_v52 = vpop.f32.mrf.mxu3 }
  0x9a   :  { %672 = vst [vmem:[%s1382_s2 + $0x150] sm:$0xff] %v535_v51  ;;  %v437_v53 = vpop.f32.mrf.mxu0  ;;  %v487_v54 = vpop.f32.mrf.mxu1 }
  0x9b   :  { %692 = vst [vmem:[%s1382_s2 + $0x1f0] sm:$0xff] %v585_v52 }
  0x9c   :  { %633 = vst [vmem:[%s1382_s2 + $0x18] sm:$0xff] %v437_v53 }
  0x9d   :  { %653 = vst [vmem:[%s1382_s2 + $0xb8] sm:$0xff] %v487_v54 }
  0xa1   :  { %v537_v55 = vpop.f32.mrf.mxu2  ;;  %v587_v56 = vpop.f32.mrf.mxu3 }
  0xa2   :  { %673 = vst [vmem:[%s1382_s2 + $0x158] sm:$0xff] %v537_v55  ;;  %v440_v57 = vpop.f32.mrf.mxu0  ;;  %v490_v58 = vpop.f32.mrf.mxu1 }
  0xa3   :  { %693 = vst [vmem:[%s1382_s2 + $0x1f8] sm:$0xff] %v587_v56 }
  0xa4   :  { %634 = vst [vmem:[%s1382_s2 + $0x20] sm:$0xff] %v440_v57 }
  0xa5   :  { %654 = vst [vmem:[%s1382_s2 + $0xc0] sm:$0xff] %v490_v58 }
  0xa9   :  { %v540_v59 = vpop.f32.mrf.mxu2  ;;  %v590_v60 = vpop.f32.mrf.mxu3 }
  0xaa   :  { %674 = vst [vmem:[%s1382_s2 + $0x160] sm:$0xff] %v540_v59  ;;  %v442_v61 = vpop.f32.mrf.mxu0  ;;  %v492_v62 = vpop.f32.mrf.mxu1 }
  0xab   :  { %694 = vst [vmem:[%s1382_s2 + $0x200] sm:$0xff] %v590_v60 }
  0xac   :  { %635 = vst [vmem:[%s1382_s2 + $0x28] sm:$0xff] %v442_v61 }
  0xad   :  { %655 = vst [vmem:[%s1382_s2 + $0xc8] sm:$0xff] %v492_v62 }
  0xb1   :  { %v542_v63 = vpop.f32.mrf.mxu2  ;;  %v592_v0 = vpop.f32.mrf.mxu3 }
  0xb2   :  { %675 = vst [vmem:[%s1382_s2 + $0x168] sm:$0xff] %v542_v63  ;;  %v445_v1 = vpop.f32.mrf.mxu0  ;;  %v495_v2 = vpop.f32.mrf.mxu1 }
  0xb3   :  { %695 = vst [vmem:[%s1382_s2 + $0x208] sm:$0xff] %v592_v0 }
  0xb4   :  { %636 = vst [vmem:[%s1382_s2 + $0x30] sm:$0xff] %v445_v1 }
  0xb5   :  { %656 = vst [vmem:[%s1382_s2 + $0xd0] sm:$0xff] %v495_v2 }
  0xb9   :  { %v545_v3 = vpop.f32.mrf.mxu2  ;;  %v595_v4 = vpop.f32.mrf.mxu3 }
  0xba   :  { %676 = vst [vmem:[%s1382_s2 + $0x170] sm:$0xff] %v545_v3  ;;  %v447_v5 = vpop.f32.mrf.mxu0  ;;  %v497_v6 = vpop.f32.mrf.mxu1 }
  0xbb   :  { %696 = vst [vmem:[%s1382_s2 + $0x210] sm:$0xff] %v595_v4 }
  0xbc   :  { %637 = vst [vmem:[%s1382_s2 + $0x38] sm:$0xff] %v447_v5 }
  0xbd   :  { %657 = vst [vmem:[%s1382_s2 + $0xd8] sm:$0xff] %v497_v6 }
  0xc1   :  { %v547_v7 = vpop.f32.mrf.mxu2  ;;  %v597_v8 = vpop.f32.mrf.mxu3 }
  0xc2   :  { %677 = vst [vmem:[%s1382_s2 + $0x178] sm:$0xff] %v547_v7  ;;  %v450_v9 = vpop.f32.mrf.mxu0  ;;  %v500_v10 = vpop.f32.mrf.mxu1 }
  0xc3   :  { %697 = vst [vmem:[%s1382_s2 + $0x218] sm:$0xff] %v597_v8 }
  0xc4   :  { %638 = vst [vmem:[%s1382_s2 + $0x40] sm:$0xff] %v450_v9 }
  0xc5   :  { %658 = vst [vmem:[%s1382_s2 + $0xe0] sm:$0xff] %v500_v10 }
  0xc9   :  { %v550_v11 = vpop.f32.mrf.mxu2  ;;  %v600_v12 = vpop.f32.mrf.mxu3 }
  0xca   :  { %678 = vst [vmem:[%s1382_s2 + $0x180] sm:$0xff] %v550_v11  ;;  %v452_v13 = vpop.f32.mrf.mxu0  ;;  %v502_v14 = vpop.f32.mrf.mxu1 }
  0xcb   :  { %698 = vst [vmem:[%s1382_s2 + $0x220] sm:$0xff] %v600_v12 }
  0xcc   :  { %639 = vst [vmem:[%s1382_s2 + $0x48] sm:$0xff] %v452_v13 }
  0xcd   :  { %659 = vst [vmem:[%s1382_s2 + $0xe8] sm:$0xff] %v502_v14 }
  0xd1   :  { %v552_v15 = vpop.f32.mrf.mxu2  ;;  %v602_v16 = vpop.f32.mrf.mxu3 }
  0xd2   :  { %679 = vst [vmem:[%s1382_s2 + $0x188] sm:$0xff] %v552_v15  ;;  %v455_v17 = vpop.f32.mrf.mxu0  ;;  %v505_v18 = vpop.f32.mrf.mxu1 }
  0xd3   :  { %699 = vst [vmem:[%s1382_s2 + $0x228] sm:$0xff] %v602_v16 }
  0xd4   :  { %640 = vst [vmem:[%s1382_s2 + $0x50] sm:$0xff] %v455_v17 }
  0xd5   :  { %660 = vst [vmem:[%s1382_s2 + $0xf0] sm:$0xff] %v505_v18 }
  0xd9   :  { %v555_v19 = vpop.f32.mrf.mxu2  ;;  %v605_v20 = vpop.f32.mrf.mxu3 }
  0xda   :  { %680 = vst [vmem:[%s1382_s2 + $0x190] sm:$0xff] %v555_v19  ;;  %v457_v21 = vpop.f32.mrf.mxu0  ;;  %v507_v22 = vpop.f32.mrf.mxu1 }
  0xdb   :  { %700 = vst [vmem:[%s1382_s2 + $0x230] sm:$0xff] %v605_v20 }
  0xdc   :  { %641 = vst [vmem:[%s1382_s2 + $0x58] sm:$0xff] %v457_v21 }
  0xdd   :  { %661 = vst [vmem:[%s1382_s2 + $0xf8] sm:$0xff] %v507_v22 }
  0xe1   :  { %v557_v23 = vpop.f32.mrf.mxu2  ;;  %v607_v24 = vpop.f32.mrf.mxu3 }
  0xe2   :  { %681 = vst [vmem:[%s1382_s2 + $0x198] sm:$0xff] %v557_v23  ;;  %v460_v25 = vpop.f32.mrf.mxu0  ;;  %v510_v26 = vpop.f32.mrf.mxu1 }
  0xe3   :  { %701 = vst [vmem:[%s1382_s2 + $0x238] sm:$0xff] %v607_v24 }
  0xe4   :  { %642 = vst [vmem:[%s1382_s2 + $0x60] sm:$0xff] %v460_v25 }
  0xe5   :  { %662 = vst [vmem:[%s1382_s2 + $0x100] sm:$0xff] %v510_v26 }
  0xe9   :  { %v560_v27 = vpop.f32.mrf.mxu2  ;;  %v610_v28 = vpop.f32.mrf.mxu3 }
  0xea   :  { %682 = vst [vmem:[%s1382_s2 + $0x1a0] sm:$0xff] %v560_v27  ;;  %v462_v29 = vpop.f32.mrf.mxu0  ;;  %v512_v30 = vpop.f32.mrf.mxu1 }
  0xeb   :  { %702 = vst [vmem:[%s1382_s2 + $0x240] sm:$0xff] %v610_v28 }
  0xec   :  { %643 = vst [vmem:[%s1382_s2 + $0x68] sm:$0xff] %v462_v29 }
  0xed   :  { %663 = vst [vmem:[%s1382_s2 + $0x108] sm:$0xff] %v512_v30 }
  0xf1   :  { %v562_v31 = vpop.f32.mrf.mxu2  ;;  %v612_v32 = vpop.f32.mrf.mxu3 }
  0xf2   :  { %683 = vst [vmem:[%s1382_s2 + $0x1a8] sm:$0xff] %v562_v31  ;;  %v465_v33 = vpop.f32.mrf.mxu0  ;;  %v515_v34 = vpop.f32.mrf.mxu1 }
  0xf3   :  { %703 = vst [vmem:[%s1382_s2 + $0x248] sm:$0xff] %v612_v32 }
  0xf4   :  { %644 = vst [vmem:[%s1382_s2 + $0x70] sm:$0xff] %v465_v33 }
  0xf5   :  { %664 = vst [vmem:[%s1382_s2 + $0x110] sm:$0xff] %v515_v34 }
  0xf9   :  { %v565_v35 = vpop.f32.mrf.mxu2  ;;  %v615_v36 = vpop.f32.mrf.mxu3 }
  0xfa   :  { %684 = vst [vmem:[%s1382_s2 + $0x1b0] sm:$0xff] %v565_v35  ;;  %v467_v37 = vpop.f32.mrf.mxu0  ;;  %v517_v38 = vpop.f32.mrf.mxu1 }
  0xfb   :  { %704 = vst [vmem:[%s1382_s2 + $0x250] sm:$0xff] %v615_v36 }
  0xfc   :  { %645 = vst [vmem:[%s1382_s2 + $0x78] sm:$0xff] %v467_v37 }
  0xfd   :  { %665 = vst [vmem:[%s1382_s2 + $0x118] sm:$0xff] %v517_v38 }
 0x101   :  { %v567_v39 = vpop.f32.mrf.mxu2  ;;  %v617_v40 = vpop.f32.mrf.mxu3 }
 0x102   :  { %685 = vst [vmem:[%s1382_s2 + $0x1b8] sm:$0xff] %v567_v39  ;;  %v470_v41 = vpop.f32.mrf.mxu0  ;;  %v520_v42 = vpop.f32.mrf.mxu1 }
 0x103   :  { %705 = vst [vmem:[%s1382_s2 + $0x258] sm:$0xff] %v617_v40 }
 0x104   :  { %646 = vst [vmem:[%s1382_s2 + $0x80] sm:$0xff] %v470_v41 }
 0x105   :  { %666 = vst [vmem:[%s1382_s2 + $0x120] sm:$0xff] %v520_v42 }
 0x109   :  { %v570_v43 = vpop.f32.mrf.mxu2  ;;  %v620_v44 = vpop.f32.mrf.mxu3 }
 0x10a   :  { %686 = vst [vmem:[%s1382_s2 + $0x1c0] sm:$0xff] %v570_v43  ;;  %v472_v45 = vpop.f32.mrf.mxu0  ;;  %v522_v46 = vpop.f32.mrf.mxu1 }
 0x10b   :  { %706 = vst [vmem:[%s1382_s2 + $0x260] sm:$0xff] %v620_v44 }
 0x10c   :  { %647 = vst [vmem:[%s1382_s2 + $0x88] sm:$0xff] %v472_v45 }
 0x10d   :  { %667 = vst [vmem:[%s1382_s2 + $0x128] sm:$0xff] %v522_v46 }
 0x111   :  { %v572_v47 = vpop.f32.mrf.mxu2  ;;  %v622_v48 = vpop.f32.mrf.mxu3 }
 0x112   :  { %687 = vst [vmem:[%s1382_s2 + $0x1c8] sm:$0xff] %v572_v47  ;;  %v475_v49 = vpop.f32.mrf.mxu0  ;;  %v525_v50 = vpop.f32.mrf.mxu1 }
 0x113   :  { %707 = vst [vmem:[%s1382_s2 + $0x268] sm:$0xff] %v622_v48 }
 0x114   :  { %648 = vst [vmem:[%s1382_s2 + $0x90] sm:$0xff] %v475_v49 }
 0x115   :  { %668 = vst [vmem:[%s1382_s2 + $0x130] sm:$0xff] %v525_v50 }
 0x119   :  { %v575_v51 = vpop.f32.mrf.mxu2  ;;  %v625_v52 = vpop.f32.mrf.mxu3 }
 0x11a   :  { %688 = vst [vmem:[%s1382_s2 + $0x1d0] sm:$0xff] %v575_v51  ;;  %v477_v53 = vpop.f32.mrf.mxu0  ;;  %v527_v54 = vpop.f32.mrf.mxu1 }
 0x11b   :  { %708 = vst [vmem:[%s1382_s2 + $0x270] sm:$0xff] %v625_v52 }
 0x11c   :  { %649 = vst [vmem:[%s1382_s2 + $0x98] sm:$0xff] %v477_v53 }
 0x11d   :  { %669 = vst [vmem:[%s1382_s2 + $0x138] sm:$0xff] %v527_v54 }
 0x121   :  { %v577_v55 = vpop.f32.mrf.mxu2  ;;  %v627_v56 = vpop.f32.mrf.mxu3 }
 0x122   :  { %689 = vst [vmem:[%s1382_s2 + $0x1d8] sm:$0xff] %v577_v55 }
 0x123   :  { %709 = vst [vmem:[%s1382_s2 + $0x278] sm:$0xff] %v627_v56 }

// kernel: squeeze.139
= control target key start
LH: loop header
LB: loop body
LE: loop exit
PB: predicated region body
PF: predicated region fallthrough
CT: control target
= control target key end

     0   :  { %s549_s8 = smov 112   ;;  %s550_s9 = smov 120   ;;  %vm3_vm0 = vcmask 64512   ;;  %s1092_s0 = inlined_call_operand.vmem [shape: f32[2048], index: 0, kind: input, shape index: {}]   ;;  %s1093_s1 = inlined_call_operand.vmem [shape: f32[256,8], index: 1, kind: output, shape index: {}]  }
   0x1   :  { %v44_v0 = vld [vmem:[%s1092_s0] sm:$0xff]   ;;  %s551_s10 = smov 104   ;;  %v412_v1 = vld [vmem:[%s1092_s0 + $0x8] sm:$0xff]   ;;  %s552_s0 = smov 96  }
   0x2   :  { %45 = vrot.lane.b32.xlu1 %v44_v0, %s549_s8  ;;  %20 = vrot.lane.b32.xlu0 %v44_v0, %s550_s9  ;;  %s553_s13 = smov 88   ;;  %s554_s14 = smov 80   ;;  %4 = vst.msk [vmem:[%s1093_s1] ss:$16 sm:$0x3] %vm3_vm0, %v44_v0  }
   0x3   :  { %70 = vrot.lane.b32.xlu2 %v44_v0, %s551_s10  ;;  %s555_s15 = smov 72   ;;  %s556_s16 = smov 64   ;;  %5 = vst.msk [vmem:[%s1093_s1] ss:$16 sm:$0xc] %vm3_vm0, %v44_v0  }
   0x4   :  { %s557_s17 = smov 56   ;;  %6 = vst.msk [vmem:[%s1093_s1] ss:$16 sm:$0x30] %vm3_vm0, %v44_v0   ;;  %s558_s30 = smov 48  }
   0x5   :  { %7 = vst.msk [vmem:[%s1093_s1] ss:$16 sm:$0xc0] %vm3_vm0, %v44_v0   ;;  %s559_s4 = smov 40   ;;  %s560_s7 = smov 32  }
   0x6   :  { %395 = vst.msk [vmem:[%s1093_s1 + $0x80] ss:$16 sm:$0x3] %vm3_vm0, %v412_v1  }
   0x7   :  { %396 = vst.msk [vmem:[%s1093_s1 + $0x80] ss:$16 sm:$0xc] %vm3_vm0, %v412_v1  }
   0x8   :  { %397 = vst.msk [vmem:[%s1093_s1 + $0x80] ss:$16 sm:$0x30] %vm3_vm0, %v412_v1  }
   0x9   :  { %398 = vst.msk [vmem:[%s1093_s1 + $0x80] ss:$16 sm:$0xc0] %vm3_vm0, %v412_v1  }
   0xa   :  { %58 = vrot.lane.b32.xlu1 %v412_v1, %s549_s8  ;;  %33 = vrot.lane.b32.xlu0 %v412_v1, %s550_s9  ;;  %s561_s8 = smov 24   ;;  %s562_s9 = smov 16  }
   0xb   :  { %83 = vrot.lane.b32.xlu2 %v412_v1, %s551_s10  ;;  %s563_s10 = smov 8  }
  0x12   :  { %108 = vrot.lane.b32.xlu1 %v412_v1, %s552_s0  ;;  %95 = vrot.lane.b32.xlu0 %v44_v0, %s552_s0 }
  0x13   :  { %120 = vrot.lane.b32.xlu2 %v44_v0, %s553_s13 }
  0x1a   :  { %145 = vrot.lane.b32.xlu1 %v44_v0, %s554_s14  ;;  %133 = vrot.lane.b32.xlu0 %v412_v1, %s553_s13 }
  0x1b   :  { %158 = vrot.lane.b32.xlu2 %v412_v1, %s554_s14 }
  0x22   :  { %183 = vrot.lane.b32.xlu1 %v412_v1, %s555_s15  ;;  %170 = vrot.lane.b32.xlu0 %v44_v0, %s555_s15 }
  0x23   :  { %195 = vrot.lane.b32.xlu2 %v44_v0, %s556_s16 }
  0x2a   :  { %220 = vrot.lane.b32.xlu1 %v44_v0, %s557_s17  ;;  %208 = vrot.lane.b32.xlu0 %v412_v1, %s556_s16 }
  0x2b   :  { %233 = vrot.lane.b32.xlu2 %v412_v1, %s557_s17 }
  0x32   :  { %258 = vrot.lane.b32.xlu1 %v412_v1, %s558_s30  ;;  %245 = vrot.lane.b32.xlu0 %v44_v0, %s558_s30 }
  0x33   :  { %270 = vrot.lane.b32.xlu2 %v44_v0, %s559_s4 }
  0x3a   :  { %295 = vrot.lane.b32.xlu1 %v44_v0, %s560_s7  ;;  %283 = vrot.lane.b32.xlu0 %v412_v1, %s559_s4 }
  0x3b   :  { %308 = vrot.lane.b32.xlu2 %v412_v1, %s560_s7 }
  0x42   :  { %333 = vrot.lane.b32.xlu1 %v412_v1, %s561_s8  ;;  %320 = vrot.lane.b32.xlu0 %v44_v0, %s561_s8 }
  0x43   :  { %345 = vrot.lane.b32.xlu2 %v44_v0, %s562_s9 }
  0x4a   :  { %370 = vrot.lane.b32.xlu1 %v44_v0, %s563_s10  ;;  %358 = vrot.lane.b32.xlu0 %v412_v1, %s562_s9 }
  0x4b   :  { %383 = vrot.lane.b32.xlu2 %v412_v1, %s563_s10 }
  0x5d   :  { %v71_v2 = vpop.permute.xlu2 %70  }
  0x5e   :  { %417 = vst.msk [vmem:[%s1093_s1 + $0x3] ss:$16 sm:$0x3] %vm3_vm0, %v71_v2  }
  0x5f   :  { %418 = vst.msk [vmem:[%s1093_s1 + $0x3] ss:$16 sm:$0xc] %vm3_vm0, %v71_v2  }
  0x60   :  { %419 = vst.msk [vmem:[%s1093_s1 + $0x3] ss:$16 sm:$0x30] %vm3_vm0, %v71_v2  }
  0x61   :  { %420 = vst.msk [vmem:[%s1093_s1 + $0x3] ss:$16 sm:$0xc0] %vm3_vm0, %v71_v2  }
  0x65   :  { %v84_v3 = vpop.permute.xlu2 %83  }
  0x66   :  { %422 = vst.msk [vmem:[%s1093_s1 + $0x83] ss:$16 sm:$0x3] %vm3_vm0, %v84_v3  }
  0x67   :  { %423 = vst.msk [vmem:[%s1093_s1 + $0x83] ss:$16 sm:$0xc] %vm3_vm0, %v84_v3  }
  0x68   :  { %424 = vst.msk [vmem:[%s1093_s1 + $0x83] ss:$16 sm:$0x30] %vm3_vm0, %v84_v3  }
  0x69   :  { %425 = vst.msk [vmem:[%s1093_s1 + $0x83] ss:$16 sm:$0xc0] %vm3_vm0, %v84_v3  }
  0x6d   :  { %v121_v4 = vpop.permute.xlu2 %120  }
  0x6e   :  { %435 = vst.msk [vmem:[%s1093_s1 + $0x5] ss:$16 sm:$0x3] %vm3_vm0, %v121_v4  }
  0x6f   :  { %436 = vst.msk [vmem:[%s1093_s1 + $0x5] ss:$16 sm:$0xc] %vm3_vm0, %v121_v4  }
  0x70   :  { %437 = vst.msk [vmem:[%s1093_s1 + $0x5] ss:$16 sm:$0x30] %vm3_vm0, %v121_v4  }
  0x71   :  { %438 = vst.msk [vmem:[%s1093_s1 + $0x5] ss:$16 sm:$0xc0] %vm3_vm0, %v121_v4  }
  0x74   :  { %v46_v5 = vpop.permute.xlu1 %45   ;;  %v21_v6 = vpop.permute.xlu0 %20  }
  0x75   :  { %408 = vst.msk [vmem:[%s1093_s1 + $0x2] ss:$16 sm:$0x3] %vm3_vm0, %v46_v5   ;;  %v159_v7 = vpop.permute.xlu2 %158  }
  0x76   :  { %409 = vst.msk [vmem:[%s1093_s1 + $0x2] ss:$16 sm:$0xc] %vm3_vm0, %v46_v5  }
  0x77   :  { %410 = vst.msk [vmem:[%s1093_s1 + $0x2] ss:$16 sm:$0x30] %vm3_vm0, %v46_v5  }
  0x78   :  { %411 = vst.msk [vmem:[%s1093_s1 + $0x2] ss:$16 sm:$0xc0] %vm3_vm0, %v46_v5  }
  0x79   :  { %399 = vst.msk [vmem:[%s1093_s1 + $0x1] ss:$16 sm:$0x3] %vm3_vm0, %v21_v6  }
  0x7a   :  { %400 = vst.msk [vmem:[%s1093_s1 + $0x1] ss:$16 sm:$0xc] %vm3_vm0, %v21_v6  }
  0x7b   :  { %401 = vst.msk [vmem:[%s1093_s1 + $0x1] ss:$16 sm:$0x30] %vm3_vm0, %v21_v6  }
  0x7c   :  { %402 = vst.msk [vmem:[%s1093_s1 + $0x1] ss:$16 sm:$0xc0] %vm3_vm0, %v21_v6   ;;  %v59_v8 = vpop.permute.xlu1 %58   ;;  %v34_v9 = vpop.permute.xlu0 %33  }
  0x7d   :  { %413 = vst.msk [vmem:[%s1093_s1 + $0x82] ss:$16 sm:$0x3] %vm3_vm0, %v59_v8   ;;  %v196_v10 = vpop.permute.xlu2 %195  }
  0x7e   :  { %414 = vst.msk [vmem:[%s1093_s1 + $0x82] ss:$16 sm:$0xc] %vm3_vm0, %v59_v8  }
  0x7f   :  { %415 = vst.msk [vmem:[%s1093_s1 + $0x82] ss:$16 sm:$0x30] %vm3_vm0, %v59_v8  }
  0x80   :  { %416 = vst.msk [vmem:[%s1093_s1 + $0x82] ss:$16 sm:$0xc0] %vm3_vm0, %v59_v8  }
  0x81   :  { %404 = vst.msk [vmem:[%s1093_s1 + $0x81] ss:$16 sm:$0x3] %vm3_vm0, %v34_v9  }
  0x82   :  { %405 = vst.msk [vmem:[%s1093_s1 + $0x81] ss:$16 sm:$0xc] %vm3_vm0, %v34_v9  }
  0x83   :  { %406 = vst.msk [vmem:[%s1093_s1 + $0x81] ss:$16 sm:$0x30] %vm3_vm0, %v34_v9  }
  0x84   :  { %407 = vst.msk [vmem:[%s1093_s1 + $0x81] ss:$16 sm:$0xc0] %vm3_vm0, %v34_v9   ;;  %v109_v11 = vpop.permute.xlu1 %108   ;;  %v96_v12 = vpop.permute.xlu0 %95  }
  0x85   :  { %431 = vst.msk [vmem:[%s1093_s1 + $0x84] ss:$16 sm:$0x3] %vm3_vm0, %v109_v11   ;;  %v234_v13 = vpop.permute.xlu2 %233  }
  0x86   :  { %432 = vst.msk [vmem:[%s1093_s1 + $0x84] ss:$16 sm:$0xc] %vm3_vm0, %v109_v11  }
  0x87   :  { %433 = vst.msk [vmem:[%s1093_s1 + $0x84] ss:$16 sm:$0x30] %vm3_vm0, %v109_v11  }
  0x88   :  { %434 = vst.msk [vmem:[%s1093_s1 + $0x84] ss:$16 sm:$0xc0] %vm3_vm0, %v109_v11  }
  0x89   :  { %426 = vst.msk [vmem:[%s1093_s1 + $0x4] ss:$16 sm:$0x3] %vm3_vm0, %v96_v12  }
  0x8a   :  { %427 = vst.msk [vmem:[%s1093_s1 + $0x4] ss:$16 sm:$0xc] %vm3_vm0, %v96_v12  }
  0x8b   :  { %428 = vst.msk [vmem:[%s1093_s1 + $0x4] ss:$16 sm:$0x30] %vm3_vm0, %v96_v12  }
  0x8c   :  { %429 = vst.msk [vmem:[%s1093_s1 + $0x4] ss:$16 sm:$0xc0] %vm3_vm0, %v96_v12   ;;  %v146_v14 = vpop.permute.xlu1 %145   ;;  %v134_v15 = vpop.permute.xlu0 %133  }
  0x8d   :  { %449 = vst.msk [vmem:[%s1093_s1 + $0x86] ss:$16 sm:$0x3] %vm3_vm0, %v159_v7   ;;  %v271_v16 = vpop.permute.xlu2 %270  }
  0x8e   :  { %450 = vst.msk [vmem:[%s1093_s1 + $0x86] ss:$16 sm:$0xc] %vm3_vm0, %v159_v7  }
  0x8f   :  { %451 = vst.msk [vmem:[%s1093_s1 + $0x86] ss:$16 sm:$0x30] %vm3_vm0, %v159_v7  }
  0x90   :  { %452 = vst.msk [vmem:[%s1093_s1 + $0x86] ss:$16 sm:$0xc0] %vm3_vm0, %v159_v7  }
  0x91   :  { %444 = vst.msk [vmem:[%s1093_s1 + $0x6] ss:$16 sm:$0x3] %vm3_vm0, %v146_v14  }
  0x92   :  { %445 = vst.msk [vmem:[%s1093_s1 + $0x6] ss:$16 sm:$0xc] %vm3_vm0, %v146_v14  }
  0x93   :  { %446 = vst.msk [vmem:[%s1093_s1 + $0x6] ss:$16 sm:$0x30] %vm3_vm0, %v146_v14  }
  0x94   :  { %447 = vst.msk [vmem:[%s1093_s1 + $0x6] ss:$16 sm:$0xc0] %vm3_vm0, %v146_v14   ;;  %v184_v17 = vpop.permute.xlu1 %183   ;;  %v171_v18 = vpop.permute.xlu0 %170  }
  0x95   :  { %440 = vst.msk [vmem:[%s1093_s1 + $0x85] ss:$16 sm:$0x3] %vm3_vm0, %v134_v15   ;;  %v309_v21 = vpop.permute.xlu2 %308  }
  0x96   :  { %441 = vst.msk [vmem:[%s1093_s1 + $0x85] ss:$16 sm:$0xc] %vm3_vm0, %v134_v15  }
  0x97   :  { %442 = vst.msk [vmem:[%s1093_s1 + $0x85] ss:$16 sm:$0x30] %vm3_vm0, %v134_v15  }
  0x98   :  { %443 = vst.msk [vmem:[%s1093_s1 + $0x85] ss:$16 sm:$0xc0] %vm3_vm0, %v134_v15  }
  0x99   :  { %462 = vst.msk [vmem:[%s1093_s1 + $0x8] ss:$16 sm:$0x3] %vm3_vm0, %v196_v10  }
  0x9a   :  { %463 = vst.msk [vmem:[%s1093_s1 + $0x8] ss:$16 sm:$0xc] %vm3_vm0, %v196_v10  }
  0x9b   :  { %464 = vst.msk [vmem:[%s1093_s1 + $0x8] ss:$16 sm:$0x30] %vm3_vm0, %v196_v10  }
  0x9c   :  { %465 = vst.msk [vmem:[%s1093_s1 + $0x8] ss:$16 sm:$0xc0] %vm3_vm0, %v196_v10   ;;  %v221_v19 = vpop.permute.xlu1 %220   ;;  %v209_v20 = vpop.permute.xlu0 %208  }
  0x9d   :  { %458 = vst.msk [vmem:[%s1093_s1 + $0x87] ss:$16 sm:$0x3] %vm3_vm0, %v184_v17   ;;  %v346_v24 = vpop.permute.xlu2 %345  }
  0x9e   :  { %459 = vst.msk [vmem:[%s1093_s1 + $0x87] ss:$16 sm:$0xc] %vm3_vm0, %v184_v17  }
  0x9f   :  { %460 = vst.msk [vmem:[%s1093_s1 + $0x87] ss:$16 sm:$0x30] %vm3_vm0, %v184_v17  }
  0xa0   :  { %461 = vst.msk [vmem:[%s1093_s1 + $0x87] ss:$16 sm:$0xc0] %vm3_vm0, %v184_v17  }
  0xa1   :  { %453 = vst.msk [vmem:[%s1093_s1 + $0x7] ss:$16 sm:$0x3] %vm3_vm0, %v171_v18  }
  0xa2   :  { %454 = vst.msk [vmem:[%s1093_s1 + $0x7] ss:$16 sm:$0xc] %vm3_vm0, %v171_v18  }
  0xa3   :  { %455 = vst.msk [vmem:[%s1093_s1 + $0x7] ss:$16 sm:$0x30] %vm3_vm0, %v171_v18  }
  0xa4   :  { %456 = vst.msk [vmem:[%s1093_s1 + $0x7] ss:$16 sm:$0xc0] %vm3_vm0, %v171_v18   ;;  %v259_v22 = vpop.permute.xlu1 %258   ;;  %v246_v23 = vpop.permute.xlu0 %245  }
  0xa5   :  { %476 = vst.msk [vmem:[%s1093_s1 + $0x89] ss:$16 sm:$0x3] %vm3_vm0, %v234_v13   ;;  %v384_v29 = vpop.permute.xlu2 %383  }
  0xa6   :  { %477 = vst.msk [vmem:[%s1093_s1 + $0x89] ss:$16 sm:$0xc] %vm3_vm0, %v234_v13  }
  0xa7   :  { %478 = vst.msk [vmem:[%s1093_s1 + $0x89] ss:$16 sm:$0x30] %vm3_vm0, %v234_v13  }
  0xa8   :  { %479 = vst.msk [vmem:[%s1093_s1 + $0x89] ss:$16 sm:$0xc0] %vm3_vm0, %v234_v13  }
  0xa9   :  { %471 = vst.msk [vmem:[%s1093_s1 + $0x9] ss:$16 sm:$0x3] %vm3_vm0, %v221_v19  }
  0xaa   :  { %472 = vst.msk [vmem:[%s1093_s1 + $0x9] ss:$16 sm:$0xc] %vm3_vm0, %v221_v19  }
  0xab   :  { %473 = vst.msk [vmem:[%s1093_s1 + $0x9] ss:$16 sm:$0x30] %vm3_vm0, %v221_v19  }
  0xac   :  { %474 = vst.msk [vmem:[%s1093_s1 + $0x9] ss:$16 sm:$0xc0] %vm3_vm0, %v221_v19   ;;  %v296_v25 = vpop.permute.xlu1 %295   ;;  %v284_v26 = vpop.permute.xlu0 %283  }
  0xad   :  { %467 = vst.msk [vmem:[%s1093_s1 + $0x88] ss:$16 sm:$0x3] %vm3_vm0, %v209_v20  }
  0xae   :  { %468 = vst.msk [vmem:[%s1093_s1 + $0x88] ss:$16 sm:$0xc] %vm3_vm0, %v209_v20  }
  0xaf   :  { %469 = vst.msk [vmem:[%s1093_s1 + $0x88] ss:$16 sm:$0x30] %vm3_vm0, %v209_v20  }
  0xb0   :  { %470 = vst.msk [vmem:[%s1093_s1 + $0x88] ss:$16 sm:$0xc0] %vm3_vm0, %v209_v20  }
  0xb1   :  { %489 = vst.msk [vmem:[%s1093_s1 + $0xb] ss:$16 sm:$0x3] %vm3_vm0, %v271_v16  }
  0xb2   :  { %490 = vst.msk [vmem:[%s1093_s1 + $0xb] ss:$16 sm:$0xc] %vm3_vm0, %v271_v16  }
  0xb3   :  { %491 = vst.msk [vmem:[%s1093_s1 + $0xb] ss:$16 sm:$0x30] %vm3_vm0, %v271_v16  }
  0xb4   :  { %492 = vst.msk [vmem:[%s1093_s1 + $0xb] ss:$16 sm:$0xc0] %vm3_vm0, %v271_v16   ;;  %v334_v27 = vpop.permute.xlu1 %333   ;;  %v321_v28 = vpop.permute.xlu0 %320  }
  0xb5   :  { %485 = vst.msk [vmem:[%s1093_s1 + $0x8a] ss:$16 sm:$0x3] %vm3_vm0, %v259_v22  }
  0xb6   :  { %486 = vst.msk [vmem:[%s1093_s1 + $0x8a] ss:$16 sm:$0xc] %vm3_vm0, %v259_v22  }
  0xb7   :  { %487 = vst.msk [vmem:[%s1093_s1 + $0x8a] ss:$16 sm:$0x30] %vm3_vm0, %v259_v22  }
  0xb8   :  { %488 = vst.msk [vmem:[%s1093_s1 + $0x8a] ss:$16 sm:$0xc0] %vm3_vm0, %v259_v22  }
  0xb9   :  { %480 = vst.msk [vmem:[%s1093_s1 + $0xa] ss:$16 sm:$0x3] %vm3_vm0, %v246_v23  }
  0xba   :  { %481 = vst.msk [vmem:[%s1093_s1 + $0xa] ss:$16 sm:$0xc] %vm3_vm0, %v246_v23  }
  0xbb   :  { %482 = vst.msk [vmem:[%s1093_s1 + $0xa] ss:$16 sm:$0x30] %vm3_vm0, %v246_v23  }
  0xbc   :  { %483 = vst.msk [vmem:[%s1093_s1 + $0xa] ss:$16 sm:$0xc0] %vm3_vm0, %v246_v23   ;;  %v371_v30 = vpop.permute.xlu1 %370   ;;  %v359_v31 = vpop.permute.xlu0 %358  }
  0xbd   :  { %503 = vst.msk [vmem:[%s1093_s1 + $0x8c] ss:$16 sm:$0x3] %vm3_vm0, %v309_v21  }
  0xbe   :  { %504 = vst.msk [vmem:[%s1093_s1 + $0x8c] ss:$16 sm:$0xc] %vm3_vm0, %v309_v21  }
  0xbf   :  { %505 = vst.msk [vmem:[%s1093_s1 + $0x8c] ss:$16 sm:$0x30] %vm3_vm0, %v309_v21  }
  0xc0   :  { %506 = vst.msk [vmem:[%s1093_s1 + $0x8c] ss:$16 sm:$0xc0] %vm3_vm0, %v309_v21  }
  0xc1   :  { %498 = vst.msk [vmem:[%s1093_s1 + $0xc] ss:$16 sm:$0x3] %vm3_vm0, %v296_v25  }
  0xc2   :  { %499 = vst.msk [vmem:[%s1093_s1 + $0xc] ss:$16 sm:$0xc] %vm3_vm0, %v296_v25  }
  0xc3   :  { %500 = vst.msk [vmem:[%s1093_s1 + $0xc] ss:$16 sm:$0x30] %vm3_vm0, %v296_v25  }
  0xc4   :  { %501 = vst.msk [vmem:[%s1093_s1 + $0xc] ss:$16 sm:$0xc0] %vm3_vm0, %v296_v25  }
  0xc5   :  { %494 = vst.msk [vmem:[%s1093_s1 + $0x8b] ss:$16 sm:$0x3] %vm3_vm0, %v284_v26  }
  0xc6   :  { %495 = vst.msk [vmem:[%s1093_s1 + $0x8b] ss:$16 sm:$0xc] %vm3_vm0, %v284_v26  }
  0xc7   :  { %496 = vst.msk [vmem:[%s1093_s1 + $0x8b] ss:$16 sm:$0x30] %vm3_vm0, %v284_v26  }
  0xc8   :  { %497 = vst.msk [vmem:[%s1093_s1 + $0x8b] ss:$16 sm:$0xc0] %vm3_vm0, %v284_v26  }
  0xc9   :  { %516 = vst.msk [vmem:[%s1093_s1 + $0xe] ss:$16 sm:$0x3] %vm3_vm0, %v346_v24  }
  0xca   :  { %517 = vst.msk [vmem:[%s1093_s1 + $0xe] ss:$16 sm:$0xc] %vm3_vm0, %v346_v24  }
  0xcb   :  { %518 = vst.msk [vmem:[%s1093_s1 + $0xe] ss:$16 sm:$0x30] %vm3_vm0, %v346_v24  }
  0xcc   :  { %519 = vst.msk [vmem:[%s1093_s1 + $0xe] ss:$16 sm:$0xc0] %vm3_vm0, %v346_v24  }
  0xcd   :  { %512 = vst.msk [vmem:[%s1093_s1 + $0x8d] ss:$16 sm:$0x3] %vm3_vm0, %v334_v27  }
  0xce   :  { %513 = vst.msk [vmem:[%s1093_s1 + $0x8d] ss:$16 sm:$0xc] %vm3_vm0, %v334_v27  }
  0xcf   :  { %514 = vst.msk [vmem:[%s1093_s1 + $0x8d] ss:$16 sm:$0x30] %vm3_vm0, %v334_v27  }
  0xd0   :  { %515 = vst.msk [vmem:[%s1093_s1 + $0x8d] ss:$16 sm:$0xc0] %vm3_vm0, %v334_v27  }
  0xd1   :  { %507 = vst.msk [vmem:[%s1093_s1 + $0xd] ss:$16 sm:$0x3] %vm3_vm0, %v321_v28  }
  0xd2   :  { %508 = vst.msk [vmem:[%s1093_s1 + $0xd] ss:$16 sm:$0xc] %vm3_vm0, %v321_v28  }
  0xd3   :  { %509 = vst.msk [vmem:[%s1093_s1 + $0xd] ss:$16 sm:$0x30] %vm3_vm0, %v321_v28  }
  0xd4   :  { %510 = vst.msk [vmem:[%s1093_s1 + $0xd] ss:$16 sm:$0xc0] %vm3_vm0, %v321_v28  }
  0xd5   :  { %530 = vst.msk [vmem:[%s1093_s1 + $0x8f] ss:$16 sm:$0x3] %vm3_vm0, %v384_v29  }
  0xd6   :  { %531 = vst.msk [vmem:[%s1093_s1 + $0x8f] ss:$16 sm:$0xc] %vm3_vm0, %v384_v29  }
  0xd7   :  { %532 = vst.msk [vmem:[%s1093_s1 + $0x8f] ss:$16 sm:$0x30] %vm3_vm0, %v384_v29  }
  0xd8   :  { %533 = vst.msk [vmem:[%s1093_s1 + $0x8f] ss:$16 sm:$0xc0] %vm3_vm0, %v384_v29  }
  0xd9   :  { %525 = vst.msk [vmem:[%s1093_s1 + $0xf] ss:$16 sm:$0x3] %vm3_vm0, %v371_v30  }
  0xda   :  { %526 = vst.msk [vmem:[%s1093_s1 + $0xf] ss:$16 sm:$0xc] %vm3_vm0, %v371_v30  }
  0xdb   :  { %527 = vst.msk [vmem:[%s1093_s1 + $0xf] ss:$16 sm:$0x30] %vm3_vm0, %v371_v30  }
  0xdc   :  { %528 = vst.msk [vmem:[%s1093_s1 + $0xf] ss:$16 sm:$0xc0] %vm3_vm0, %v371_v30  }
  0xdd   :  { %521 = vst.msk [vmem:[%s1093_s1 + $0x8e] ss:$16 sm:$0x3] %vm3_vm0, %v359_v31  }
  0xde   :  { %522 = vst.msk [vmem:[%s1093_s1 + $0x8e] ss:$16 sm:$0xc] %vm3_vm0, %v359_v31  }
  0xdf   :  { %523 = vst.msk [vmem:[%s1093_s1 + $0x8e] ss:$16 sm:$0x30] %vm3_vm0, %v359_v31  }
  0xe0   :  { %524 = vst.msk [vmem:[%s1093_s1 + $0x8e] ss:$16 sm:$0xc0] %vm3_vm0, %v359_v31  }

// kernel: _fwd.20
= control target key start
LH: loop header
LB: loop body
LE: loop exit
PB: predicated region body
PF: predicated region fallthrough
CT: control target
= control target key end

     0   :  { %vm194_vm0 = vcmask 1040384   ;;  %vm196_vm1 = vcmask 1042434   ;;  %vm198_vm2 = vcmask 1041408   ;;  %vm200_vm3 = vcmask 1044484   ;;  %s717_s0 = inlined_call_operand.vmem [shape: f32[16,2048], index: 0, kind: input, shape index: {}]   ;;  %s718_s1 = inlined_call_operand.vmem [shape: f32[1,2048], index: 1, kind: output, shape index: {0}]   ;;  %s719_s2 = inlined_call_operand.vmem [shape: f32[1,2048], index: 2, kind: output, shape index: {1}]  }
   0x1   :  { %v10_v0 = vld [vmem:[%s717_s0] sm:$0xff]  ;;  %v11_v1 = vld [vmem:[%s717_s0 + $0x8] sm:$0xff]  ;;  %v12_v2 = vld [vmem:[%s717_s0 + $0x10] sm:$0xff]  ;;  %vm202_vm4 = vcmask 1046534   ;;  %vm204_vm5 = vcmask 1045508   ;;  %vm206_vm6 = vcmask 1043456  }
   0x2   :  { %v13_v3 = vld [vmem:[%s717_s0 + $0x18] sm:$0xff]  ;;  %v14_v4 = vld [vmem:[%s717_s0 + $0x20] sm:$0xff]  ;;  %v15_v5 = vld [vmem:[%s717_s0 + $0x28] sm:$0xff]  ;;  %v459_v6 = vmul.f32 %v10_v0, %v10_v0  ;;  %v461_v7 = vmul.f32 %v11_v1, %v11_v1  ;;  %v472_v11 = vmul.f32 %v12_v2, %v12_v2 }
   0x3   :  { %v16_v8 = vld [vmem:[%s717_s0 + $0x30] sm:$0xff]  ;;  %v17_v9 = vld [vmem:[%s717_s0 + $0x38] sm:$0xff]  ;;  %v26_v10 = vld [vmem:[%s717_s0 + $0x80] sm:$0xff]  ;;  %v474_v12 = vmul.f32 %v13_v3, %v13_v3  ;;  %v476_v13 = vmul.f32 %v14_v4, %v14_v4  ;;  %v478_v14 = vmul.f32 %v15_v5, %v15_v5 }
   0x4   :  { %v27_v15 = vld [vmem:[%s717_s0 + $0x88] sm:$0xff]  ;;  %v486_v16 = vld [vmem:[%s717_s0 + $0x90] sm:$0xff]  ;;  %v491_v17 = vld [vmem:[%s717_s0 + $0x98] sm:$0xff]  ;;  %v52_v18 = vadd.f32 %v26_v10, %v10_v0  ;;  %v493_v19 = vmul.f32 %v16_v8, %v16_v8  ;;  %v495_v20 = vmul.f32 %v17_v9, %v17_v9  ;;  %v497_v21 = vmul.f32 %v26_v10, %v26_v10 }
   0x5   :  { %v502_v22 = vld [vmem:[%s717_s0 + $0xa0] sm:$0xff]  ;;  %v507_v23 = vld [vmem:[%s717_s0 + $0xa8] sm:$0xff]  ;;  %v512_v24 = vld [vmem:[%s717_s0 + $0xb0] sm:$0xff]  ;;  %v59_v25 = vadd.f32 %v27_v15, %v11_v1  ;;  %v66_v26 = vadd.f32 %v486_v16, %v12_v2  ;;  %v73_v27 = vadd.f32 %v491_v17, %v13_v3  ;;  %v516_v28 = vmul.f32 %v27_v15, %v27_v15 }
   0x6   :  { %v521_v29 = vld [vmem:[%s717_s0 + $0xb8] sm:$0xff]  ;;  %v53_v30 = vrot.slane %v52_v18, 4  ;;  %v80_v31 = vadd.f32 %v502_v22, %v14_v4  ;;  %v87_v32 = vadd.f32 %v507_v23, %v15_v5  ;;  %v94_v33 = vadd.f32 %v512_v24, %v16_v8 }
   0x7   :  { %v60_v34 = vrot.slane %v59_v25, 4  ;;  %v67_v35 = vrot.slane %v66_v26, 4  ;;  %v74_v36 = vrot.slane %v73_v27, 4  ;;  %v101_v37 = vadd.f32 %v521_v29, %v17_v9 }
   0x8   :  { %v54_v38 = vadd.f32 %v53_v30, %v52_v18  ;;  %v81_v39 = vrot.slane %v80_v31, 4  ;;  %v88_v40 = vrot.slane %v87_v32, 4  ;;  %v95_v41 = vrot.slane %v94_v33, 4  ;;  %v530_v30 = vld [vmem:[%s717_s0 + $0x40] sm:$0xff] }
   0x9   :  { %v61_v42 = vadd.f32 %v60_v34, %v59_v25  ;;  %v68_v43 = vadd.f32 %v67_v35, %v66_v26  ;;  %v75_v44 = vadd.f32 %v74_v36, %v73_v27  ;;  %v102_v45 = vrot.slane %v101_v37, 4 }
   0xa   :  { %v55_v46 = vrot.slane %v54_v38, 2  ;;  %v82_v47 = vadd.f32 %v81_v39, %v80_v31  ;;  %v89_v48 = vadd.f32 %v88_v40, %v87_v32  ;;  %v96_v49 = vadd.f32 %v95_v41, %v94_v33  ;;  %v535_v31 = vld [vmem:[%s717_s0 + $0xc0] sm:$0xff] }
   0xb   :  { %v62_v50 = vrot.slane %v61_v42, 2  ;;  %v69_v51 = vrot.slane %v68_v43, 2  ;;  %v76_v52 = vrot.slane %v75_v44, 2  ;;  %v103_v53 = vadd.f32 %v102_v45, %v101_v37 }
   0xc   :  { %v56_v54 = vadd.f32 %v55_v46, %v54_v38  ;;  %v83_v55 = vrot.slane %v82_v47, 2  ;;  %v90_v56 = vrot.slane %v89_v48, 2  ;;  %v97_v57 = vrot.slane %v96_v49, 2 }
   0xd   :  { %v63_v58 = vadd.f32 %v62_v50, %v61_v42  ;;  %v70_v59 = vadd.f32 %v69_v51, %v68_v43  ;;  %v77_v60 = vadd.f32 %v76_v52, %v75_v44  ;;  %v104_v61 = vrot.slane %v103_v53, 2  ;;  %v542_v43 = vld [vmem:[%s717_s0 + $0x48] sm:$0xff]  ;;  %v559_v50 = vld [vmem:[%s717_s0 + $0x58] sm:$0xff]  ;;  %v564_v51 = vld [vmem:[%s717_s0 + $0xd0] sm:$0xff] }
   0xe   :  { %v57_v62 = vrot.slane %v56_v54, 1  ;;  %v84_v63 = vadd.f32 %v83_v55, %v82_v47  ;;  %v91_v0 = vadd.f32 %v90_v56, %v89_v48  ;;  %v98_v1 = vadd.f32 %v97_v57, %v96_v49  ;;  %v547_v44 = vld [vmem:[%s717_s0 + $0xc8] sm:$0xff]  ;;  %v554_v49 = vld [vmem:[%s717_s0 + $0x50] sm:$0xff]  ;;  %v573_v55 = vld [vmem:[%s717_s0 + $0x60] sm:$0xff] }
   0xf   :  { %v64_v2 = vrot.slane %v63_v58, 1  ;;  %v71_v3 = vrot.slane %v70_v59, 1  ;;  %v78_v4 = vrot.slane %v77_v60, 1  ;;  %v105_v5 = vadd.f32 %v104_v61, %v103_v53  ;;  %v578_v56 = vld [vmem:[%s717_s0 + $0xd8] sm:$0xff]  ;;  %v583_v57 = vld [vmem:[%s717_s0 + $0xe0] sm:$0xff]  ;;  %v591_v61 = vld [vmem:[%s717_s0 + $0x68] sm:$0xff] }
  0x10   :  { %v58_v8 = vadd.f32 %v57_v62, %v56_v54  ;;  %v85_v9 = vrot.slane %v84_v63, 1  ;;  %v92_v10 = vrot.slane %v91_v0, 1  ;;  %v99_v15 = vrot.slane %v98_v1, 1  ;;  %v596_v62 = vld [vmem:[%s717_s0 + $0xe8] sm:$0xff] }
  0x11   :  { %v65_v18 = vadd.f32 %v64_v2, %v63_v58  ;;  %v72_v25 = vadd.f32 %v71_v3, %v70_v59  ;;  %v79_v26 = vadd.f32 %v78_v4, %v77_v60  ;;  %v106_v27 = vrot.slane %v105_v5, 1 }
  0x12   :  { %v86_v32 = vadd.f32 %v85_v9, %v84_v63  ;;  %v93_v33 = vadd.f32 %v92_v10, %v91_v0  ;;  %v100_v34 = vadd.f32 %v99_v15, %v98_v1  ;;  %v108_v35 = vadd.f32 %v535_v31, %v530_v30 }
  0x13   :  { %v107_v36 = vadd.f32 %v106_v27, %v105_v5  ;;  %v180_v37 = vrot.slane %v65_v18, 7  ;;  %v181_v38 = vrot.slane %v72_v25, 6  ;;  %v182_v39 = vrot.slane %v79_v26, 5  ;;  %v609_v18 = vld [vmem:[%s717_s0 + $0x70] sm:$0xff] }
  0x14   :  { %v183_v40 = vrot.slane %v86_v32, 4  ;;  %v184_v41 = vrot.slane %v93_v33, 3  ;;  %v185_v42 = vrot.slane %v100_v34, 2  ;;  %v109_v45 = vrot.slane %v108_v35, 4  ;;  %v614_v25 = vld [vmem:[%s717_s0 + $0xf0] sm:$0xff]  ;;  %v619_v33 = vld [vmem:[%s717_s0 + $0x78] sm:$0xff] }
  0x15   :  { %v186_v46 = vrot.slane %v107_v36, 1  ;;  %v195_v47 = vsel %vm194_vm0, %v58_v8, %v180_v37  ;;  %v197_v48 = vsel %vm196_vm1, %v181_v38, %v182_v39  ;;  %v115_v52 = vadd.f32 %v547_v44, %v542_v43  ;;  %v624_v34 = vld [vmem:[%s717_s0 + $0xf8] sm:$0xff] }
  0x16   :  { %v199_v53 = vsel %vm198_vm2, %v195_v47, %v197_v48  ;;  %v201_v54 = vsel %vm200_vm3, %v183_v40, %v184_v41  ;;  %v110_v58 = vadd.f32 %v109_v45, %v108_v35  ;;  %v122_v59 = vadd.f32 %v564_v51, %v554_v49 }
  0x17   :  { %v203_v60 = vsel %vm202_vm4, %v185_v42, %v186_v46  ;;  %v116_v63 = vrot.slane %v115_v52, 4  ;;  %v129_v0 = vadd.f32 %v578_v56, %v559_v50  ;;  %v136_v1 = vadd.f32 %v583_v57, %v573_v55 }
  0x18   :  { %v205_v2 = vsel %vm204_vm5, %v201_v54, %v203_v60  ;;  %v111_v3 = vrot.slane %v110_v58, 2  ;;  %v123_v4 = vrot.slane %v122_v59, 4  ;;  %v143_v5 = vadd.f32 %v596_v62, %v591_v61 }
  0x19   :  { %v207_v8 = vsel %vm206_vm6, %v199_v53, %v205_v2  ;;  %v117_v9 = vadd.f32 %v116_v63, %v115_v52  ;;  %v130_v10 = vrot.slane %v129_v0, 4  ;;  %v137_v15 = vrot.slane %v136_v1, 4 }
  0x1a   :  { %v112_v26 = vadd.f32 %v111_v3, %v110_v58  ;;  %v124_v27 = vadd.f32 %v123_v4, %v122_v59  ;;  %v144_v32 = vrot.slane %v143_v5, 4  ;;  %v150_v38 = vadd.f32 %v614_v25, %v609_v18  ;;  %219 = vst [vmem:[%s718_s1] sm:$0xff] %v207_v8 }
  0x1b   :  { %v118_v35 = vrot.slane %v117_v9, 2  ;;  %v131_v36 = vadd.f32 %v130_v10, %v129_v0  ;;  %v138_v37 = vadd.f32 %v137_v15, %v136_v1  ;;  %v157_v42 = vadd.f32 %v624_v34, %v619_v33 }
  0x1c   :  { %v113_v39 = vrot.slane %v112_v26, 1  ;;  %v125_v40 = vrot.slane %v124_v27, 2  ;;  %v145_v41 = vadd.f32 %v144_v32, %v143_v5  ;;  %v151_v48 = vrot.slane %v150_v38, 4 }
  0x1d   :  { %v119_v45 = vadd.f32 %v118_v35, %v117_v9  ;;  %v132_v46 = vrot.slane %v131_v36, 2  ;;  %v139_v47 = vrot.slane %v138_v37, 2  ;;  %v158_v58 = vrot.slane %v157_v42, 4 }
  0x1e   :  { %v114_v52 = vadd.f32 %v113_v39, %v112_v26  ;;  %v126_v53 = vadd.f32 %v125_v40, %v124_v27  ;;  %v146_v54 = vrot.slane %v145_v41, 2  ;;  %v152_v0 = vadd.f32 %v151_v48, %v150_v38 }
  0x1f   :  { %v120_v59 = vrot.slane %v119_v45, 1  ;;  %v133_v60 = vadd.f32 %v132_v46, %v131_v36  ;;  %v140_v63 = vadd.f32 %v139_v47, %v138_v37  ;;  %v159_v3 = vadd.f32 %v158_v58, %v157_v42 }
  0x20   :  { %v127_v1 = vrot.slane %v126_v53, 1  ;;  %v147_v2 = vadd.f32 %v146_v54, %v145_v41  ;;  %v241_v4 = vmul.f32 %v486_v16, %v486_v16  ;;  %v153_v10 = vrot.slane %v152_v0, 2 }
  0x21   :  { %v121_v5 = vadd.f32 %v120_v59, %v119_v45  ;;  %v134_v8 = vrot.slane %v133_v60, 1  ;;  %v141_v9 = vrot.slane %v140_v63, 1  ;;  %v160_v26 = vrot.slane %v159_v3, 2 }
  0x22   :  { %v128_v15 = vadd.f32 %v127_v1, %v126_v53  ;;  %v148_v32 = vrot.slane %v147_v2, 1  ;;  %v242_v27 = vmul.f32 %v491_v17, %v491_v17  ;;  %v154_v37 = vadd.f32 %v153_v10, %v152_v0 }
  0x23   :  { %v135_v35 = vadd.f32 %v134_v8, %v133_v60  ;;  %v142_v36 = vadd.f32 %v141_v9, %v140_v63  ;;  %v187_v38 = vrot.slane %v121_v5, 7  ;;  %v161_v40 = vadd.f32 %v160_v26, %v159_v3 }
  0x24   :  { %v149_v39 = vadd.f32 %v148_v32, %v147_v2  ;;  %v188_v41 = vrot.slane %v128_v15, 6  ;;  %v243_v16 = vmul.f32 %v502_v22, %v502_v22  ;;  %v155_v42 = vrot.slane %v154_v37, 1 }
  0x25   :  { %v189_v45 = vrot.slane %v135_v35, 5  ;;  %v190_v46 = vrot.slane %v142_v36, 4  ;;  %v208_v47 = vsel %vm194_vm0, %v114_v52, %v187_v38  ;;  %v162_v48 = vrot.slane %v161_v40, 1 }
  0x26   :  { %v191_v53 = vrot.slane %v149_v39, 3  ;;  %v244_v17 = vmul.f32 %v507_v23, %v507_v23  ;;  %v245_v54 = vmul.f32 %v512_v24, %v512_v24  ;;  %v156_v58 = vadd.f32 %v155_v42, %v154_v37 }
  0x27   :  { %v209_v59 = vsel %vm196_vm1, %v188_v41, %v189_v45  ;;  %v246_v60 = vmul.f32 %v521_v29, %v521_v29  ;;  %v255_v22 = vadd.f32 %v497_v21, %v459_v6  ;;  %v163_v63 = vadd.f32 %v162_v48, %v161_v40 }
  0x28   :  { %v210_v52 = vsel %vm198_vm2, %v208_v47, %v209_v59  ;;  %v211_v0 = vsel %vm200_vm3, %v190_v46, %v191_v53  ;;  %v262_v23 = vadd.f32 %v516_v28, %v461_v7  ;;  %v192_v1 = vrot.slane %v156_v58, 2 }
  0x29   :  { %v256_v2 = vrot.slane %v255_v22, 4  ;;  %v269_v24 = vadd.f32 %v241_v4, %v472_v11  ;;  %v276_v3 = vadd.f32 %v242_v27, %v474_v12  ;;  %v193_v5 = vrot.slane %v163_v63, 1 }
  0x2a   :  { %v263_v8 = vrot.slane %v262_v23, 4  ;;  %v283_v29 = vadd.f32 %v243_v16, %v476_v13  ;;  %v290_v6 = vadd.f32 %v244_v17, %v478_v14  ;;  %v297_v15 = vadd.f32 %v245_v54, %v493_v19 }
  0x2b   :  { %v257_v21 = vadd.f32 %v256_v2, %v255_v22  ;;  %v270_v9 = vrot.slane %v269_v24, 4  ;;  %v277_v10 = vrot.slane %v276_v3, 4  ;;  %v212_v32 = vsel %vm202_vm4, %v192_v1, %v193_v5 }
  0x2c   :  { %v264_v7 = vadd.f32 %v263_v8, %v262_v23  ;;  %v284_v28 = vrot.slane %v283_v29, 4  ;;  %v291_v26 = vrot.slane %v290_v6, 4  ;;  %v213_v11 = vsel %vm204_vm5, %v211_v0, %v212_v32 }
  0x2d   :  { %v258_v4 = vrot.slane %v257_v21, 2  ;;  %v271_v12 = vadd.f32 %v270_v9, %v269_v24  ;;  %v278_v27 = vadd.f32 %v277_v10, %v276_v3  ;;  %v214_v35 = vsel %vm206_vm6, %v210_v52, %v213_v11 }
  0x2e   :  { %v265_v13 = vrot.slane %v264_v7, 2  ;;  %v285_v36 = vadd.f32 %v284_v28, %v283_v29  ;;  %v292_v14 = vadd.f32 %v291_v26, %v290_v6  ;;  %v298_v16 = vrot.slane %v297_v15, 4  ;;  %220 = vst [vmem:[%s718_s1 + $0x8] sm:$0xff] %v214_v35 }
  0x2f   :  { %v259_v37 = vadd.f32 %v258_v4, %v257_v21  ;;  %v272_v38 = vrot.slane %v271_v12, 2  ;;  %v279_v39 = vrot.slane %v278_v27, 2  ;;  %v304_v47 = vadd.f32 %v246_v60, %v495_v20 }
  0x30   :  { %v266_v40 = vadd.f32 %v265_v13, %v264_v7  ;;  %v286_v19 = vrot.slane %v285_v36, 2  ;;  %v293_v41 = vrot.slane %v292_v14, 2  ;;  %v299_v54 = vadd.f32 %v298_v16, %v297_v15 }
  0x31   :  { %v260_v42 = vrot.slane %v259_v37, 1  ;;  %v273_v45 = vadd.f32 %v272_v38, %v271_v12  ;;  %v280_v46 = vadd.f32 %v279_v39, %v278_v27  ;;  %v305_v63 = vrot.slane %v304_v47, 4 }
  0x32   :  { %v267_v48 = vrot.slane %v266_v40, 1  ;;  %v287_v53 = vadd.f32 %v286_v19, %v285_v36  ;;  %v294_v17 = vadd.f32 %v293_v41, %v292_v14  ;;  %v300_v1 = vrot.slane %v299_v54, 2 }
  0x33   :  { %v261_v58 = vadd.f32 %v260_v42, %v259_v37  ;;  %v274_v59 = vrot.slane %v273_v45, 1  ;;  %v281_v22 = vrot.slane %v280_v46, 1  ;;  %v306_v3 = vadd.f32 %v305_v63, %v304_v47 }
  0x34   :  { %v268_v52 = vadd.f32 %v267_v48, %v266_v40  ;;  %v288_v0 = vrot.slane %v287_v53, 1  ;;  %v295_v23 = vrot.slane %v294_v17, 1  ;;  %v231_v5 = vmul.f32 %v530_v30, %v530_v30 }
  0x35   :  { %v275_v2 = vadd.f32 %v274_v59, %v273_v45  ;;  %v282_v24 = vadd.f32 %v281_v22, %v280_v46  ;;  %v301_v60 = vadd.f32 %v300_v1, %v299_v54  ;;  %v307_v6 = vrot.slane %v306_v3, 2 }
  0x36   :  { %v289_v8 = vadd.f32 %v288_v0, %v287_v53  ;;  %v296_v20 = vadd.f32 %v295_v23, %v294_v17  ;;  %v383_v29 = vrot.slane %v268_v52, 7  ;;  %v232_v10 = vmul.f32 %v542_v43, %v542_v43 }
  0x37   :  { %v384_v21 = vrot.slane %v275_v2, 6  ;;  %v385_v9 = vrot.slane %v282_v24, 5  ;;  %v302_v15 = vrot.slane %v301_v60, 1  ;;  %v308_v26 = vadd.f32 %v307_v6, %v306_v3 }
  0x38   :  { %v386_v32 = vrot.slane %v289_v8, 4  ;;  %v387_v7 = vrot.slane %v296_v20, 3  ;;  %v397_v28 = vsel %vm194_vm0, %v261_v58, %v383_v29  ;;  %v233_v30 = vmul.f32 %v554_v49, %v554_v49 }
  0x39   :  { %v398_v11 = vsel %vm196_vm1, %v384_v21, %v385_v9  ;;  %v234_v4 = vmul.f32 %v559_v50, %v559_v50  ;;  %v303_v12 = vadd.f32 %v302_v15, %v301_v60  ;;  %v235_v43 = vmul.f32 %v573_v55, %v573_v55 }
  0x3a   :  { %v399_v27 = vsel %vm198_vm2, %v397_v28, %v398_v11  ;;  %v400_v35 = vsel %vm200_vm3, %v386_v32, %v387_v7  ;;  %v309_v13 = vrot.slane %v308_v26, 1  ;;  %v236_v36 = vmul.f32 %v591_v61, %v591_v61 }
  0x3b   :  { %v237_v14 = vmul.f32 %v609_v18, %v609_v18  ;;  %v238_v49 = vmul.f32 %v619_v33, %v619_v33  ;;  %v388_v37 = vrot.slane %v303_v12, 2  ;;  %v247_v50 = vmul.f32 %v535_v31, %v535_v31 }
  0x3c   :  { %v248_v38 = vmul.f32 %v547_v44, %v547_v44  ;;  %v249_v55 = vmul.f32 %v564_v51, %v564_v51  ;;  %v310_v39 = vadd.f32 %v309_v13, %v308_v26  ;;  %v250_v61 = vmul.f32 %v578_v56, %v578_v56 }
  0x3d   :  { %v251_v18 = vmul.f32 %v583_v57, %v583_v57  ;;  %v252_v33 = vmul.f32 %v596_v62, %v596_v62  ;;  %v253_v40 = vmul.f32 %v614_v25, %v614_v25  ;;  %v254_v31 = vmul.f32 %v624_v34, %v624_v34 }
  0x3e   :  { %v311_v44 = vadd.f32 %v247_v50, %v231_v5  ;;  %v318_v19 = vadd.f32 %v248_v38, %v232_v10  ;;  %v389_v41 = vrot.slane %v310_v39, 1  ;;  %v325_v51 = vadd.f32 %v249_v55, %v233_v30 }
  0x3f   :  { %v332_v16 = vadd.f32 %v250_v61, %v234_v4  ;;  %v339_v42 = vadd.f32 %v251_v18, %v235_v43  ;;  %v346_v46 = vadd.f32 %v252_v33, %v236_v36  ;;  %v353_v47 = vadd.f32 %v253_v40, %v237_v14 }
  0x40   :  { %v312_v45 = vrot.slane %v311_v44, 4  ;;  %v319_v56 = vrot.slane %v318_v19, 4  ;;  %v401_v57 = vsel %vm202_vm4, %v388_v37, %v389_v41  ;;  %v326_v48 = vrot.slane %v325_v51, 4 }
  0x41   :  { %v333_v62 = vrot.slane %v332_v16, 4  ;;  %v340_v53 = vrot.slane %v339_v42, 4  ;;  %v402_v25 = vsel %vm204_vm5, %v400_v35, %v401_v57  ;;  %v347_v34 = vrot.slane %v346_v46, 4 }
  0x42   :  { %v313_v17 = vadd.f32 %v312_v45, %v311_v44  ;;  %v320_v54 = vadd.f32 %v319_v56, %v318_v19  ;;  %v403_v58 = vsel %vm206_vm6, %v399_v27, %v402_v25  ;;  %v327_v59 = vadd.f32 %v326_v48, %v325_v51 }
  0x43   :  { %v334_v22 = vadd.f32 %v333_v62, %v332_v16  ;;  %v341_v63 = vadd.f32 %v340_v53, %v339_v42  ;;  %v348_v23 = vadd.f32 %v347_v34, %v346_v46  ;;  %v354_v3 = vrot.slane %v353_v47, 4  ;;  %415 = vst [vmem:[%s719_s2] sm:$0xff] %v403_v58 }
  0x44   :  { %v314_v52 = vrot.slane %v313_v17, 2  ;;  %v321_v0 = vrot.slane %v320_v54, 2  ;;  %v328_v1 = vrot.slane %v327_v59, 2  ;;  %v360_v60 = vadd.f32 %v254_v31, %v238_v49 }
  0x45   :  { %v335_v2 = vrot.slane %v334_v22, 2  ;;  %v342_v24 = vrot.slane %v341_v63, 2  ;;  %v349_v20 = vrot.slane %v348_v23, 2  ;;  %v355_v9 = vadd.f32 %v354_v3, %v353_v47 }
  0x46   :  { %v315_v5 = vadd.f32 %v314_v52, %v313_v17  ;;  %v322_v8 = vadd.f32 %v321_v0, %v320_v54  ;;  %v329_v29 = vadd.f32 %v328_v1, %v327_v59  ;;  %v361_v7 = vrot.slane %v360_v60, 4 }
  0x47   :  { %v336_v6 = vadd.f32 %v335_v2, %v334_v22  ;;  %v343_v21 = vadd.f32 %v342_v24, %v341_v63  ;;  %v350_v32 = vadd.f32 %v349_v20, %v348_v23  ;;  %v356_v30 = vrot.slane %v355_v9, 2 }
  0x48   :  { %v316_v10 = vrot.slane %v315_v5, 1  ;;  %v323_v15 = vrot.slane %v322_v8, 1  ;;  %v330_v28 = vrot.slane %v329_v29, 1  ;;  %v362_v27 = vadd.f32 %v361_v7, %v360_v60 }
  0x49   :  { %v337_v26 = vrot.slane %v336_v6, 1  ;;  %v344_v11 = vrot.slane %v343_v21, 1  ;;  %v351_v12 = vrot.slane %v350_v32, 1  ;;  %v357_v13 = vadd.f32 %v356_v30, %v355_v9 }
  0x4a   :  { %v324_v4 = vadd.f32 %v323_v15, %v322_v8  ;;  %v331_v35 = vadd.f32 %v330_v28, %v329_v29  ;;  %v363_v49 = vrot.slane %v362_v27, 2  ;;  %v317_v37 = vadd.f32 %v316_v10, %v315_v5 }
  0x4b   :  { %v338_v43 = vadd.f32 %v337_v26, %v336_v6  ;;  %v345_v36 = vadd.f32 %v344_v11, %v343_v21  ;;  %v352_v14 = vadd.f32 %v351_v12, %v350_v32  ;;  %v358_v50 = vrot.slane %v357_v13, 1 }
  0x4c   :  { %v364_v38 = vadd.f32 %v363_v49, %v362_v27  ;;  %v390_v55 = vrot.slane %v324_v4, 7  ;;  %v391_v39 = vrot.slane %v331_v35, 6 }
  0x4d   :  { %v392_v61 = vrot.slane %v338_v43, 5  ;;  %v359_v18 = vadd.f32 %v358_v50, %v357_v13  ;;  %v393_v40 = vrot.slane %v345_v36, 4  ;;  %v394_v31 = vrot.slane %v352_v14, 3 }
  0x4e   :  { %v365_v33 = vrot.slane %v364_v38, 1  ;;  %v404_v41 = vsel %vm194_vm0, %v317_v37, %v390_v55 }
  0x4f   :  { %v395_v19 = vrot.slane %v359_v18, 2  ;;  %v405_v51 = vsel %vm196_vm1, %v391_v39, %v392_v61  ;;  %v407_v42 = vsel %vm200_vm3, %v393_v40, %v394_v31 }
  0x50   :  { %v366_v44 = vadd.f32 %v365_v33, %v364_v38  ;;  %v406_v45 = vsel %vm198_vm2, %v404_v41, %v405_v51 }
  0x52   :  { %v396_v16 = vrot.slane %v366_v44, 1 }
  0x54   :  { %v408_v56 = vsel %vm202_vm4, %v395_v19, %v396_v16 }
  0x55   :  { %v409_v46 = vsel %vm204_vm5, %v407_v42, %v408_v56 }
  0x56   :  { %v410_v47 = vsel %vm206_vm6, %v406_v45, %v409_v46 }
  0x57   :  { %416 = vst [vmem:[%s719_s2 + $0x8] sm:$0xff] %v410_v47 }

// kernel: tile.78
= control target key start
LH: loop header
LB: loop body
LE: loop exit
PB: predicated region body
PF: predicated region fallthrough
CT: control target
= control target key end

     0   :  { %s208_s0 = inlined_call_operand.vmem [shape: f32[8], index: 0, kind: input, shape index: {}]   ;;  %s209_s1 = inlined_call_operand.vmem [shape: f32[256,8], index: 1, kind: output, shape index: {}]  }
   0x1   :  { %v4_v0 = vld [vmem:[%s208_s0] ss:$0 sm:$0xff] }
   0x2   :  { %5 = vst [vmem:[%s209_s1] sm:$0xff] %v4_v0 }
   0x3   :  { %68 = vst [vmem:[%s209_s1 + $0x8] sm:$0xff] %v4_v0 }
   0x4   :  { %69 = vst [vmem:[%s209_s1 + $0x10] sm:$0xff] %v4_v0 }
   0x5   :  { %70 = vst [vmem:[%s209_s1 + $0x18] sm:$0xff] %v4_v0 }
   0x6   :  { %71 = vst [vmem:[%s209_s1 + $0x20] sm:$0xff] %v4_v0 }
   0x7   :  { %72 = vst [vmem:[%s209_s1 + $0x28] sm:$0xff] %v4_v0 }
   0x8   :  { %73 = vst [vmem:[%s209_s1 + $0x30] sm:$0xff] %v4_v0 }
   0x9   :  { %74 = vst [vmem:[%s209_s1 + $0x38] sm:$0xff] %v4_v0 }
   0xa   :  { %75 = vst [vmem:[%s209_s1 + $0x40] sm:$0xff] %v4_v0 }
   0xb   :  { %76 = vst [vmem:[%s209_s1 + $0x48] sm:$0xff] %v4_v0 }
   0xc   :  { %77 = vst [vmem:[%s209_s1 + $0x50] sm:$0xff] %v4_v0 }
   0xd   :  { %78 = vst [vmem:[%s209_s1 + $0x58] sm:$0xff] %v4_v0 }
   0xe   :  { %79 = vst [vmem:[%s209_s1 + $0x60] sm:$0xff] %v4_v0 }
   0xf   :  { %80 = vst [vmem:[%s209_s1 + $0x68] sm:$0xff] %v4_v0 }
  0x10   :  { %81 = vst [vmem:[%s209_s1 + $0x70] sm:$0xff] %v4_v0 }
  0x11   :  { %82 = vst [vmem:[%s209_s1 + $0x78] sm:$0xff] %v4_v0 }
  0x12   :  { %83 = vst [vmem:[%s209_s1 + $0x80] sm:$0xff] %v4_v0 }
  0x13   :  { %84 = vst [vmem:[%s209_s1 + $0x88] sm:$0xff] %v4_v0 }
  0x14   :  { %85 = vst [vmem:[%s209_s1 + $0x90] sm:$0xff] %v4_v0 }
  0x15   :  { %86 = vst [vmem:[%s209_s1 + $0x98] sm:$0xff] %v4_v0 }
  0x16   :  { %87 = vst [vmem:[%s209_s1 + $0xa0] sm:$0xff] %v4_v0 }
  0x17   :  { %88 = vst [vmem:[%s209_s1 + $0xa8] sm:$0xff] %v4_v0 }
  0x18   :  { %89 = vst [vmem:[%s209_s1 + $0xb0] sm:$0xff] %v4_v0 }
  0x19   :  { %90 = vst [vmem:[%s209_s1 + $0xb8] sm:$0xff] %v4_v0 }
  0x1a   :  { %91 = vst [vmem:[%s209_s1 + $0xc0] sm:$0xff] %v4_v0 }
  0x1b   :  { %92 = vst [vmem:[%s209_s1 + $0xc8] sm:$0xff] %v4_v0 }
  0x1c   :  { %93 = vst [vmem:[%s209_s1 + $0xd0] sm:$0xff] %v4_v0 }
  0x1d   :  { %94 = vst [vmem:[%s209_s1 + $0xd8] sm:$0xff] %v4_v0 }
  0x1e   :  { %95 = vst [vmem:[%s209_s1 + $0xe0] sm:$0xff] %v4_v0 }
  0x1f   :  { %96 = vst [vmem:[%s209_s1 + $0xe8] sm:$0xff] %v4_v0 }
  0x20   :  { %97 = vst [vmem:[%s209_s1 + $0xf0] sm:$0xff] %v4_v0 }
  0x21   :  { %98 = vst [vmem:[%s209_s1 + $0xf8] sm:$0xff] %v4_v0 }

// kernel: tile.83
= control target key start
LH: loop header
LB: loop body
LE: loop exit
PB: predicated region body
PF: predicated region fallthrough
CT: control target
= control target key end

     0   :  { %vm6_vm0 = vcmask 1043458   ;;  %vm10_vm1 = vcmask 1045508   ;;  %vm14_vm2 = vcmask 1047558   ;;  %s43_s6 = smov 3  ;;  %s46_s7 = smov 12  ;;  %vm16_vm3 = vcmask 64512   ;;  %s1589_s0 = inlined_call_operand.vmem [shape: f32[256,8], index: 0, kind: input, shape index: {}]   ;;  %s1590_s1 = inlined_call_operand.vmem [shape: f32[1,2048], index: 1, kind: output, shape index: {}]  }
   0x1   :  { %v862_v0 = vld [vmem:[%s1589_s0 + $0xf] ss:$16 sm:%s43_s6]   ;;  %s51_s12 = smov 48  ;;  %s56_s13 = smov 192  ;;  %vm62_vm4 = vcmask 1048512   ;;  %vm110_vm5 = vcmask 982912  }
   0x2   :  { %v863_v1 = vld [vmem:[%s1589_s0 + $0xf] ss:$16 sm:%s46_s7]   ;;  %s91_s18 = smov 3  ;;  %s94_s21 = smov 12  ;;  %vm158_vm6 = vcmask 917312   ;;  %vm206_vm7 = vcmask 851712  }
   0x3   :  { %v49_v2 = vsel %vm6_vm0, %v863_v1, %v862_v0  ;;  %v864_v3 = vld [vmem:[%s1589_s0 + $0xf] ss:$16 sm:%s51_s12]   ;;  %v870_v6 = vld [vmem:[%s1589_s0 + $0xe] ss:$16 sm:%s91_s18]   ;;  %s99_s22 = smov 48  ;;  %s104_s27 = smov 192 }
   0x4   :  { %v865_v4 = vld [vmem:[%s1589_s0 + $0xf] ss:$16 sm:%s56_s13]   ;;  %v54_v5 = vsel %vm10_vm1, %v864_v3, %v49_v2  ;;  %v871_v8 = vld [vmem:[%s1589_s0 + $0xe] ss:$16 sm:%s94_s21]   ;;  %s1012_s28 = smov 120   ;;  %s66_s2 = smov 3 }
   0x5   :  { %v59_v7 = vsel %vm14_vm2, %v865_v4, %v54_v5  ;;  %v872_v9 = vld [vmem:[%s1589_s0 + $0xe] ss:$16 sm:%s99_s22]   ;;  %v97_v10 = vsel %vm6_vm0, %v871_v8, %v870_v6  ;;  %s69_s3 = smov 12  ;;  %v866_v13 = vld [vmem:[%s1589_s0 + $0x8f] ss:$16 sm:%s66_s2]   ;;  %s74_s8 = smov 48 }
   0x6   :  { %60 = vrot.lane.b32.xlu0 %v59_v7, %s1012_s28  ;;  %v873_v11 = vld [vmem:[%s1589_s0 + $0xe] ss:$16 sm:%s104_s27]   ;;  %v102_v12 = vsel %vm10_vm1, %v872_v9, %v97_v10  ;;  %s79_s9 = smov 192  ;;  %s114_s14 = smov 3  ;;  %vm254_vm8 = vcmask 786112   ;;  %vm302_vm9 = vcmask 720512  }
   0x7   :  { %v867_v14 = vld [vmem:[%s1589_s0 + $0x8f] ss:$16 sm:%s69_s3]   ;;  %v107_v15 = vsel %vm14_vm2, %v873_v11, %v102_v12  ;;  %s117_s15 = smov 12  ;;  %s1013_s16 = smov 112   ;;  %v874_v20 = vld [vmem:[%s1589_s0 + $0x8e] ss:$16 sm:%s114_s14]  }
   0x8   :  { %v72_v16 = vsel %vm6_vm0, %v867_v14, %v866_v13  ;;  %v868_v17 = vld [vmem:[%s1589_s0 + $0x8f] ss:$16 sm:%s74_s8]   ;;  %108 = vrot.lane.b32.xlu1 %v107_v15, %s1013_s16  ;;  %s122_s19 = smov 48  ;;  %s127_s20 = smov 192  ;;  %vm350_vm10 = vcmask 654912   ;;  %vm398_vm11 = vcmask 589312  }
   0x9   :  { %v869_v18 = vld [vmem:[%s1589_s0 + $0x8f] ss:$16 sm:%s79_s9]   ;;  %v77_v19 = vsel %vm10_vm1, %v868_v17, %v72_v16  ;;  %v875_v21 = vld [vmem:[%s1589_s0 + $0x8e] ss:$16 sm:%s117_s15]   ;;  %s187_s25 = smov 3  ;;  %s190_s26 = smov 12 }
   0xa   :  { %v876_v22 = vld [vmem:[%s1589_s0 + $0x8e] ss:$16 sm:%s122_s19]   ;;  %v82_v23 = vsel %vm14_vm2, %v869_v18, %v77_v19  ;;  %v120_v24 = vsel %vm6_vm0, %v875_v21, %v874_v20  ;;  %v886_v26 = vld [vmem:[%s1589_s0 + $0xc] ss:$16 sm:%s187_s25]   ;;  %s195_s3 = smov 48  ;;  %s200_s6 = smov 192 }
   0xb   :  { %v877_v25 = vld [vmem:[%s1589_s0 + $0x8e] ss:$16 sm:%s127_s20]   ;;  %v125_v27 = vsel %vm10_vm1, %v876_v22, %v120_v24  ;;  %v887_v28 = vld [vmem:[%s1589_s0 + $0xc] ss:$16 sm:%s190_s26]   ;;  %s210_s7 = smov 3  ;;  %s213_s12 = smov 12 }
   0xc   :  { %v193_v29 = vsel %vm6_vm0, %v887_v28, %v886_v26  ;;  %v888_v30 = vld [vmem:[%s1589_s0 + $0xc] ss:$16 sm:%s195_s3]   ;;  %s218_s13 = smov 48  ;;  %v130_v32 = vsel %vm14_vm2, %v877_v25, %v125_v27  ;;  %s223_s15 = smov 192  ;;  %vm446_vm12 = vcmask 523712   ;;  %vm494_vm13 = vcmask 458112  }
   0xd   :  { %v890_v31 = vld [vmem:[%s1589_s0 + $0x8c] ss:$16 sm:%s210_s7]   ;;  %s258_s17 = smov 3  ;;  %s261_s18 = smov 12  ;;  %v198_v34 = vsel %vm10_vm1, %v888_v30, %v193_v29  ;;  %vm542_vm14 = vcmask 392512   ;;  %vm590_vm15 = vcmask 326912  }
   0xe   :  { %83 = vrot.lane.b32.xlu0 %v82_v23, %s1012_s28  ;;  %v891_v33 = vld [vmem:[%s1589_s0 + $0x8c] ss:$16 sm:%s213_s12]   ;;  %s266_s23 = smov 48  ;;  %s139_s27 = smov 3 }
   0xf   :  { %v889_v35 = vld [vmem:[%s1589_s0 + $0xc] ss:$16 sm:%s200_s6]   ;;  %v216_v36 = vsel %vm6_vm0, %v891_v33, %v890_v31  ;;  %v898_v39 = vld [vmem:[%s1589_s0 + $0x8b] ss:$16 sm:%s258_s17]   ;;  %s142_s29 = smov 12  ;;  %s147_s5 = smov 48 }
  0x10   :  { %v892_v37 = vld [vmem:[%s1589_s0 + $0x8c] ss:$16 sm:%s218_s13]   ;;  %131 = vrot.lane.b32.xlu1 %v130_v32, %s1013_s16  ;;  %s152_s6 = smov 192  ;;  %v203_v42 = vsel %vm14_vm2, %v889_v35, %v198_v34  ;;  %s271_s7 = smov 192 }
  0x11   :  { %v893_v38 = vld [vmem:[%s1589_s0 + $0x8c] ss:$16 sm:%s223_s15]   ;;  %v899_v40 = vld [vmem:[%s1589_s0 + $0x8b] ss:$16 sm:%s261_s18]   ;;  %v221_v43 = vsel %vm10_vm1, %v892_v37, %v216_v36  ;;  %s283_s12 = smov 3  ;;  %s286_s17 = smov 12 }
  0x12   :  { %v878_v41 = vld [vmem:[%s1589_s0 + $0xd] ss:$16 sm:%s139_s27]   ;;  %v900_v46 = vld [vmem:[%s1589_s0 + $0x8b] ss:$16 sm:%s266_s23]   ;;  %v264_v49 = vsel %vm6_vm0, %v899_v40, %v898_v39  ;;  %s291_s22 = smov 48  ;;  %s296_s23 = smov 192  ;;  %v226_v53 = vsel %vm14_vm2, %v893_v38, %v221_v43 }
  0x13   :  { %v879_v44 = vld [vmem:[%s1589_s0 + $0xd] ss:$16 sm:%s142_s29]   ;;  %v902_v51 = vld [vmem:[%s1589_s0 + $0xa] ss:$16 sm:%s283_s12]   ;;  %s1014_s16 = smov 96   ;;  %s331_s24 = smov 3  ;;  %v269_v56 = vsel %vm10_vm1, %v900_v46, %v264_v49 }
  0x14   :  { %v880_v45 = vld [vmem:[%s1589_s0 + $0xd] ss:$16 sm:%s147_s5]   ;;  %v145_v47 = vsel %vm6_vm0, %v879_v44, %v878_v41  ;;  %v903_v52 = vld [vmem:[%s1589_s0 + $0xa] ss:$16 sm:%s286_s17]   ;;  %s334_s25 = smov 12  ;;  %s1015_s29 = smov 104  }
  0x15   :  { %v881_v48 = vld [vmem:[%s1589_s0 + $0xd] ss:$16 sm:%s152_s6]   ;;  %v150_v50 = vsel %vm10_vm1, %v880_v45, %v145_v47  ;;  %v901_v55 = vld [vmem:[%s1589_s0 + $0x8b] ss:$16 sm:%s271_s7]   ;;  %v289_v57 = vsel %vm6_vm0, %v903_v52, %v902_v51  ;;  %s339_s5 = smov 48  ;;  %s162_s6 = smov 3 }
  0x16   :  { %204 = vrot.lane.b32.xlu0 %v203_v42, %s1014_s16  ;;  %v155_v54 = vsel %vm14_vm2, %v881_v48, %v150_v50  ;;  %v904_v58 = vld [vmem:[%s1589_s0 + $0xa] ss:$16 sm:%s291_s22]   ;;  %s165_s11 = smov 12  ;;  %s170_s12 = smov 48  ;;  %v274_v0 = vsel %vm14_vm2, %v901_v55, %v269_v56 }
  0x17   :  { %156 = vrot.lane.b32.xlu2 %v155_v54, %s1015_s29  ;;  %v910_v59 = vld [vmem:[%s1589_s0 + $0x9] ss:$16 sm:%s331_s24]   ;;  %s175_s17 = smov 192  ;;  %s354_s18 = smov 3  ;;  %v294_v1 = vsel %vm10_vm1, %v904_v58, %v289_v57 }
  0x18   :  { %227 = vrot.lane.b32.xlu1 %v226_v53, %s1014_s16  ;;  %v905_v60 = vld [vmem:[%s1589_s0 + $0xa] ss:$16 sm:%s296_s23]   ;;  %s344_s19 = smov 192  ;;  %s357_s16 = smov 12 }
  0x19   :  { %v911_v61 = vld [vmem:[%s1589_s0 + $0x9] ss:$16 sm:%s334_s25]   ;;  %v882_v62 = vld [vmem:[%s1589_s0 + $0x8d] ss:$16 sm:%s162_s6]   ;;  %s362_s26 = smov 48  ;;  %s402_s4 = smov 3  ;;  %v299_v11 = vsel %vm14_vm2, %v905_v60, %v294_v1 }
  0x1a   :  { %v883_v63 = vld [vmem:[%s1589_s0 + $0x8d] ss:$16 sm:%s165_s11]   ;;  %v912_v5 = vld [vmem:[%s1589_s0 + $0x9] ss:$16 sm:%s339_s5]   ;;  %v337_v7 = vsel %vm6_vm0, %v911_v61, %v910_v59  ;;  %s405_s5 = smov 12  ;;  %s1016_s6 = smov 88  }
  0x1b   :  { %v168_v2 = vsel %vm6_vm0, %v883_v63, %v882_v62  ;;  %v884_v3 = vld [vmem:[%s1589_s0 + $0x8d] ss:$16 sm:%s170_s12]   ;;  %v914_v9 = vld [vmem:[%s1589_s0 + $0x89] ss:$16 sm:%s354_s18]   ;;  %s367_s9 = smov 192  ;;  %s235_s11 = smov 3  ;;  %v342_v14 = vsel %vm10_vm1, %v912_v5, %v337_v7 }
  0x1c   :  { %v885_v4 = vld [vmem:[%s1589_s0 + $0x8d] ss:$16 sm:%s175_s17]   ;;  %v173_v6 = vsel %vm10_vm1, %v884_v3, %v168_v2  ;;  %v915_v10 = vld [vmem:[%s1589_s0 + $0x89] ss:$16 sm:%s357_s16]   ;;  %s238_s12 = smov 12  ;;  %s243_s17 = smov 48 }
  0x1d   :  { %v178_v8 = vsel %vm14_vm2, %v885_v4, %v173_v6  ;;  %v913_v12 = vld [vmem:[%s1589_s0 + $0x9] ss:$16 sm:%s344_s19]   ;;  %v360_v15 = vsel %vm6_vm0, %v915_v10, %v914_v9  ;;  %v922_v16 = vld [vmem:[%s1589_s0 + $0x88] ss:$16 sm:%s402_s4]   ;;  %s248_s18 = smov 192  ;;  %s1017_s19 = smov 80  }
  0x1e   :  { %275 = vrot.lane.b32.xlu0 %v274_v0, %s1016_s6  ;;  %v916_v13 = vld [vmem:[%s1589_s0 + $0x89] ss:$16 sm:%s362_s26]   ;;  %s410_s20 = smov 48  ;;  %s427_s26 = smov 3  ;;  %v347_v21 = vsel %vm14_vm2, %v913_v12, %v342_v14 }
  0x1f   :  { %179 = vrot.lane.b32.xlu2 %v178_v8, %s1015_s29  ;;  %v923_v17 = vld [vmem:[%s1589_s0 + $0x88] ss:$16 sm:%s405_s5]   ;;  %s430_s27 = smov 12  ;;  %v365_v22 = vsel %vm10_vm1, %v916_v13, %v360_v15  ;;  %s415_s3 = smov 192 }
  0x20   :  { %300 = vrot.lane.b32.xlu1 %v299_v11, %s1017_s19  ;;  %v894_v18 = vld [vmem:[%s1589_s0 + $0xb] ss:$16 sm:%s235_s11]   ;;  %v408_v28 = vsel %vm6_vm0, %v923_v17, %v922_v16  ;;  %s475_s13 = smov 3  ;;  %s478_s28 = smov 12 }
  0x21   :  { %v895_v19 = vld [vmem:[%s1589_s0 + $0xb] ss:$16 sm:%s238_s12]   ;;  %v917_v23 = vld [vmem:[%s1589_s0 + $0x89] ss:$16 sm:%s367_s9]   ;;  %s435_s9 = smov 48  ;;  %s1018_s14 = smov 72  }
  0x22   :  { %v896_v20 = vld [vmem:[%s1589_s0 + $0xb] ss:$16 sm:%s243_s17]   ;;  %v241_v24 = vsel %vm6_vm0, %v895_v19, %v894_v18  ;;  %v924_v26 = vld [vmem:[%s1589_s0 + $0x88] ss:$16 sm:%s410_s20]   ;;  %v370_v32 = vsel %vm14_vm2, %v917_v23, %v365_v22  ;;  %s309_s20 = smov 12  ;;  %s314_s22 = smov 48 }
  0x23   :  { %v897_v25 = vld [vmem:[%s1589_s0 + $0xb] ss:$16 sm:%s248_s18]   ;;  %v246_v27 = vsel %vm10_vm1, %v896_v20, %v241_v24  ;;  %v926_v30 = vld [vmem:[%s1589_s0 + $0x7] ss:$16 sm:%s427_s26]   ;;  %s306_s18 = smov 3  ;;  %s319_s23 = smov 192  ;;  %v413_v35 = vsel %vm10_vm1, %v924_v26, %v408_v28 }
  0x24   :  { %v251_v29 = vsel %vm14_vm2, %v897_v25, %v246_v27  ;;  %v927_v31 = vld [vmem:[%s1589_s0 + $0x7] ss:$16 sm:%s430_s27]   ;;  %v925_v33 = vld [vmem:[%s1589_s0 + $0x88] ss:$16 sm:%s415_s3]   ;;  %s440_s16 = smov 192  ;;  %s483_s3 = smov 48 }
  0x25   :  { %v928_v34 = vld [vmem:[%s1589_s0 + $0x7] ss:$16 sm:%s435_s9]   ;;  %v433_v36 = vsel %vm6_vm0, %v927_v31, %v926_v30  ;;  %v934_v37 = vld [vmem:[%s1589_s0 + $0x6] ss:$16 sm:%s475_s13]   ;;  %s498_s10 = smov 3  ;;  %s501_s11 = smov 12  ;;  %v418_v44 = vsel %vm14_vm2, %v925_v33, %v413_v35 }
  0x26   :  { %348 = vrot.lane.b32.xlu0 %v347_v21, %s1018_s14  ;;  %v935_v38 = vld [vmem:[%s1589_s0 + $0x6] ss:$16 sm:%s478_s28]   ;;  %v438_v45 = vsel %vm10_vm1, %v928_v34, %v433_v36  ;;  %s488_s28 = smov 192  ;;  %s506_s17 = smov 48 }
  0x27   :  { %252 = vrot.lane.b32.xlu2 %v251_v29, %s1016_s6  ;;  %v906_v39 = vld [vmem:[%s1589_s0 + $0x8a] ss:$16 sm:%s306_s18]   ;;  %s546_s18 = smov 3  ;;  %v481_v50 = vsel %vm6_vm0, %v935_v38, %v934_v37  ;;  %s1019_s24 = smov 64  }
  0x28   :  { %371 = vrot.lane.b32.xlu1 %v370_v32, %s1018_s14  ;;  %v907_v40 = vld [vmem:[%s1589_s0 + $0x8a] ss:$16 sm:%s309_s20]   ;;  %s387_s27 = smov 48  ;;  %s549_s2 = smov 12 }
  0x29   :  { %v312_v41 = vsel %vm6_vm0, %v907_v40, %v906_v39  ;;  %v908_v42 = vld [vmem:[%s1589_s0 + $0x8a] ss:$16 sm:%s314_s22]   ;;  %v929_v46 = vld [vmem:[%s1589_s0 + $0x7] ss:$16 sm:%s440_s16]   ;;  %s382_s16 = smov 12  ;;  %s511_s4 = smov 192 }
  0x2a   :  { %v909_v43 = vld [vmem:[%s1589_s0 + $0x8a] ss:$16 sm:%s319_s23]   ;;  %v317_v47 = vsel %vm10_vm1, %v908_v42, %v312_v41  ;;  %v936_v48 = vld [vmem:[%s1589_s0 + $0x6] ss:$16 sm:%s483_s3]   ;;  %s379_s23 = smov 3  ;;  %v443_v53 = vsel %vm14_vm2, %v929_v46, %v438_v45  ;;  %s392_s3 = smov 192 }
  0x2b   :  { %v322_v49 = vsel %vm14_vm2, %v909_v43, %v317_v47  ;;  %v938_v51 = vld [vmem:[%s1589_s0 + $0x86] ss:$16 sm:%s498_s10]   ;;  %v486_v56 = vsel %vm10_vm1, %v936_v48, %v481_v50  ;;  %v946_v58 = vld [vmem:[%s1589_s0 + $0x85] ss:$16 sm:%s546_s18]   ;;  %s554_s12 = smov 48  ;;  %s571_s20 = smov 3 }
  0x2c   :  { %v939_v52 = vld [vmem:[%s1589_s0 + $0x86] ss:$16 sm:%s501_s11]   ;;  %v918_v59 = vld [vmem:[%s1589_s0 + $0x8] ss:$16 sm:%s379_s23]   ;;  %s1020_s11 = smov 56   ;;  %s574_s6 = smov 12 }
  0x2d   :  { %v937_v54 = vld [vmem:[%s1589_s0 + $0x6] ss:$16 sm:%s488_s28]   ;;  %v504_v57 = vsel %vm6_vm0, %v939_v52, %v938_v51  ;;  %v919_v60 = vld [vmem:[%s1589_s0 + $0x8] ss:$16 sm:%s382_s16]   ;;  %s559_s23 = smov 192  ;;  %s579_s16 = smov 48 }
  0x2e   :  { %419 = vrot.lane.b32.xlu0 %v418_v44, %s1019_s24  ;;  %v940_v55 = vld [vmem:[%s1589_s0 + $0x86] ss:$16 sm:%s506_s17]   ;;  %v385_v61 = vsel %vm6_vm0, %v919_v60, %v918_v59  ;;  %v491_v2 = vsel %vm14_vm2, %v937_v54, %v486_v56  ;;  %s458_s5 = smov 48  ;;  %s1021_s7 = smov 48  }
  0x2f   :  { %323 = vrot.lane.b32.xlu2 %v322_v49, %s1017_s19  ;;  %v920_v62 = vld [vmem:[%s1589_s0 + $0x8] ss:$16 sm:%s387_s27]   ;;  %v509_v3 = vsel %vm10_vm1, %v940_v55, %v504_v57  ;;  %s450_s27 = smov 3  ;;  %s622_s13 = smov 12 }
  0x30   :  { %444 = vrot.lane.b32.xlu1 %v443_v53, %s1020_s11  ;;  %v947_v63 = vld [vmem:[%s1589_s0 + $0x85] ss:$16 sm:%s549_s2]   ;;  %v390_v0 = vsel %vm10_vm1, %v920_v62, %v385_v61  ;;  %s584_s15 = smov 192  ;;  %s627_s21 = smov 48 }
  0x31   :  { %v921_v1 = vld [vmem:[%s1589_s0 + $0x8] ss:$16 sm:%s392_s3]   ;;  %v941_v4 = vld [vmem:[%s1589_s0 + $0x86] ss:$16 sm:%s511_s4]   ;;  %v552_v7 = vsel %vm6_vm0, %v947_v63, %v946_v58  ;;  %s453_s4 = smov 12  ;;  %s642_s19 = smov 3 }
  0x32   :  { %v948_v5 = vld [vmem:[%s1589_s0 + $0x85] ss:$16 sm:%s554_s12]   ;;  %v395_v6 = vsel %vm14_vm2, %v921_v1, %v390_v0  ;;  %v950_v8 = vld [vmem:[%s1589_s0 + $0x4] ss:$16 sm:%s571_s20]   ;;  %v514_v10 = vsel %vm14_vm2, %v941_v4, %v509_v3  ;;  %s463_s12 = smov 192  ;;  %s645_s30 = smov 12 }
  0x33   :  { %v951_v9 = vld [vmem:[%s1589_s0 + $0x4] ss:$16 sm:%s574_s6]   ;;  %v949_v11 = vld [vmem:[%s1589_s0 + $0x85] ss:$16 sm:%s559_s23]   ;;  %v557_v14 = vsel %vm10_vm1, %v948_v5, %v552_v7  ;;  %s526_s9 = smov 12  ;;  %s531_s28 = smov 48 }
  0x34   :  { %v952_v12 = vld [vmem:[%s1589_s0 + $0x4] ss:$16 sm:%s579_s16]   ;;  %v930_v13 = vld [vmem:[%s1589_s0 + $0x87] ss:$16 sm:%s450_s27]   ;;  %v577_v15 = vsel %vm6_vm0, %v951_v9, %v950_v8  ;;  %v562_v23 = vsel %vm14_vm2, %v949_v11, %v557_v14  ;;  %s1022_s14 = smov 40   ;;  %s536_s6 = smov 192 }
  0x35   :  { %v931_v16 = vld [vmem:[%s1589_s0 + $0x87] ss:$16 sm:%s453_s4]   ;;  %v959_v21 = vld [vmem:[%s1589_s0 + $0x3] ss:$16 sm:%s622_s13]   ;;  %v582_v24 = vsel %vm10_vm1, %v952_v12, %v577_v15  ;;  %s632_s4 = smov 192  ;;  %s650_s13 = smov 48 }
  0x36   :  { %492 = vrot.lane.b32.xlu0 %v491_v2, %s1021_s7  ;;  %v932_v17 = vld [vmem:[%s1589_s0 + $0x87] ss:$16 sm:%s458_s5]   ;;  %v456_v18 = vsel %vm6_vm0, %v931_v16, %v930_v13  ;;  %s523_s5 = smov 3  ;;  %s655_s26 = smov 192 }
  0x37   :  { %396 = vrot.lane.b32.xlu2 %v395_v6, %s1019_s24  ;;  %s619_s24 = smov 3  ;;  %v933_v19 = vld [vmem:[%s1589_s0 + $0x87] ss:$16 sm:%s463_s12]   ;;  %v461_v22 = vsel %vm10_vm1, %v932_v17, %v456_v18  ;;  %s1023_s2 = smov 32  }
  0x38   :  { %515 = vrot.lane.b32.xlu1 %v514_v10, %s1021_s7  ;;  %v958_v20 = vld [vmem:[%s1589_s0 + $0x3] ss:$16 sm:%s619_s24]   ;;  %v466_v27 = vsel %vm14_vm2, %v933_v19, %v461_v22  ;;  %s698_s3 = smov 48  ;;  %s597_s7 = smov 12 }
  0x39   :  { %v953_v25 = vld [vmem:[%s1589_s0 + $0x4] ss:$16 sm:%s584_s15]   ;;  %v960_v26 = vld [vmem:[%s1589_s0 + $0x3] ss:$16 sm:%s627_s21]   ;;  %v625_v28 = vsel %vm6_vm0, %v959_v21, %v958_v20  ;;  %s693_s21 = smov 12  ;;  %s715_s12 = smov 3 }
  0x3a   :  { %v962_v29 = vld [vmem:[%s1589_s0 + $0x83] ss:$16 sm:%s642_s19]   ;;  %v587_v31 = vsel %vm14_vm2, %v953_v25, %v582_v24  ;;  %v942_v33 = vld [vmem:[%s1589_s0 + $0x5] ss:$16 sm:%s523_s5]   ;;  %v630_v35 = vsel %vm10_vm1, %v960_v26, %v625_v28  ;;  %s718_s24 = smov 12  ;;  %s602_s18 = smov 48 }
  0x3b   :  { %v963_v30 = vld [vmem:[%s1589_s0 + $0x83] ss:$16 sm:%s645_s30]   ;;  %v943_v34 = vld [vmem:[%s1589_s0 + $0x5] ss:$16 sm:%s526_s9]   ;;  %s594_s30 = smov 3  ;;  %s703_s22 = smov 192 }
  0x3c   :  { %v961_v32 = vld [vmem:[%s1589_s0 + $0x3] ss:$16 sm:%s632_s4]   ;;  %v648_v36 = vsel %vm6_vm0, %v963_v30, %v962_v29  ;;  %v529_v38 = vsel %vm6_vm0, %v943_v34, %v942_v33  ;;  %v944_v39 = vld [vmem:[%s1589_s0 + $0x5] ss:$16 sm:%s531_s28]   ;;  %s723_s27 = smov 48  ;;  %s1024_s19 = smov 24  }
  0x3d   :  { %v964_v37 = vld [vmem:[%s1589_s0 + $0x83] ss:$16 sm:%s650_s13]   ;;  %v534_v40 = vsel %vm10_vm1, %v944_v39, %v529_v38  ;;  %v945_v41 = vld [vmem:[%s1589_s0 + $0x5] ss:$16 sm:%s536_s6]   ;;  %v635_v44 = vsel %vm14_vm2, %v961_v32, %v630_v35  ;;  %s607_s4 = smov 192  ;;  %s667_s29 = smov 3 }
  0x3e   :  { %563 = vrot.lane.b32.xlu0 %v562_v23, %s1022_s14  ;;  %v971_v43 = vld [vmem:[%s1589_s0 + $0x82] ss:$16 sm:%s693_s21]   ;;  %v653_v45 = vsel %vm10_vm1, %v964_v37, %v648_v36  ;;  %v539_v49 = vsel %vm14_vm2, %v945_v41, %v534_v40  ;;  %s670_s10 = smov 12  ;;  %s675_s6 = smov 48 }
  0x3f   :  { %467 = vrot.lane.b32.xlu2 %v466_v27, %s1020_s11  ;;  %s690_s11 = smov 3  ;;  %v965_v46 = vld [vmem:[%s1589_s0 + $0x83] ss:$16 sm:%s655_s26]   ;;  %s680_s23 = smov 192 }
  0x40   :  { %588 = vrot.lane.b32.xlu1 %v587_v31, %s1023_s2  ;;  %v970_v42 = vld [vmem:[%s1589_s0 + $0x82] ss:$16 sm:%s690_s11]   ;;  %v658_v54 = vsel %vm14_vm2, %v965_v46, %v653_v45  ;;  %s1025_s11 = smov 16   ;;  %s741_s16 = smov 12 }
  0x41   :  { %v954_v47 = vld [vmem:[%s1589_s0 + $0x84] ss:$16 sm:%s594_s30]   ;;  %v972_v48 = vld [vmem:[%s1589_s0 + $0x82] ss:$16 sm:%s698_s3]   ;;  %v696_v51 = vsel %vm6_vm0, %v971_v43, %v970_v42  ;;  %s1026_s25 = smov 8   ;;  %s8_s30 = smov 48 }
  0x42   :  { %v955_v50 = vld [vmem:[%s1589_s0 + $0x84] ss:$16 sm:%s597_s7]   ;;  %v974_v52 = vld [vmem:[%s1589_s0 + $0x1] ss:$16 sm:%s715_s12]   ;;  %v701_v57 = vsel %vm10_vm1, %v972_v48, %v696_v51  ;;  %s12_s3 = smov 192  ;;  %s2_s8 = smov 3 }
  0x43   :  { %v975_v53 = vld [vmem:[%s1589_s0 + $0x1] ss:$16 sm:%s718_s24]   ;;  %v600_v55 = vsel %vm6_vm0, %v955_v50, %v954_v47  ;;  %v956_v56 = vld [vmem:[%s1589_s0 + $0x84] ss:$16 sm:%s602_s18]   ;;  %s4_s9 = smov 12  ;;  %s751_s15 = smov 192 }
  0x44   :  { %v973_v58 = vld [vmem:[%s1589_s0 + $0x82] ss:$16 sm:%s703_s22]   ;;  %v721_v59 = vsel %vm6_vm0, %v975_v53, %v974_v52  ;;  %v976_v60 = vld [vmem:[%s1589_s0 + $0x1] ss:$16 sm:%s723_s27]   ;;  %v605_v61 = vsel %vm10_vm1, %v956_v56, %v600_v55  ;;  %s20_s22 = smov 3 }
  0x45   :  { %v957_v62 = vld [vmem:[%s1589_s0 + $0x84] ss:$16 sm:%s607_s4]   ;;  %v706_v0 = vsel %vm14_vm2, %v973_v58, %v701_v57  ;;  %v726_v1 = vsel %vm10_vm1, %v976_v60, %v721_v59  ;;  %v966_v2 = vld [vmem:[%s1589_s0 + $0x2] ss:$16 sm:%s667_s29]  }
  0x46   :  { %636 = vrot.lane.b32.xlu0 %v635_v44, %s1024_s19  ;;  %v967_v3 = vld [vmem:[%s1589_s0 + $0x2] ss:$16 sm:%s670_s10]   ;;  %v610_v4 = vsel %vm14_vm2, %v957_v62, %v605_v61 }
  0x47   :  { %540 = vrot.lane.b32.xlu2 %v539_v49, %s1022_s14  ;;  %s728_s14 = smov 192  ;;  %v673_v6 = vsel %vm6_vm0, %v967_v3, %v966_v2  ;;  %v968_v7 = vld [vmem:[%s1589_s0 + $0x2] ss:$16 sm:%s675_s6]  }
  0x48   :  { %659 = vrot.lane.b32.xlu1 %v658_v54, %s1024_s19  ;;  %v977_v63 = vld [vmem:[%s1589_s0 + $0x1] ss:$16 sm:%s728_s14]   ;;  %v678_v8 = vsel %vm10_vm1, %v968_v7, %v673_v6  ;;  %s746_s19 = smov 48 }
  0x49   :  { %v731_v5 = vsel %vm14_vm2, %v977_v63, %v726_v1  ;;  %v969_v9 = vld [vmem:[%s1589_s0 + $0x2] ss:$16 sm:%s680_s23]   ;;  %v979_v11 = vld [vmem:[%s1589_s0 + $0x81] ss:$16 sm:%s741_s16]   ;;  %s23_s23 = smov 12  ;;  %s33_s16 = smov 192 }
  0x4a   :  { %v683_v12 = vsel %vm14_vm2, %v969_v9, %v678_v8  ;;  %v980_v13 = vld [vmem:[%s1589_s0 + $0x81] ss:$16 sm:%s746_s19]   ;;  %v9_v14 = vld [vmem:[%s1589_s0] ss:$16 sm:%s8_s30]  }
  0x4b   :  { %v13_v15 = vld [vmem:[%s1589_s0] ss:$16 sm:%s12_s3]   ;;  %v981_v22 = vld [vmem:[%s1589_s0 + $0x81] ss:$16 sm:%s751_s15]  }
  0x4c   :  { %v3_v17 = vld [vmem:[%s1589_s0] ss:$16 sm:%s2_s8]  }
  0x4d   :  { %v5_v18 = vld [vmem:[%s1589_s0] ss:$16 sm:%s4_s9]  }
  0x4e   :  { %707 = vrot.lane.b32.xlu0 %v706_v0, %s1025_s11  ;;  %v7_v19 = vsel %vm6_vm0, %v5_v18, %v3_v17  ;;  %v858_v25 = vld [vmem:[%s1589_s0 + $0x80] ss:$16 sm:%s20_s22]  }
  0x4f   :  { %611 = vrot.lane.b32.xlu2 %v610_v4, %s1023_s2  ;;  %s738_s2 = smov 3  ;;  %v11_v20 = vsel %vm10_vm1, %v9_v14, %v7_v19  ;;  %v859_v26 = vld [vmem:[%s1589_s0 + $0x80] ss:$16 sm:%s23_s23]  }
  0x50   :  { %732 = vrot.lane.b32.xlu1 %v731_v5, %s1026_s25  ;;  %v978_v10 = vld [vmem:[%s1589_s0 + $0x81] ss:$16 sm:%s738_s2]   ;;  %v15_v23 = vsel %vm14_vm2, %v13_v15, %v11_v20  ;;  %s28_s2 = smov 48  ;;  %v26_v29 = vsel %vm6_vm0, %v859_v26, %v858_v25 }
  0x51   :  { %v744_v16 = vsel %vm6_vm0, %v979_v11, %v978_v10  ;;  %17 = vst.msk [vmem:[#allocation0] ss:$8 sm:$0xf] %vm16_vm3, %v15_v23   ;;  %v860_v27 = vld [vmem:[%s1589_s0 + $0x80] ss:$16 sm:%s28_s2]   ;;  %vm638_vm0 = vcmask 261312  }
  0x52   :  { %v749_v21 = vsel %vm10_vm1, %v980_v13, %v744_v16  ;;  %18 = vst.msk [vmem:[#allocation0] ss:$8 sm:$0xf0] %vm16_vm3, %v15_v23   ;;  %v861_v28 = vld [vmem:[%s1589_s0 + $0x80] ss:$16 sm:%s33_s16]   ;;  %v31_v30 = vsel %vm10_vm1, %v860_v27, %v26_v29  ;;  %vm686_vm1 = vcmask 195712  }
  0x53   :  { %v754_v24 = vsel %vm14_vm2, %v981_v22, %v749_v21  ;;  %v36_v31 = vsel %vm14_vm2, %v861_v28, %v31_v30  ;;  %vm734_vm2 = vcmask 130112  }
  0x54   :  { %39 = vst.msk [vmem:[#allocation0 + $0x40] ss:$8 sm:$0xf] %vm16_vm3, %v36_v31  }
  0x55   :  { %41 = vst.msk [vmem:[#allocation0 + $0x40] ss:$8 sm:$0xf0] %vm16_vm3, %v36_v31  }
  0x57   :  { %684 = vrot.lane.b32.xlu2 %v683_v12, %s1025_s11 }
  0x5f   :  { %755 = vrot.lane.b32.xlu2 %v754_v24, %s1026_s25 }
  0x71   :  { %v157_v32 = vpop.permute.xlu2 %156  }
  0x78   :  { %v61_v33 = vpop.permute.xlu0 %60  }
  0x79   :  { %63 = vst.msk [vmem:[#allocation0] ss:$8 sm:$0xf] %vm62_vm4, %v61_v33   ;;  %v180_v34 = vpop.permute.xlu2 %179  }
  0x7a   :  { %64 = vst.msk [vmem:[#allocation0] ss:$8 sm:$0xf0] %vm62_vm4, %v61_v33   ;;  %v109_v35 = vpop.permute.xlu1 %108  }
  0x7b   :  { %111 = vst.msk [vmem:[#allocation0] ss:$8 sm:$0xf] %vm110_vm5, %v109_v35  }
  0x7c   :  { %112 = vst.msk [vmem:[#allocation0] ss:$8 sm:$0xf0] %vm110_vm5, %v109_v35  }
  0x7d   :  { %159 = vst.msk [vmem:[#allocation0] ss:$8 sm:$0xf] %vm158_vm6, %v157_v32  }
  0x7e   :  { %160 = vst.msk [vmem:[#allocation0] ss:$8 sm:$0xf0] %vm158_vm6, %v157_v32  }
  0x80   :  { %v84_v36 = vpop.permute.xlu0 %83  }
  0x81   :  { %87 = vst.msk [vmem:[#allocation0 + $0x40] ss:$8 sm:$0xf] %vm62_vm4, %v84_v36   ;;  %v253_v37 = vpop.permute.xlu2 %252  }
  0x82   :  { %89 = vst.msk [vmem:[#allocation0 + $0x40] ss:$8 sm:$0xf0] %vm62_vm4, %v84_v36   ;;  %v132_v38 = vpop.permute.xlu1 %131  }
  0x83   :  { %135 = vst.msk [vmem:[#allocation0 + $0x40] ss:$8 sm:$0xf] %vm110_vm5, %v132_v38  }
  0x84   :  { %137 = vst.msk [vmem:[#allocation0 + $0x40] ss:$8 sm:$0xf0] %vm110_vm5, %v132_v38  }
  0x85   :  { %183 = vst.msk [vmem:[#allocation0 + $0x40] ss:$8 sm:$0xf] %vm158_vm6, %v180_v34  }
  0x86   :  { %185 = vst.msk [vmem:[#allocation0 + $0x40] ss:$8 sm:$0xf0] %vm158_vm6, %v180_v34  }
  0x88   :  { %v205_v39 = vpop.permute.xlu0 %204  }
  0x89   :  { %207 = vst.msk [vmem:[#allocation0] ss:$8 sm:$0xf] %vm206_vm7, %v205_v39   ;;  %v324_v40 = vpop.permute.xlu2 %323  }
  0x8a   :  { %208 = vst.msk [vmem:[#allocation0] ss:$8 sm:$0xf0] %vm206_vm7, %v205_v39   ;;  %v228_v41 = vpop.permute.xlu1 %227  }
  0x8b   :  { %255 = vst.msk [vmem:[#allocation0] ss:$8 sm:$0xf] %vm254_vm8, %v253_v37  }
  0x8c   :  { %256 = vst.msk [vmem:[#allocation0] ss:$8 sm:$0xf0] %vm254_vm8, %v253_v37  }
  0x8d   :  { %231 = vst.msk [vmem:[#allocation0 + $0x40] ss:$8 sm:$0xf] %vm206_vm7, %v228_v41  }
  0x8e   :  { %233 = vst.msk [vmem:[#allocation0 + $0x40] ss:$8 sm:$0xf0] %vm206_vm7, %v228_v41  }
  0x90   :  { %v276_v42 = vpop.permute.xlu0 %275  }
  0x91   :  { %279 = vst.msk [vmem:[#allocation0 + $0x40] ss:$8 sm:$0xf] %vm254_vm8, %v276_v42   ;;  %v397_v43 = vpop.permute.xlu2 %396  }
  0x92   :  { %281 = vst.msk [vmem:[#allocation0 + $0x40] ss:$8 sm:$0xf0] %vm254_vm8, %v276_v42   ;;  %v301_v44 = vpop.permute.xlu1 %300  }
  0x93   :  { %327 = vst.msk [vmem:[#allocation0 + $0x40] ss:$8 sm:$0xf] %vm302_vm9, %v324_v40  }
  0x94   :  { %329 = vst.msk [vmem:[#allocation0 + $0x40] ss:$8 sm:$0xf0] %vm302_vm9, %v324_v40  }
  0x95   :  { %303 = vst.msk [vmem:[#allocation0] ss:$8 sm:$0xf] %vm302_vm9, %v301_v44  }
  0x96   :  { %304 = vst.msk [vmem:[#allocation0] ss:$8 sm:$0xf0] %vm302_vm9, %v301_v44  }
  0x98   :  { %v349_v45 = vpop.permute.xlu0 %348  }
  0x99   :  { %351 = vst.msk [vmem:[#allocation0] ss:$8 sm:$0xf] %vm350_vm10, %v349_v45   ;;  %v468_v46 = vpop.permute.xlu2 %467  }
  0x9a   :  { %352 = vst.msk [vmem:[#allocation0] ss:$8 sm:$0xf0] %vm350_vm10, %v349_v45   ;;  %v372_v47 = vpop.permute.xlu1 %371  }
  0x9b   :  { %399 = vst.msk [vmem:[#allocation0] ss:$8 sm:$0xf] %vm398_vm11, %v397_v43  }
  0x9c   :  { %400 = vst.msk [vmem:[#allocation0] ss:$8 sm:$0xf0] %vm398_vm11, %v397_v43  }
  0x9d   :  { %375 = vst.msk [vmem:[#allocation0 + $0x40] ss:$8 sm:$0xf] %vm350_vm10, %v372_v47  }
  0x9e   :  { %377 = vst.msk [vmem:[#allocation0 + $0x40] ss:$8 sm:$0xf0] %vm350_vm10, %v372_v47  }
  0xa0   :  { %v420_v48 = vpop.permute.xlu0 %419  }
  0xa1   :  { %423 = vst.msk [vmem:[#allocation0 + $0x40] ss:$8 sm:$0xf] %vm398_vm11, %v420_v48   ;;  %v541_v49 = vpop.permute.xlu2 %540  }
  0xa2   :  { %425 = vst.msk [vmem:[#allocation0 + $0x40] ss:$8 sm:$0xf0] %vm398_vm11, %v420_v48   ;;  %v445_v50 = vpop.permute.xlu1 %444  }
  0xa3   :  { %471 = vst.msk [vmem:[#allocation0 + $0x40] ss:$8 sm:$0xf] %vm446_vm12, %v468_v46  }
  0xa4   :  { %473 = vst.msk [vmem:[#allocation0 + $0x40] ss:$8 sm:$0xf0] %vm446_vm12, %v468_v46  }
  0xa5   :  { %447 = vst.msk [vmem:[#allocation0] ss:$8 sm:$0xf] %vm446_vm12, %v445_v50  }
  0xa6   :  { %448 = vst.msk [vmem:[#allocation0] ss:$8 sm:$0xf0] %vm446_vm12, %v445_v50  }
  0xa8   :  { %v493_v51 = vpop.permute.xlu0 %492  }
  0xa9   :  { %495 = vst.msk [vmem:[#allocation0] ss:$8 sm:$0xf] %vm494_vm13, %v493_v51   ;;  %v612_v52 = vpop.permute.xlu2 %611  }
  0xaa   :  { %496 = vst.msk [vmem:[#allocation0] ss:$8 sm:$0xf0] %vm494_vm13, %v493_v51   ;;  %v516_v53 = vpop.permute.xlu1 %515  }
  0xab   :  { %543 = vst.msk [vmem:[#allocation0] ss:$8 sm:$0xf] %vm542_vm14, %v541_v49  }
  0xac   :  { %544 = vst.msk [vmem:[#allocation0] ss:$8 sm:$0xf0] %vm542_vm14, %v541_v49  }
  0xad   :  { %519 = vst.msk [vmem:[#allocation0 + $0x40] ss:$8 sm:$0xf] %vm494_vm13, %v516_v53  }
  0xae   :  { %521 = vst.msk [vmem:[#allocation0 + $0x40] ss:$8 sm:$0xf0] %vm494_vm13, %v516_v53  }
  0xb0   :  { %v564_v54 = vpop.permute.xlu0 %563  }
  0xb1   :  { %567 = vst.msk [vmem:[#allocation0 + $0x40] ss:$8 sm:$0xf] %vm542_vm14, %v564_v54   ;;  %v685_v55 = vpop.permute.xlu2 %684  }
  0xb2   :  { %569 = vst.msk [vmem:[#allocation0 + $0x40] ss:$8 sm:$0xf0] %vm542_vm14, %v564_v54   ;;  %v589_v56 = vpop.permute.xlu1 %588  }
  0xb3   :  { %615 = vst.msk [vmem:[#allocation0 + $0x40] ss:$8 sm:$0xf] %vm590_vm15, %v612_v52  }
  0xb4   :  { %617 = vst.msk [vmem:[#allocation0 + $0x40] ss:$8 sm:$0xf0] %vm590_vm15, %v612_v52  }
  0xb5   :  { %591 = vst.msk [vmem:[#allocation0] ss:$8 sm:$0xf] %vm590_vm15, %v589_v56  }
  0xb6   :  { %592 = vst.msk [vmem:[#allocation0] ss:$8 sm:$0xf0] %vm590_vm15, %v589_v56  }
  0xb8   :  { %v637_v57 = vpop.permute.xlu0 %636  }
  0xb9   :  { %639 = vst.msk [vmem:[#allocation0] ss:$8 sm:$0xf] %vm638_vm0, %v637_v57   ;;  %v756_v58 = vpop.permute.xlu2 %755  }
  0xba   :  { %640 = vst.msk [vmem:[#allocation0] ss:$8 sm:$0xf0] %vm638_vm0, %v637_v57   ;;  %v660_v59 = vpop.permute.xlu1 %659  }
  0xbb   :  { %687 = vst.msk [vmem:[#allocation0] ss:$8 sm:$0xf] %vm686_vm1, %v685_v55  }
  0xbc   :  { %688 = vst.msk [vmem:[#allocation0] ss:$8 sm:$0xf0] %vm686_vm1, %v685_v55  }
  0xbd   :  { %663 = vst.msk [vmem:[#allocation0 + $0x40] ss:$8 sm:$0xf] %vm638_vm0, %v660_v59  }
  0xbe   :  { %665 = vst.msk [vmem:[#allocation0 + $0x40] ss:$8 sm:$0xf0] %vm638_vm0, %v660_v59  }
  0xc0   :  { %v708_v60 = vpop.permute.xlu0 %707  }
  0xc1   :  { %711 = vst.msk [vmem:[#allocation0 + $0x40] ss:$8 sm:$0xf] %vm686_vm1, %v708_v60  }
  0xc2   :  { %713 = vst.msk [vmem:[#allocation0 + $0x40] ss:$8 sm:$0xf0] %vm686_vm1, %v708_v60   ;;  %v733_v61 = vpop.permute.xlu1 %732  }
  0xc3   :  { %759 = vst.msk [vmem:[#allocation0 + $0x40] ss:$8 sm:$0xf] %vm734_vm2, %v756_v58  }
  0xc4   :  { %761 = vst.msk [vmem:[#allocation0 + $0x40] ss:$8 sm:$0xf0] %vm734_vm2, %v756_v58  }
  0xc5   :  { %735 = vst.msk [vmem:[#allocation0] ss:$8 sm:$0xf] %vm734_vm2, %v733_v61  }
  0xc6   :  { %736 = vst.msk [vmem:[#allocation0] ss:$8 sm:$0xf0] %vm734_vm2, %v733_v61  }
  0xca   :  { %v811_v62 = vld [vmem:[#allocation0 + $0x40] sm:$0x1]  ;;  %v817_v63 = vld [vmem:[#allocation0 + $0x48] sm:$0x1]  ;;  %v823_v0 = vld [vmem:[#allocation0 + $0x50] sm:$0x1] }
  0xcb   :  { %989 = vst [vmem:[%s1590_s1 + $0x8] sm:$0x1] %v811_v62  ;;  %v829_v1 = vld [vmem:[#allocation0 + $0x58] sm:$0x1]  ;;  %v835_v2 = vld [vmem:[#allocation0 + $0x60] sm:$0x1] }
  0xcc   :  { %990 = vst [vmem:[%s1590_s1 + $0x9] sm:$0x1] %v817_v63  ;;  %v841_v3 = vld [vmem:[#allocation0 + $0x68] sm:$0x1]  ;;  %v847_v4 = vld [vmem:[#allocation0 + $0x70] sm:$0x1] }
  0xcd   :  { %991 = vst [vmem:[%s1590_s1 + $0xa] sm:$0x1] %v823_v0  ;;  %v853_v5 = vld [vmem:[#allocation0 + $0x78] sm:$0x1]  ;;  %v764_v6 = vld [vmem:[#allocation0] sm:$0x1] }
  0xce   :  { %992 = vst [vmem:[%s1590_s1 + $0xb] sm:$0x1] %v829_v1  ;;  %v769_v7 = vld [vmem:[#allocation0 + $0x8] sm:$0x1]  ;;  %v775_v8 = vld [vmem:[#allocation0 + $0x10] sm:$0x1] }
  0xcf   :  { %993 = vst [vmem:[%s1590_s1 + $0xc] sm:$0x1] %v835_v2  ;;  %v781_v9 = vld [vmem:[#allocation0 + $0x18] sm:$0x1]  ;;  %v787_v10 = vld [vmem:[#allocation0 + $0x20] sm:$0x1] }
  0xd0   :  { %994 = vst [vmem:[%s1590_s1 + $0xd] sm:$0x1] %v841_v3  ;;  %v793_v11 = vld [vmem:[#allocation0 + $0x28] sm:$0x1]  ;;  %v799_v12 = vld [vmem:[#allocation0 + $0x30] sm:$0x1] }
  0xd1   :  { %995 = vst [vmem:[%s1590_s1 + $0xe] sm:$0x1] %v847_v4  ;;  %v805_v13 = vld [vmem:[#allocation0 + $0x38] sm:$0x1] }
  0xd2   :  { %996 = vst [vmem:[%s1590_s1 + $0xf] sm:$0x1] %v853_v5 }
  0xd3   :  { %767 = vst [vmem:[%s1590_s1] sm:$0x1] %v764_v6 }
  0xd4   :  { %982 = vst [vmem:[%s1590_s1 + $0x1] sm:$0x1] %v769_v7 }
  0xd5   :  { %983 = vst [vmem:[%s1590_s1 + $0x2] sm:$0x1] %v775_v8 }
  0xd6   :  { %984 = vst [vmem:[%s1590_s1 + $0x3] sm:$0x1] %v781_v9 }
  0xd7   :  { %985 = vst [vmem:[%s1590_s1 + $0x4] sm:$0x1] %v787_v10 }
  0xd8   :  { %986 = vst [vmem:[%s1590_s1 + $0x5] sm:$0x1] %v793_v11 }
  0xd9   :  { %987 = vst [vmem:[%s1590_s1 + $0x6] sm:$0x1] %v799_v12 }
  0xda   :  { %988 = vst [vmem:[%s1590_s1 + $0x7] sm:$0x1] %v805_v13 }

// kernel: _fwd.21
= control target key start
LH: loop header
LB: loop body
LE: loop exit
PB: predicated region body
PF: predicated region fallthrough
CT: control target
= control target key end

     0   :  { %s594_s0 = inlined_call_operand.vmem [shape: f32[16,2048], index: 0, kind: input, shape index: {}]   ;;  %s595_s1 = inlined_call_operand.vmem [shape: f32[1,2048], index: 1, kind: input, shape index: {}]   ;;  %s596_s2 = inlined_call_operand.vmem [shape: f32[1,2048], index: 2, kind: input, shape index: {}]   ;;  %s597_s3 = inlined_call_operand.vmem [shape: bf16[16,2048], index: 3, kind: output, shape index: {}]  }
   0x1   :  { %v14_v0 = vld [vmem:[%s594_s0] sm:$0xff]  ;;  %v15_v1 = vld [vmem:[%s594_s0 + $0x8] sm:$0xff]  ;;  %v16_v6 = vld [vmem:[%s594_s0 + $0x10] sm:$0xff] }
   0x2   :  { %v279_v2 = vld [vmem:[%s595_s1] sm:$0xff]  ;;  %v17_v7 = vld [vmem:[%s594_s0 + $0x18] sm:$0xff]  ;;  %v19_v18 = vld [vmem:[%s594_s0 + $0x28] sm:$0xff] }
   0x3   :  { %v50_v3 = vperm.slane %v279_v2, 0  ;;  %v51_v4 = vperm.slane %v279_v2, 1  ;;  %v286_v5 = vld [vmem:[%s596_s2] sm:$0xff]  ;;  %v52_v8 = vperm.slane %v279_v2, 2  ;;  %v53_v11 = vperm.slane %v279_v2, 3  ;;  %v20_v27 = vld [vmem:[%s594_s0 + $0x30] sm:$0xff] }
   0x4   :  { %v118_v9 = vperm.slane %v286_v5, 0  ;;  %v119_v10 = vperm.slane %v286_v5, 1  ;;  %v120_v12 = vperm.slane %v286_v5, 2  ;;  %v121_v16 = vperm.slane %v286_v5, 3  ;;  %v18_v17 = vld [vmem:[%s594_s0 + $0x20] sm:$0xff]  ;;  %v21_v31 = vld [vmem:[%s594_s0 + $0x38] sm:$0xff] }
   0x5   :  { %v82_v13 = vmul.f32 %v50_v3, %v14_v0  ;;  %v83_v14 = vmul.f32 %v51_v4, %v15_v1  ;;  %v84_v15 = vmul.f32 %v52_v8, %v16_v6  ;;  %v85_v19 = vmul.f32 %v53_v11, %v17_v7  ;;  %v341_v37 = vld [vmem:[%s595_s1 + $0x8] sm:$0xff]  ;;  %v22_v47 = vld [vmem:[%s594_s0 + $0x40] sm:$0xff]  ;;  %v24_v57 = vld [vmem:[%s594_s0 + $0x50] sm:$0xff] }
   0x6   :  { %v54_v20 = vperm.slane %v279_v2, 4  ;;  %v55_v21 = vperm.slane %v279_v2, 5  ;;  %v122_v22 = vperm.slane %v286_v5, 4  ;;  %v123_v26 = vperm.slane %v286_v5, 5  ;;  %v352_v42 = vld [vmem:[%s596_s2 + $0x8] sm:$0xff]  ;;  %v25_v61 = vld [vmem:[%s594_s0 + $0x58] sm:$0xff] }
   0x7   :  { %v150_v23 = vadd.f32 %v118_v9, %v82_v13  ;;  %v151_v24 = vadd.f32 %v119_v10, %v83_v14  ;;  %v152_v25 = vadd.f32 %v120_v12, %v84_v15  ;;  %v153_v28 = vadd.f32 %v121_v16, %v85_v19  ;;  %v23_v51 = vld [vmem:[%s594_s0 + $0x48] sm:$0xff] }
   0x8   :  { %v86_v29 = vmul.f32 %v54_v20, %v18_v17  ;;  %v87_v30 = vmul.f32 %v55_v21, %v19_v18  ;;  %v56_v32 = vperm.slane %v279_v2, 6  ;;  %v57_v36 = vperm.slane %v279_v2, 7  ;;  %v26_v17 = vld [vmem:[%s594_s0 + $0x60] sm:$0xff] }
   0x9   :  { %v182_v33 = vmax.f32 %v150_v23, 0.0  ;;  %v183_v34 = vmax.f32 %v151_v24, 0.0  ;;  %v184_v35 = vmax.f32 %v152_v25, 0.0  ;;  %v185_v38 = vmax.f32 %v153_v28, 0.0  ;;  %v27_v24 = vld [vmem:[%s594_s0 + $0x68] sm:$0xff]  ;;  %v42_v2 = vld [vmem:[%s594_s0 + $0xe0] sm:$0xff] }
   0xa   :  { %v154_v39 = vadd.f32 %v122_v22, %v86_v29  ;;  %v155_v40 = vadd.f32 %v123_v26, %v87_v30  ;;  %v88_v41 = vmul.f32 %v56_v32, %v20_v27  ;;  %v89_v44 = vmul.f32 %v57_v36, %v21_v31 }
   0xb   :  { %v214_v43 = vpack.c.bf16 %v183_v34, %v182_v33  ;;  %v124_v45 = vperm.slane %v286_v5, 6  ;;  %v125_v46 = vperm.slane %v286_v5, 7  ;;  %v215_v48 = vpack.c.bf16 %v185_v38, %v184_v35  ;;  %v28_v38 = vld [vmem:[%s594_s0 + $0x70] sm:$0xff] }
   0xc   :  { %v186_v49 = vmax.f32 %v154_v39, 0.0  ;;  %v187_v50 = vmax.f32 %v155_v40, 0.0  ;;  %v58_v52 = vperm.slane %v341_v37, 0  ;;  %v59_v55 = vperm.slane %v341_v37, 1  ;;  %v29_v39 = vld [vmem:[%s594_s0 + $0x78] sm:$0xff]  ;;  %v44_v5 = vld [vmem:[%s594_s0 + $0xf0] sm:$0xff] }
   0xd   :  { %230 = vst [vmem:[%s597_s3] sm:$0xff] %v214_v43  ;;  %v156_v53 = vadd.f32 %v124_v45, %v88_v41  ;;  %v157_v54 = vadd.f32 %v125_v46, %v89_v44  ;;  %v126_v56 = vperm.slane %v352_v42, 0  ;;  %v127_v60 = vperm.slane %v352_v42, 1 }
   0xe   :  { %231 = vst [vmem:[%s597_s3 + $0x8] sm:$0xff] %v215_v48  ;;  %v216_v58 = vpack.c.bf16 %v187_v50, %v186_v49  ;;  %v90_v59 = vmul.f32 %v58_v52, %v22_v47  ;;  %v60_v62 = vperm.slane %v341_v37, 2  ;;  %v91_v1 = vmul.f32 %v59_v55, %v23_v51  ;;  %v30_v47 = vld [vmem:[%s594_s0 + $0x80] sm:$0xff]  ;;  %v31_v48 = vld [vmem:[%s594_s0 + $0x88] sm:$0xff] }
   0xf   :  { %v188_v63 = vmax.f32 %v156_v53, 0.0  ;;  %v189_v0 = vmax.f32 %v157_v54, 0.0  ;;  %v61_v6 = vperm.slane %v341_v37, 3  ;;  %v128_v14 = vperm.slane %v352_v42, 2  ;;  %v32_v54 = vld [vmem:[%s594_s0 + $0x90] sm:$0xff] }
  0x10   :  { %232 = vst [vmem:[%s597_s3 + $0x10] sm:$0xff] %v216_v58  ;;  %v158_v7 = vadd.f32 %v126_v56, %v90_v59  ;;  %v92_v13 = vmul.f32 %v60_v62, %v24_v57  ;;  %v129_v15 = vperm.slane %v352_v42, 3  ;;  %v159_v19 = vadd.f32 %v127_v60, %v91_v1 }
  0x11   :  { %v217_v18 = vpack.c.bf16 %v189_v0, %v188_v63  ;;  %v93_v23 = vmul.f32 %v61_v6, %v25_v61  ;;  %v62_v25 = vperm.slane %v341_v37, 4  ;;  %v63_v29 = vperm.slane %v341_v37, 5  ;;  %v33_v63 = vld [vmem:[%s594_s0 + $0x98] sm:$0xff]  ;;  %v34_v0 = vld [vmem:[%s594_s0 + $0xa0] sm:$0xff] }
  0x12   :  { %v190_v27 = vmax.f32 %v158_v7, 0.0  ;;  %v160_v28 = vadd.f32 %v128_v14, %v92_v13  ;;  %v130_v30 = vperm.slane %v352_v42, 4  ;;  %v191_v31 = vmax.f32 %v159_v19, 0.0 }
  0x13   :  { %233 = vst [vmem:[%s597_s3 + $0x18] sm:$0xff] %v217_v18  ;;  %v161_v33 = vadd.f32 %v129_v15, %v93_v23  ;;  %v94_v34 = vmul.f32 %v62_v25, %v26_v17  ;;  %v131_v35 = vperm.slane %v352_v42, 5  ;;  %v95_v41 = vmul.f32 %v63_v29, %v27_v24 }
  0x14   :  { %v192_v40 = vmax.f32 %v160_v28, 0.0  ;;  %v64_v43 = vperm.slane %v341_v37, 6  ;;  %v65_v44 = vperm.slane %v341_v37, 7  ;;  %v218_v49 = vpack.c.bf16 %v191_v31, %v190_v27  ;;  %v35_v27 = vld [vmem:[%s594_s0 + $0xa8] sm:$0xff]  ;;  %v36_v31 = vld [vmem:[%s594_s0 + $0xb0] sm:$0xff] }
  0x15   :  { %v193_v50 = vmax.f32 %v161_v33, 0.0  ;;  %v162_v51 = vadd.f32 %v130_v30, %v94_v34  ;;  %v132_v53 = vperm.slane %v352_v42, 6  ;;  %v163_v57 = vadd.f32 %v131_v35, %v95_v41  ;;  %v38_v41 = vld [vmem:[%s594_s0 + $0xc0] sm:$0xff] }
  0x16   :  { %v96_v58 = vmul.f32 %v64_v43, %v28_v38  ;;  %v97_v59 = vmul.f32 %v65_v44, %v29_v39  ;;  %v133_v61 = vperm.slane %v352_v42, 7  ;;  %234 = vst [vmem:[%s597_s3 + $0x20] sm:$0xff] %v218_v49  ;;  %v98_v13 = vmul.f32 %v50_v3, %v30_v47  ;;  %v40_v49 = vld [vmem:[%s594_s0 + $0xd0] sm:$0xff] }
  0x17   :  { %v219_v1 = vpack.c.bf16 %v193_v50, %v192_v40  ;;  %v194_v7 = vmax.f32 %v162_v51, 0.0  ;;  %v99_v17 = vmul.f32 %v51_v4, %v31_v48  ;;  %v195_v18 = vmax.f32 %v163_v57, 0.0 }
  0x18   :  { %v164_v19 = vadd.f32 %v132_v53, %v96_v58  ;;  %v165_v23 = vadd.f32 %v133_v61, %v97_v59  ;;  %v100_v24 = vmul.f32 %v52_v8, %v32_v54  ;;  %v166_v3 = vadd.f32 %v118_v9, %v98_v13  ;;  %v37_v9 = vld [vmem:[%s594_s0 + $0xb8] sm:$0xff] }
  0x19   :  { %235 = vst [vmem:[%s597_s3 + $0x28] sm:$0xff] %v219_v1  ;;  %v167_v4 = vadd.f32 %v119_v10, %v99_v17  ;;  %v101_v28 = vmul.f32 %v53_v11, %v33_v63  ;;  %v102_v8 = vmul.f32 %v54_v20, %v34_v0  ;;  %v220_v33 = vpack.c.bf16 %v195_v18, %v194_v7  ;;  %v41_v58 = vld [vmem:[%s594_s0 + $0xd8] sm:$0xff] }
  0x1a   :  { %v196_v34 = vmax.f32 %v164_v19, 0.0  ;;  %v197_v38 = vmax.f32 %v165_v23, 0.0  ;;  %v168_v39 = vadd.f32 %v120_v12, %v100_v24  ;;  %v198_v10 = vmax.f32 %v166_v3, 0.0  ;;  %v39_v12 = vld [vmem:[%s594_s0 + $0xc8] sm:$0xff] }
  0x1b   :  { %v199_v40 = vmax.f32 %v167_v4, 0.0  ;;  %v169_v11 = vadd.f32 %v121_v16, %v101_v28  ;;  %v103_v20 = vmul.f32 %v55_v21, %v35_v27  ;;  %236 = vst [vmem:[%s597_s3 + $0x30] sm:$0xff] %v220_v33  ;;  %v170_v16 = vadd.f32 %v122_v22, %v102_v8 }
  0x1c   :  { %v221_v47 = vpack.c.bf16 %v197_v38, %v196_v34  ;;  %v200_v48 = vmax.f32 %v168_v39, 0.0  ;;  %v104_v21 = vmul.f32 %v56_v32, %v36_v31  ;;  %v105_v57 = vmul.f32 %v57_v36, %v37_v9 }
  0x1d   :  { %v222_v50 = vpack.c.bf16 %v199_v40, %v198_v10  ;;  %v201_v51 = vmax.f32 %v169_v11, 0.0  ;;  %v171_v54 = vadd.f32 %v123_v26, %v103_v20  ;;  %v202_v22 = vmax.f32 %v170_v16, 0.0 }
  0x1e   :  { %237 = vst [vmem:[%s597_s3 + $0x38] sm:$0xff] %v221_v47  ;;  %v172_v32 = vadd.f32 %v124_v45, %v104_v21  ;;  %v106_v59 = vmul.f32 %v58_v52, %v38_v41  ;;  %v107_v26 = vmul.f32 %v59_v55, %v39_v12  ;;  %v173_v0 = vadd.f32 %v125_v46, %v105_v57  ;;  %v43_v52 = vld [vmem:[%s594_s0 + $0xe8] sm:$0xff] }
  0x1f   :  { %238 = vst [vmem:[%s597_s3 + $0x40] sm:$0xff] %v222_v50  ;;  %v223_v36 = vpack.c.bf16 %v201_v51, %v200_v48  ;;  %v203_v63 = vmax.f32 %v171_v54, 0.0  ;;  %v108_v45 = vmul.f32 %v60_v62, %v40_v49  ;;  %v109_v13 = vmul.f32 %v61_v6, %v41_v58 }
  0x20   :  { %v204_v55 = vmax.f32 %v172_v32, 0.0  ;;  %v174_v1 = vadd.f32 %v126_v56, %v106_v59  ;;  %v175_v7 = vadd.f32 %v127_v60, %v107_v26  ;;  %v205_v62 = vmax.f32 %v173_v0, 0.0  ;;  %v45_v60 = vld [vmem:[%s594_s0 + $0xf8] sm:$0xff] }
  0x21   :  { %239 = vst [vmem:[%s597_s3 + $0x48] sm:$0xff] %v223_v36  ;;  %v224_v46 = vpack.c.bf16 %v203_v63, %v202_v22  ;;  %v176_v17 = vadd.f32 %v128_v14, %v108_v45  ;;  %v110_v56 = vmul.f32 %v62_v25, %v42_v2  ;;  %v177_v19 = vadd.f32 %v129_v15, %v109_v13 }
  0x22   :  { %v206_v6 = vmax.f32 %v174_v1, 0.0  ;;  %v207_v18 = vmax.f32 %v175_v7, 0.0  ;;  %v111_v23 = vmul.f32 %v63_v29, %v43_v52  ;;  %v225_v14 = vpack.c.bf16 %v205_v62, %v204_v55 }
  0x23   :  { %240 = vst [vmem:[%s597_s3 + $0x50] sm:$0xff] %v224_v46  ;;  %v208_v24 = vmax.f32 %v176_v17, 0.0  ;;  %v178_v25 = vadd.f32 %v130_v30, %v110_v56  ;;  %v112_v27 = vmul.f32 %v64_v43, %v44_v5  ;;  %v209_v4 = vmax.f32 %v177_v19, 0.0 }
  0x24   :  { %v226_v3 = vpack.c.bf16 %v207_v18, %v206_v6  ;;  %v179_v15 = vadd.f32 %v131_v35, %v111_v23  ;;  %v113_v29 = vmul.f32 %v65_v44, %v45_v60  ;;  %241 = vst [vmem:[%s597_s3 + $0x58] sm:$0xff] %v225_v14 }
  0x25   :  { %v210_v28 = vmax.f32 %v178_v25, 0.0  ;;  %v180_v8 = vadd.f32 %v132_v53, %v112_v27  ;;  %v227_v30 = vpack.c.bf16 %v209_v4, %v208_v24 }
  0x26   :  { %242 = vst [vmem:[%s597_s3 + $0x60] sm:$0xff] %v226_v3  ;;  %v211_v43 = vmax.f32 %v179_v15, 0.0  ;;  %v181_v35 = vadd.f32 %v133_v61, %v113_v29 }
  0x27   :  { %v212_v31 = vmax.f32 %v180_v8, 0.0  ;;  %243 = vst [vmem:[%s597_s3 + $0x68] sm:$0xff] %v227_v30 }
  0x28   :  { %v228_v37 = vpack.c.bf16 %v211_v43, %v210_v28  ;;  %v213_v44 = vmax.f32 %v181_v35, 0.0 }
  0x2a   :  { %244 = vst [vmem:[%s597_s3 + $0x70] sm:$0xff] %v228_v37  ;;  %v229_v53 = vpack.c.bf16 %v213_v44, %v212_v31 }
  0x2c   :  { %245 = vst [vmem:[%s597_s3 + $0x78] sm:$0xff] %v229_v53 }

// kernel: _fwd.22
= control target key start
LH: loop header
LB: loop body
LE: loop exit
PB: predicated region body
PF: predicated region fallthrough
CT: control target
= control target key end

     0   :  { %s1001_s9 = smov 0   ;;  %s1221_s0 = inlined_call_operand.vmem [shape: bf16[2560,8], index: 0, kind: input, shape index: {}]   ;;  %s1222_s1 = inlined_call_operand.vmem [shape: bf16[8,48], index: 1, kind: input, shape index: {}]   ;;  %s1223_s2 = inlined_call_operand.vmem [shape: f32[2560,48], index: 2, kind: output, shape index: {}]  }
   0x1 LB: > { %s764_s10 = sadd.s32 4294967295, %s984_s9   ;;  %p768_p0 = scmp.ge.s32.totalorder %s984_s9, 1  ;;  %s984_s9 = sphi %s1001_s9, %s12_s9  }
   0x2   : > { %p113_p1 = scmp.lt.s32.totalorder %s984_s9, 6 }
   0x4   : > { %p114_p2 = pnand %p768_p0, %p113_p1 }
   0x5   : > { %s769_s13 = sshll.u32 (!%p114_p2), %s764_s10, 6 }
   0x6   : > { %117 = sbr.rel (%p114_p2) target bundleno = 271 (0x10f), region = 28  ;;  %p136_p3 = scmp.lt.s32.totalorder (!%p114_p2), %s769_s13, 319 }
   0xb   : > { %v212_v0 = vld [vmem:[%s1222_s1] sm:$0xf]  ;;  %vm470_vm0 = vcmask 1043456   ;;  %s1225_s13 = smov (!%p136_p3, %s769_s13), 319  ;;  %vm373_vm1 = vcmask 64512   ;;  %vm643_vm2 = vcmask 392192  }
   0xc   : > { %v472_v1 = vsel %vm470_vm0, %v212_v0, 0  ;;  %s770_s14 = sshll.u32 %s1225_s13, 2  ;;  %s772_s18 = sshll.u32 %s1225_s13, 3 }
   0xd   : > { %481 = vmatpush.bf16.msra.mxu0 %v472_v1  ;;  %967 = vmatpush.bf16.msra.mxu1 %v472_v1  ;;  %s1018_s17 = scalar_lea.vmem %s1221_s0, %s770_s14  ;;  %s1088_s21 = scalar_lea.vmem %s1223_s2, %s772_s18 }
   0xe   : > { %968 = vmatpush.bf16.msra.mxu2 %v472_v1  ;;  %969 = vmatpush.bf16.msra.mxu3 %v472_v1  ;;  %v935_v2 = vld [vmem:[%s1018_s17] sm:$0xff]  ;;  %v936_v6 = vld [vmem:[%s1018_s17 + $0x8] sm:$0xff]  ;;  %v937_v10 = vld [vmem:[%s1018_s17 + $0x10] sm:$0xff] }
   0xf   : > { %v943_v3 = vld [vmem:[%s1018_s17 + $0x40] sm:$0xff]  ;;  %v944_v7 = vld [vmem:[%s1018_s17 + $0x48] sm:$0xff]  ;;  %v945_v11 = vld [vmem:[%s1018_s17 + $0x50] sm:$0xff] }
  0x10   : > { %v951_v4 = vld [vmem:[%s1018_s17 + $0x80] sm:$0xff]  ;;  %901 = vmatmul.msk.bf16.vlgmr.msra.gmra.mxu0 %vm373_vm1, %v935_v2  ;;  %909 = vmatmul.msk.bf16.vlgmr.msra.gmra.mxu1 %vm373_vm1, %v943_v3  ;;  %v952_v8 = vld [vmem:[%s1018_s17 + $0x88] sm:$0xff]  ;;  %v953_v12 = vld [vmem:[%s1018_s17 + $0x90] sm:$0xff] }
  0x11   : > { %v959_v5 = vld [vmem:[%s1018_s17 + $0xc0] sm:$0xff]  ;;  %917 = vmatmul.msk.bf16.vlgmr.msra.gmra.mxu2 %vm373_vm1, %v951_v4  ;;  %v960_v9 = vld [vmem:[%s1018_s17 + $0xc8] sm:$0xff]  ;;  %v961_v13 = vld [vmem:[%s1018_s17 + $0xd0] sm:$0xff] }
  0x12   : > { %925 = vmatmul.msk.bf16.vlgmr.msra.gmra.mxu3 %vm373_vm1, %v959_v5  ;;  %v938_v14 = vld [vmem:[%s1018_s17 + $0x18] sm:$0xff]  ;;  %v939_v18 = vld [vmem:[%s1018_s17 + $0x20] sm:$0xff]  ;;  %v940_v22 = vld [vmem:[%s1018_s17 + $0x28] sm:$0xff] }
  0x13   : > { %v946_v15 = vld [vmem:[%s1018_s17 + $0x58] sm:$0xff]  ;;  %v947_v19 = vld [vmem:[%s1018_s17 + $0x60] sm:$0xff]  ;;  %v948_v23 = vld [vmem:[%s1018_s17 + $0x68] sm:$0xff] }
  0x14   : > { %v954_v16 = vld [vmem:[%s1018_s17 + $0x98] sm:$0xff]  ;;  %v955_v20 = vld [vmem:[%s1018_s17 + $0xa0] sm:$0xff]  ;;  %v956_v24 = vld [vmem:[%s1018_s17 + $0xa8] sm:$0xff] }
  0x15   : > { %v962_v17 = vld [vmem:[%s1018_s17 + $0xd8] sm:$0xff]  ;;  %v963_v21 = vld [vmem:[%s1018_s17 + $0xe0] sm:$0xff]  ;;  %v964_v25 = vld [vmem:[%s1018_s17 + $0xe8] sm:$0xff] }
  0x16   : > { %v941_v26 = vld [vmem:[%s1018_s17 + $0x30] sm:$0xff]  ;;  %v942_v30 = vld [vmem:[%s1018_s17 + $0x38] sm:$0xff] }
  0x17   : > { %v949_v27 = vld [vmem:[%s1018_s17 + $0x70] sm:$0xff]  ;;  %v950_v31 = vld [vmem:[%s1018_s17 + $0x78] sm:$0xff] }
  0x18   : > { %v957_v28 = vld [vmem:[%s1018_s17 + $0xb0] sm:$0xff]  ;;  %v958_v32 = vld [vmem:[%s1018_s17 + $0xb8] sm:$0xff] }
  0x19   : > { %v965_v29 = vld [vmem:[%s1018_s17 + $0xf0] sm:$0xff]  ;;  %v966_v33 = vld [vmem:[%s1018_s17 + $0xf8] sm:$0xff] }
  0x20   : > { %902 = vmatmul.msk.bf16.gmra.mxu0 %vm373_vm1, %v936_v6  ;;  %910 = vmatmul.msk.bf16.gmra.mxu1 %vm373_vm1, %v944_v7 }
  0x21   : > { %918 = vmatmul.msk.bf16.gmra.mxu2 %vm373_vm1, %v952_v8 }
  0x22   : > { %926 = vmatmul.msk.bf16.gmra.mxu3 %vm373_vm1, %v960_v9 }
  0x30   : > { %903 = vmatmul.msk.bf16.gmra.mxu0 %vm373_vm1, %v937_v10  ;;  %911 = vmatmul.msk.bf16.gmra.mxu1 %vm373_vm1, %v945_v11 }
  0x31   : > { %919 = vmatmul.msk.bf16.gmra.mxu2 %vm373_vm1, %v953_v12 }
  0x32   : > { %927 = vmatmul.msk.bf16.gmra.mxu3 %vm373_vm1, %v961_v13 }
  0x40   : > { %904 = vmatmul.msk.bf16.gmra.mxu0 %vm373_vm1, %v938_v14  ;;  %912 = vmatmul.msk.bf16.gmra.mxu1 %vm373_vm1, %v946_v15 }
  0x41   : > { %920 = vmatmul.msk.bf16.gmra.mxu2 %vm373_vm1, %v954_v16 }
  0x42   : > { %928 = vmatmul.msk.bf16.gmra.mxu3 %vm373_vm1, %v962_v17 }
  0x50   : > { %905 = vmatmul.msk.bf16.gmra.mxu0 %vm373_vm1, %v939_v18  ;;  %913 = vmatmul.msk.bf16.gmra.mxu1 %vm373_vm1, %v947_v19 }
  0x51   : > { %921 = vmatmul.msk.bf16.gmra.mxu2 %vm373_vm1, %v955_v20 }
  0x52   : > { %929 = vmatmul.msk.bf16.gmra.mxu3 %vm373_vm1, %v963_v21 }
  0x60   : > { %906 = vmatmul.msk.bf16.gmra.mxu0 %vm373_vm1, %v940_v22  ;;  %914 = vmatmul.msk.bf16.gmra.mxu1 %vm373_vm1, %v948_v23 }
  0x61   : > { %922 = vmatmul.msk.bf16.gmra.mxu2 %vm373_vm1, %v956_v24 }
  0x62   : > { %930 = vmatmul.msk.bf16.gmra.mxu3 %vm373_vm1, %v964_v25 }
  0x70   : > { %907 = vmatmul.msk.bf16.gmra.mxu0 %vm373_vm1, %v941_v26  ;;  %915 = vmatmul.msk.bf16.gmra.mxu1 %vm373_vm1, %v949_v27 }
  0x71   : > { %923 = vmatmul.msk.bf16.gmra.mxu2 %vm373_vm1, %v957_v28 }
  0x72   : > { %931 = vmatmul.msk.bf16.gmra.mxu3 %vm373_vm1, %v965_v29 }
  0x80   : > { %908 = vmatmul.msk.bf16.gmra.mxu0 %vm373_vm1, %v942_v30  ;;  %916 = vmatmul.msk.bf16.gmra.mxu1 %vm373_vm1, %v950_v31 }
  0x81   : > { %924 = vmatmul.msk.bf16.gmra.mxu2 %vm373_vm1, %v958_v32 }
  0x82   : > { %932 = vmatmul.msk.bf16.gmra.mxu3 %vm373_vm1, %v966_v33 }
  0x8d   : > { %v483_v34 = vpop.f32.mrf.mxu0  ;;  %v523_v35 = vpop.f32.mrf.mxu1 }
  0x8e   : > { %644 = vst.msk [vmem:[%s1088_s21] sm:$0xff] %vm643_vm2, %v483_v34 }
  0x8f   : > { %660 = vst.msk [vmem:[%s1088_s21 + $0x80] sm:$0xff] %vm643_vm2, %v523_v35 }
  0x94   : > { %v563_v36 = vpop.f32.mrf.mxu2 }
  0x95   : > { %v603_v37 = vpop.f32.mrf.mxu3  ;;  %676 = vst.msk [vmem:[%s1088_s21 + $0x100] sm:$0xff] %vm643_vm2, %v563_v36  ;;  %v485_v38 = vpop.f32.mrf.mxu0 }
  0x96   : > { %v525_v39 = vpop.f32.mrf.mxu1  ;;  %692 = vst.msk [vmem:[%s1088_s21 + $0x180] sm:$0xff] %vm643_vm2, %v603_v37 }
  0x97   : > { %645 = vst.msk [vmem:[%s1088_s21 + $0x8] sm:$0xff] %vm643_vm2, %v485_v38 }
  0x98   : > { %661 = vst.msk [vmem:[%s1088_s21 + $0x88] sm:$0xff] %vm643_vm2, %v525_v39 }
  0x9c   : > { %v565_v40 = vpop.f32.mrf.mxu2 }
  0x9d   : > { %v605_v41 = vpop.f32.mrf.mxu3  ;;  %677 = vst.msk [vmem:[%s1088_s21 + $0x108] sm:$0xff] %vm643_vm2, %v565_v40  ;;  %v488_v42 = vpop.f32.mrf.mxu0 }
  0x9e   : > { %v528_v43 = vpop.f32.mrf.mxu1  ;;  %693 = vst.msk [vmem:[%s1088_s21 + $0x188] sm:$0xff] %vm643_vm2, %v605_v41 }
  0x9f   : > { %646 = vst.msk [vmem:[%s1088_s21 + $0x10] sm:$0xff] %vm643_vm2, %v488_v42 }
  0xa0   : > { %662 = vst.msk [vmem:[%s1088_s21 + $0x90] sm:$0xff] %vm643_vm2, %v528_v43 }
  0xa4   : > { %v568_v44 = vpop.f32.mrf.mxu2 }
  0xa5   : > { %v608_v45 = vpop.f32.mrf.mxu3  ;;  %678 = vst.msk [vmem:[%s1088_s21 + $0x110] sm:$0xff] %vm643_vm2, %v568_v44  ;;  %v490_v46 = vpop.f32.mrf.mxu0 }
  0xa6   : > { %v530_v47 = vpop.f32.mrf.mxu1  ;;  %694 = vst.msk [vmem:[%s1088_s21 + $0x190] sm:$0xff] %vm643_vm2, %v608_v45 }
  0xa7   : > { %647 = vst.msk [vmem:[%s1088_s21 + $0x18] sm:$0xff] %vm643_vm2, %v490_v46 }
  0xa8   : > { %663 = vst.msk [vmem:[%s1088_s21 + $0x98] sm:$0xff] %vm643_vm2, %v530_v47 }
  0xac   : > { %v570_v48 = vpop.f32.mrf.mxu2 }
  0xad   : > { %v610_v49 = vpop.f32.mrf.mxu3  ;;  %679 = vst.msk [vmem:[%s1088_s21 + $0x118] sm:$0xff] %vm643_vm2, %v570_v48  ;;  %v493_v50 = vpop.f32.mrf.mxu0 }
  0xae   : > { %v533_v51 = vpop.f32.mrf.mxu1  ;;  %695 = vst.msk [vmem:[%s1088_s21 + $0x198] sm:$0xff] %vm643_vm2, %v610_v49 }
  0xaf   : > { %648 = vst.msk [vmem:[%s1088_s21 + $0x20] sm:$0xff] %vm643_vm2, %v493_v50 }
  0xb0   : > { %664 = vst.msk [vmem:[%s1088_s21 + $0xa0] sm:$0xff] %vm643_vm2, %v533_v51 }
  0xb4   : > { %v573_v52 = vpop.f32.mrf.mxu2 }
  0xb5   : > { %v613_v53 = vpop.f32.mrf.mxu3  ;;  %680 = vst.msk [vmem:[%s1088_s21 + $0x120] sm:$0xff] %vm643_vm2, %v573_v52  ;;  %v495_v54 = vpop.f32.mrf.mxu0 }
  0xb6   : > { %v535_v55 = vpop.f32.mrf.mxu1  ;;  %696 = vst.msk [vmem:[%s1088_s21 + $0x1a0] sm:$0xff] %vm643_vm2, %v613_v53 }
  0xb7   : > { %649 = vst.msk [vmem:[%s1088_s21 + $0x28] sm:$0xff] %vm643_vm2, %v495_v54 }
  0xb8   : > { %665 = vst.msk [vmem:[%s1088_s21 + $0xa8] sm:$0xff] %vm643_vm2, %v535_v55 }
  0xbc   : > { %v575_v56 = vpop.f32.mrf.mxu2 }
  0xbd   : > { %v615_v57 = vpop.f32.mrf.mxu3  ;;  %681 = vst.msk [vmem:[%s1088_s21 + $0x128] sm:$0xff] %vm643_vm2, %v575_v56  ;;  %v498_v58 = vpop.f32.mrf.mxu0 }
  0xbe   : > { %v538_v59 = vpop.f32.mrf.mxu1  ;;  %697 = vst.msk [vmem:[%s1088_s21 + $0x1a8] sm:$0xff] %vm643_vm2, %v615_v57 }
  0xbf   : > { %650 = vst.msk [vmem:[%s1088_s21 + $0x30] sm:$0xff] %vm643_vm2, %v498_v58 }
  0xc0   : > { %666 = vst.msk [vmem:[%s1088_s21 + $0xb0] sm:$0xff] %vm643_vm2, %v538_v59 }
  0xc4   : > { %v578_v60 = vpop.f32.mrf.mxu2 }
  0xc5   : > { %v618_v61 = vpop.f32.mrf.mxu3  ;;  %682 = vst.msk [vmem:[%s1088_s21 + $0x130] sm:$0xff] %vm643_vm2, %v578_v60  ;;  %v500_v62 = vpop.f32.mrf.mxu0 }
  0xc6   : > { %v540_v63 = vpop.f32.mrf.mxu1  ;;  %698 = vst.msk [vmem:[%s1088_s21 + $0x1b0] sm:$0xff] %vm643_vm2, %v618_v61 }
  0xc7   : > { %651 = vst.msk [vmem:[%s1088_s21 + $0x38] sm:$0xff] %vm643_vm2, %v500_v62 }
  0xc8   : > { %667 = vst.msk [vmem:[%s1088_s21 + $0xb8] sm:$0xff] %vm643_vm2, %v540_v63 }
  0xcc   : > { %v580_v0 = vpop.f32.mrf.mxu2 }
  0xcd   : > { %v620_v1 = vpop.f32.mrf.mxu3  ;;  %683 = vst.msk [vmem:[%s1088_s21 + $0x138] sm:$0xff] %vm643_vm2, %v580_v0  ;;  %v503_v2 = vpop.f32.mrf.mxu0 }
  0xce   : > { %v543_v3 = vpop.f32.mrf.mxu1  ;;  %699 = vst.msk [vmem:[%s1088_s21 + $0x1b8] sm:$0xff] %vm643_vm2, %v620_v1 }
  0xcf   : > { %652 = vst.msk [vmem:[%s1088_s21 + $0x40] sm:$0xff] %vm643_vm2, %v503_v2 }
  0xd0   : > { %668 = vst.msk [vmem:[%s1088_s21 + $0xc0] sm:$0xff] %vm643_vm2, %v543_v3 }
  0xd4   : > { %v583_v4 = vpop.f32.mrf.mxu2 }
  0xd5   : > { %v623_v5 = vpop.f32.mrf.mxu3  ;;  %684 = vst.msk [vmem:[%s1088_s21 + $0x140] sm:$0xff] %vm643_vm2, %v583_v4  ;;  %v505_v6 = vpop.f32.mrf.mxu0 }
  0xd6   : > { %v545_v7 = vpop.f32.mrf.mxu1  ;;  %700 = vst.msk [vmem:[%s1088_s21 + $0x1c0] sm:$0xff] %vm643_vm2, %v623_v5 }
  0xd7   : > { %653 = vst.msk [vmem:[%s1088_s21 + $0x48] sm:$0xff] %vm643_vm2, %v505_v6 }
  0xd8   : > { %669 = vst.msk [vmem:[%s1088_s21 + $0xc8] sm:$0xff] %vm643_vm2, %v545_v7 }
  0xdc   : > { %v585_v8 = vpop.f32.mrf.mxu2 }
  0xdd   : > { %v625_v9 = vpop.f32.mrf.mxu3  ;;  %685 = vst.msk [vmem:[%s1088_s21 + $0x148] sm:$0xff] %vm643_vm2, %v585_v8  ;;  %v508_v10 = vpop.f32.mrf.mxu0 }
  0xde   : > { %v548_v11 = vpop.f32.mrf.mxu1  ;;  %701 = vst.msk [vmem:[%s1088_s21 + $0x1c8] sm:$0xff] %vm643_vm2, %v625_v9 }
  0xdf   : > { %654 = vst.msk [vmem:[%s1088_s21 + $0x50] sm:$0xff] %vm643_vm2, %v508_v10 }
  0xe0   : > { %670 = vst.msk [vmem:[%s1088_s21 + $0xd0] sm:$0xff] %vm643_vm2, %v548_v11 }
  0xe4   : > { %v588_v12 = vpop.f32.mrf.mxu2 }
  0xe5   : > { %v628_v13 = vpop.f32.mrf.mxu3  ;;  %686 = vst.msk [vmem:[%s1088_s21 + $0x150] sm:$0xff] %vm643_vm2, %v588_v12  ;;  %v510_v14 = vpop.f32.mrf.mxu0 }
  0xe6   : > { %v550_v15 = vpop.f32.mrf.mxu1  ;;  %702 = vst.msk [vmem:[%s1088_s21 + $0x1d0] sm:$0xff] %vm643_vm2, %v628_v13 }
  0xe7   : > { %655 = vst.msk [vmem:[%s1088_s21 + $0x58] sm:$0xff] %vm643_vm2, %v510_v14 }
  0xe8   : > { %671 = vst.msk [vmem:[%s1088_s21 + $0xd8] sm:$0xff] %vm643_vm2, %v550_v15 }
  0xec   : > { %v590_v16 = vpop.f32.mrf.mxu2 }
  0xed   : > { %v630_v17 = vpop.f32.mrf.mxu3  ;;  %687 = vst.msk [vmem:[%s1088_s21 + $0x158] sm:$0xff] %vm643_vm2, %v590_v16  ;;  %v513_v18 = vpop.f32.mrf.mxu0 }
  0xee   : > { %v553_v19 = vpop.f32.mrf.mxu1  ;;  %703 = vst.msk [vmem:[%s1088_s21 + $0x1d8] sm:$0xff] %vm643_vm2, %v630_v17 }
  0xef   : > { %656 = vst.msk [vmem:[%s1088_s21 + $0x60] sm:$0xff] %vm643_vm2, %v513_v18 }
  0xf0   : > { %672 = vst.msk [vmem:[%s1088_s21 + $0xe0] sm:$0xff] %vm643_vm2, %v553_v19 }
  0xf4   : > { %v593_v20 = vpop.f32.mrf.mxu2 }
  0xf5   : > { %v633_v21 = vpop.f32.mrf.mxu3  ;;  %688 = vst.msk [vmem:[%s1088_s21 + $0x160] sm:$0xff] %vm643_vm2, %v593_v20  ;;  %v515_v22 = vpop.f32.mrf.mxu0 }
  0xf6   : > { %v555_v23 = vpop.f32.mrf.mxu1  ;;  %704 = vst.msk [vmem:[%s1088_s21 + $0x1e0] sm:$0xff] %vm643_vm2, %v633_v21 }
  0xf7   : > { %657 = vst.msk [vmem:[%s1088_s21 + $0x68] sm:$0xff] %vm643_vm2, %v515_v22 }
  0xf8   : > { %673 = vst.msk [vmem:[%s1088_s21 + $0xe8] sm:$0xff] %vm643_vm2, %v555_v23 }
  0xfc   : > { %v595_v24 = vpop.f32.mrf.mxu2 }
  0xfd   : > { %v635_v25 = vpop.f32.mrf.mxu3  ;;  %689 = vst.msk [vmem:[%s1088_s21 + $0x168] sm:$0xff] %vm643_vm2, %v595_v24  ;;  %v518_v26 = vpop.f32.mrf.mxu0 }
  0xfe   : > { %v558_v27 = vpop.f32.mrf.mxu1  ;;  %705 = vst.msk [vmem:[%s1088_s21 + $0x1e8] sm:$0xff] %vm643_vm2, %v635_v25 }
  0xff   : > { %658 = vst.msk [vmem:[%s1088_s21 + $0x70] sm:$0xff] %vm643_vm2, %v518_v26 }
 0x100   : > { %674 = vst.msk [vmem:[%s1088_s21 + $0xf0] sm:$0xff] %vm643_vm2, %v558_v27 }
 0x104   : > { %v598_v28 = vpop.f32.mrf.mxu2 }
 0x105   : > { %v638_v29 = vpop.f32.mrf.mxu3  ;;  %690 = vst.msk [vmem:[%s1088_s21 + $0x170] sm:$0xff] %vm643_vm2, %v598_v28  ;;  %v520_v30 = vpop.f32.mrf.mxu0 }
 0x106   : > { %v560_v31 = vpop.f32.mrf.mxu1  ;;  %706 = vst.msk [vmem:[%s1088_s21 + $0x1f0] sm:$0xff] %vm643_vm2, %v638_v29 }
 0x107   : > { %659 = vst.msk [vmem:[%s1088_s21 + $0x78] sm:$0xff] %vm643_vm2, %v520_v30 }
 0x108   : > { %675 = vst.msk [vmem:[%s1088_s21 + $0xf8] sm:$0xff] %vm643_vm2, %v560_v31 }
 0x10c   : > { %v600_v32 = vpop.f32.mrf.mxu2 }
 0x10d   : > { %v640_v33 = vpop.f32.mrf.mxu3  ;;  %691 = vst.msk [vmem:[%s1088_s21 + $0x178] sm:$0xff] %vm643_vm2, %v600_v32 }
 0x10e   : > { %707 = vst.msk [vmem:[%s1088_s21 + $0x1f8] sm:$0xff] %vm643_vm2, %v640_v33 }
 0x10f PF: > { %s12_s9 = sadd.s32 1, %s984_s9  }
 0x110   : > { %p9_p4 = scmp.ge.s32.totalorder %s12_s9, 7  }
 0x112   :  { %11 = sbr.rel (!%p9_p4) target bundleno = 1 (0x1), region = 58 }

// kernel: tile.88
= control target key start
LH: loop header
LB: loop body
LE: loop exit
PB: predicated region body
PF: predicated region fallthrough
CT: control target
= control target key end

     0   :  { %s914_s0 = inlined_call_operand.vmem [shape: f32[3], index: 0, kind: input, shape index: {}]   ;;  %s915_s1 = inlined_call_operand.vmem [shape: f32[1024,3], index: 1, kind: output, shape index: {}]  }
   0x1   :  { %v400_v0 = vld [vmem:[%s914_s0] ss:$0 sm:$0xff] }
   0x2   :  { %5 = vst [vmem:[%s915_s1] sm:$0xff] %v400_v0 }
   0x3   :  { %260 = vst [vmem:[%s915_s1 + $0x8] sm:$0xff] %v400_v0 }
   0x4   :  { %261 = vst [vmem:[%s915_s1 + $0x10] sm:$0xff] %v400_v0 }
   0x5   :  { %262 = vst [vmem:[%s915_s1 + $0x18] sm:$0xff] %v400_v0 }
   0x6   :  { %263 = vst [vmem:[%s915_s1 + $0x20] sm:$0xff] %v400_v0 }
   0x7   :  { %264 = vst [vmem:[%s915_s1 + $0x28] sm:$0xff] %v400_v0 }
   0x8   :  { %265 = vst [vmem:[%s915_s1 + $0x30] sm:$0xff] %v400_v0 }
   0x9   :  { %266 = vst [vmem:[%s915_s1 + $0x38] sm:$0xff] %v400_v0 }
   0xa   :  { %267 = vst [vmem:[%s915_s1 + $0x40] sm:$0xff] %v400_v0 }
   0xb   :  { %268 = vst [vmem:[%s915_s1 + $0x48] sm:$0xff] %v400_v0 }
   0xc   :  { %269 = vst [vmem:[%s915_s1 + $0x50] sm:$0xff] %v400_v0 }
   0xd   :  { %270 = vst [vmem:[%s915_s1 + $0x58] sm:$0xff] %v400_v0 }
   0xe   :  { %271 = vst [vmem:[%s915_s1 + $0x60] sm:$0xff] %v400_v0 }
   0xf   :  { %272 = vst [vmem:[%s915_s1 + $0x68] sm:$0xff] %v400_v0 }
  0x10   :  { %273 = vst [vmem:[%s915_s1 + $0x70] sm:$0xff] %v400_v0 }
  0x11   :  { %274 = vst [vmem:[%s915_s1 + $0x78] sm:$0xff] %v400_v0 }
  0x12   :  { %275 = vst [vmem:[%s915_s1 + $0x80] sm:$0xff] %v400_v0 }
  0x13   :  { %276 = vst [vmem:[%s915_s1 + $0x88] sm:$0xff] %v400_v0 }
  0x14   :  { %277 = vst [vmem:[%s915_s1 + $0x90] sm:$0xff] %v400_v0 }
  0x15   :  { %278 = vst [vmem:[%s915_s1 + $0x98] sm:$0xff] %v400_v0 }
  0x16   :  { %279 = vst [vmem:[%s915_s1 + $0xa0] sm:$0xff] %v400_v0 }
  0x17   :  { %280 = vst [vmem:[%s915_s1 + $0xa8] sm:$0xff] %v400_v0 }
  0x18   :  { %281 = vst [vmem:[%s915_s1 + $0xb0] sm:$0xff] %v400_v0 }
  0x19   :  { %282 = vst [vmem:[%s915_s1 + $0xb8] sm:$0xff] %v400_v0 }
  0x1a   :  { %283 = vst [vmem:[%s915_s1 + $0xc0] sm:$0xff] %v400_v0 }
  0x1b   :  { %284 = vst [vmem:[%s915_s1 + $0xc8] sm:$0xff] %v400_v0 }
  0x1c   :  { %285 = vst [vmem:[%s915_s1 + $0xd0] sm:$0xff] %v400_v0 }
  0x1d   :  { %286 = vst [vmem:[%s915_s1 + $0xd8] sm:$0xff] %v400_v0 }
  0x1e   :  { %287 = vst [vmem:[%s915_s1 + $0xe0] sm:$0xff] %v400_v0 }
  0x1f   :  { %288 = vst [vmem:[%s915_s1 + $0xe8] sm:$0xff] %v400_v0 }
  0x20   :  { %289 = vst [vmem:[%s915_s1 + $0xf0] sm:$0xff] %v400_v0 }
  0x21   :  { %290 = vst [vmem:[%s915_s1 + $0xf8] sm:$0xff] %v400_v0 }
  0x22   :  { %291 = vst [vmem:[%s915_s1 + $0x100] sm:$0xff] %v400_v0 }
  0x23   :  { %292 = vst [vmem:[%s915_s1 + $0x108] sm:$0xff] %v400_v0 }
  0x24   :  { %293 = vst [vmem:[%s915_s1 + $0x110] sm:$0xff] %v400_v0 }
  0x25   :  { %294 = vst [vmem:[%s915_s1 + $0x118] sm:$0xff] %v400_v0 }
  0x26   :  { %295 = vst [vmem:[%s915_s1 + $0x120] sm:$0xff] %v400_v0 }
  0x27   :  { %296 = vst [vmem:[%s915_s1 + $0x128] sm:$0xff] %v400_v0 }
  0x28   :  { %297 = vst [vmem:[%s915_s1 + $0x130] sm:$0xff] %v400_v0 }
  0x29   :  { %298 = vst [vmem:[%s915_s1 + $0x138] sm:$0xff] %v400_v0 }
  0x2a   :  { %299 = vst [vmem:[%s915_s1 + $0x140] sm:$0xff] %v400_v0 }
  0x2b   :  { %300 = vst [vmem:[%s915_s1 + $0x148] sm:$0xff] %v400_v0 }
  0x2c   :  { %301 = vst [vmem:[%s915_s1 + $0x150] sm:$0xff] %v400_v0 }
  0x2d   :  { %302 = vst [vmem:[%s915_s1 + $0x158] sm:$0xff] %v400_v0 }
  0x2e   :  { %303 = vst [vmem:[%s915_s1 + $0x160] sm:$0xff] %v400_v0 }
  0x2f   :  { %304 = vst [vmem:[%s915_s1 + $0x168] sm:$0xff] %v400_v0 }
  0x30   :  { %305 = vst [vmem:[%s915_s1 + $0x170] sm:$0xff] %v400_v0 }
  0x31   :  { %306 = vst [vmem:[%s915_s1 + $0x178] sm:$0xff] %v400_v0 }
  0x32   :  { %307 = vst [vmem:[%s915_s1 + $0x180] sm:$0xff] %v400_v0 }
  0x33   :  { %308 = vst [vmem:[%s915_s1 + $0x188] sm:$0xff] %v400_v0 }
  0x34   :  { %309 = vst [vmem:[%s915_s1 + $0x190] sm:$0xff] %v400_v0 }
  0x35   :  { %310 = vst [vmem:[%s915_s1 + $0x198] sm:$0xff] %v400_v0 }
  0x36   :  { %311 = vst [vmem:[%s915_s1 + $0x1a0] sm:$0xff] %v400_v0 }
  0x37   :  { %312 = vst [vmem:[%s915_s1 + $0x1a8] sm:$0xff] %v400_v0 }
  0x38   :  { %313 = vst [vmem:[%s915_s1 + $0x1b0] sm:$0xff] %v400_v0 }
  0x39   :  { %314 = vst [vmem:[%s915_s1 + $0x1b8] sm:$0xff] %v400_v0 }
  0x3a   :  { %315 = vst [vmem:[%s915_s1 + $0x1c0] sm:$0xff] %v400_v0 }
  0x3b   :  { %316 = vst [vmem:[%s915_s1 + $0x1c8] sm:$0xff] %v400_v0 }
  0x3c   :  { %317 = vst [vmem:[%s915_s1 + $0x1d0] sm:$0xff] %v400_v0 }
  0x3d   :  { %318 = vst [vmem:[%s915_s1 + $0x1d8] sm:$0xff] %v400_v0 }
  0x3e   :  { %319 = vst [vmem:[%s915_s1 + $0x1e0] sm:$0xff] %v400_v0 }
  0x3f   :  { %320 = vst [vmem:[%s915_s1 + $0x1e8] sm:$0xff] %v400_v0 }
  0x40   :  { %321 = vst [vmem:[%s915_s1 + $0x1f0] sm:$0xff] %v400_v0 }
  0x41   :  { %322 = vst [vmem:[%s915_s1 + $0x1f8] sm:$0xff] %v400_v0 }
  0x42   :  { %323 = vst [vmem:[%s915_s1 + $0x200] sm:$0xff] %v400_v0 }
  0x43   :  { %324 = vst [vmem:[%s915_s1 + $0x208] sm:$0xff] %v400_v0 }
  0x44   :  { %325 = vst [vmem:[%s915_s1 + $0x210] sm:$0xff] %v400_v0 }
  0x45   :  { %326 = vst [vmem:[%s915_s1 + $0x218] sm:$0xff] %v400_v0 }
  0x46   :  { %327 = vst [vmem:[%s915_s1 + $0x220] sm:$0xff] %v400_v0 }
  0x47   :  { %328 = vst [vmem:[%s915_s1 + $0x228] sm:$0xff] %v400_v0 }
  0x48   :  { %329 = vst [vmem:[%s915_s1 + $0x230] sm:$0xff] %v400_v0 }
  0x49   :  { %330 = vst [vmem:[%s915_s1 + $0x238] sm:$0xff] %v400_v0 }
  0x4a   :  { %331 = vst [vmem:[%s915_s1 + $0x240] sm:$0xff] %v400_v0 }
  0x4b   :  { %332 = vst [vmem:[%s915_s1 + $0x248] sm:$0xff] %v400_v0 }
  0x4c   :  { %333 = vst [vmem:[%s915_s1 + $0x250] sm:$0xff] %v400_v0 }
  0x4d   :  { %334 = vst [vmem:[%s915_s1 + $0x258] sm:$0xff] %v400_v0 }
  0x4e   :  { %335 = vst [vmem:[%s915_s1 + $0x260] sm:$0xff] %v400_v0 }
  0x4f   :  { %336 = vst [vmem:[%s915_s1 + $0x268] sm:$0xff] %v400_v0 }
  0x50   :  { %337 = vst [vmem:[%s915_s1 + $0x270] sm:$0xff] %v400_v0 }
  0x51   :  { %338 = vst [vmem:[%s915_s1 + $0x278] sm:$0xff] %v400_v0 }
  0x52   :  { %339 = vst [vmem:[%s915_s1 + $0x280] sm:$0xff] %v400_v0 }
  0x53   :  { %340 = vst [vmem:[%s915_s1 + $0x288] sm:$0xff] %v400_v0 }
  0x54   :  { %341 = vst [vmem:[%s915_s1 + $0x290] sm:$0xff] %v400_v0 }
  0x55   :  { %342 = vst [vmem:[%s915_s1 + $0x298] sm:$0xff] %v400_v0 }
  0x56   :  { %343 = vst [vmem:[%s915_s1 + $0x2a0] sm:$0xff] %v400_v0 }
  0x57   :  { %344 = vst [vmem:[%s915_s1 + $0x2a8] sm:$0xff] %v400_v0 }
  0x58   :  { %345 = vst [vmem:[%s915_s1 + $0x2b0] sm:$0xff] %v400_v0 }
  0x59   :  { %346 = vst [vmem:[%s915_s1 + $0x2b8] sm:$0xff] %v400_v0 }
  0x5a   :  { %347 = vst [vmem:[%s915_s1 + $0x2c0] sm:$0xff] %v400_v0 }
  0x5b   :  { %348 = vst [vmem:[%s915_s1 + $0x2c8] sm:$0xff] %v400_v0 }
  0x5c   :  { %349 = vst [vmem:[%s915_s1 + $0x2d0] sm:$0xff] %v400_v0 }
  0x5d   :  { %350 = vst [vmem:[%s915_s1 + $0x2d8] sm:$0xff] %v400_v0 }
  0x5e   :  { %351 = vst [vmem:[%s915_s1 + $0x2e0] sm:$0xff] %v400_v0 }
  0x5f   :  { %352 = vst [vmem:[%s915_s1 + $0x2e8] sm:$0xff] %v400_v0 }
  0x60   :  { %353 = vst [vmem:[%s915_s1 + $0x2f0] sm:$0xff] %v400_v0 }
  0x61   :  { %354 = vst [vmem:[%s915_s1 + $0x2f8] sm:$0xff] %v400_v0 }
  0x62   :  { %355 = vst [vmem:[%s915_s1 + $0x300] sm:$0xff] %v400_v0 }
  0x63   :  { %356 = vst [vmem:[%s915_s1 + $0x308] sm:$0xff] %v400_v0 }
  0x64   :  { %357 = vst [vmem:[%s915_s1 + $0x310] sm:$0xff] %v400_v0 }
  0x65   :  { %358 = vst [vmem:[%s915_s1 + $0x318] sm:$0xff] %v400_v0 }
  0x66   :  { %359 = vst [vmem:[%s915_s1 + $0x320] sm:$0xff] %v400_v0 }
  0x67   :  { %360 = vst [vmem:[%s915_s1 + $0x328] sm:$0xff] %v400_v0 }
  0x68   :  { %361 = vst [vmem:[%s915_s1 + $0x330] sm:$0xff] %v400_v0 }
  0x69   :  { %362 = vst [vmem:[%s915_s1 + $0x338] sm:$0xff] %v400_v0 }
  0x6a   :  { %363 = vst [vmem:[%s915_s1 + $0x340] sm:$0xff] %v400_v0 }
  0x6b   :  { %364 = vst [vmem:[%s915_s1 + $0x348] sm:$0xff] %v400_v0 }
  0x6c   :  { %365 = vst [vmem:[%s915_s1 + $0x350] sm:$0xff] %v400_v0 }
  0x6d   :  { %366 = vst [vmem:[%s915_s1 + $0x358] sm:$0xff] %v400_v0 }
  0x6e   :  { %367 = vst [vmem:[%s915_s1 + $0x360] sm:$0xff] %v400_v0 }
  0x6f   :  { %368 = vst [vmem:[%s915_s1 + $0x368] sm:$0xff] %v400_v0 }
  0x70   :  { %369 = vst [vmem:[%s915_s1 + $0x370] sm:$0xff] %v400_v0 }
  0x71   :  { %370 = vst [vmem:[%s915_s1 + $0x378] sm:$0xff] %v400_v0 }
  0x72   :  { %371 = vst [vmem:[%s915_s1 + $0x380] sm:$0xff] %v400_v0 }
  0x73   :  { %372 = vst [vmem:[%s915_s1 + $0x388] sm:$0xff] %v400_v0 }
  0x74   :  { %373 = vst [vmem:[%s915_s1 + $0x390] sm:$0xff] %v400_v0 }
  0x75   :  { %374 = vst [vmem:[%s915_s1 + $0x398] sm:$0xff] %v400_v0 }
  0x76   :  { %375 = vst [vmem:[%s915_s1 + $0x3a0] sm:$0xff] %v400_v0 }
  0x77   :  { %376 = vst [vmem:[%s915_s1 + $0x3a8] sm:$0xff] %v400_v0 }
  0x78   :  { %377 = vst [vmem:[%s915_s1 + $0x3b0] sm:$0xff] %v400_v0 }
  0x79   :  { %378 = vst [vmem:[%s915_s1 + $0x3b8] sm:$0xff] %v400_v0 }
  0x7a   :  { %379 = vst [vmem:[%s915_s1 + $0x3c0] sm:$0xff] %v400_v0 }
  0x7b   :  { %380 = vst [vmem:[%s915_s1 + $0x3c8] sm:$0xff] %v400_v0 }
  0x7c   :  { %381 = vst [vmem:[%s915_s1 + $0x3d0] sm:$0xff] %v400_v0 }
  0x7d   :  { %382 = vst [vmem:[%s915_s1 + $0x3d8] sm:$0xff] %v400_v0 }
  0x7e   :  { %383 = vst [vmem:[%s915_s1 + $0x3e0] sm:$0xff] %v400_v0 }
  0x7f   :  { %384 = vst [vmem:[%s915_s1 + $0x3e8] sm:$0xff] %v400_v0 }
  0x80   :  { %385 = vst [vmem:[%s915_s1 + $0x3f0] sm:$0xff] %v400_v0 }
  0x81   :  { %386 = vst [vmem:[%s915_s1 + $0x3f8] sm:$0xff] %v400_v0 }

// kernel: tile.89
= control target key start
LH: loop header
LB: loop body
LE: loop exit
PB: predicated region body
PF: predicated region fallthrough
CT: control target
= control target key end

     0   :  { %vm5_vm0 = vcmask 1041409   ;;  %vm9_vm1 = vcmask 1042434   ;;  %vm13_vm2 = vcmask 1043459   ;;  %vm17_vm3 = vcmask 1044484   ;;  %s6614_s19 = smov 126   ;;  %s6615_s9 = smov 127   ;;  %s11805_s0 = inlined_call_operand.vmem [shape: f32[1024,3], index: 0, kind: input, shape index: {}]   ;;  %s11806_s1 = inlined_call_operand.vmem [shape: f32[1,3072], index: 1, kind: output, shape index: {}]  }
   0x1   :  { %v5448_v0 = vld [vmem:[%s11805_s0 + $0xaa] sm:$0x1]   ;;  %vm21_vm4 = vcmask 1045509   ;;  %vm25_vm5 = vcmask 1046534   ;;  %vm29_vm6 = vcmask 1047559   ;;  %s6616_s27 = smov 122  }
   0x2   :  { %v5449_v1 = vld [vmem:[%s11805_s0 + $0x29] sm:$0x2]   ;;  %v5432_v10 = vld [vmem:[%s11805_s0 + $0x155] sm:$0x1]   ;;  %v5488_v52 = vld [vmem:[%s11805_s0 + $0x17e] sm:$0x1]  }
   0x3   :  { %v121_v2 = vsel %vm5_vm0, %v5449_v1, %v5448_v0  ;;  %v5450_v3 = vld [vmem:[%s11805_s0 + $0x1a8] sm:$0x4]   ;;  %v5433_v11 = vld [vmem:[%s11805_s0 + $0xd4] sm:$0x2]   ;;  %v5489_v53 = vld [vmem:[%s11805_s0 + $0xfd] sm:$0x2]  }
   0x4   :  { %v5451_v4 = vld [vmem:[%s11805_s0 + $0x127] sm:$0x8]   ;;  %v125_v6 = vsel %vm9_vm1, %v5450_v3, %v121_v2  ;;  %v5434_v12 = vld [vmem:[%s11805_s0 + $0x53] sm:$0x4]   ;;  %v39_v15 = vsel %vm5_vm0, %v5433_v11, %v5432_v10  ;;  %v324_v56 = vsel %vm5_vm0, %v5489_v53, %v5488_v52  ;;  %v5490_v57 = vld [vmem:[%s11805_s0 + $0x7c] sm:$0x4]  }
   0x5   :  { %v5452_v5 = vld [vmem:[%s11805_s0 + $0x2a6] sm:$0x10]   ;;  %v129_v9 = vsel %vm13_vm2, %v5451_v4, %v125_v6  ;;  %v5435_v16 = vld [vmem:[%s11805_s0 + $0x1d2] sm:$0x8]   ;;  %v43_v19 = vsel %vm9_vm1, %v5434_v12, %v39_v15  ;;  %v5491_v58 = vld [vmem:[%s11805_s0 + $0x1fb] sm:$0x8]   ;;  %v328_v63 = vsel %vm9_vm1, %v5490_v57, %v324_v56 }
   0x6   :  { %v5453_v7 = vld [vmem:[%s11805_s0 + $0x225] sm:$0x20]   ;;  %v133_v13 = vsel %vm17_vm3, %v5452_v5, %v129_v9  ;;  %v5436_v17 = vld [vmem:[%s11805_s0 + $0x351] sm:$0x10]   ;;  %v47_v24 = vsel %vm13_vm2, %v5435_v16, %v43_v19  ;;  %v5492_v59 = vld [vmem:[%s11805_s0 + $0x37a] sm:$0x10]   ;;  %v332_v2 = vsel %vm13_vm2, %v5491_v58, %v328_v63 }
   0x7   :  { %v5454_v8 = vld [vmem:[%s11805_s0 + $0x3a4] sm:$0x40]   ;;  %v137_v18 = vsel %vm21_vm4, %v5453_v7, %v133_v13  ;;  %v5437_v20 = vld [vmem:[%s11805_s0 + $0x2d0] sm:$0x20]   ;;  %v51_v29 = vsel %vm17_vm3, %v5436_v17, %v47_v24  ;;  %v5493_v0 = vld [vmem:[%s11805_s0 + $0x2f9] sm:$0x20]   ;;  %v336_v7 = vsel %vm17_vm3, %v5492_v59, %v332_v2 }
   0x8   :  { %v5455_v14 = vld [vmem:[%s11805_s0 + $0x323] sm:$0x80]   ;;  %v5438_v21 = vld [vmem:[%s11805_s0 + $0x24f] sm:$0x40]   ;;  %v141_v23 = vsel %vm25_vm5, %v5454_v8, %v137_v18  ;;  %v55_v33 = vsel %vm21_vm4, %v5437_v20, %v51_v29  ;;  %v5480_v3 = vld [vmem:[%s11805_s0 + $0x29] sm:$0x1]   ;;  %v340_v13 = vsel %vm21_vm4, %v5493_v0, %v336_v7 }
   0x9   :  { %v5439_v22 = vld [vmem:[%s11805_s0 + $0x3ce] sm:$0x80]   ;;  %v5456_v25 = vld [vmem:[%s11805_s0 + $0x2a] sm:$0x1]   ;;  %v145_v28 = vsel %vm29_vm6, %v5455_v14, %v141_v23  ;;  %v59_v38 = vsel %vm25_vm5, %v5438_v21, %v55_v33  ;;  %v5481_v4 = vld [vmem:[%s11805_s0 + $0x1a8] sm:$0x2]  }
   0xa   :  { %v5457_v26 = vld [vmem:[%s11805_s0 + $0x1a9] sm:$0x2]   ;;  %146 = vrot.lane.b32.xlu1 %v145_v28, %s6614_s19  ;;  %v5440_v37 = vld [vmem:[%s11805_s0 + $0xd5] sm:$0x1]   ;;  %v63_v43 = vsel %vm29_vm6, %v5439_v22, %v59_v38  ;;  %v5482_v5 = vld [vmem:[%s11805_s0 + $0x127] sm:$0x4]   ;;  %v284_v9 = vsel %vm5_vm0, %v5481_v4, %v5480_v3 }
   0xb   :  { %v5458_v27 = vld [vmem:[%s11805_s0 + $0x128] sm:$0x4]   ;;  %v162_v30 = vsel %vm5_vm0, %v5457_v26, %v5456_v25  ;;  %v5441_v40 = vld [vmem:[%s11805_s0 + $0x54] sm:$0x2]   ;;  %64 = vrot.lane.b32.xlu0 %v63_v43, %s6615_s9  ;;  %v5494_v8 = vld [vmem:[%s11805_s0 + $0x278] sm:$0x40]   ;;  %v288_v15 = vsel %vm9_vm1, %v5482_v5, %v284_v9 }
   0xc   :  { %v5459_v31 = vld [vmem:[%s11805_s0 + $0xa7] sm:$0x8]   ;;  %v166_v34 = vsel %vm9_vm1, %v5458_v27, %v162_v30  ;;  %v5442_v41 = vld [vmem:[%s11805_s0 + $0x1d3] sm:$0x4]   ;;  %v80_v46 = vsel %vm5_vm0, %v5441_v40, %v5440_v37  ;;  %v5483_v10 = vld [vmem:[%s11805_s0 + $0xa6] sm:$0x8]   ;;  %v344_v21 = vsel %vm25_vm5, %v5494_v8, %v340_v13 }
   0xd   :  { %v5460_v32 = vld [vmem:[%s11805_s0 + $0x226] sm:$0x10]   ;;  %v170_v39 = vsel %vm13_vm2, %v5459_v31, %v166_v34  ;;  %v5443_v42 = vld [vmem:[%s11805_s0 + $0x152] sm:$0x8]   ;;  %v84_v50 = vsel %vm9_vm1, %v5442_v41, %v80_v46  ;;  %v5484_v11 = vld [vmem:[%s11805_s0 + $0x225] sm:$0x10]   ;;  %v292_v17 = vsel %vm13_vm2, %v5483_v10, %v288_v15 }
   0xe   :  { %v5461_v35 = vld [vmem:[%s11805_s0 + $0x3a5] sm:$0x20]   ;;  %v174_v44 = vsel %vm17_vm3, %v5460_v32, %v170_v39  ;;  %v5444_v47 = vld [vmem:[%s11805_s0 + $0x2d1] sm:$0x10]   ;;  %v88_v55 = vsel %vm13_vm2, %v5443_v42, %v84_v50  ;;  %v5495_v14 = vld [vmem:[%s11805_s0 + $0x3f7] sm:$0x80]   ;;  %v296_v22 = vsel %vm17_vm3, %v5484_v11, %v292_v17 }
   0xf   :  { %v5462_v36 = vld [vmem:[%s11805_s0 + $0x324] sm:$0x40]   ;;  %v5445_v48 = vld [vmem:[%s11805_s0 + $0x250] sm:$0x20]   ;;  %v178_v49 = vsel %vm21_vm4, %v5461_v35, %v174_v44  ;;  %v92_v61 = vsel %vm17_vm3, %v5444_v47, %v88_v55  ;;  %v5485_v16 = vld [vmem:[%s11805_s0 + $0x3a4] sm:$0x20]   ;;  %v348_v37 = vsel %vm29_vm6, %v5495_v14, %v344_v21 }
  0x10   :  { %v5463_v45 = vld [vmem:[%s11805_s0 + $0x2a3] sm:$0x80]   ;;  %v5446_v51 = vld [vmem:[%s11805_s0 + $0x3cf] sm:$0x40]   ;;  %v182_v54 = vsel %vm25_vm5, %v5462_v36, %v178_v49  ;;  %v96_v1 = vsel %vm21_vm4, %v5445_v48, %v92_v61  ;;  %v5464_v18 = vld [vmem:[%s11805_s0 + $0x17f] sm:$0x1]   ;;  %v300_v27 = vsel %vm21_vm4, %v5485_v16, %v296_v22 }
  0x11   :  { %v186_v60 = vsel %vm29_vm6, %v5463_v45, %v182_v54  ;;  %v5447_v62 = vld [vmem:[%s11805_s0 + $0x34e] sm:$0x80]   ;;  %v100_v6 = vsel %vm25_vm5, %v5446_v51, %v96_v1  ;;  %v5465_v19 = vld [vmem:[%s11805_s0 + $0xfe] sm:$0x2]   ;;  %v5486_v23 = vld [vmem:[%s11805_s0 + $0x323] sm:$0x40]  }
  0x12   :  { %187 = vrot.lane.b32.xlu1 %v186_v60, %s6614_s19  ;;  %v104_v12 = vsel %vm29_vm6, %v5447_v62, %v100_v6  ;;  %v5466_v20 = vld [vmem:[%s11805_s0 + $0x7d] sm:$0x4]   ;;  %v202_v24 = vsel %vm5_vm0, %v5465_v19, %v5464_v18  ;;  %v5487_v28 = vld [vmem:[%s11805_s0 + $0x2a2] sm:$0x80]   ;;  %v5512_v32 = vld [vmem:[%s11805_s0 + $0x17d] sm:$0x1]   ;;  %v304_v38 = vsel %vm25_vm5, %v5486_v23, %v300_v27 }
  0x13   :  { %v5467_v25 = vld [vmem:[%s11805_s0 + $0x1fc] sm:$0x8]   ;;  %105 = vrot.lane.b32.xlu0 %v104_v12, %s6615_s9  ;;  %v206_v29 = vsel %vm9_vm1, %v5466_v20, %v202_v24  ;;  %v5513_v34 = vld [vmem:[%s11805_s0 + $0xfc] sm:$0x2]   ;;  %v5504_v47 = vld [vmem:[%s11805_s0 + $0x28] sm:$0x1]   ;;  %v308_v53 = vsel %vm29_vm6, %v5487_v28, %v304_v38 }
  0x14   :  { %v5468_v26 = vld [vmem:[%s11805_s0 + $0x37b] sm:$0x10]   ;;  %v210_v33 = vsel %vm13_vm2, %v5467_v25, %v206_v29  ;;  %v5514_v35 = vld [vmem:[%s11805_s0 + $0x7b] sm:$0x4]   ;;  %v446_v41 = vsel %vm5_vm0, %v5513_v34, %v5512_v32  ;;  %v5505_v50 = vld [vmem:[%s11805_s0 + $0x1a7] sm:$0x2]  }
  0x15   :  { %v5469_v30 = vld [vmem:[%s11805_s0 + $0x2fa] sm:$0x20]   ;;  %v5515_v36 = vld [vmem:[%s11805_s0 + $0x1fa] sm:$0x8]   ;;  %v214_v39 = vsel %vm17_vm3, %v5468_v26, %v210_v33  ;;  %v450_v44 = vsel %vm9_vm1, %v5514_v35, %v446_v41  ;;  %v5506_v51 = vld [vmem:[%s11805_s0 + $0x126] sm:$0x4]   ;;  %v406_v57 = vsel %vm5_vm0, %v5505_v50, %v5504_v47 }
  0x16   :  { %v5470_v31 = vld [vmem:[%s11805_s0 + $0x279] sm:$0x40]   ;;  %v5516_v42 = vld [vmem:[%s11805_s0 + $0x379] sm:$0x10]   ;;  %v218_v43 = vsel %vm21_vm4, %v5469_v30, %v214_v39  ;;  %v454_v49 = vsel %vm13_vm2, %v5515_v36, %v450_v44  ;;  %v5507_v52 = vld [vmem:[%s11805_s0 + $0xa5] sm:$0x8]   ;;  %v410_v61 = vsel %vm9_vm1, %v5506_v51, %v406_v57 }
  0x17   :  { %v5471_v40 = vld [vmem:[%s11805_s0 + $0x3f8] sm:$0x80]   ;;  %v5517_v45 = vld [vmem:[%s11805_s0 + $0x2f8] sm:$0x20]   ;;  %v222_v48 = vsel %vm25_vm5, %v5470_v31, %v218_v43  ;;  %v458_v55 = vsel %vm17_vm3, %v5516_v42, %v454_v49  ;;  %v5508_v58 = vld [vmem:[%s11805_s0 + $0x224] sm:$0x10]   ;;  %v414_v2 = vsel %vm13_vm2, %v5507_v52, %v410_v61 }
  0x18   :  { %v5518_v46 = vld [vmem:[%s11805_s0 + $0x277] sm:$0x40]   ;;  %v226_v54 = vsel %vm29_vm6, %v5471_v40, %v222_v48  ;;  %v5509_v59 = vld [vmem:[%s11805_s0 + $0x3a3] sm:$0x20]   ;;  %s6617_s5 = smov 125   ;;  %v462_v60 = vsel %vm21_vm4, %v5517_v45, %v458_v55  ;;  %s6618_s18 = smov 123   ;;  %v418_v7 = vsel %vm17_vm3, %v5508_v58, %v414_v2 }
  0x19   :  { %v5519_v56 = vld [vmem:[%s11805_s0 + $0x3f6] sm:$0x80]   ;;  %227 = vrot.lane.b32.xlu2 %v226_v54, %s6617_s5  ;;  %v5510_v62 = vld [vmem:[%s11805_s0 + $0x322] sm:$0x40]   ;;  %v5472_v63 = vld [vmem:[%s11805_s0 + $0xd4] sm:$0x1]   ;;  %v466_v1 = vsel %vm25_vm5, %v5518_v46, %v462_v60  ;;  %v422_v12 = vsel %vm21_vm4, %v5509_v59, %v418_v7 }
  0x1a   :  { %349 = vrot.lane.b32.xlu1 %v348_v37, %s6616_s27  ;;  %v5473_v0 = vld [vmem:[%s11805_s0 + $0x53] sm:$0x2]   ;;  %v5511_v8 = vld [vmem:[%s11805_s0 + $0x2a1] sm:$0x80]   ;;  %v5536_v15 = vld [vmem:[%s11805_s0 + $0x17c] sm:$0x1]   ;;  %v470_v17 = vsel %vm29_vm6, %v5519_v56, %v466_v1  ;;  %v426_v18 = vsel %vm25_vm5, %v5510_v62, %v422_v12 }
  0x1b   :  { %v243_v3 = vsel %vm5_vm0, %v5473_v0, %v5472_v63  ;;  %v5474_v4 = vld [vmem:[%s11805_s0 + $0x1d2] sm:$0x4]   ;;  %309 = vrot.lane.b32.xlu0 %v308_v53, %s6618_s18  ;;  %v5537_v16 = vld [vmem:[%s11805_s0 + $0xfb] sm:$0x2]   ;;  %v5528_v30 = vld [vmem:[%s11805_s0 + $0x27] sm:$0x1]   ;;  %v430_v33 = vsel %vm29_vm6, %v5511_v8, %v426_v18 }
  0x1c   :  { %v5475_v5 = vld [vmem:[%s11805_s0 + $0x151] sm:$0x8]   ;;  %v247_v9 = vsel %vm9_vm1, %v5474_v4, %v243_v3  ;;  %v568_v20 = vsel %vm5_vm0, %v5537_v16, %v5536_v15  ;;  %v5538_v21 = vld [vmem:[%s11805_s0 + $0x7a] sm:$0x4]   ;;  %v5529_v31 = vld [vmem:[%s11805_s0 + $0x1a6] sm:$0x2]  }
  0x1d   :  { %v5476_v6 = vld [vmem:[%s11805_s0 + $0x2d0] sm:$0x10]   ;;  %v251_v13 = vsel %vm13_vm2, %v5475_v5, %v247_v9  ;;  %v5539_v22 = vld [vmem:[%s11805_s0 + $0x1f9] sm:$0x8]   ;;  %v572_v25 = vsel %vm9_vm1, %v5538_v21, %v568_v20  ;;  %v5530_v32 = vld [vmem:[%s11805_s0 + $0x125] sm:$0x4]   ;;  %v528_v36 = vsel %vm5_vm0, %v5529_v31, %v5528_v30 }
  0x1e   :  { %v5477_v10 = vld [vmem:[%s11805_s0 + $0x24f] sm:$0x20]   ;;  %v255_v19 = vsel %vm17_vm3, %v5476_v6, %v251_v13  ;;  %v5540_v23 = vld [vmem:[%s11805_s0 + $0x378] sm:$0x10]   ;;  %v576_v29 = vsel %vm13_vm2, %v5539_v22, %v572_v25  ;;  %s6619_s18 = smov 119   ;;  %s6620_s24 = smov 124   ;;  %v532_v41 = vsel %vm9_vm1, %v5530_v32, %v528_v36 }
  0x1f   :  { %v5478_v11 = vld [vmem:[%s11805_s0 + $0x3ce] sm:$0x40]   ;;  %v259_v24 = vsel %vm21_vm4, %v5477_v10, %v255_v19  ;;  %v5541_v26 = vld [vmem:[%s11805_s0 + $0x2f7] sm:$0x20]   ;;  %v580_v35 = vsel %vm17_vm3, %v5540_v23, %v576_v29  ;;  %v5531_v37 = vld [vmem:[%s11805_s0 + $0xa4] sm:$0x8]  }
  0x20   :  { %v5479_v14 = vld [vmem:[%s11805_s0 + $0x34d] sm:$0x80]   ;;  %v5542_v27 = vld [vmem:[%s11805_s0 + $0x276] sm:$0x40]   ;;  %v263_v28 = vsel %vm25_vm5, %v5478_v11, %v259_v24  ;;  %v5532_v38 = vld [vmem:[%s11805_s0 + $0x223] sm:$0x10]   ;;  %v584_v39 = vsel %vm21_vm4, %v5541_v26, %v580_v35  ;;  %v536_v45 = vsel %vm13_vm2, %v5531_v37, %v532_v41 }
  0x21   :  { %v267_v34 = vsel %vm29_vm6, %v5479_v14, %v263_v28  ;;  %v5543_v40 = vld [vmem:[%s11805_s0 + $0x3f5] sm:$0x80]   ;;  %v5533_v42 = vld [vmem:[%s11805_s0 + $0x3a2] sm:$0x20]   ;;  %v588_v44 = vsel %vm25_vm5, %v5542_v27, %v584_v39  ;;  %v5496_v46 = vld [vmem:[%s11805_s0 + $0xd3] sm:$0x1]   ;;  %v540_v49 = vsel %vm17_vm3, %v5532_v38, %v536_v45 }
  0x22   :  { %471 = vrot.lane.b32.xlu1 %v470_v17, %s6619_s18  ;;  %268 = vrot.lane.b32.xlu2 %v267_v34, %s6620_s24  ;;  %v5534_v43 = vld [vmem:[%s11805_s0 + $0x321] sm:$0x40]   ;;  %v5497_v47 = vld [vmem:[%s11805_s0 + $0x52] sm:$0x2]   ;;  %s6621_s7 = smov 120   ;;  %v544_v54 = vsel %vm21_vm4, %v5533_v42, %v540_v49  ;;  %v592_v59 = vsel %vm29_vm6, %v5543_v40, %v588_v44  ;;  %s6623_s21 = smov 121  }
  0x23   :  { %v5498_v48 = vld [vmem:[%s11805_s0 + $0x1d1] sm:$0x4]   ;;  %431 = vrot.lane.b32.xlu0 %v430_v33, %s6621_s7  ;;  %v5535_v50 = vld [vmem:[%s11805_s0 + $0x2a0] sm:$0x80]   ;;  %v365_v51 = vsel %vm5_vm0, %v5497_v47, %v5496_v46  ;;  %v5560_v58 = vld [vmem:[%s11805_s0 + $0x17b] sm:$0x1]   ;;  %v548_v60 = vsel %vm25_vm5, %v5534_v43, %v544_v54 }
  0x24   :  { %v5499_v52 = vld [vmem:[%s11805_s0 + $0x150] sm:$0x8]   ;;  %v369_v55 = vsel %vm9_vm1, %v5498_v48, %v365_v51  ;;  %v5561_v62 = vld [vmem:[%s11805_s0 + $0xfa] sm:$0x2]   ;;  %v5552_v9 = vld [vmem:[%s11805_s0 + $0x26] sm:$0x1]   ;;  %v552_v10 = vsel %vm29_vm6, %v5535_v50, %v548_v60 }
  0x25   :  { %v5500_v53 = vld [vmem:[%s11805_s0 + $0x2cf] sm:$0x10]   ;;  %v373_v61 = vsel %vm13_vm2, %v5499_v52, %v369_v55  ;;  %v5562_v63 = vld [vmem:[%s11805_s0 + $0x79] sm:$0x4]   ;;  %v690_v3 = vsel %vm5_vm0, %v5561_v62, %v5560_v58  ;;  %s6622_s7 = smov 116   ;;  %s6624_s27 = smov 117  }
  0x26   :  { %v5501_v56 = vld [vmem:[%s11805_s0 + $0x24e] sm:$0x20]   ;;  %v5563_v0 = vld [vmem:[%s11805_s0 + $0x1f8] sm:$0x8]   ;;  %v377_v1 = vsel %vm17_vm3, %v5500_v53, %v373_v61  ;;  %v694_v6 = vsel %vm9_vm1, %v5562_v63, %v690_v3  ;;  %v5553_v14 = vld [vmem:[%s11805_s0 + $0x1a5] sm:$0x2]  }
  0x27   :  { %v5502_v57 = vld [vmem:[%s11805_s0 + $0x3cd] sm:$0x40]   ;;  %v5564_v4 = vld [vmem:[%s11805_s0 + $0x377] sm:$0x10]   ;;  %v381_v5 = vsel %vm21_vm4, %v5501_v56, %v377_v1  ;;  %v698_v12 = vsel %vm13_vm2, %v5563_v0, %v694_v6  ;;  %v5554_v15 = vld [vmem:[%s11805_s0 + $0x124] sm:$0x4]   ;;  %v650_v19 = vsel %vm5_vm0, %v5553_v14, %v5552_v9 }
  0x28   :  { %v5503_v2 = vld [vmem:[%s11805_s0 + $0x34c] sm:$0x80]   ;;  %v5565_v7 = vld [vmem:[%s11805_s0 + $0x2f6] sm:$0x20]   ;;  %v385_v11 = vsel %vm25_vm5, %v5502_v57, %v381_v5  ;;  %v5555_v16 = vld [vmem:[%s11805_s0 + $0xa3] sm:$0x8]   ;;  %v702_v18 = vsel %vm17_vm3, %v5564_v4, %v698_v12  ;;  %v654_v23 = vsel %vm9_vm1, %v5554_v15, %v650_v19 }
  0x29   :  { %v5566_v8 = vld [vmem:[%s11805_s0 + $0x275] sm:$0x40]   ;;  %v389_v17 = vsel %vm29_vm6, %v5503_v2, %v385_v11  ;;  %v5556_v20 = vld [vmem:[%s11805_s0 + $0x222] sm:$0x10]   ;;  %v706_v22 = vsel %vm21_vm4, %v5565_v7, %v702_v18  ;;  %v5520_v25 = vld [vmem:[%s11805_s0 + $0xd2] sm:$0x1]   ;;  %v658_v28 = vsel %vm13_vm2, %v5555_v16, %v654_v23 }
  0x2a   :  { %593 = vrot.lane.b32.xlu1 %v592_v59, %s6622_s7  ;;  %v5567_v13 = vld [vmem:[%s11805_s0 + $0x3f4] sm:$0x80]   ;;  %v5557_v21 = vld [vmem:[%s11805_s0 + $0x3a1] sm:$0x20]   ;;  %390 = vrot.lane.b32.xlu2 %v389_v17, %s6623_s21  ;;  %v710_v27 = vsel %vm25_vm5, %v5566_v8, %v706_v22  ;;  %v662_v33 = vsel %vm17_vm3, %v5556_v20, %v658_v28  ;;  %s6626_s10 = smov 118   ;;  %s6627_s16 = smov 114  }
  0x2b   :  { %v5558_v24 = vld [vmem:[%s11805_s0 + $0x320] sm:$0x40]   ;;  %v5521_v26 = vld [vmem:[%s11805_s0 + $0x51] sm:$0x2]   ;;  %553 = vrot.lane.b32.xlu0 %v552_v10, %s6624_s27  ;;  %v714_v38 = vsel %vm29_vm6, %v5567_v13, %v710_v27  ;;  %v666_v39 = vsel %vm21_vm4, %v5557_v21, %v662_v33  ;;  %v5584_v42 = vld [vmem:[%s11805_s0 + $0x17a] sm:$0x1]  }
  0x2c   :  { %v487_v29 = vsel %vm5_vm0, %v5521_v26, %v5520_v25  ;;  %v5522_v30 = vld [vmem:[%s11805_s0 + $0x1d0] sm:$0x4]   ;;  %v5559_v34 = vld [vmem:[%s11805_s0 + $0x29f] sm:$0x80]   ;;  %v5585_v43 = vld [vmem:[%s11805_s0 + $0xf9] sm:$0x2]   ;;  %v670_v44 = vsel %vm25_vm5, %v5558_v24, %v666_v39 }
  0x2d   :  { %v5523_v31 = vld [vmem:[%s11805_s0 + $0x14f] sm:$0x8]   ;;  %v491_v35 = vsel %vm9_vm1, %v5522_v30, %v487_v29  ;;  %v812_v46 = vsel %vm5_vm0, %v5585_v43, %v5584_v42  ;;  %v5586_v47 = vld [vmem:[%s11805_s0 + $0x78] sm:$0x4]   ;;  %s6625_s27 = smov 113   ;;  %v674_v54 = vsel %vm29_vm6, %v5559_v34, %v670_v44  ;;  %s6628_s18 = smov 110  }
  0x2e   :  { %v5524_v32 = vld [vmem:[%s11805_s0 + $0x2ce] sm:$0x10]   ;;  %v495_v40 = vsel %vm13_vm2, %v5523_v31, %v491_v35  ;;  %v5587_v48 = vld [vmem:[%s11805_s0 + $0x1f7] sm:$0x8]   ;;  %v816_v51 = vsel %vm9_vm1, %v5586_v47, %v812_v46  ;;  %v5576_v57 = vld [vmem:[%s11805_s0 + $0x25] sm:$0x1]  }
  0x2f   :  { %v5525_v36 = vld [vmem:[%s11805_s0 + $0x24d] sm:$0x20]   ;;  %v499_v45 = vsel %vm17_vm3, %v5524_v32, %v495_v40  ;;  %v5588_v49 = vld [vmem:[%s11805_s0 + $0x376] sm:$0x10]   ;;  %v820_v56 = vsel %vm13_vm2, %v5587_v48, %v816_v51  ;;  %v5577_v58 = vld [vmem:[%s11805_s0 + $0x1a4] sm:$0x2]  }
  0x30   :  { %v5526_v37 = vld [vmem:[%s11805_s0 + $0x3cc] sm:$0x40]   ;;  %v503_v50 = vsel %vm21_vm4, %v5525_v36, %v499_v45  ;;  %v5589_v52 = vld [vmem:[%s11805_s0 + $0x2f5] sm:$0x20]   ;;  %v5578_v59 = vld [vmem:[%s11805_s0 + $0x123] sm:$0x4]   ;;  %v824_v61 = vsel %vm17_vm3, %v5588_v49, %v820_v56  ;;  %v772_v62 = vsel %vm5_vm0, %v5577_v58, %v5576_v57 }
  0x31   :  { %v5527_v41 = vld [vmem:[%s11805_s0 + $0x34b] sm:$0x80]   ;;  %v5590_v53 = vld [vmem:[%s11805_s0 + $0x274] sm:$0x40]   ;;  %v507_v55 = vsel %vm25_vm5, %v5526_v37, %v503_v50  ;;  %v5579_v63 = vld [vmem:[%s11805_s0 + $0xa2] sm:$0x8]   ;;  %v828_v1 = vsel %vm21_vm4, %v5589_v52, %v824_v61  ;;  %v776_v3 = vsel %vm9_vm1, %v5578_v59, %v772_v62 }
  0x32   :  { %715 = vrot.lane.b32.xlu1 %v714_v38, %s6625_s27  ;;  %v511_v60 = vsel %vm29_vm6, %v5527_v41, %v507_v55  ;;  %v5580_v0 = vld [vmem:[%s11805_s0 + $0x221] sm:$0x10]   ;;  %v5591_v2 = vld [vmem:[%s11805_s0 + $0x3f3] sm:$0x80]   ;;  %v832_v6 = vsel %vm25_vm5, %v5590_v53, %v828_v1  ;;  %v780_v7 = vsel %vm13_vm2, %v5579_v63, %v776_v3  ;;  %v5544_v9 = vld [vmem:[%s11805_s0 + $0xd1] sm:$0x1]  }
  0x33   :  { %512 = vrot.lane.b32.xlu2 %v511_v60, %s6626_s10  ;;  %v5581_v4 = vld [vmem:[%s11805_s0 + $0x3a0] sm:$0x20]   ;;  %675 = vrot.lane.b32.xlu0 %v674_v54, %s6627_s16  ;;  %v5545_v10 = vld [vmem:[%s11805_s0 + $0x50] sm:$0x2]   ;;  %v784_v12 = vsel %vm17_vm3, %v5580_v0, %v780_v7  ;;  %v836_v16 = vsel %vm29_vm6, %v5591_v2, %v832_v6  ;;  %s6629_s8 = smov 111   ;;  %s6630_s10 = smov 115  }
  0x34   :  { %v5582_v5 = vld [vmem:[%s11805_s0 + $0x31f] sm:$0x40]   ;;  %v5546_v11 = vld [vmem:[%s11805_s0 + $0x1cf] sm:$0x4]   ;;  %v609_v13 = vsel %vm5_vm0, %v5545_v10, %v5544_v9  ;;  %v788_v17 = vsel %vm21_vm4, %v5581_v4, %v784_v12  ;;  %v5608_v21 = vld [vmem:[%s11805_s0 + $0x179] sm:$0x1]  }
  0x35   :  { %v5583_v8 = vld [vmem:[%s11805_s0 + $0x29e] sm:$0x80]   ;;  %v5547_v14 = vld [vmem:[%s11805_s0 + $0x14e] sm:$0x8]   ;;  %v613_v18 = vsel %vm9_vm1, %v5546_v11, %v609_v13  ;;  %v792_v22 = vsel %vm25_vm5, %v5582_v5, %v788_v17  ;;  %v5609_v24 = vld [vmem:[%s11805_s0 + $0xf8] sm:$0x2]  }
  0x36   :  { %v5548_v15 = vld [vmem:[%s11805_s0 + $0x2cd] sm:$0x10]   ;;  %v617_v23 = vsel %vm13_vm2, %v5547_v14, %v613_v18  ;;  %v5610_v25 = vld [vmem:[%s11805_s0 + $0x77] sm:$0x4]   ;;  %v934_v29 = vsel %vm5_vm0, %v5609_v24, %v5608_v21  ;;  %v796_v32 = vsel %vm29_vm6, %v5583_v8, %v792_v22  ;;  %v5600_v37 = vld [vmem:[%s11805_s0 + $0x24] sm:$0x1]  }
  0x37   :  { %v5549_v19 = vld [vmem:[%s11805_s0 + $0x24c] sm:$0x20]   ;;  %v5611_v26 = vld [vmem:[%s11805_s0 + $0x1f6] sm:$0x8]   ;;  %v621_v27 = vsel %vm17_vm3, %v5548_v15, %v617_v23  ;;  %v938_v34 = vsel %vm9_vm1, %v5610_v25, %v934_v29  ;;  %v5601_v40 = vld [vmem:[%s11805_s0 + $0x1a3] sm:$0x2]  }
  0x38   :  { %v5550_v20 = vld [vmem:[%s11805_s0 + $0x3cb] sm:$0x40]   ;;  %v5612_v30 = vld [vmem:[%s11805_s0 + $0x375] sm:$0x10]   ;;  %v625_v33 = vsel %vm21_vm4, %v5549_v19, %v621_v27  ;;  %v942_v39 = vsel %vm13_vm2, %v5611_v26, %v938_v34  ;;  %v5602_v41 = vld [vmem:[%s11805_s0 + $0x122] sm:$0x4]   ;;  %v894_v45 = vsel %vm5_vm0, %v5601_v40, %v5600_v37 }
  0x39   :  { %v5551_v28 = vld [vmem:[%s11805_s0 + $0x34a] sm:$0x80]   ;;  %v5613_v31 = vld [vmem:[%s11805_s0 + $0x2f4] sm:$0x20]   ;;  %v629_v38 = vsel %vm25_vm5, %v5550_v20, %v625_v33  ;;  %v5603_v42 = vld [vmem:[%s11805_s0 + $0xa1] sm:$0x8]   ;;  %v946_v44 = vsel %vm17_vm3, %v5612_v30, %v942_v39  ;;  %v898_v50 = vsel %vm9_vm1, %v5602_v41, %v894_v45 }
  0x3a   :  { %837 = vrot.lane.b32.xlu1 %v836_v16, %s6628_s18  ;;  %v5614_v35 = vld [vmem:[%s11805_s0 + $0x273] sm:$0x40]   ;;  %v633_v43 = vsel %vm29_vm6, %v5551_v28, %v629_v38  ;;  %v5604_v46 = vld [vmem:[%s11805_s0 + $0x220] sm:$0x10]   ;;  %v950_v49 = vsel %vm21_vm4, %v5613_v31, %v946_v44  ;;  %v5568_v52 = vld [vmem:[%s11805_s0 + $0xd0] sm:$0x1]   ;;  %v902_v54 = vsel %vm13_vm2, %v5603_v42, %v898_v50 }
  0x3b   :  { %v5615_v36 = vld [vmem:[%s11805_s0 + $0x3f2] sm:$0x80]   ;;  %v5605_v47 = vld [vmem:[%s11805_s0 + $0x39f] sm:$0x20]   ;;  %797 = vrot.lane.b32.xlu0 %v796_v32, %s6629_s8  ;;  %634 = vrot.lane.b32.xlu2 %v633_v43, %s6630_s10  ;;  %v954_v53 = vsel %vm25_vm5, %v5614_v35, %v950_v49  ;;  %v906_v59 = vsel %vm17_vm3, %v5604_v46, %v902_v54  ;;  %s6631_s7 = smov 107   ;;  %s6632_s9 = smov 108  }
  0x3c   :  { %v5606_v48 = vld [vmem:[%s11805_s0 + $0x31e] sm:$0x40]   ;;  %v5569_v55 = vld [vmem:[%s11805_s0 + $0x4f] sm:$0x2]   ;;  %v958_v58 = vsel %vm29_vm6, %v5615_v36, %v954_v53  ;;  %v910_v63 = vsel %vm21_vm4, %v5605_v47, %v906_v59  ;;  %v5632_v2 = vld [vmem:[%s11805_s0 + $0x178] sm:$0x1]  }
  0x3d   :  { %v5607_v51 = vld [vmem:[%s11805_s0 + $0x29d] sm:$0x80]   ;;  %v5570_v56 = vld [vmem:[%s11805_s0 + $0x1ce] sm:$0x4]   ;;  %v731_v60 = vsel %vm5_vm0, %v5569_v55, %v5568_v52  ;;  %v5633_v3 = vld [vmem:[%s11805_s0 + $0xf7] sm:$0x2]   ;;  %v914_v4 = vsel %vm25_vm5, %v5606_v48, %v910_v63 }
  0x3e   :  { %v5571_v57 = vld [vmem:[%s11805_s0 + $0x14d] sm:$0x8]   ;;  %v735_v0 = vsel %vm9_vm1, %v5570_v56, %v731_v60  ;;  %v1056_v6 = vsel %vm5_vm0, %v5633_v3, %v5632_v2  ;;  %v5634_v7 = vld [vmem:[%s11805_s0 + $0x76] sm:$0x4]   ;;  %v918_v10 = vsel %vm29_vm6, %v5607_v51, %v914_v4  ;;  %v5624_v18 = vld [vmem:[%s11805_s0 + $0x23] sm:$0x1]  }
  0x3f   :  { %v5572_v61 = vld [vmem:[%s11805_s0 + $0x2cc] sm:$0x10]   ;;  %v739_v5 = vsel %vm13_vm2, %v5571_v57, %v735_v0  ;;  %v5635_v8 = vld [vmem:[%s11805_s0 + $0x1f5] sm:$0x8]   ;;  %v1060_v13 = vsel %vm9_vm1, %v5634_v7, %v1056_v6  ;;  %v5625_v19 = vld [vmem:[%s11805_s0 + $0x1a2] sm:$0x2]  }
  0x40   :  { %v5573_v62 = vld [vmem:[%s11805_s0 + $0x24b] sm:$0x20]   ;;  %v5636_v9 = vld [vmem:[%s11805_s0 + $0x374] sm:$0x10]   ;;  %v743_v11 = vsel %vm17_vm3, %v5572_v61, %v739_v5  ;;  %v1064_v17 = vsel %vm13_vm2, %v5635_v8, %v1060_v13  ;;  %v5626_v20 = vld [vmem:[%s11805_s0 + $0x121] sm:$0x4]   ;;  %v1016_v24 = vsel %vm5_vm0, %v5625_v19, %v5624_v18 }
  0x41   :  { %v5574_v1 = vld [vmem:[%s11805_s0 + $0x3ca] sm:$0x40]   ;;  %v5637_v14 = vld [vmem:[%s11805_s0 + $0x2f3] sm:$0x20]   ;;  %v747_v16 = vsel %vm21_vm4, %v5573_v62, %v743_v11  ;;  %v1068_v22 = vsel %vm17_vm3, %v5636_v9, %v1064_v17  ;;  %v5627_v25 = vld [vmem:[%s11805_s0 + $0xa0] sm:$0x8]   ;;  %v1020_v29 = vsel %vm9_vm1, %v5626_v20, %v1016_v24 }
  0x42   :  { %959 = vrot.lane.b32.xlu1 %v958_v58, %s6631_s7  ;;  %v5575_v12 = vld [vmem:[%s11805_s0 + $0x349] sm:$0x80]   ;;  %v5638_v15 = vld [vmem:[%s11805_s0 + $0x272] sm:$0x40]   ;;  %v751_v21 = vsel %vm25_vm5, %v5574_v1, %v747_v16  ;;  %v5628_v26 = vld [vmem:[%s11805_s0 + $0x21f] sm:$0x10]   ;;  %v1072_v28 = vsel %vm21_vm4, %v5637_v14, %v1068_v22  ;;  %v1024_v34 = vsel %vm13_vm2, %v5627_v25, %v1020_v29 }
  0x43   :  { %v5639_v23 = vld [vmem:[%s11805_s0 + $0x3f1] sm:$0x80]   ;;  %919 = vrot.lane.b32.xlu0 %v918_v10, %s6632_s9  ;;  %v755_v27 = vsel %vm29_vm6, %v5575_v12, %v751_v21  ;;  %v5629_v30 = vld [vmem:[%s11805_s0 + $0x39e] sm:$0x20]   ;;  %s6633_s4 = smov 112   ;;  %v1076_v33 = vsel %vm25_vm5, %v5638_v15, %v1072_v28  ;;  %v1028_v39 = vsel %vm17_vm3, %v5628_v26, %v1024_v34  ;;  %s6634_s27 = smov 104  }
  0x44   :  { %v5630_v31 = vld [vmem:[%s11805_s0 + $0x31d] sm:$0x40]   ;;  %756 = vrot.lane.b32.xlu2 %v755_v27, %s6633_s4  ;;  %v5592_v35 = vld [vmem:[%s11805_s0 + $0xcf] sm:$0x1]   ;;  %v1080_v38 = vsel %vm29_vm6, %v5639_v23, %v1076_v33  ;;  %v1032_v43 = vsel %vm21_vm4, %v5629_v30, %v1028_v39  ;;  %v5656_v47 = vld [vmem:[%s11805_s0 + $0x177] sm:$0x1]  }
  0x45   :  { %v5631_v32 = vld [vmem:[%s11805_s0 + $0x29c] sm:$0x80]   ;;  %v5593_v36 = vld [vmem:[%s11805_s0 + $0x4e] sm:$0x2]   ;;  %v1036_v48 = vsel %vm25_vm5, %v5630_v31, %v1032_v43  ;;  %v5657_v50 = vld [vmem:[%s11805_s0 + $0xf6] sm:$0x2]  }
  0x46   :  { %v5594_v37 = vld [vmem:[%s11805_s0 + $0x1cd] sm:$0x4]   ;;  %v853_v40 = vsel %vm5_vm0, %v5593_v36, %v5592_v35  ;;  %v5658_v51 = vld [vmem:[%s11805_s0 + $0x75] sm:$0x4]   ;;  %v1040_v53 = vsel %vm29_vm6, %v5631_v32, %v1036_v48  ;;  %v1178_v56 = vsel %vm5_vm0, %v5657_v50, %v5656_v47  ;;  %v5648_v63 = vld [vmem:[%s11805_s0 + $0x22] sm:$0x1]  }
  0x47   :  { %v5595_v41 = vld [vmem:[%s11805_s0 + $0x14c] sm:$0x8]   ;;  %v857_v44 = vsel %vm9_vm1, %v5594_v37, %v853_v40  ;;  %v5659_v52 = vld [vmem:[%s11805_s0 + $0x1f4] sm:$0x8]   ;;  %v1182_v60 = vsel %vm9_vm1, %v5658_v51, %v1178_v56  ;;  %v5649_v2 = vld [vmem:[%s11805_s0 + $0x1a1] sm:$0x2]  }
  0x48   :  { %v5596_v42 = vld [vmem:[%s11805_s0 + $0x2cb] sm:$0x10]   ;;  %v861_v49 = vsel %vm13_vm2, %v5595_v41, %v857_v44  ;;  %v5660_v57 = vld [vmem:[%s11805_s0 + $0x373] sm:$0x10]   ;;  %v1186_v1 = vsel %vm13_vm2, %v5659_v52, %v1182_v60  ;;  %v5650_v3 = vld [vmem:[%s11805_s0 + $0x120] sm:$0x4]   ;;  %v1138_v7 = vsel %vm5_vm0, %v5649_v2, %v5648_v63 }
  0x49   :  { %v5597_v45 = vld [vmem:[%s11805_s0 + $0x24a] sm:$0x20]   ;;  %v865_v54 = vsel %vm17_vm3, %v5596_v42, %v861_v49  ;;  %v5661_v58 = vld [vmem:[%s11805_s0 + $0x2f2] sm:$0x20]   ;;  %v5651_v4 = vld [vmem:[%s11805_s0 + $0x9f] sm:$0x8]   ;;  %v1190_v6 = vsel %vm17_vm3, %v5660_v57, %v1186_v1  ;;  %v1142_v11 = vsel %vm9_vm1, %v5650_v3, %v1138_v7 }
  0x4a   :  { %v5598_v46 = vld [vmem:[%s11805_s0 + $0x3c9] sm:$0x40]   ;;  %1081 = vrot.lane.b32.xlu1 %v1080_v38, %s6634_s27  ;;  %v869_v59 = vsel %vm21_vm4, %v5597_v45, %v865_v54  ;;  %v5662_v61 = vld [vmem:[%s11805_s0 + $0x271] sm:$0x40]   ;;  %s6635_s17 = smov 105   ;;  %s6636_s23 = smov 109   ;;  %v1194_v10 = vsel %vm21_vm4, %v5661_v58, %v1190_v6  ;;  %v1146_v16 = vsel %vm13_vm2, %v5651_v4, %v1142_v11 }
  0x4b   :  { %v5599_v55 = vld [vmem:[%s11805_s0 + $0x348] sm:$0x80]   ;;  %v5663_v62 = vld [vmem:[%s11805_s0 + $0x3f0] sm:$0x80]   ;;  %v873_v0 = vsel %vm25_vm5, %v5598_v46, %v869_v59  ;;  %1041 = vrot.lane.b32.xlu0 %v1040_v53, %s6635_s17  ;;  %v5652_v8 = vld [vmem:[%s11805_s0 + $0x21e] sm:$0x10]   ;;  %v1198_v15 = vsel %vm25_vm5, %v5662_v61, %v1194_v10 }
  0x4c   :  { %v877_v5 = vsel %vm29_vm6, %v5599_v55, %v873_v0  ;;  %v5653_v9 = vld [vmem:[%s11805_s0 + $0x39d] sm:$0x20]   ;;  %v5616_v13 = vld [vmem:[%s11805_s0 + $0xce] sm:$0x1]   ;;  %v1202_v21 = vsel %vm29_vm6, %v5663_v62, %v1198_v15  ;;  %v1150_v22 = vsel %vm17_vm3, %v5652_v8, %v1146_v16  ;;  %v5680_v30 = vld [vmem:[%s11805_s0 + $0x176] sm:$0x1]  }
  0x4d   :  { %878 = vrot.lane.b32.xlu2 %v877_v5, %s6636_s23  ;;  %v5654_v12 = vld [vmem:[%s11805_s0 + $0x31c] sm:$0x40]   ;;  %v5617_v14 = vld [vmem:[%s11805_s0 + $0x4d] sm:$0x2]   ;;  %v1154_v27 = vsel %vm21_vm4, %v5653_v9, %v1150_v22  ;;  %v5681_v31 = vld [vmem:[%s11805_s0 + $0xf5] sm:$0x2]  }
  0x4e   :  { %v975_v17 = vsel %vm5_vm0, %v5617_v14, %v5616_v13  ;;  %v5618_v18 = vld [vmem:[%s11805_s0 + $0x1cc] sm:$0x4]   ;;  %v5655_v23 = vld [vmem:[%s11805_s0 + $0x29b] sm:$0x80]   ;;  %s6637_s18 = smov 101   ;;  %v1158_v32 = vsel %vm25_vm5, %v5654_v12, %v1154_v27  ;;  %v1300_v34 = vsel %vm5_vm0, %v5681_v31, %v5680_v30  ;;  %s6638_s6 = smov 102  }
  0x4f   :  { %v5619_v19 = vld [vmem:[%s11805_s0 + $0x14b] sm:$0x8]   ;;  %v979_v24 = vsel %vm9_vm1, %v5618_v18, %v975_v17  ;;  %v5682_v35 = vld [vmem:[%s11805_s0 + $0x74] sm:$0x4]   ;;  %v1162_v38 = vsel %vm29_vm6, %v5655_v23, %v1158_v32  ;;  %v5672_v45 = vld [vmem:[%s11805_s0 + $0x21] sm:$0x1]  }
  0x50   :  { %v5620_v20 = vld [vmem:[%s11805_s0 + $0x2ca] sm:$0x10]   ;;  %v983_v28 = vsel %vm13_vm2, %v5619_v19, %v979_v24  ;;  %v5683_v36 = vld [vmem:[%s11805_s0 + $0x1f3] sm:$0x8]   ;;  %v1304_v40 = vsel %vm9_vm1, %v5682_v35, %v1300_v34  ;;  %v5673_v46 = vld [vmem:[%s11805_s0 + $0x1a0] sm:$0x2]  }
  0x51   :  { %v5621_v25 = vld [vmem:[%s11805_s0 + $0x249] sm:$0x20]   ;;  %v987_v33 = vsel %vm17_vm3, %v5620_v20, %v983_v28  ;;  %v5684_v37 = vld [vmem:[%s11805_s0 + $0x372] sm:$0x10]   ;;  %v1308_v44 = vsel %vm13_vm2, %v5683_v36, %v1304_v40  ;;  %v5674_v47 = vld [vmem:[%s11805_s0 + $0x11f] sm:$0x4]   ;;  %v1260_v51 = vsel %vm5_vm0, %v5673_v46, %v5672_v45 }
  0x52   :  { %v5622_v26 = vld [vmem:[%s11805_s0 + $0x3c8] sm:$0x40]   ;;  %1203 = vrot.lane.b32.xlu1 %v1202_v21, %s6637_s18  ;;  %v991_v39 = vsel %vm21_vm4, %v5621_v25, %v987_v33  ;;  %v5685_v41 = vld [vmem:[%s11805_s0 + $0x2f1] sm:$0x20]   ;;  %v1312_v49 = vsel %vm17_vm3, %v5684_v37, %v1308_v44  ;;  %v5675_v52 = vld [vmem:[%s11805_s0 + $0x9e] sm:$0x8]   ;;  %v1264_v55 = vsel %vm9_vm1, %v5674_v47, %v1260_v51 }
  0x53   :  { %v5623_v29 = vld [vmem:[%s11805_s0 + $0x347] sm:$0x80]   ;;  %v5686_v42 = vld [vmem:[%s11805_s0 + $0x270] sm:$0x40]   ;;  %v995_v43 = vsel %vm25_vm5, %v5622_v26, %v991_v39  ;;  %1163 = vrot.lane.b32.xlu0 %v1162_v38, %s6638_s6  ;;  %v5676_v53 = vld [vmem:[%s11805_s0 + $0x21d] sm:$0x10]   ;;  %v1316_v54 = vsel %vm21_vm4, %v5685_v41, %v1312_v49  ;;  %v1268_v60 = vsel %vm13_vm2, %v5675_v52, %v1264_v55 }
  0x54   :  { %v999_v48 = vsel %vm29_vm6, %v5623_v29, %v995_v43  ;;  %v5687_v50 = vld [vmem:[%s11805_s0 + $0x3ef] sm:$0x80]   ;;  %s6639_s13 = smov 106   ;;  %v5677_v56 = vld [vmem:[%s11805_s0 + $0x39c] sm:$0x20]   ;;  %v1320_v59 = vsel %vm25_vm5, %v5686_v42, %v1316_v54  ;;  %v1272_v1 = vsel %vm17_vm3, %v5676_v53, %v1268_v60  ;;  %s6640_s7 = smov 98  }
  0x55   :  { %1000 = vrot.lane.b32.xlu2 %v999_v48, %s6639_s13  ;;  %v5678_v57 = vld [vmem:[%s11805_s0 + $0x31b] sm:$0x40]   ;;  %v5640_v61 = vld [vmem:[%s11805_s0 + $0xcd] sm:$0x1]   ;;  %v1324_v0 = vsel %vm29_vm6, %v5687_v50, %v1320_v59  ;;  %v1276_v5 = vsel %vm21_vm4, %v5677_v56, %v1272_v1  ;;  %v5704_v9 = vld [vmem:[%s11805_s0 + $0x175] sm:$0x1]  }
  0x56   :  { %v5679_v58 = vld [vmem:[%s11805_s0 + $0x29a] sm:$0x80]   ;;  %v5641_v62 = vld [vmem:[%s11805_s0 + $0x4c] sm:$0x2]   ;;  %v1280_v10 = vsel %vm25_vm5, %v5678_v57, %v1276_v5  ;;  %v5705_v12 = vld [vmem:[%s11805_s0 + $0xf4] sm:$0x2]  }
  0x57   :  { %v5642_v63 = vld [vmem:[%s11805_s0 + $0x1cb] sm:$0x4]   ;;  %v1097_v2 = vsel %vm5_vm0, %v5641_v62, %v5640_v61  ;;  %v5706_v13 = vld [vmem:[%s11805_s0 + $0x73] sm:$0x4]   ;;  %v1284_v15 = vsel %vm29_vm6, %v5679_v58, %v1280_v10  ;;  %v1422_v18 = vsel %vm5_vm0, %v5705_v12, %v5704_v9  ;;  %v5696_v25 = vld [vmem:[%s11805_s0 + $0x20] sm:$0x1]  }
  0x58   :  { %v5643_v3 = vld [vmem:[%s11805_s0 + $0x14a] sm:$0x8]   ;;  %v1101_v6 = vsel %vm9_vm1, %v5642_v63, %v1097_v2  ;;  %v5707_v14 = vld [vmem:[%s11805_s0 + $0x1f2] sm:$0x8]   ;;  %v1426_v22 = vsel %vm9_vm1, %v5706_v13, %v1422_v18  ;;  %s6641_s9 = smov 99   ;;  %s6642_s8 = smov 103  }
  0x59   :  { %v5644_v4 = vld [vmem:[%s11805_s0 + $0x2c9] sm:$0x10]   ;;  %v1105_v11 = vsel %vm13_vm2, %v5643_v3, %v1101_v6  ;;  %v5708_v19 = vld [vmem:[%s11805_s0 + $0x371] sm:$0x10]   ;;  %v1430_v27 = vsel %vm13_vm2, %v5707_v14, %v1426_v22  ;;  %v5697_v28 = vld [vmem:[%s11805_s0 + $0x19f] sm:$0x2]  }
  0x5a   :  { %v5645_v7 = vld [vmem:[%s11805_s0 + $0x248] sm:$0x20]   ;;  %1325 = vrot.lane.b32.xlu1 %v1324_v0, %s6640_s7  ;;  %v1109_v16 = vsel %vm17_vm3, %v5644_v4, %v1105_v11  ;;  %v5709_v20 = vld [vmem:[%s11805_s0 + $0x2f0] sm:$0x20]   ;;  %v5698_v29 = vld [vmem:[%s11805_s0 + $0x11e] sm:$0x4]   ;;  %v1434_v32 = vsel %vm17_vm3, %v5708_v19, %v1430_v27  ;;  %v1382_v33 = vsel %vm5_vm0, %v5697_v28, %v5696_v25 }
  0x5b   :  { %v5646_v8 = vld [vmem:[%s11805_s0 + $0x3c7] sm:$0x40]   ;;  %v1113_v21 = vsel %vm21_vm4, %v5645_v7, %v1109_v16  ;;  %v5710_v23 = vld [vmem:[%s11805_s0 + $0x26f] sm:$0x40]   ;;  %1285 = vrot.lane.b32.xlu0 %v1284_v15, %s6641_s9  ;;  %v5699_v30 = vld [vmem:[%s11805_s0 + $0x9d] sm:$0x8]   ;;  %v1438_v36 = vsel %vm21_vm4, %v5709_v20, %v1434_v32  ;;  %v1386_v37 = vsel %vm9_vm1, %v5698_v29, %v1382_v33 }
  0x5c   :  { %v5647_v17 = vld [vmem:[%s11805_s0 + $0x346] sm:$0x80]   ;;  %v5711_v24 = vld [vmem:[%s11805_s0 + $0x3ee] sm:$0x80]   ;;  %v1117_v26 = vsel %vm25_vm5, %v5646_v8, %v1113_v21  ;;  %v5700_v34 = vld [vmem:[%s11805_s0 + $0x21c] sm:$0x10]   ;;  %v1442_v41 = vsel %vm25_vm5, %v5710_v23, %v1438_v36  ;;  %v1390_v42 = vsel %vm13_vm2, %v5699_v30, %v1386_v37 }
  0x5d   :  { %v1121_v31 = vsel %vm29_vm6, %v5647_v17, %v1117_v26  ;;  %v5701_v35 = vld [vmem:[%s11805_s0 + $0x39b] sm:$0x20]   ;;  %v5664_v39 = vld [vmem:[%s11805_s0 + $0xcc] sm:$0x1]   ;;  %v1446_v47 = vsel %vm29_vm6, %v5711_v24, %v1442_v41  ;;  %v1394_v48 = vsel %vm17_vm3, %v5700_v34, %v1390_v42  ;;  %s6643_s27 = smov 95   ;;  %s6644_s15 = smov 96  }
  0x5e   :  { %1122 = vrot.lane.b32.xlu2 %v1121_v31, %s6642_s8  ;;  %v5702_v38 = vld [vmem:[%s11805_s0 + $0x31a] sm:$0x40]   ;;  %v5665_v40 = vld [vmem:[%s11805_s0 + $0x4b] sm:$0x2]   ;;  %v1398_v53 = vsel %vm21_vm4, %v5701_v35, %v1394_v48  ;;  %v5728_v56 = vld [vmem:[%s11805_s0 + $0x174] sm:$0x1]  }
  0x5f   :  { %v1219_v43 = vsel %vm5_vm0, %v5665_v40, %v5664_v39  ;;  %v5666_v44 = vld [vmem:[%s11805_s0 + $0x1ca] sm:$0x4]   ;;  %v5703_v49 = vld [vmem:[%s11805_s0 + $0x299] sm:$0x80]   ;;  %v5729_v57 = vld [vmem:[%s11805_s0 + $0xf3] sm:$0x2]   ;;  %v1402_v58 = vsel %vm25_vm5, %v5702_v38, %v1398_v53 }
  0x60   :  { %v5667_v45 = vld [vmem:[%s11805_s0 + $0x149] sm:$0x8]   ;;  %v1223_v50 = vsel %vm9_vm1, %v5666_v44, %v1219_v43  ;;  %v1544_v60 = vsel %vm5_vm0, %v5729_v57, %v5728_v56  ;;  %v5730_v61 = vld [vmem:[%s11805_s0 + $0x72] sm:$0x4]   ;;  %v1406_v0 = vsel %vm29_vm6, %v5703_v49, %v1402_v58  ;;  %v5720_v7 = vld [vmem:[%s11805_s0 + $0x1f] sm:$0x1]  }
  0x61   :  { %v5668_v46 = vld [vmem:[%s11805_s0 + $0x2c8] sm:$0x10]   ;;  %v1227_v54 = vsel %vm13_vm2, %v5667_v45, %v1223_v50  ;;  %v5731_v62 = vld [vmem:[%s11805_s0 + $0x1f1] sm:$0x8]   ;;  %v1548_v2 = vsel %vm9_vm1, %v5730_v61, %v1544_v60  ;;  %v5721_v8 = vld [vmem:[%s11805_s0 + $0x19e] sm:$0x2]  }
  0x62   :  { %v5669_v51 = vld [vmem:[%s11805_s0 + $0x247] sm:$0x20]   ;;  %1447 = vrot.lane.b32.xlu1 %v1446_v47, %s6643_s27  ;;  %v1231_v59 = vsel %vm17_vm3, %v5668_v46, %v1227_v54  ;;  %v5732_v63 = vld [vmem:[%s11805_s0 + $0x370] sm:$0x10]   ;;  %v1552_v6 = vsel %vm13_vm2, %v5731_v62, %v1548_v2  ;;  %v5722_v9 = vld [vmem:[%s11805_s0 + $0x11d] sm:$0x4]   ;;  %v1504_v13 = vsel %vm5_vm0, %v5721_v8, %v5720_v7 }
  0x63   :  { %v5670_v52 = vld [vmem:[%s11805_s0 + $0x3c6] sm:$0x40]   ;;  %v1235_v1 = vsel %vm21_vm4, %v5669_v51, %v1231_v59  ;;  %v5733_v3 = vld [vmem:[%s11805_s0 + $0x2ef] sm:$0x20]   ;;  %1407 = vrot.lane.b32.xlu0 %v1406_v0, %s6644_s15  ;;  %v1556_v11 = vsel %vm17_vm3, %v5732_v63, %v1552_v6  ;;  %v5723_v14 = vld [vmem:[%s11805_s0 + $0x9c] sm:$0x8]   ;;  %v1508_v17 = vsel %vm9_vm1, %v5722_v9, %v1504_v13 }
  0x64   :  { %v5671_v55 = vld [vmem:[%s11805_s0 + $0x345] sm:$0x80]   ;;  %v5734_v4 = vld [vmem:[%s11805_s0 + $0x26e] sm:$0x40]   ;;  %v1239_v5 = vsel %vm25_vm5, %v5670_v52, %v1235_v1  ;;  %v5724_v15 = vld [vmem:[%s11805_s0 + $0x21b] sm:$0x10]   ;;  %v1560_v16 = vsel %vm21_vm4, %v5733_v3, %v1556_v11  ;;  %v1512_v22 = vsel %vm13_vm2, %v5723_v14, %v1508_v17 }
  0x65   :  { %v1243_v10 = vsel %vm29_vm6, %v5671_v55, %v1239_v5  ;;  %v5735_v12 = vld [vmem:[%s11805_s0 + $0x3ed] sm:$0x80]   ;;  %s6645_s28 = smov 100   ;;  %v5725_v18 = vld [vmem:[%s11805_s0 + $0x39a] sm:$0x20]   ;;  %v1564_v21 = vsel %vm25_vm5, %v5734_v4, %v1560_v16  ;;  %v1516_v27 = vsel %vm17_vm3, %v5724_v15, %v1512_v22  ;;  %s6646_s16 = smov 92  }
  0x66   :  { %1244 = vrot.lane.b32.xlu2 %v1243_v10, %s6645_s28  ;;  %v5726_v19 = vld [vmem:[%s11805_s0 + $0x319] sm:$0x40]   ;;  %v5688_v23 = vld [vmem:[%s11805_s0 + $0xcb] sm:$0x1]   ;;  %v1568_v26 = vsel %vm29_vm6, %v5735_v12, %v1564_v21  ;;  %v1520_v31 = vsel %vm21_vm4, %v5725_v18, %v1516_v27  ;;  %v5752_v35 = vld [vmem:[%s11805_s0 + $0x173] sm:$0x1]  }
  0x67   :  { %v5727_v20 = vld [vmem:[%s11805_s0 + $0x298] sm:$0x80]   ;;  %v5689_v24 = vld [vmem:[%s11805_s0 + $0x4a] sm:$0x2]   ;;  %v1524_v36 = vsel %vm25_vm5, %v5726_v19, %v1520_v31  ;;  %v5753_v38 = vld [vmem:[%s11805_s0 + $0xf2] sm:$0x2]  }
  0x68   :  { %v5690_v25 = vld [vmem:[%s11805_s0 + $0x1c9] sm:$0x4]   ;;  %v1341_v28 = vsel %vm5_vm0, %v5689_v24, %v5688_v23  ;;  %v5754_v39 = vld [vmem:[%s11805_s0 + $0x71] sm:$0x4]   ;;  %v1528_v41 = vsel %vm29_vm6, %v5727_v20, %v1524_v36  ;;  %v1666_v44 = vsel %vm5_vm0, %v5753_v38, %v5752_v35  ;;  %s6647_s6 = smov 93   ;;  %s6648_s24 = smov 97  }
  0x69   :  { %v5691_v29 = vld [vmem:[%s11805_s0 + $0x148] sm:$0x8]   ;;  %v1345_v32 = vsel %vm9_vm1, %v5690_v25, %v1341_v28  ;;  %v5755_v40 = vld [vmem:[%s11805_s0 + $0x1f0] sm:$0x8]   ;;  %v1670_v48 = vsel %vm9_vm1, %v5754_v39, %v1666_v44  ;;  %v5744_v51 = vld [vmem:[%s11805_s0 + $0x1e] sm:$0x1]  }
  0x6a   :  { %v5692_v30 = vld [vmem:[%s11805_s0 + $0x2c7] sm:$0x10]   ;;  %1569 = vrot.lane.b32.xlu1 %v1568_v26, %s6646_s16  ;;  %v1349_v37 = vsel %vm13_vm2, %v5691_v29, %v1345_v32  ;;  %v5756_v45 = vld [vmem:[%s11805_s0 + $0x36f] sm:$0x10]   ;;  %v1674_v53 = vsel %vm13_vm2, %v5755_v40, %v1670_v48  ;;  %v5745_v54 = vld [vmem:[%s11805_s0 + $0x19d] sm:$0x2]  }
  0x6b   :  { %v5693_v33 = vld [vmem:[%s11805_s0 + $0x246] sm:$0x20]   ;;  %v1353_v42 = vsel %vm17_vm3, %v5692_v30, %v1349_v37  ;;  %v5757_v46 = vld [vmem:[%s11805_s0 + $0x2ee] sm:$0x20]   ;;  %1529 = vrot.lane.b32.xlu0 %v1528_v41, %s6647_s6  ;;  %v5746_v55 = vld [vmem:[%s11805_s0 + $0x11c] sm:$0x4]   ;;  %v1678_v58 = vsel %vm17_vm3, %v5756_v45, %v1674_v53  ;;  %v1626_v59 = vsel %vm5_vm0, %v5745_v54, %v5744_v51 }
  0x6c   :  { %v5694_v34 = vld [vmem:[%s11805_s0 + $0x3c5] sm:$0x40]   ;;  %v1357_v47 = vsel %vm21_vm4, %v5693_v33, %v1353_v42  ;;  %v5758_v49 = vld [vmem:[%s11805_s0 + $0x26d] sm:$0x40]   ;;  %v5747_v56 = vld [vmem:[%s11805_s0 + $0x9b] sm:$0x8]   ;;  %v1682_v62 = vsel %vm21_vm4, %v5757_v46, %v1678_v58  ;;  %v1630_v63 = vsel %vm9_vm1, %v5746_v55, %v1626_v59 }
  0x6d   :  { %v5695_v43 = vld [vmem:[%s11805_s0 + $0x344] sm:$0x80]   ;;  %v5759_v50 = vld [vmem:[%s11805_s0 + $0x3ec] sm:$0x80]   ;;  %v1361_v52 = vsel %vm25_vm5, %v5694_v34, %v1357_v47  ;;  %v5748_v60 = vld [vmem:[%s11805_s0 + $0x21a] sm:$0x10]   ;;  %v1686_v3 = vsel %vm25_vm5, %v5758_v49, %v1682_v62  ;;  %v1634_v4 = vsel %vm13_vm2, %v5747_v56, %v1630_v63 }
  0x6e   :  { %v1365_v57 = vsel %vm29_vm6, %v5695_v43, %v1361_v52  ;;  %v5749_v61 = vld [vmem:[%s11805_s0 + $0x399] sm:$0x20]   ;;  %v5712_v1 = vld [vmem:[%s11805_s0 + $0xca] sm:$0x1]   ;;  %v1690_v9 = vsel %vm29_vm6, %v5759_v50, %v1686_v3  ;;  %v1638_v10 = vsel %vm17_vm3, %v5748_v60, %v1634_v4  ;;  %s6649_s13 = smov 89   ;;  %s6650_s30 = smov 90  }
  0x6f   :  { %1366 = vrot.lane.b32.xlu2 %v1365_v57, %s6648_s24  ;;  %v5750_v0 = vld [vmem:[%s11805_s0 + $0x318] sm:$0x40]   ;;  %v5713_v2 = vld [vmem:[%s11805_s0 + $0x49] sm:$0x2]   ;;  %v1642_v15 = vsel %vm21_vm4, %v5749_v61, %v1638_v10  ;;  %v5776_v18 = vld [vmem:[%s11805_s0 + $0x172] sm:$0x1]  }
  0x70   :  { %v1463_v5 = vsel %vm5_vm0, %v5713_v2, %v5712_v1  ;;  %v5714_v6 = vld [vmem:[%s11805_s0 + $0x1c8] sm:$0x4]   ;;  %v5751_v11 = vld [vmem:[%s11805_s0 + $0x297] sm:$0x80]   ;;  %v5777_v19 = vld [vmem:[%s11805_s0 + $0xf1] sm:$0x2]   ;;  %v1646_v20 = vsel %vm25_vm5, %v5750_v0, %v1642_v15 }
  0x71   :  { %v5715_v7 = vld [vmem:[%s11805_s0 + $0x147] sm:$0x8]   ;;  %v1467_v12 = vsel %vm9_vm1, %v5714_v6, %v1463_v5  ;;  %v1788_v22 = vsel %vm5_vm0, %v5777_v19, %v5776_v18  ;;  %v5778_v23 = vld [vmem:[%s11805_s0 + $0x70] sm:$0x4]   ;;  %v1650_v26 = vsel %vm29_vm6, %v5751_v11, %v1646_v20  ;;  %v5768_v34 = vld [vmem:[%s11805_s0 + $0x1d] sm:$0x1]  }
  0x72   :  { %v5716_v8 = vld [vmem:[%s11805_s0 + $0x2c6] sm:$0x10]   ;;  %1691 = vrot.lane.b32.xlu1 %v1690_v9, %s6649_s13  ;;  %v1471_v16 = vsel %vm13_vm2, %v5715_v7, %v1467_v12  ;;  %v5779_v24 = vld [vmem:[%s11805_s0 + $0x1ef] sm:$0x8]   ;;  %v1792_v28 = vsel %vm9_vm1, %v5778_v23, %v1788_v22  ;;  %v5769_v35 = vld [vmem:[%s11805_s0 + $0x19c] sm:$0x2]  }
  0x73   :  { %v5717_v13 = vld [vmem:[%s11805_s0 + $0x245] sm:$0x20]   ;;  %v1475_v21 = vsel %vm17_vm3, %v5716_v8, %v1471_v16  ;;  %v5780_v25 = vld [vmem:[%s11805_s0 + $0x36e] sm:$0x10]   ;;  %v8016_v31 = vpop.permute.xlu2 %227   ;;  %1651 = vrot.lane.b32.xlu0 %v1650_v26, %s6650_s30  ;;  %v1796_v33 = vsel %vm13_vm2, %v5779_v24, %v1792_v28  ;;  %v5770_v36 = vld [vmem:[%s11805_s0 + $0x11b] sm:$0x4]   ;;  %v1748_v40 = vsel %vm5_vm0, %v5769_v35, %v5768_v34 }
  0x74   :  { %v5718_v14 = vld [vmem:[%s11805_s0 + $0x3c4] sm:$0x40]   ;;  %v1479_v27 = vsel %vm21_vm4, %v5717_v13, %v1475_v21  ;;  %v5781_v29 = vld [vmem:[%s11805_s0 + $0x2ed] sm:$0x20]   ;;  %v1800_v38 = vsel %vm17_vm3, %v5780_v25, %v1796_v33  ;;  %v5771_v41 = vld [vmem:[%s11805_s0 + $0x9a] sm:$0x8]   ;;  %v1752_v44 = vsel %vm9_vm1, %v5770_v36, %v1748_v40 }
  0x75   :  { %v5719_v17 = vld [vmem:[%s11805_s0 + $0x343] sm:$0x80]   ;;  %v5782_v30 = vld [vmem:[%s11805_s0 + $0x26c] sm:$0x40]   ;;  %v1483_v32 = vsel %vm25_vm5, %v5718_v14, %v1479_v27  ;;  %v5772_v42 = vld [vmem:[%s11805_s0 + $0x219] sm:$0x10]   ;;  %v1804_v43 = vsel %vm21_vm4, %v5781_v29, %v1800_v38  ;;  %v1756_v49 = vsel %vm13_vm2, %v5771_v41, %v1752_v44 }
  0x76   :  { %v1487_v37 = vsel %vm29_vm6, %v5719_v17, %v1483_v32  ;;  %v5783_v39 = vld [vmem:[%s11805_s0 + $0x3eb] sm:$0x80]   ;;  %s6651_s14 = smov 94   ;;  %v5773_v45 = vld [vmem:[%s11805_s0 + $0x398] sm:$0x20]   ;;  %v1808_v48 = vsel %vm25_vm5, %v5782_v30, %v1804_v43  ;;  %v1760_v53 = vsel %vm17_vm3, %v5772_v42, %v1756_v49  ;;  %s6652_s2 = smov 86  }
  0x77   :  { %1488 = vrot.lane.b32.xlu2 %v1487_v37, %s6651_s14  ;;  %v5774_v46 = vld [vmem:[%s11805_s0 + $0x317] sm:$0x40]   ;;  %v5736_v50 = vld [vmem:[%s11805_s0 + $0xc9] sm:$0x1]   ;;  %v1812_v52 = vsel %vm29_vm6, %v5783_v39, %v1808_v48  ;;  %v1764_v58 = vsel %vm21_vm4, %v5773_v45, %v1760_v53  ;;  %vm66_vm7 = vcmask 15360   ;;  %s6653_s20 = smov 87  }
  0x78   :  { %v5775_v47 = vld [vmem:[%s11805_s0 + $0x296] sm:$0x80]   ;;  %v5737_v51 = vld [vmem:[%s11805_s0 + $0x48] sm:$0x2]   ;;  %v1768_v63 = vsel %vm25_vm5, %v5774_v46, %v1764_v58  ;;  %v5800_v2 = vld [vmem:[%s11805_s0 + $0x171] sm:$0x1]  }
  0x79   :  { %v1585_v54 = vsel %vm5_vm0, %v5737_v51, %v5736_v50  ;;  %v5738_v55 = vld [vmem:[%s11805_s0 + $0x1c7] sm:$0x4]   ;;  %v5801_v3 = vld [vmem:[%s11805_s0 + $0xf0] sm:$0x2]   ;;  %v1772_v4 = vsel %vm29_vm6, %v5775_v47, %v1768_v63  ;;  %v5792_v19 = vld [vmem:[%s11805_s0 + $0x1c] sm:$0x1]  }
  0x7a   :  { %v5739_v56 = vld [vmem:[%s11805_s0 + $0x146] sm:$0x8]   ;;  %1813 = vrot.lane.b32.xlu1 %v1812_v52, %s6652_s2  ;;  %v1589_v59 = vsel %vm9_vm1, %v5738_v55, %v1585_v54  ;;  %v1910_v6 = vsel %vm5_vm0, %v5801_v3, %v5800_v2  ;;  %v5802_v7 = vld [vmem:[%s11805_s0 + $0x6f] sm:$0x4]   ;;  %v5793_v20 = vld [vmem:[%s11805_s0 + $0x19b] sm:$0x2]  }
  0x7b   :  { %v5740_v57 = vld [vmem:[%s11805_s0 + $0x2c5] sm:$0x10]   ;;  %v1593_v1 = vsel %vm13_vm2, %v5739_v56, %v1589_v59  ;;  %v5803_v8 = vld [vmem:[%s11805_s0 + $0x1ee] sm:$0x8]   ;;  %1773 = vrot.lane.b32.xlu0 %v1772_v4, %s6653_s20  ;;  %v1914_v12 = vsel %vm9_vm1, %v5802_v7, %v1910_v6  ;;  %v5794_v21 = vld [vmem:[%s11805_s0 + $0x11a] sm:$0x4]   ;;  %v1870_v24 = vsel %vm5_vm0, %v5793_v20, %v5792_v19 }
  0x7c   :  { %v5741_v60 = vld [vmem:[%s11805_s0 + $0x244] sm:$0x20]   ;;  %v8084_v0 = vpop.permute.xlu1 %146   ;;  %v1597_v5 = vsel %vm17_vm3, %v5740_v57, %v1593_v1  ;;  %v5804_v9 = vld [vmem:[%s11805_s0 + $0x36d] sm:$0x10]   ;;  %v8105_v10 = vpop.permute.xlu2 %268   ;;  %v1918_v18 = vsel %vm13_vm2, %v5803_v8, %v1914_v12  ;;  %vm229_vm8 = vcmask 1048552   ;;  %s6654_s5 = smov 91   ;;  %v1874_v27 = vsel %vm9_vm1, %v5794_v21, %v1870_v24 }
  0x7d   :  { %v5742_v61 = vld [vmem:[%s11805_s0 + $0x3c3] sm:$0x40]   ;;  %v1601_v11 = vsel %vm21_vm4, %v5741_v60, %v1597_v5  ;;  %v5805_v13 = vld [vmem:[%s11805_s0 + $0x2ec] sm:$0x20]   ;;  %v65_v16 = vpop.permute.xlu0 %64   ;;  %v1922_v23 = vsel %vm17_vm3, %v5804_v9, %v1918_v18  ;;  %v5795_v25 = vld [vmem:[%s11805_s0 + $0x99] sm:$0x8]  }
  0x7e   :  { %v5743_v62 = vld [vmem:[%s11805_s0 + $0x342] sm:$0x80]   ;;  %v5806_v14 = vld [vmem:[%s11805_s0 + $0x26b] sm:$0x40]   ;;  %v1605_v17 = vsel %vm25_vm5, %v5742_v61, %v1601_v11  ;;  %v1926_v26 = vsel %vm21_vm4, %v5805_v13, %v1922_v23  ;;  %v5796_v28 = vld [vmem:[%s11805_s0 + $0x218] sm:$0x10]   ;;  %v1878_v30 = vsel %vm13_vm2, %v5795_v25, %v1874_v27 }
  0x7f   :  { %v5807_v15 = vld [vmem:[%s11805_s0 + $0x3ea] sm:$0x80]   ;;  %68 = vst.msk [vmem:[#allocation0 + $0x40] ss:$-24 sm:$0x7] %vm66_vm7, %v65_v16   ;;  %v1609_v22 = vsel %vm29_vm6, %v5743_v62, %v1605_v17  ;;  %v1930_v29 = vsel %vm25_vm5, %v5806_v14, %v1926_v26  ;;  %v1882_v34 = vsel %vm17_vm3, %v5796_v28, %v1878_v30  ;;  %s6655_s14 = smov 83  }
  0x80   :  { %70 = vst.msk [vmem:[#allocation0 - $0x80] ss:$72 sm:$0x18] %vm66_vm7, %v65_v16   ;;  %1610 = vrot.lane.b32.xlu2 %v1609_v22, %s6654_s5  ;;  %v5797_v32 = vld [vmem:[%s11805_s0 + $0x397] sm:$0x20]   ;;  %v1934_v33 = vsel %vm29_vm6, %v5807_v15, %v1930_v29  ;;  %vm107_vm9 = vcmask 1048568  }
  0x81   :  { %72 = vst.msk [vmem:[#allocation0 + $0x100] ss:$-24 sm:$0x60] %vm66_vm7, %v65_v16   ;;  %v5798_v35 = vld [vmem:[%s11805_s0 + $0x316] sm:$0x40]   ;;  %v1886_v37 = vsel %vm21_vm4, %v5797_v32, %v1882_v34  ;;  %s6656_s17 = smov 84  }
  0x82   :  { %74 = vst.msk [vmem:[#allocation0 + $0xb1] sm:$0x80] %vm66_vm7, %v65_v16   ;;  %v5799_v36 = vld [vmem:[%s11805_s0 + $0x295] sm:$0x80]   ;;  %1935 = vrot.lane.b32.xlu1 %v1934_v33, %s6655_s14  ;;  %v1890_v39 = vsel %vm25_vm5, %v5798_v35, %v1886_v37  ;;  %v5426_v41 = vld [vmem:[%s11805_s0 + $0xfe] sm:$0x4]  }
  0x83   :  { %231 = vst.msk [vmem:[#allocation0 + $0x40] ss:$-24 sm:$0x7] %vm229_vm8, %v8016_v31   ;;  %v1894_v40 = vsel %vm29_vm6, %v5799_v36, %v1890_v39  ;;  %v5428_v43 = vld [vmem:[%s11805_s0 + $0x1fc] sm:$0x10]   ;;  %vm148_vm10 = vcmask 7168  }
  0x84   :  { %v8160_v38 = vpop.permute.xlu1 %187   ;;  %233 = vst.msk [vmem:[#allocation0 - $0x80] ss:$72 sm:$0x18] %vm229_vm8, %v8016_v31   ;;  %v8171_v42 = vpop.permute.xlu2 %390   ;;  %1895 = vrot.lane.b32.xlu0 %v1894_v40, %s6656_s17  ;;  %v5429_v45 = vld [vmem:[%s11805_s0 + $0x27b] sm:$0x20]   ;;  %vm31_vm11 = vcmask 23552  }
  0x85   :  { %235 = vst.msk [vmem:[#allocation0 + $0x100] ss:$-24 sm:$0x60] %vm229_vm8, %v8016_v31   ;;  %v106_v44 = vpop.permute.xlu0 %105   ;;  %v2_v46 = vld [vmem:[%s11805_s0] sm:$0x1]   ;;  %vm189_vm12 = vcmask 1048560  }
  0x86   :  { %237 = vst.msk [vmem:[#allocation0 + $0xb1] sm:$0x80] %vm229_vm8, %v8016_v31   ;;  %v5427_v31 = vld [vmem:[%s11805_s0 + $0x17d] sm:$0x8]   ;;  %v5760_v50 = vld [vmem:[%s11805_s0 + $0xc8] sm:$0x1]  }
  0x87   :  { %v5425_v47 = vld [vmem:[%s11805_s0 + $0x7f] sm:$0x2]   ;;  %109 = vst.msk [vmem:[#allocation0 + $0x20] ss:$-24 sm:$0x3] %vm107_vm9, %v106_v44   ;;  %s6657_s22 = smov 88  }
  0x88   :  { %v5430_v48 = vld [vmem:[%s11805_s0 + $0x2fa] sm:$0x40]   ;;  %v6_v49 = vsel %vm5_vm0, %v5425_v47, %v2_v46  ;;  %111 = vst.msk [vmem:[#allocation0 + $0x80] ss:$-24 sm:$0xc] %vm107_vm9, %v106_v44   ;;  %vm270_vm13 = vcmask 1040352  }
  0x89   :  { %v5431_v51 = vld [vmem:[%s11805_s0 + $0x379] sm:$0x80]   ;;  %v10_v52 = vsel %vm9_vm1, %v5426_v41, %v6_v49  ;;  %v5761_v53 = vld [vmem:[%s11805_s0 + $0x47] sm:$0x2]   ;;  %v5824_v12 = vld [vmem:[%s11805_s0 + $0x170] sm:$0x1]  }
  0x8a   :  { %v14_v54 = vsel %vm13_vm2, %v5427_v31, %v10_v52  ;;  %113 = vst.msk [vmem:[#allocation0 + $0xe0] ss:$-24 sm:$0x30] %vm107_vm9, %v106_v44   ;;  %v1707_v55 = vsel %vm5_vm0, %v5761_v53, %v5760_v50  ;;  %v5762_v56 = vld [vmem:[%s11805_s0 + $0x1c6] sm:$0x4]   ;;  %s6658_s10 = smov 80  }
  0x8b   :  { %v18_v57 = vsel %vm17_vm3, %v5428_v43, %v14_v54  ;;  %115 = vst.msk [vmem:[#allocation0 + $0x140] ss:$-24 sm:$0xc0] %vm107_vm9, %v106_v44   ;;  %v1711_v58 = vsel %vm9_vm1, %v5762_v56, %v1707_v55  ;;  %v5763_v59 = vld [vmem:[%s11805_s0 + $0x145] sm:$0x8]   ;;  %vm392_vm14 = vcmask 1015752  }
  0x8c   :  { %v8218_v60 = vpop.permute.xlu1 %349   ;;  %v22_v61 = vsel %vm21_vm4, %v5429_v45, %v18_v57  ;;  %150 = vst.msk [vmem:[#allocation0 + $0x20] ss:$-24 sm:$0x3] %vm148_vm10, %v8084_v0   ;;  %v1715_v62 = vsel %vm13_vm2, %v5763_v59, %v1711_v58  ;;  %v5764_v63 = vld [vmem:[%s11805_s0 + $0x2c4] sm:$0x10]   ;;  %vm351_vm15 = vcmask 1023952  }
  0x8d   :  { %v26_v1 = vsel %vm25_vm5, %v5430_v48, %v22_v61  ;;  %152 = vst.msk [vmem:[#allocation0 + $0x80] ss:$-24 sm:$0xc] %vm148_vm10, %v8084_v0   ;;  %v1719_v2 = vsel %vm17_vm3, %v5764_v63, %v1715_v62  ;;  %v5765_v3 = vld [vmem:[%s11805_s0 + $0x243] sm:$0x20]   ;;  %v8241_v7 = vpop.permute.xlu0 %309   ;;  %v8258_v14 = vpop.permute.xlu2 %512   ;;  %s6659_s5 = smov 81  }
  0x8e   :  { %v30_v4 = vsel %vm29_vm6, %v5431_v51, %v26_v1  ;;  %154 = vst.msk [vmem:[#allocation0 + $0xe0] ss:$-24 sm:$0x30] %vm148_vm10, %v8084_v0   ;;  %v1723_v5 = vsel %vm21_vm4, %v5765_v3, %v1719_v2  ;;  %v5766_v6 = vld [vmem:[%s11805_s0 + $0x3c2] sm:$0x40]   ;;  %vm311_vm7 = vcmask 1032152  }
  0x8f   :  { %32 = vst.msk [vmem:[#allocation0] ss:$24 sm:$0xf] %vm31_vm11, %v30_v4   ;;  %v1727_v8 = vsel %vm25_vm5, %v5766_v6, %v1723_v5  ;;  %v5767_v9 = vld [vmem:[%s11805_s0 + $0x341] sm:$0x80]   ;;  %s6660_s16 = smov 85  }
  0x90   :  { %33 = vst.msk [vmem:[#allocation0] ss:$24 sm:$0xf0] %vm31_vm11, %v30_v4   ;;  %v1731_v11 = vsel %vm29_vm6, %v5767_v9, %v1727_v8  ;;  %v5825_v13 = vld [vmem:[%s11805_s0 + $0xef] sm:$0x2]   ;;  %vm514_vm8 = vcmask 991152  }
  0x91   :  { %190 = vst.msk [vmem:[#allocation0] ss:$72 sm:$0x3] %vm189_vm12, %v8160_v38   ;;  %1732 = vrot.lane.b32.xlu2 %v1731_v11, %s6657_s22  ;;  %v2032_v15 = vsel %vm5_vm0, %v5825_v13, %v5824_v12  ;;  %v5826_v16 = vld [vmem:[%s11805_s0 + $0x6e] sm:$0x4]   ;;  %vm473_vm9 = vcmask 999352  }
  0x92   :  { %192 = vst.msk [vmem:[#allocation0 + $0x60] ss:$-24 sm:$0xc] %vm189_vm12, %v8160_v38   ;;  %v2036_v17 = vsel %vm9_vm1, %v5826_v16, %v2032_v15  ;;  %v5827_v18 = vld [vmem:[%s11805_s0 + $0x1ed] sm:$0x8]   ;;  %s6662_s27 = smov 78  }
  0x93   :  { %194 = vst.msk [vmem:[#allocation0 - $0xc0] ss:$72 sm:$0x30] %vm189_vm12, %v8160_v38   ;;  %v2040_v20 = vsel %vm13_vm2, %v5827_v18, %v2036_v17  ;;  %v5828_v21 = vld [vmem:[%s11805_s0 + $0x36c] sm:$0x10]   ;;  %s6663_s7 = smov 82  }
  0x94   :  { %v8272_v19 = vpop.permute.xlu1 %471   ;;  %196 = vst.msk [vmem:[#allocation0 + $0x120] ss:$-24 sm:$0xc0] %vm189_vm12, %v8160_v38   ;;  %v5829_v22 = vld [vmem:[%s11805_s0 + $0x2eb] sm:$0x20]   ;;  %vm636_vm11 = vcmask 966552  }
  0x95   :  { %156 = vst.msk [vmem:[#allocation0 + $0x140] ss:$-24 sm:$0xc0] %vm148_vm10, %v8084_v0   ;;  %v2044_v0 = vsel %vm17_vm3, %v5828_v21, %v2040_v20  ;;  %v5830_v24 = vld [vmem:[%s11805_s0 + $0x26a] sm:$0x40]   ;;  %v8292_v25 = vpop.permute.xlu0 %431   ;;  %v8370_v53 = vpop.permute.xlu2 %634   ;;  %vm433_vm10 = vcmask 1007552  }
  0x96   :  { %272 = vst.msk [vmem:[#allocation0 + $0x20] ss:$-24 sm:$0x3] %vm270_vm13, %v8105_v10   ;;  %v2048_v23 = vsel %vm21_vm4, %v5829_v22, %v2044_v0  ;;  %v5831_v27 = vld [vmem:[%s11805_s0 + $0x3e9] sm:$0x80]   ;;  %vm595_vm12 = vcmask 974752  }
  0x97   :  { %274 = vst.msk [vmem:[#allocation0 + $0x80] ss:$-24 sm:$0xc] %vm270_vm13, %v8105_v10   ;;  %v2052_v26 = vsel %vm25_vm5, %v5830_v24, %v2048_v23  ;;  %v5816_v29 = vld [vmem:[%s11805_s0 + $0x1b] sm:$0x1]   ;;  %s6664_s11 = smov 74  }
  0x98   :  { %276 = vst.msk [vmem:[#allocation0 + $0xe0] ss:$-24 sm:$0x30] %vm270_vm13, %v8105_v10   ;;  %v2056_v28 = vsel %vm29_vm6, %v5831_v27, %v2052_v26  ;;  %v5818_v32 = vld [vmem:[%s11805_s0 + $0x119] sm:$0x4]   ;;  %s6665_s21 = smov 75  }
  0x99   :  { %278 = vst.msk [vmem:[#allocation0 + $0x140] ss:$-24 sm:$0xc0] %vm270_vm13, %v8105_v10   ;;  %2057 = vrot.lane.b32.xlu1 %v2056_v28, %s6658_s10  ;;  %v5817_v10 = vld [vmem:[%s11805_s0 + $0x19a] sm:$0x2]   ;;  %vm555_vm13 = vcmask 982952  }
  0x9a   :  { %v1992_v30 = vsel %vm5_vm0, %v5817_v10, %v5816_v29  ;;  %v5819_v33 = vld [vmem:[%s11805_s0 + $0x98] sm:$0x8]   ;;  %394 = vst.msk [vmem:[#allocation0 + $0x20] ss:$-24 sm:$0x3] %vm392_vm14, %v8171_v42   ;;  %s6666_s2 = smov 79  }
  0x9b   :  { %v5820_v34 = vld [vmem:[%s11805_s0 + $0x217] sm:$0x10]   ;;  %v1996_v35 = vsel %vm9_vm1, %v5818_v32, %v1992_v30  ;;  %v5784_v40 = vld [vmem:[%s11805_s0 + $0xc7] sm:$0x1]   ;;  %359 = vst.msk [vmem:[#allocation0 + $0xb1] sm:$0x80] %vm351_vm15, %v8218_v60  }
  0x9c   :  { %v5821_v36 = vld [vmem:[%s11805_s0 + $0x396] sm:$0x20]   ;;  %v2000_v39 = vsel %vm13_vm2, %v5819_v33, %v1996_v35  ;;  %396 = vst.msk [vmem:[#allocation0 + $0x80] ss:$-24 sm:$0xc] %vm392_vm14, %v8171_v42   ;;  %v8372_v54 = vpop.permute.xlu1 %593   ;;  %s6667_s4 = smov 71  }
  0x9d   :  { %v5822_v37 = vld [vmem:[%s11805_s0 + $0x315] sm:$0x40]   ;;  %v2004_v41 = vsel %vm17_vm3, %v5820_v34, %v2000_v39  ;;  %v5785_v31 = vld [vmem:[%s11805_s0 + $0x46] sm:$0x2]   ;;  %v8380_v57 = vpop.permute.xlu0 %553   ;;  %v5849_v62 = vld [vmem:[%s11805_s0 + $0xee] sm:$0x2]  }
  0x9e   :  { %v5823_v38 = vld [vmem:[%s11805_s0 + $0x294] sm:$0x80]   ;;  %v2008_v43 = vsel %vm21_vm4, %v5821_v36, %v2004_v41  ;;  %398 = vst.msk [vmem:[#allocation0 + $0xe0] ss:$-24 sm:$0x30] %vm392_vm14, %v8171_v42   ;;  %v1829_v44 = vsel %vm5_vm0, %v5785_v31, %v5784_v40  ;;  %s6668_s13 = smov 72  }
  0x9f   :  { %v5786_v45 = vld [vmem:[%s11805_s0 + $0x1c5] sm:$0x4]   ;;  %v2012_v46 = vsel %vm25_vm5, %v5822_v37, %v2008_v43  ;;  %400 = vst.msk [vmem:[#allocation0 + $0x140] ss:$-24 sm:$0xc0] %vm392_vm14, %v8171_v42   ;;  %vm758_vm14 = vcmask 941952  }
  0xa0   :  { %v1833_v42 = vsel %vm9_vm1, %v5786_v45, %v1829_v44  ;;  %v5787_v47 = vld [vmem:[%s11805_s0 + $0x144] sm:$0x8]   ;;  %v2016_v48 = vsel %vm29_vm6, %v5823_v38, %v2012_v46  ;;  %353 = vst.msk [vmem:[#allocation0 + $0x40] ss:$-24 sm:$0x7] %vm351_vm15, %v8218_v60   ;;  %v8489_v38 = vpop.permute.xlu2 %756   ;;  %s6669_s25 = smov 76  }
  0xa1   :  { %v1837_v49 = vsel %vm13_vm2, %v5787_v47, %v1833_v42  ;;  %v5788_v50 = vld [vmem:[%s11805_s0 + $0x2c3] sm:$0x10]   ;;  %2017 = vrot.lane.b32.xlu0 %v2016_v48, %s6659_s5  ;;  %355 = vst.msk [vmem:[#allocation0 - $0x80] ss:$72 sm:$0x18] %vm351_vm15, %v8218_v60   ;;  %s6671_s6 = smov 69  }
  0xa2   :  { %v1841_v51 = vsel %vm17_vm3, %v5788_v50, %v1837_v49  ;;  %v5789_v52 = vld [vmem:[%s11805_s0 + $0x242] sm:$0x20]   ;;  %357 = vst.msk [vmem:[#allocation0 + $0x100] ss:$-24 sm:$0x60] %vm351_vm15, %v8218_v60   ;;  %vm717_vm15 = vcmask 950152  }
  0xa3   :  { %v1845_v55 = vsel %vm21_vm4, %v5789_v52, %v1841_v51  ;;  %v5790_v56 = vld [vmem:[%s11805_s0 + $0x3c1] sm:$0x40]   ;;  %v5848_v60 = vld [vmem:[%s11805_s0 + $0x16f] sm:$0x1]   ;;  %v5840_v12 = vld [vmem:[%s11805_s0 + $0x1a] sm:$0x1]  }
  0xa4   :  { %v1849_v58 = vsel %vm25_vm5, %v5790_v56, %v1845_v55  ;;  %v5791_v59 = vld [vmem:[%s11805_s0 + $0x340] sm:$0x80]   ;;  %312 = vst.msk [vmem:[#allocation0] ss:$72 sm:$0x3] %vm311_vm7, %v8241_v7   ;;  %v2154_v63 = vsel %vm5_vm0, %v5849_v62, %v5848_v60  ;;  %v8491_v39 = vpop.permute.xlu1 %715   ;;  %s6672_s15 = smov 73  }
  0xa5   :  { %v1853_v61 = vsel %vm29_vm6, %v5791_v59, %v1849_v58  ;;  %314 = vst.msk [vmem:[#allocation0 + $0x60] ss:$-24 sm:$0xc] %vm311_vm7, %v8241_v7   ;;  %v5850_v1 = vld [vmem:[%s11805_s0 + $0x6d] sm:$0x4]   ;;  %v8505_v43 = vpop.permute.xlu0 %675   ;;  %s6673_s20 = smov 65  }
  0xa6   :  { %1854 = vrot.lane.b32.xlu2 %v1853_v61, %s6660_s16  ;;  %316 = vst.msk [vmem:[#allocation0 - $0xc0] ss:$72 sm:$0x30] %vm311_vm7, %v8241_v7   ;;  %v2158_v2 = vsel %vm9_vm1, %v5850_v1, %v2154_v63  ;;  %v5851_v3 = vld [vmem:[%s11805_s0 + $0x1ec] sm:$0x8]   ;;  %s6661_s16 = smov 77  }
  0xa7   :  { %318 = vst.msk [vmem:[#allocation0 + $0x120] ss:$-24 sm:$0xc0] %vm311_vm7, %v8241_v7   ;;  %v2162_v4 = vsel %vm13_vm2, %v5851_v3, %v2158_v2  ;;  %v5852_v5 = vld [vmem:[%s11805_s0 + $0x36b] sm:$0x10]   ;;  %vm677_vm7 = vcmask 958352  }
  0xa8   :  { %v2166_v6 = vsel %vm17_vm3, %v5852_v5, %v2162_v4  ;;  %v5853_v7 = vld [vmem:[%s11805_s0 + $0x2ea] sm:$0x20]   ;;  %v5841_v13 = vld [vmem:[%s11805_s0 + $0x199] sm:$0x2]   ;;  %481 = vst.msk [vmem:[#allocation0 + $0xb1] sm:$0x80] %vm473_vm9, %v8272_v19  }
  0xa9   :  { %v5854_v8 = vld [vmem:[%s11805_s0 + $0x269] sm:$0x40]   ;;  %v2170_v11 = vsel %vm21_vm4, %v5853_v7, %v2166_v6  ;;  %v5842_v15 = vld [vmem:[%s11805_s0 + $0x118] sm:$0x4]   ;;  %v2114_v17 = vsel %vm5_vm0, %v5841_v13, %v5840_v12  ;;  %v5808_v27 = vld [vmem:[%s11805_s0 + $0xc6] sm:$0x1]  }
  0xaa   :  { %v5855_v9 = vld [vmem:[%s11805_s0 + $0x3e8] sm:$0x80]   ;;  %v2174_v16 = vsel %vm25_vm5, %v5854_v8, %v2170_v11  ;;  %v5843_v18 = vld [vmem:[%s11805_s0 + $0x97] sm:$0x8]   ;;  %v2118_v22 = vsel %vm9_vm1, %v5842_v15, %v2114_v17  ;;  %v5809_v29 = vld [vmem:[%s11805_s0 + $0x45] sm:$0x2]  }
  0xab   :  { %v5844_v20 = vld [vmem:[%s11805_s0 + $0x216] sm:$0x10]   ;;  %v2178_v0 = vsel %vm29_vm6, %v5855_v9, %v2174_v16  ;;  %v2122_v26 = vsel %vm13_vm2, %v5843_v18, %v2118_v22  ;;  %516 = vst.msk [vmem:[#allocation0 + $0x20] ss:$-24 sm:$0x3] %vm514_vm8, %v8258_v14   ;;  %v1951_v30 = vsel %vm5_vm0, %v5809_v29, %v5808_v27  ;;  %s6674_s28 = smov 66  }
  0xac   :  { %v5845_v21 = vld [vmem:[%s11805_s0 + $0x395] sm:$0x20]   ;;  %2179 = vrot.lane.b32.xlu1 %v2178_v0, %s6661_s16  ;;  %v2126_v28 = vsel %vm17_vm3, %v5844_v20, %v2122_v26  ;;  %518 = vst.msk [vmem:[#allocation0 + $0x80] ss:$-24 sm:$0xc] %vm514_vm8, %v8258_v14   ;;  %v8614_v26 = vpop.permute.xlu1 %837   ;;  %s6675_s19 = smov 70  }
  0xad   :  { %v5846_v23 = vld [vmem:[%s11805_s0 + $0x314] sm:$0x40]   ;;  %v2130_v10 = vsel %vm21_vm4, %v5845_v21, %v2126_v28  ;;  %520 = vst.msk [vmem:[#allocation0 + $0xe0] ss:$-24 sm:$0x30] %vm514_vm8, %v8258_v14   ;;  %v8622_v29 = vpop.permute.xlu0 %797   ;;  %s6676_s12 = smov 62  }
  0xae   :  { %v5847_v24 = vld [vmem:[%s11805_s0 + $0x293] sm:$0x80]   ;;  %v5810_v32 = vld [vmem:[%s11805_s0 + $0x1c4] sm:$0x4]   ;;  %v2134_v33 = vsel %vm25_vm5, %v5846_v23, %v2130_v10  ;;  %v5872_v42 = vld [vmem:[%s11805_s0 + $0x16e] sm:$0x1]  }
  0xaf   :  { %522 = vst.msk [vmem:[#allocation0 + $0x140] ss:$-24 sm:$0xc0] %vm514_vm8, %v8258_v14   ;;  %v1955_v14 = vsel %vm9_vm1, %v5810_v32, %v1951_v30  ;;  %v5811_v34 = vld [vmem:[%s11805_s0 + $0x143] sm:$0x8]   ;;  %v2138_v35 = vsel %vm29_vm6, %v5847_v24, %v2134_v33  ;;  %v8612_v24 = vpop.permute.xlu2 %878   ;;  %vm880_vm8 = vcmask 917352  }
  0xb0   :  { %475 = vst.msk [vmem:[#allocation0 + $0x40] ss:$-24 sm:$0x7] %vm473_vm9, %v8272_v19   ;;  %v1959_v36 = vsel %vm13_vm2, %v5811_v34, %v1955_v14  ;;  %v5812_v37 = vld [vmem:[%s11805_s0 + $0x2c2] sm:$0x10]   ;;  %2139 = vrot.lane.b32.xlu0 %v2138_v35, %s6662_s27  ;;  %s6677_s22 = smov 63  }
  0xb1   :  { %477 = vst.msk [vmem:[#allocation0 - $0x80] ss:$72 sm:$0x18] %vm473_vm9, %v8272_v19   ;;  %v1963_v40 = vsel %vm17_vm3, %v5812_v37, %v1959_v36  ;;  %v5813_v41 = vld [vmem:[%s11805_s0 + $0x241] sm:$0x20]   ;;  %s6678_s3 = smov 67  }
  0xb2   :  { %479 = vst.msk [vmem:[#allocation0 + $0x100] ss:$-24 sm:$0x60] %vm473_vm9, %v8272_v19   ;;  %v1967_v19 = vsel %vm21_vm4, %v5813_v41, %v1963_v40  ;;  %v5814_v31 = vld [vmem:[%s11805_s0 + $0x3c0] sm:$0x40]   ;;  %vm839_vm9 = vcmask 925552  }
  0xb3   :  { %434 = vst.msk [vmem:[#allocation0] ss:$72 sm:$0x3] %vm433_vm10, %v8292_v25   ;;  %v1971_v44 = vsel %vm25_vm5, %v5814_v31, %v1967_v19  ;;  %v5815_v45 = vld [vmem:[%s11805_s0 + $0x33f] sm:$0x80]   ;;  %s6680_s14 = smov 60  }
  0xb4   :  { %436 = vst.msk [vmem:[#allocation0 + $0x60] ss:$-24 sm:$0xc] %vm433_vm10, %v8292_v25   ;;  %v1975_v46 = vsel %vm29_vm6, %v5815_v45, %v1971_v44  ;;  %v5873_v47 = vld [vmem:[%s11805_s0 + $0xed] sm:$0x2]   ;;  %s6681_s24 = smov 64  }
  0xb5   :  { %438 = vst.msk [vmem:[#allocation0 - $0xc0] ss:$72 sm:$0x30] %vm433_vm10, %v8292_v25   ;;  %1976 = vrot.lane.b32.xlu2 %v1975_v46, %s6663_s7  ;;  %v5874_v48 = vld [vmem:[%s11805_s0 + $0x6c] sm:$0x4]   ;;  %s6682_s27 = smov 56  }
  0xb6   :  { %440 = vst.msk [vmem:[#allocation0 + $0x120] ss:$-24 sm:$0xc0] %vm433_vm10, %v8292_v25   ;;  %v2276_v25 = vsel %vm5_vm0, %v5873_v47, %v5872_v42  ;;  %v5875_v50 = vld [vmem:[%s11805_s0 + $0x1eb] sm:$0x8]   ;;  %vm799_vm10 = vcmask 933752  }
  0xb7   :  { %v2280_v49 = vsel %vm9_vm1, %v5874_v48, %v2276_v25  ;;  %v5876_v51 = vld [vmem:[%s11805_s0 + $0x36a] sm:$0x10]   ;;  %v5864_v59 = vld [vmem:[%s11805_s0 + $0x19] sm:$0x1]   ;;  %v5832_v12 = vld [vmem:[%s11805_s0 + $0xc5] sm:$0x1]  }
  0xb8   :  { %v5877_v52 = vld [vmem:[%s11805_s0 + $0x2e9] sm:$0x20]   ;;  %v2284_v55 = vsel %vm13_vm2, %v5875_v50, %v2280_v49  ;;  %v5865_v61 = vld [vmem:[%s11805_s0 + $0x198] sm:$0x2]   ;;  %v5833_v15 = vld [vmem:[%s11805_s0 + $0x44] sm:$0x2]  }
  0xb9   :  { %v5878_v56 = vld [vmem:[%s11805_s0 + $0x268] sm:$0x40]   ;;  %v2288_v60 = vsel %vm17_vm3, %v5876_v51, %v2284_v55  ;;  %v5866_v62 = vld [vmem:[%s11805_s0 + $0x117] sm:$0x4]   ;;  %v2236_v2 = vsel %vm5_vm0, %v5865_v61, %v5864_v59  ;;  %v5834_v17 = vld [vmem:[%s11805_s0 + $0x1c3] sm:$0x4]  }
  0xba   :  { %v5879_v58 = vld [vmem:[%s11805_s0 + $0x3e7] sm:$0x80]   ;;  %v5867_v63 = vld [vmem:[%s11805_s0 + $0x96] sm:$0x8]   ;;  %v2292_v1 = vsel %vm21_vm4, %v5877_v52, %v2288_v60  ;;  %v2240_v7 = vsel %vm9_vm1, %v5866_v62, %v2236_v2  ;;  %v5835_v21 = vld [vmem:[%s11805_s0 + $0x142] sm:$0x8]  }
  0xbb   :  { %v5868_v3 = vld [vmem:[%s11805_s0 + $0x215] sm:$0x10]   ;;  %v2296_v6 = vsel %vm25_vm5, %v5878_v56, %v2292_v1  ;;  %638 = vst.msk [vmem:[#allocation0 + $0x20] ss:$-24 sm:$0x3] %vm636_vm11, %v8370_v53   ;;  %v2244_v11 = vsel %vm13_vm2, %v5867_v63, %v2240_v7  ;;  %s6683_s7 = smov 57  }
  0xbc   :  { %v5869_v4 = vld [vmem:[%s11805_s0 + $0x394] sm:$0x20]   ;;  %v2300_v9 = vsel %vm29_vm6, %v5879_v58, %v2296_v6  ;;  %640 = vst.msk [vmem:[#allocation0 + $0x80] ss:$-24 sm:$0xc] %vm636_vm11, %v8370_v53   ;;  %v2248_v13 = vsel %vm17_vm3, %v5868_v3, %v2244_v11  ;;  %s6684_s18 = smov 61  }
  0xbd   :  { %v5870_v5 = vld [vmem:[%s11805_s0 + $0x313] sm:$0x40]   ;;  %2301 = vrot.lane.b32.xlu1 %v2300_v9, %s6664_s11  ;;  %642 = vst.msk [vmem:[#allocation0 + $0xe0] ss:$-24 sm:$0x30] %vm636_vm11, %v8370_v53   ;;  %v2252_v16 = vsel %vm21_vm4, %v5869_v4, %v2248_v13  ;;  %v8741_v13 = vpop.permute.xlu1 %959   ;;  %s6686_s29 = smov 54  }
  0xbe   :  { %v5871_v8 = vld [vmem:[%s11805_s0 + $0x292] sm:$0x80]   ;;  %644 = vst.msk [vmem:[#allocation0 + $0x140] ss:$-24 sm:$0xc0] %vm636_vm11, %v8370_v53   ;;  %v2073_v53 = vsel %vm5_vm0, %v5833_v15, %v5832_v12  ;;  %v2256_v18 = vsel %vm25_vm5, %v5870_v5, %v2252_v16  ;;  %v8739_v12 = vpop.permute.xlu2 %1000   ;;  %vm1002_vm11 = vcmask 892752  }
  0xbf   :  { %597 = vst.msk [vmem:[#allocation0 + $0x40] ss:$-24 sm:$0x7] %vm595_vm12, %v8372_v54   ;;  %v2077_v20 = vsel %vm9_vm1, %v5834_v17, %v2073_v53  ;;  %v2260_v0 = vsel %vm29_vm6, %v5871_v8, %v2256_v18  ;;  %v5836_v23 = vld [vmem:[%s11805_s0 + $0x2c1] sm:$0x10]   ;;  %v8749_v53 = vpop.permute.xlu0 %919   ;;  %s6687_s11 = smov 58  }
  0xc0   :  { %599 = vst.msk [vmem:[#allocation0 - $0x80] ss:$72 sm:$0x18] %vm595_vm12, %v8372_v54   ;;  %v2081_v22 = vsel %vm13_vm2, %v5835_v21, %v2077_v20  ;;  %2261 = vrot.lane.b32.xlu0 %v2260_v0, %s6665_s21  ;;  %v5837_v28 = vld [vmem:[%s11805_s0 + $0x240] sm:$0x20]   ;;  %s6685_s21 = smov 53  }
  0xc1   :  { %601 = vst.msk [vmem:[#allocation0 + $0x100] ss:$-24 sm:$0x60] %vm595_vm12, %v8372_v54   ;;  %v2085_v27 = vsel %vm17_vm3, %v5836_v23, %v2081_v22  ;;  %v5838_v10 = vld [vmem:[%s11805_s0 + $0x3bf] sm:$0x40]   ;;  %s6689_s23 = smov 51  }
  0xc2   :  { %603 = vst.msk [vmem:[#allocation0 + $0xb1] sm:$0x80] %vm595_vm12, %v8372_v54   ;;  %v2089_v54 = vsel %vm21_vm4, %v5837_v28, %v2085_v27  ;;  %v5839_v30 = vld [vmem:[%s11805_s0 + $0x33e] sm:$0x80]   ;;  %v5896_v33 = vld [vmem:[%s11805_s0 + $0x16d] sm:$0x1]  }
  0xc3   :  { %556 = vst.msk [vmem:[#allocation0] ss:$72 sm:$0x3] %vm555_vm13, %v8380_v57   ;;  %v2093_v32 = vsel %vm25_vm5, %v5838_v10, %v2089_v54  ;;  %v5897_v34 = vld [vmem:[%s11805_s0 + $0xec] sm:$0x2]   ;;  %vm961_vm12 = vcmask 900952  }
  0xc4   :  { %558 = vst.msk [vmem:[#allocation0 + $0x60] ss:$-24 sm:$0xc] %vm555_vm13, %v8380_v57   ;;  %v2097_v14 = vsel %vm29_vm6, %v5839_v30, %v2093_v32  ;;  %v2398_v35 = vsel %vm5_vm0, %v5897_v34, %v5896_v33  ;;  %v5898_v36 = vld [vmem:[%s11805_s0 + $0x6b] sm:$0x4]   ;;  %s6693_s9 = smov 52  }
  0xc5   :  { %560 = vst.msk [vmem:[#allocation0 - $0xc0] ss:$72 sm:$0x30] %vm555_vm13, %v8380_v57   ;;  %2098 = vrot.lane.b32.xlu2 %v2097_v14, %s6666_s2  ;;  %v5899_v37 = vld [vmem:[%s11805_s0 + $0x1ea] sm:$0x8]   ;;  %s6690_s2 = smov 55  }
  0xc6   :  { %562 = vst.msk [vmem:[#allocation0 + $0x120] ss:$-24 sm:$0xc0] %vm555_vm13, %v8380_v57   ;;  %v2402_v57 = vsel %vm9_vm1, %v5898_v36, %v2398_v35  ;;  %v5900_v41 = vld [vmem:[%s11805_s0 + $0x369] sm:$0x10]   ;;  %vm921_vm13 = vcmask 909152  }
  0xc7   :  { %v2406_v40 = vsel %vm13_vm2, %v5899_v37, %v2402_v57  ;;  %v5901_v19 = vld [vmem:[%s11805_s0 + $0x2e8] sm:$0x20]   ;;  %v5888_v46 = vld [vmem:[%s11805_s0 + $0x18] sm:$0x1]   ;;  %v5856_v61 = vld [vmem:[%s11805_s0 + $0xc4] sm:$0x1]  }
  0xc8   :  { %v5902_v31 = vld [vmem:[%s11805_s0 + $0x267] sm:$0x40]   ;;  %v2410_v44 = vsel %vm17_vm3, %v5900_v41, %v2406_v40  ;;  %v5889_v42 = vld [vmem:[%s11805_s0 + $0x197] sm:$0x2]   ;;  %v5857_v63 = vld [vmem:[%s11805_s0 + $0x43] sm:$0x2]  }
  0xc9   :  { %v5903_v45 = vld [vmem:[%s11805_s0 + $0x3e6] sm:$0x80]   ;;  %v2414_v47 = vsel %vm21_vm4, %v5901_v19, %v2410_v44  ;;  %v2358_v25 = vsel %vm5_vm0, %v5889_v42, %v5888_v46  ;;  %v5890_v48 = vld [vmem:[%s11805_s0 + $0x116] sm:$0x4]   ;;  %v2195_v2 = vsel %vm5_vm0, %v5857_v63, %v5856_v61  ;;  %v5858_v3 = vld [vmem:[%s11805_s0 + $0x1c2] sm:$0x4]  }
  0xca   :  { %v5891_v49 = vld [vmem:[%s11805_s0 + $0x95] sm:$0x8]   ;;  %v2418_v51 = vsel %vm25_vm5, %v5902_v31, %v2414_v47  ;;  %v2362_v52 = vsel %vm9_vm1, %v5890_v48, %v2358_v25  ;;  %760 = vst.msk [vmem:[#allocation0 + $0x20] ss:$-24 sm:$0x3] %vm758_vm14, %v8489_v38   ;;  %s6695_s8 = smov 45  }
  0xcb   :  { %v5892_v50 = vld [vmem:[%s11805_s0 + $0x214] sm:$0x10]   ;;  %v2422_v59 = vsel %vm29_vm6, %v5903_v45, %v2418_v51  ;;  %v2366_v60 = vsel %vm13_vm2, %v5891_v49, %v2362_v52  ;;  %762 = vst.msk [vmem:[#allocation0 + $0x80] ss:$-24 sm:$0xc] %vm758_vm14, %v8489_v38   ;;  %s6698_s30 = smov 42  }
  0xcc   :  { %v5893_v55 = vld [vmem:[%s11805_s0 + $0x393] sm:$0x20]   ;;  %2423 = vrot.lane.b32.xlu1 %v2422_v59, %s6667_s4  ;;  %v2370_v62 = vsel %vm17_vm3, %v5892_v50, %v2366_v60  ;;  %764 = vst.msk [vmem:[#allocation0 + $0xe0] ss:$-24 sm:$0x30] %vm758_vm14, %v8489_v38   ;;  %v8858_v59 = vpop.permute.xlu2 %1122   ;;  %v8860_v60 = vpop.permute.xlu1 %1081   ;;  %s6702_s5 = smov 43  }
  0xcd   :  { %v5894_v56 = vld [vmem:[%s11805_s0 + $0x312] sm:$0x40]   ;;  %v2374_v1 = vsel %vm21_vm4, %v5893_v55, %v2370_v62  ;;  %766 = vst.msk [vmem:[#allocation0 + $0x140] ss:$-24 sm:$0xc0] %vm758_vm14, %v8489_v38   ;;  %v2199_v38 = vsel %vm9_vm1, %v5858_v3, %v2195_v2  ;;  %vm1124_vm14 = vcmask 868152  }
  0xce   :  { %v5895_v58 = vld [vmem:[%s11805_s0 + $0x291] sm:$0x80]   ;;  %v2378_v4 = vsel %vm25_vm5, %v5894_v56, %v2374_v1  ;;  %v5859_v5 = vld [vmem:[%s11805_s0 + $0x141] sm:$0x8]   ;;  %725 = vst.msk [vmem:[#allocation0 + $0xb1] sm:$0x80] %vm717_vm15, %v8491_v39   ;;  %v8874_v1 = vpop.permute.xlu0 %1041  }
  0xcf   :  { %v2382_v6 = vsel %vm29_vm6, %v5895_v58, %v2378_v4  ;;  %719 = vst.msk [vmem:[#allocation0 + $0x40] ss:$-24 sm:$0x7] %vm717_vm15, %v8491_v39   ;;  %v2203_v7 = vsel %vm13_vm2, %v5859_v5, %v2199_v38  ;;  %v5860_v8 = vld [vmem:[%s11805_s0 + $0x2c0] sm:$0x10]   ;;  %s6704_s16 = smov 36  }
  0xd0   :  { %2383 = vrot.lane.b32.xlu0 %v2382_v6, %s6668_s13  ;;  %721 = vst.msk [vmem:[#allocation0 - $0x80] ss:$72 sm:$0x18] %vm717_vm15, %v8491_v39   ;;  %v2207_v9 = vsel %vm17_vm3, %v5860_v8, %v2203_v7  ;;  %v5861_v11 = vld [vmem:[%s11805_s0 + $0x23f] sm:$0x20]   ;;  %s6707_s10 = smov 33  }
  0xd1   :  { %723 = vst.msk [vmem:[#allocation0 + $0x100] ss:$-24 sm:$0x60] %vm717_vm15, %v8491_v39   ;;  %v2211_v15 = vsel %vm21_vm4, %v5861_v11, %v2207_v9  ;;  %v5862_v16 = vld [vmem:[%s11805_s0 + $0x3be] sm:$0x40]   ;;  %vm1083_vm15 = vcmask 876352  }
  0xd2   :  { %v2215_v39 = vsel %vm25_vm5, %v5862_v16, %v2211_v15  ;;  %v5863_v17 = vld [vmem:[%s11805_s0 + $0x33d] sm:$0x80]   ;;  %v5920_v18 = vld [vmem:[%s11805_s0 + $0x16c] sm:$0x1]   ;;  %v5912_v14 = vld [vmem:[%s11805_s0 + $0x17] sm:$0x1]  }
  0xd3   :  { %678 = vst.msk [vmem:[#allocation0] ss:$72 sm:$0x3] %vm677_vm7, %v8505_v43   ;;  %v2219_v20 = vsel %vm29_vm6, %v5863_v17, %v2215_v39  ;;  %v5921_v21 = vld [vmem:[%s11805_s0 + $0xeb] sm:$0x2]   ;;  %s6711_s13 = smov 34  }
  0xd4   :  { %680 = vst.msk [vmem:[#allocation0 + $0x60] ss:$-24 sm:$0xc] %vm677_vm7, %v8505_v43   ;;  %2220 = vrot.lane.b32.xlu2 %v2219_v20, %s6669_s25  ;;  %v2520_v0 = vsel %vm5_vm0, %v5921_v21, %v5920_v18  ;;  %v5922_v22 = vld [vmem:[%s11805_s0 + $0x6a] sm:$0x4]   ;;  %s6670_s25 = smov 68  }
  0xd5   :  { %682 = vst.msk [vmem:[#allocation0 - $0xc0] ss:$72 sm:$0x30] %vm677_vm7, %v8505_v43   ;;  %v2524_v23 = vsel %vm9_vm1, %v5922_v22, %v2520_v0  ;;  %v5923_v27 = vld [vmem:[%s11805_s0 + $0x1e9] sm:$0x8]   ;;  %s6716_s17 = smov 24  }
  0xd6   :  { %684 = vst.msk [vmem:[#allocation0 + $0x120] ss:$-24 sm:$0xc0] %vm677_vm7, %v8505_v43   ;;  %v2528_v43 = vsel %vm13_vm2, %v5923_v27, %v2524_v23  ;;  %v5924_v28 = vld [vmem:[%s11805_s0 + $0x368] sm:$0x10]   ;;  %vm1043_vm7 = vcmask 884552  }
  0xd7   :  { %v2532_v54 = vsel %vm17_vm3, %v5924_v28, %v2528_v43  ;;  %v5925_v10 = vld [vmem:[%s11805_s0 + $0x2e7] sm:$0x20]   ;;  %v5913_v34 = vld [vmem:[%s11805_s0 + $0x196] sm:$0x2]   ;;  %847 = vst.msk [vmem:[#allocation0 + $0xb1] sm:$0x80] %vm839_vm9, %v8614_v26  }
  0xd8   :  { %v5926_v30 = vld [vmem:[%s11805_s0 + $0x266] sm:$0x40]   ;;  %v2536_v33 = vsel %vm21_vm4, %v5925_v10, %v2532_v54  ;;  %v5914_v35 = vld [vmem:[%s11805_s0 + $0x115] sm:$0x4]   ;;  %v2480_v57 = vsel %vm5_vm0, %v5913_v34, %v5912_v14  ;;  %v5880_v42 = vld [vmem:[%s11805_s0 + $0xc3] sm:$0x1]  }
  0xd9   :  { %v5927_v32 = vld [vmem:[%s11805_s0 + $0x3e5] sm:$0x80]   ;;  %v2540_v36 = vsel %vm25_vm5, %v5926_v30, %v2536_v33  ;;  %v5915_v37 = vld [vmem:[%s11805_s0 + $0x94] sm:$0x8]   ;;  %v2484_v31 = vsel %vm9_vm1, %v5914_v35, %v2480_v57  ;;  %v5881_v25 = vld [vmem:[%s11805_s0 + $0x42] sm:$0x2]  }
  0xda   :  { %v5916_v40 = vld [vmem:[%s11805_s0 + $0x213] sm:$0x10]   ;;  %v2544_v19 = vsel %vm29_vm6, %v5927_v32, %v2540_v36  ;;  %v2488_v46 = vsel %vm13_vm2, %v5915_v37, %v2484_v31  ;;  %882 = vst.msk [vmem:[#allocation0 + $0x20] ss:$-24 sm:$0x3] %vm880_vm8, %v8612_v24   ;;  %v2317_v49 = vsel %vm5_vm0, %v5881_v25, %v5880_v42  ;;  %v8991_v25 = vpop.permute.xlu0 %1163   ;;  %s6725_s26 = smov 15  }
  0xdb   :  { %v5917_v41 = vld [vmem:[%s11805_s0 + $0x392] sm:$0x20]   ;;  %2545 = vrot.lane.b32.xlu1 %v2544_v19, %s6670_s25  ;;  %v2492_v47 = vsel %vm17_vm3, %v5916_v40, %v2488_v46  ;;  %884 = vst.msk [vmem:[#allocation0 + $0x80] ss:$-24 sm:$0xc] %vm880_vm8, %v8612_v24   ;;  %v8983_v46 = vpop.permute.xlu1 %1203   ;;  %s6713_s25 = smov 27  }
  0xdc   :  { %v5918_v44 = vld [vmem:[%s11805_s0 + $0x311] sm:$0x40]   ;;  %v2496_v48 = vsel %vm21_vm4, %v5917_v41, %v2492_v47  ;;  %886 = vst.msk [vmem:[#allocation0 + $0xe0] ss:$-24 sm:$0x30] %vm880_vm8, %v8612_v24   ;;  %s6734_s4 = smov 6  }
  0xdd   :  { %v5919_v45 = vld [vmem:[%s11805_s0 + $0x290] sm:$0x80]   ;;  %v5882_v50 = vld [vmem:[%s11805_s0 + $0x1c1] sm:$0x4]   ;;  %v2500_v51 = vsel %vm25_vm5, %v5918_v44, %v2496_v48  ;;  %v5944_v38 = vld [vmem:[%s11805_s0 + $0x16b] sm:$0x1]  }
  0xde   :  { %888 = vst.msk [vmem:[#allocation0 + $0x140] ss:$-24 sm:$0xc0] %vm880_vm8, %v8612_v24   ;;  %v2321_v24 = vsel %vm9_vm1, %v5882_v50, %v2317_v49  ;;  %v5883_v52 = vld [vmem:[%s11805_s0 + $0x140] sm:$0x8]   ;;  %v2504_v55 = vsel %vm29_vm6, %v5919_v45, %v2500_v51  ;;  %v8981_v45 = vpop.permute.xlu2 %1244   ;;  %vm1246_vm8 = vcmask 843552  }
  0xdf   :  { %841 = vst.msk [vmem:[#allocation0 + $0x40] ss:$-24 sm:$0x7] %vm839_vm9, %v8614_v26   ;;  %v2325_v56 = vsel %vm13_vm2, %v5883_v52, %v2321_v24  ;;  %v5884_v58 = vld [vmem:[%s11805_s0 + $0x2bf] sm:$0x10]   ;;  %2505 = vrot.lane.b32.xlu0 %v2504_v55, %s6671_s6  ;;  %s6691_s6 = smov 47  }
  0xe0   :  { %843 = vst.msk [vmem:[#allocation0 - $0x80] ss:$72 sm:$0x18] %vm839_vm9, %v8614_v26   ;;  %v2329_v61 = vsel %vm17_vm3, %v5884_v58, %v2325_v56  ;;  %v5885_v62 = vld [vmem:[%s11805_s0 + $0x23e] sm:$0x20]  }
  0xe1   :  { %845 = vst.msk [vmem:[#allocation0 + $0x100] ss:$-24 sm:$0x60] %vm839_vm9, %v8614_v26   ;;  %v2333_v26 = vsel %vm21_vm4, %v5885_v62, %v2329_v61  ;;  %v5886_v63 = vld [vmem:[%s11805_s0 + $0x3bd] sm:$0x40]   ;;  %vm1205_vm9 = vcmask 851752  }
  0xe2   :  { %800 = vst.msk [vmem:[#allocation0] ss:$72 sm:$0x3] %vm799_vm10, %v8622_v29   ;;  %v2337_v2 = vsel %vm25_vm5, %v5886_v63, %v2333_v26  ;;  %v5887_v3 = vld [vmem:[%s11805_s0 + $0x33c] sm:$0x80]  }
  0xe3   :  { %802 = vst.msk [vmem:[#allocation0 + $0x60] ss:$-24 sm:$0xc] %vm799_vm10, %v8622_v29   ;;  %v2341_v4 = vsel %vm29_vm6, %v5887_v3, %v2337_v2  ;;  %v5945_v5 = vld [vmem:[%s11805_s0 + $0xea] sm:$0x2]  }
  0xe4   :  { %804 = vst.msk [vmem:[#allocation0 - $0xc0] ss:$72 sm:$0x30] %vm799_vm10, %v8622_v29   ;;  %2342 = vrot.lane.b32.xlu2 %v2341_v4, %s6672_s15  ;;  %v5946_v6 = vld [vmem:[%s11805_s0 + $0x69] sm:$0x4]   ;;  %s6692_s15 = smov 48  }
  0xe5   :  { %806 = vst.msk [vmem:[#allocation0 + $0x120] ss:$-24 sm:$0xc0] %vm799_vm10, %v8622_v29   ;;  %v2642_v29 = vsel %vm5_vm0, %v5945_v5, %v5944_v38  ;;  %v5947_v8 = vld [vmem:[%s11805_s0 + $0x1e8] sm:$0x8]   ;;  %vm1165_vm10 = vcmask 859952  }
  0xe6   :  { %v2646_v7 = vsel %vm9_vm1, %v5946_v6, %v2642_v29  ;;  %v5948_v9 = vld [vmem:[%s11805_s0 + $0x367] sm:$0x10]   ;;  %v5936_v17 = vld [vmem:[%s11805_s0 + $0x16] sm:$0x1]   ;;  %v5904_v14 = vld [vmem:[%s11805_s0 + $0xc2] sm:$0x1]  }
  0xe7   :  { %v5949_v11 = vld [vmem:[%s11805_s0 + $0x2e6] sm:$0x20]   ;;  %v2650_v15 = vsel %vm13_vm2, %v5947_v8, %v2646_v7  ;;  %v5937_v20 = vld [vmem:[%s11805_s0 + $0x195] sm:$0x2]   ;;  %v5905_v35 = vld [vmem:[%s11805_s0 + $0x41] sm:$0x2]  }
  0xe8   :  { %v5950_v16 = vld [vmem:[%s11805_s0 + $0x265] sm:$0x40]   ;;  %v2654_v18 = vsel %vm17_vm3, %v5948_v9, %v2650_v15  ;;  %v5938_v21 = vld [vmem:[%s11805_s0 + $0x114] sm:$0x4]   ;;  %v2602_v23 = vsel %vm5_vm0, %v5937_v20, %v5936_v17  ;;  %v5906_v57 = vld [vmem:[%s11805_s0 + $0x1c0] sm:$0x4]  }
  0xe9   :  { %v5951_v39 = vld [vmem:[%s11805_s0 + $0x3e4] sm:$0x80]   ;;  %v5939_v0 = vld [vmem:[%s11805_s0 + $0x93] sm:$0x8]   ;;  %v2658_v22 = vsel %vm21_vm4, %v5949_v11, %v2654_v18  ;;  %v2606_v10 = vsel %vm9_vm1, %v5938_v21, %v2602_v23  ;;  %v5907_v41 = vld [vmem:[%s11805_s0 + $0x13f] sm:$0x8]  }
  0xea   :  { %v5940_v27 = vld [vmem:[%s11805_s0 + $0x212] sm:$0x10]   ;;  %v2662_v54 = vsel %vm25_vm5, %v5950_v16, %v2658_v22  ;;  %1004 = vst.msk [vmem:[#allocation0 + $0x20] ss:$-24 sm:$0x3] %vm1002_vm11, %v8739_v12   ;;  %v2610_v33 = vsel %vm13_vm2, %v5939_v0, %v2606_v10 }
  0xeb   :  { %v5941_v43 = vld [vmem:[%s11805_s0 + $0x391] sm:$0x20]   ;;  %v2666_v32 = vsel %vm29_vm6, %v5951_v39, %v2662_v54  ;;  %1006 = vst.msk [vmem:[#allocation0 + $0x80] ss:$-24 sm:$0xc] %vm1002_vm11, %v8739_v12   ;;  %v2614_v34 = vsel %vm17_vm3, %v5940_v27, %v2610_v33 }
  0xec   :  { %v5942_v28 = vld [vmem:[%s11805_s0 + $0x310] sm:$0x40]   ;;  %2667 = vrot.lane.b32.xlu1 %v2666_v32, %s6673_s20  ;;  %1008 = vst.msk [vmem:[#allocation0 + $0xe0] ss:$-24 sm:$0x30] %vm1002_vm11, %v8739_v12   ;;  %v2618_v36 = vsel %vm21_vm4, %v5941_v43, %v2614_v34  ;;  %v9110_v34 = vpop.permute.xlu1 %1325   ;;  %s6696_s20 = smov 49  }
  0xed   :  { %v5943_v30 = vld [vmem:[%s11805_s0 + $0x28f] sm:$0x80]   ;;  %1010 = vst.msk [vmem:[#allocation0 + $0x140] ss:$-24 sm:$0xc0] %vm1002_vm11, %v8739_v12   ;;  %v2439_v12 = vsel %vm5_vm0, %v5905_v35, %v5904_v14  ;;  %v2622_v37 = vsel %vm25_vm5, %v5942_v28, %v2618_v36  ;;  %v9108_v14 = vpop.permute.xlu2 %1366   ;;  %vm1368_vm11 = vcmask 818952  }
  0xee   :  { %963 = vst.msk [vmem:[#allocation0 + $0x40] ss:$-24 sm:$0x7] %vm961_vm12, %v8741_v13   ;;  %v2443_v40 = vsel %vm9_vm1, %v5906_v57, %v2439_v12  ;;  %v2626_v19 = vsel %vm29_vm6, %v5943_v30, %v2622_v37  ;;  %v5908_v44 = vld [vmem:[%s11805_s0 + $0x2be] sm:$0x10]   ;;  %v9118_v12 = vpop.permute.xlu0 %1285  }
  0xef   :  { %965 = vst.msk [vmem:[#allocation0 - $0x80] ss:$72 sm:$0x18] %vm961_vm12, %v8741_v13   ;;  %v2447_v31 = vsel %vm13_vm2, %v5907_v41, %v2443_v40  ;;  %2627 = vrot.lane.b32.xlu0 %v2626_v19, %s6674_s28  ;;  %v5909_v47 = vld [vmem:[%s11805_s0 + $0x23d] sm:$0x20]   ;;  %s6694_s28 = smov 44  }
  0xf0   :  { %967 = vst.msk [vmem:[#allocation0 + $0x100] ss:$-24 sm:$0x60] %vm961_vm12, %v8741_v13   ;;  %v2451_v42 = vsel %vm17_vm3, %v5908_v44, %v2447_v31  ;;  %v5910_v48 = vld [vmem:[%s11805_s0 + $0x3bc] sm:$0x40]  }
  0xf1   :  { %969 = vst.msk [vmem:[#allocation0 + $0xb1] sm:$0x80] %vm961_vm12, %v8741_v13   ;;  %v2455_v13 = vsel %vm21_vm4, %v5909_v47, %v2451_v42  ;;  %v5911_v49 = vld [vmem:[%s11805_s0 + $0x33b] sm:$0x80]   ;;  %v5968_v51 = vld [vmem:[%s11805_s0 + $0x16a] sm:$0x1]  }
  0xf2   :  { %922 = vst.msk [vmem:[#allocation0] ss:$72 sm:$0x3] %vm921_vm13, %v8749_v53   ;;  %v2459_v50 = vsel %vm25_vm5, %v5910_v48, %v2455_v13  ;;  %v5969_v52 = vld [vmem:[%s11805_s0 + $0xe9] sm:$0x2]   ;;  %vm1327_vm12 = vcmask 827152  }
  0xf3   :  { %924 = vst.msk [vmem:[#allocation0 + $0x60] ss:$-24 sm:$0xc] %vm921_vm13, %v8749_v53   ;;  %v2463_v24 = vsel %vm29_vm6, %v5911_v49, %v2459_v50  ;;  %v2764_v55 = vsel %vm5_vm0, %v5969_v52, %v5968_v51  ;;  %v5970_v56 = vld [vmem:[%s11805_s0 + $0x68] sm:$0x4]  }
  0xf4   :  { %926 = vst.msk [vmem:[#allocation0 - $0xc0] ss:$72 sm:$0x30] %vm921_vm13, %v8749_v53   ;;  %2464 = vrot.lane.b32.xlu2 %v2463_v24, %s6675_s19  ;;  %v5971_v58 = vld [vmem:[%s11805_s0 + $0x1e7] sm:$0x8]   ;;  %s6699_s19 = smov 46  }
  0xf5   :  { %928 = vst.msk [vmem:[#allocation0 + $0x120] ss:$-24 sm:$0xc0] %vm921_vm13, %v8749_v53   ;;  %v2768_v53 = vsel %vm9_vm1, %v5970_v56, %v2764_v55  ;;  %v5972_v62 = vld [vmem:[%s11805_s0 + $0x366] sm:$0x10]   ;;  %vm1287_vm13 = vcmask 835352  }
  0xf6   :  { %v2772_v61 = vsel %vm13_vm2, %v5971_v58, %v2768_v53  ;;  %v5973_v26 = vld [vmem:[%s11805_s0 + $0x2e5] sm:$0x20]   ;;  %v5960_v4 = vld [vmem:[%s11805_s0 + $0x15] sm:$0x1]   ;;  %v5928_v20 = vld [vmem:[%s11805_s0 + $0xc1] sm:$0x1]  }
  0xf7   :  { %v5974_v63 = vld [vmem:[%s11805_s0 + $0x264] sm:$0x40]   ;;  %v2776_v2 = vsel %vm17_vm3, %v5972_v62, %v2772_v61  ;;  %v5961_v38 = vld [vmem:[%s11805_s0 + $0x194] sm:$0x2]   ;;  %v5929_v0 = vld [vmem:[%s11805_s0 + $0x40] sm:$0x2]  }
  0xf8   :  { %v5975_v3 = vld [vmem:[%s11805_s0 + $0x3e3] sm:$0x80]   ;;  %v2780_v5 = vsel %vm21_vm4, %v5973_v26, %v2776_v2  ;;  %v2724_v29 = vsel %vm5_vm0, %v5961_v38, %v5960_v4  ;;  %v5962_v6 = vld [vmem:[%s11805_s0 + $0x113] sm:$0x4]   ;;  %v2561_v23 = vsel %vm5_vm0, %v5929_v0, %v5928_v20  ;;  %v5930_v27 = vld [vmem:[%s11805_s0 + $0x1bf] sm:$0x4]  }
  0xf9   :  { %v5963_v7 = vld [vmem:[%s11805_s0 + $0x92] sm:$0x8]   ;;  %v2784_v9 = vsel %vm25_vm5, %v5974_v63, %v2780_v5  ;;  %v2728_v11 = vsel %vm9_vm1, %v5962_v6, %v2724_v29  ;;  %1126 = vst.msk [vmem:[#allocation0 + $0x20] ss:$-24 sm:$0x3] %vm1124_vm14, %v8858_v59  }
  0xfa   :  { %v5964_v8 = vld [vmem:[%s11805_s0 + $0x211] sm:$0x10]   ;;  %v2788_v17 = vsel %vm29_vm6, %v5975_v3, %v2784_v9  ;;  %v2732_v18 = vsel %vm13_vm2, %v5963_v7, %v2728_v11  ;;  %1128 = vst.msk [vmem:[#allocation0 + $0x80] ss:$-24 sm:$0xc] %vm1124_vm14, %v8858_v59  }
  0xfb   :  { %v5965_v15 = vld [vmem:[%s11805_s0 + $0x390] sm:$0x20]   ;;  %2789 = vrot.lane.b32.xlu1 %v2788_v17, %s6676_s12  ;;  %v2736_v21 = vsel %vm17_vm3, %v5964_v8, %v2732_v18  ;;  %1130 = vst.msk [vmem:[#allocation0 + $0xe0] ss:$-24 sm:$0x30] %vm1124_vm14, %v8858_v59   ;;  %v9227_v17 = vpop.permute.xlu2 %1488   ;;  %v9229_v18 = vpop.permute.xlu1 %1447  }
  0xfc   :  { %v5966_v16 = vld [vmem:[%s11805_s0 + $0x30f] sm:$0x40]   ;;  %v2740_v22 = vsel %vm21_vm4, %v5965_v15, %v2736_v21  ;;  %1132 = vst.msk [vmem:[#allocation0 + $0x140] ss:$-24 sm:$0xc0] %vm1124_vm14, %v8858_v59   ;;  %v2565_v59 = vsel %vm9_vm1, %v5930_v27, %v2561_v23  ;;  %vm1490_vm14 = vcmask 794352  }
  0xfd   :  { %v5967_v39 = vld [vmem:[%s11805_s0 + $0x28e] sm:$0x80]   ;;  %v2744_v43 = vsel %vm25_vm5, %v5966_v16, %v2740_v22  ;;  %v5931_v28 = vld [vmem:[%s11805_s0 + $0x13e] sm:$0x8]   ;;  %1091 = vst.msk [vmem:[#allocation0 + $0xb1] sm:$0x80] %vm1083_vm15, %v8860_v60   ;;  %v9243_v22 = vpop.permute.xlu0 %1407  }
  0xfe   :  { %v2748_v54 = vsel %vm29_vm6, %v5967_v39, %v2744_v43  ;;  %1085 = vst.msk [vmem:[#allocation0 + $0x40] ss:$-24 sm:$0x7] %vm1083_vm15, %v8860_v60   ;;  %v2569_v10 = vsel %vm13_vm2, %v5931_v28, %v2565_v59  ;;  %v5932_v30 = vld [vmem:[%s11805_s0 + $0x2bd] sm:$0x10]  }
  0xff   :  { %2749 = vrot.lane.b32.xlu0 %v2748_v54, %s6677_s22  ;;  %1087 = vst.msk [vmem:[#allocation0 - $0x80] ss:$72 sm:$0x18] %vm1083_vm15, %v8860_v60   ;;  %v2573_v32 = vsel %vm17_vm3, %v5932_v30, %v2569_v10  ;;  %v5933_v33 = vld [vmem:[%s11805_s0 + $0x23c] sm:$0x20]   ;;  %s6720_s22 = smov 25  }
 0x100   :  { %1089 = vst.msk [vmem:[#allocation0 + $0x100] ss:$-24 sm:$0x60] %vm1083_vm15, %v8860_v60   ;;  %v2577_v35 = vsel %vm21_vm4, %v5933_v33, %v2573_v32  ;;  %v5934_v36 = vld [vmem:[%s11805_s0 + $0x3bb] sm:$0x40]   ;;  %vm1449_vm15 = vcmask 802552  }
 0x101   :  { %v2581_v60 = vsel %vm25_vm5, %v5934_v36, %v2577_v35  ;;  %v5935_v57 = vld [vmem:[%s11805_s0 + $0x33a] sm:$0x80]   ;;  %v5992_v37 = vld [vmem:[%s11805_s0 + $0x169] sm:$0x1]   ;;  %v5984_v24 = vld [vmem:[%s11805_s0 + $0x14] sm:$0x1]  }
 0x102   :  { %1044 = vst.msk [vmem:[#allocation0] ss:$72 sm:$0x3] %vm1043_vm7, %v8874_v1   ;;  %v2585_v40 = vsel %vm29_vm6, %v5935_v57, %v2581_v60  ;;  %v5993_v41 = vld [vmem:[%s11805_s0 + $0xe8] sm:$0x2]  }
 0x103   :  { %1046 = vst.msk [vmem:[#allocation0 + $0x60] ss:$-24 sm:$0xc] %vm1043_vm7, %v8874_v1   ;;  %2586 = vrot.lane.b32.xlu2 %v2585_v40, %s6678_s3  ;;  %v2886_v19 = vsel %vm5_vm0, %v5993_v41, %v5992_v37  ;;  %v5994_v31 = vld [vmem:[%s11805_s0 + $0x67] sm:$0x4]   ;;  %s6679_s3 = smov 59  }
 0x104   :  { %1048 = vst.msk [vmem:[#allocation0 - $0xc0] ss:$72 sm:$0x30] %vm1043_vm7, %v8874_v1   ;;  %v2890_v44 = vsel %vm9_vm1, %v5994_v31, %v2886_v19  ;;  %v5995_v42 = vld [vmem:[%s11805_s0 + $0x1e6] sm:$0x8]  }
 0x105   :  { %1050 = vst.msk [vmem:[#allocation0 + $0x120] ss:$-24 sm:$0xc0] %vm1043_vm7, %v8874_v1   ;;  %v2894_v1 = vsel %vm13_vm2, %v5995_v42, %v2890_v44  ;;  %v5996_v47 = vld [vmem:[%s11805_s0 + $0x365] sm:$0x10]   ;;  %vm1409_vm7 = vcmask 810752  }
 0x106   :  { %v2898_v13 = vsel %vm17_vm3, %v5996_v47, %v2894_v1  ;;  %v5997_v48 = vld [vmem:[%s11805_s0 + $0x2e4] sm:$0x20]   ;;  %v5985_v52 = vld [vmem:[%s11805_s0 + $0x193] sm:$0x2]   ;;  %1213 = vst.msk [vmem:[#allocation0 + $0xb1] sm:$0x80] %vm1205_vm9, %v8983_v46  }
 0x107   :  { %v5998_v49 = vld [vmem:[%s11805_s0 + $0x263] sm:$0x40]   ;;  %v2902_v51 = vsel %vm21_vm4, %v5997_v48, %v2898_v13  ;;  %v5986_v55 = vld [vmem:[%s11805_s0 + $0x112] sm:$0x4]   ;;  %v2846_v53 = vsel %vm5_vm0, %v5985_v52, %v5984_v24  ;;  %v5952_v38 = vld [vmem:[%s11805_s0 + $0xc0] sm:$0x1]  }
 0x108   :  { %v5999_v50 = vld [vmem:[%s11805_s0 + $0x3e2] sm:$0x80]   ;;  %v2906_v56 = vsel %vm25_vm5, %v5998_v49, %v2902_v51  ;;  %v5987_v58 = vld [vmem:[%s11805_s0 + $0x91] sm:$0x8]   ;;  %v2850_v63 = vsel %vm9_vm1, %v5986_v55, %v2846_v53  ;;  %v5953_v29 = vld [vmem:[%s11805_s0 + $0x3f] sm:$0x2]  }
 0x109   :  { %v5988_v61 = vld [vmem:[%s11805_s0 + $0x210] sm:$0x10]   ;;  %v2910_v26 = vsel %vm29_vm6, %v5999_v50, %v2906_v56  ;;  %v2854_v4 = vsel %vm13_vm2, %v5987_v58, %v2850_v63  ;;  %1248 = vst.msk [vmem:[#allocation0 + $0x20] ss:$-24 sm:$0x3] %vm1246_vm8, %v8981_v45   ;;  %v2683_v7 = vsel %vm5_vm0, %v5953_v29, %v5952_v38  ;;  %v9360_v29 = vpop.permute.xlu0 %1529  }
 0x10a   :  { %v5989_v62 = vld [vmem:[%s11805_s0 + $0x38f] sm:$0x20]   ;;  %2911 = vrot.lane.b32.xlu1 %v2910_v26, %s6679_s3  ;;  %v2858_v5 = vsel %vm17_vm3, %v5988_v61, %v2854_v4  ;;  %1250 = vst.msk [vmem:[#allocation0 + $0x80] ss:$-24 sm:$0xc] %vm1246_vm8, %v8981_v45   ;;  %v9352_v4 = vpop.permute.xlu1 %1569   ;;  %s6722_s3 = smov 18  }
 0x10b   :  { %v5990_v2 = vld [vmem:[%s11805_s0 + $0x30e] sm:$0x40]   ;;  %v2862_v6 = vsel %vm21_vm4, %v5989_v62, %v2858_v5  ;;  %1252 = vst.msk [vmem:[#allocation0 + $0xe0] ss:$-24 sm:$0x30] %vm1246_vm8, %v8981_v45  }
 0x10c   :  { %v5991_v3 = vld [vmem:[%s11805_s0 + $0x28d] sm:$0x80]   ;;  %v5954_v8 = vld [vmem:[%s11805_s0 + $0x1be] sm:$0x4]   ;;  %v2866_v9 = vsel %vm25_vm5, %v5990_v2, %v2862_v6  ;;  %v6016_v59 = vld [vmem:[%s11805_s0 + $0x168] sm:$0x1]  }
 0x10d   :  { %1254 = vst.msk [vmem:[#allocation0 + $0x140] ss:$-24 sm:$0xc0] %vm1246_vm8, %v8981_v45   ;;  %v2687_v45 = vsel %vm9_vm1, %v5954_v8, %v2683_v7  ;;  %v5955_v11 = vld [vmem:[%s11805_s0 + $0x13d] sm:$0x8]   ;;  %v2870_v15 = vsel %vm29_vm6, %v5991_v3, %v2866_v9  ;;  %v9350_v3 = vpop.permute.xlu2 %1610   ;;  %vm1612_vm8 = vcmask 769752  }
 0x10e   :  { %1207 = vst.msk [vmem:[#allocation0 + $0x40] ss:$-24 sm:$0x7] %vm1205_vm9, %v8983_v46   ;;  %v2691_v16 = vsel %vm13_vm2, %v5955_v11, %v2687_v45  ;;  %v5956_v39 = vld [vmem:[%s11805_s0 + $0x2bc] sm:$0x10]   ;;  %2871 = vrot.lane.b32.xlu0 %v2870_v15, %s6680_s14  ;;  %s6700_s14 = smov 38  }
 0x10f   :  { %1209 = vst.msk [vmem:[#allocation0 - $0x80] ss:$72 sm:$0x18] %vm1205_vm9, %v8983_v46   ;;  %v2695_v20 = vsel %vm17_vm3, %v5956_v39, %v2691_v16  ;;  %v5957_v21 = vld [vmem:[%s11805_s0 + $0x23b] sm:$0x20]  }
 0x110   :  { %1211 = vst.msk [vmem:[#allocation0 + $0x100] ss:$-24 sm:$0x60] %vm1205_vm9, %v8983_v46   ;;  %v2699_v46 = vsel %vm21_vm4, %v5957_v21, %v2695_v20  ;;  %v5958_v0 = vld [vmem:[%s11805_s0 + $0x3ba] sm:$0x40]   ;;  %vm1571_vm9 = vcmask 777952  }
 0x111   :  { %1166 = vst.msk [vmem:[#allocation0] ss:$72 sm:$0x3] %vm1165_vm10, %v8991_v25   ;;  %v2703_v23 = vsel %vm25_vm5, %v5958_v0, %v2699_v46  ;;  %v5959_v27 = vld [vmem:[%s11805_s0 + $0x339] sm:$0x80]  }
 0x112   :  { %1168 = vst.msk [vmem:[#allocation0 + $0x60] ss:$-24 sm:$0xc] %vm1165_vm10, %v8991_v25   ;;  %v2707_v43 = vsel %vm29_vm6, %v5959_v27, %v2703_v23  ;;  %v6017_v28 = vld [vmem:[%s11805_s0 + $0xe7] sm:$0x2]  }
 0x113   :  { %1170 = vst.msk [vmem:[#allocation0 - $0xc0] ss:$72 sm:$0x30] %vm1165_vm10, %v8991_v25   ;;  %2708 = vrot.lane.b32.xlu2 %v2707_v43, %s6681_s24  ;;  %v6018_v54 = vld [vmem:[%s11805_s0 + $0x66] sm:$0x4]   ;;  %s6701_s24 = smov 39  }
 0x114   :  { %1172 = vst.msk [vmem:[#allocation0 + $0x120] ss:$-24 sm:$0xc0] %vm1165_vm10, %v8991_v25   ;;  %v3008_v25 = vsel %vm5_vm0, %v6017_v28, %v6016_v59  ;;  %v6019_v30 = vld [vmem:[%s11805_s0 + $0x1e5] sm:$0x8]   ;;  %vm1531_vm10 = vcmask 786152  }
 0x115   :  { %v3012_v10 = vsel %vm9_vm1, %v6018_v54, %v3008_v25  ;;  %v6020_v32 = vld [vmem:[%s11805_s0 + $0x364] sm:$0x10]   ;;  %v6008_v57 = vld [vmem:[%s11805_s0 + $0x13] sm:$0x1]   ;;  %v5976_v24 = vld [vmem:[%s11805_s0 + $0xbf] sm:$0x1]  }
 0x116   :  { %v6021_v33 = vld [vmem:[%s11805_s0 + $0x2e3] sm:$0x20]   ;;  %v3016_v35 = vsel %vm13_vm2, %v6019_v30, %v3012_v10  ;;  %v6009_v40 = vld [vmem:[%s11805_s0 + $0x192] sm:$0x2]   ;;  %v5977_v55 = vld [vmem:[%s11805_s0 + $0x3e] sm:$0x2]  }
 0x117   :  { %v6022_v36 = vld [vmem:[%s11805_s0 + $0x262] sm:$0x40]   ;;  %v3020_v37 = vsel %vm17_vm3, %v6020_v32, %v3016_v35  ;;  %v6010_v41 = vld [vmem:[%s11805_s0 + $0x111] sm:$0x4]   ;;  %v2968_v44 = vsel %vm5_vm0, %v6009_v40, %v6008_v57  ;;  %v5978_v53 = vld [vmem:[%s11805_s0 + $0x1bd] sm:$0x4]  }
 0x118   :  { %v6023_v60 = vld [vmem:[%s11805_s0 + $0x3e1] sm:$0x80]   ;;  %v6011_v19 = vld [vmem:[%s11805_s0 + $0x90] sm:$0x8]   ;;  %v3024_v31 = vsel %vm21_vm4, %v6021_v33, %v3020_v37  ;;  %v2972_v48 = vsel %vm9_vm1, %v6010_v41, %v2968_v44  ;;  %v5979_v62 = vld [vmem:[%s11805_s0 + $0x13c] sm:$0x8]  }
 0x119   :  { %v6012_v42 = vld [vmem:[%s11805_s0 + $0x20f] sm:$0x10]   ;;  %v3028_v13 = vsel %vm25_vm5, %v6022_v36, %v3024_v31  ;;  %1370 = vst.msk [vmem:[#allocation0 + $0x20] ss:$-24 sm:$0x3] %vm1368_vm11, %v9108_v14   ;;  %v2976_v51 = vsel %vm13_vm2, %v6011_v19, %v2972_v48 }
 0x11a   :  { %v6013_v1 = vld [vmem:[%s11805_s0 + $0x38e] sm:$0x20]   ;;  %v3032_v50 = vsel %vm29_vm6, %v6023_v60, %v3028_v13  ;;  %1372 = vst.msk [vmem:[#allocation0 + $0x80] ss:$-24 sm:$0xc] %vm1368_vm11, %v9108_v14   ;;  %v2980_v52 = vsel %vm17_vm3, %v6012_v42, %v2976_v51 }
 0x11b   :  { %v6014_v47 = vld [vmem:[%s11805_s0 + $0x30d] sm:$0x40]   ;;  %3033 = vrot.lane.b32.xlu1 %v3032_v50, %s6682_s27  ;;  %1374 = vst.msk [vmem:[#allocation0 + $0xe0] ss:$-24 sm:$0x30] %vm1368_vm11, %v9108_v14   ;;  %v2984_v56 = vsel %vm21_vm4, %v6013_v1, %v2980_v52  ;;  %v9479_v52 = vpop.permute.xlu1 %1691   ;;  %s6705_s27 = smov 40  }
 0x11c   :  { %v6015_v49 = vld [vmem:[%s11805_s0 + $0x28c] sm:$0x80]   ;;  %1376 = vst.msk [vmem:[#allocation0 + $0x140] ss:$-24 sm:$0xc0] %vm1368_vm11, %v9108_v14   ;;  %v2805_v14 = vsel %vm5_vm0, %v5977_v55, %v5976_v24  ;;  %v2988_v58 = vsel %vm25_vm5, %v6014_v47, %v2984_v56  ;;  %v9477_v24 = vpop.permute.xlu2 %1732   ;;  %vm1734_vm11 = vcmask 745152  }
 0x11d   :  { %1329 = vst.msk [vmem:[#allocation0 + $0x40] ss:$-24 sm:$0x7] %vm1327_vm12, %v9110_v34   ;;  %v2809_v61 = vsel %vm9_vm1, %v5978_v53, %v2805_v14  ;;  %v2992_v26 = vsel %vm29_vm6, %v6015_v49, %v2988_v58  ;;  %v5980_v2 = vld [vmem:[%s11805_s0 + $0x2bb] sm:$0x10]   ;;  %v9487_v14 = vpop.permute.xlu0 %1651  }
 0x11e   :  { %1331 = vst.msk [vmem:[#allocation0 - $0x80] ss:$72 sm:$0x18] %vm1327_vm12, %v9110_v34   ;;  %v2813_v63 = vsel %vm13_vm2, %v5979_v62, %v2809_v61  ;;  %2993 = vrot.lane.b32.xlu0 %v2992_v26, %s6683_s7  ;;  %v5981_v5 = vld [vmem:[%s11805_s0 + $0x23a] sm:$0x20]   ;;  %s6703_s7 = smov 35  }
 0x11f   :  { %1333 = vst.msk [vmem:[#allocation0 + $0x100] ss:$-24 sm:$0x60] %vm1327_vm12, %v9110_v34   ;;  %v2817_v38 = vsel %vm17_vm3, %v5980_v2, %v2813_v63  ;;  %v5982_v6 = vld [vmem:[%s11805_s0 + $0x3b9] sm:$0x40]  }
 0x120   :  { %1335 = vst.msk [vmem:[#allocation0 + $0xb1] sm:$0x80] %vm1327_vm12, %v9110_v34   ;;  %v2821_v34 = vsel %vm21_vm4, %v5981_v5, %v2817_v38  ;;  %v5983_v7 = vld [vmem:[%s11805_s0 + $0x338] sm:$0x80]   ;;  %v6040_v9 = vld [vmem:[%s11805_s0 + $0x167] sm:$0x1]  }
 0x121   :  { %1288 = vst.msk [vmem:[#allocation0] ss:$72 sm:$0x3] %vm1287_vm13, %v9118_v12   ;;  %v2825_v8 = vsel %vm25_vm5, %v5982_v6, %v2821_v34  ;;  %v6041_v11 = vld [vmem:[%s11805_s0 + $0xe6] sm:$0x2]   ;;  %vm1693_vm12 = vcmask 753352  }
 0x122   :  { %1290 = vst.msk [vmem:[#allocation0 + $0x60] ss:$-24 sm:$0xc] %vm1287_vm13, %v9118_v12   ;;  %v2829_v45 = vsel %vm29_vm6, %v5983_v7, %v2825_v8  ;;  %v3130_v15 = vsel %vm5_vm0, %v6041_v11, %v6040_v9  ;;  %v6042_v16 = vld [vmem:[%s11805_s0 + $0x65] sm:$0x4]  }
 0x123   :  { %1292 = vst.msk [vmem:[#allocation0 - $0xc0] ss:$72 sm:$0x30] %vm1287_vm13, %v9118_v12   ;;  %2830 = vrot.lane.b32.xlu2 %v2829_v45, %s6684_s18  ;;  %v6043_v39 = vld [vmem:[%s11805_s0 + $0x1e4] sm:$0x8]   ;;  %s6708_s18 = smov 37  }
 0x124   :  { %1294 = vst.msk [vmem:[#allocation0 + $0x120] ss:$-24 sm:$0xc0] %vm1287_vm13, %v9118_v12   ;;  %v3134_v12 = vsel %vm9_vm1, %v6042_v16, %v3130_v15  ;;  %v6044_v21 = vld [vmem:[%s11805_s0 + $0x363] sm:$0x10]   ;;  %vm1653_vm13 = vcmask 761552  }
 0x125   :  { %v3138_v20 = vsel %vm13_vm2, %v6043_v39, %v3134_v12  ;;  %v6045_v46 = vld [vmem:[%s11805_s0 + $0x2e2] sm:$0x20]   ;;  %v6032_v43 = vld [vmem:[%s11805_s0 + $0x12] sm:$0x1]   ;;  %v6000_v40 = vld [vmem:[%s11805_s0 + $0xbe] sm:$0x1]  }
 0x126   :  { %v6046_v0 = vld [vmem:[%s11805_s0 + $0x261] sm:$0x40]   ;;  %v3142_v23 = vsel %vm17_vm3, %v6044_v21, %v3138_v20  ;;  %v6033_v59 = vld [vmem:[%s11805_s0 + $0x191] sm:$0x2]   ;;  %v6001_v19 = vld [vmem:[%s11805_s0 + $0x3d] sm:$0x2]  }
 0x127   :  { %v6047_v27 = vld [vmem:[%s11805_s0 + $0x3e0] sm:$0x80]   ;;  %v3146_v28 = vsel %vm21_vm4, %v6045_v46, %v3142_v23  ;;  %v3090_v25 = vsel %vm5_vm0, %v6033_v59, %v6032_v43  ;;  %v6034_v54 = vld [vmem:[%s11805_s0 + $0x110] sm:$0x4]   ;;  %v2927_v44 = vsel %vm5_vm0, %v6001_v19, %v6000_v40  ;;  %v6002_v42 = vld [vmem:[%s11805_s0 + $0x1bc] sm:$0x4]  }
 0x128   :  { %v6035_v10 = vld [vmem:[%s11805_s0 + $0x8f] sm:$0x8]   ;;  %v3150_v32 = vsel %vm25_vm5, %v6046_v0, %v3146_v28  ;;  %v3094_v33 = vsel %vm9_vm1, %v6034_v54, %v3090_v25  ;;  %1492 = vst.msk [vmem:[#allocation0 + $0x20] ss:$-24 sm:$0x3] %vm1490_vm14, %v9227_v17  }
 0x129   :  { %v6036_v30 = vld [vmem:[%s11805_s0 + $0x20e] sm:$0x10]   ;;  %v3154_v57 = vsel %vm29_vm6, %v6047_v27, %v3150_v32  ;;  %v3098_v37 = vsel %vm13_vm2, %v6035_v10, %v3094_v33  ;;  %1494 = vst.msk [vmem:[#allocation0 + $0x80] ss:$-24 sm:$0xc] %vm1490_vm14, %v9227_v17  }
 0x12a   :  { %v6037_v35 = vld [vmem:[%s11805_s0 + $0x38d] sm:$0x20]   ;;  %3155 = vrot.lane.b32.xlu1 %v3154_v57, %s6685_s21  ;;  %v3102_v41 = vsel %vm17_vm3, %v6036_v30, %v3098_v37  ;;  %1496 = vst.msk [vmem:[#allocation0 + $0xe0] ss:$-24 sm:$0x30] %vm1490_vm14, %v9227_v17   ;;  %v9596_v57 = vpop.permute.xlu2 %1854   ;;  %v9598_v37 = vpop.permute.xlu1 %1813  }
 0x12b   :  { %v6038_v36 = vld [vmem:[%s11805_s0 + $0x30c] sm:$0x40]   ;;  %v3106_v31 = vsel %vm21_vm4, %v6037_v35, %v3102_v41  ;;  %1498 = vst.msk [vmem:[#allocation0 + $0x140] ss:$-24 sm:$0xc0] %vm1490_vm14, %v9227_v17   ;;  %v2931_v17 = vsel %vm9_vm1, %v6002_v42, %v2927_v44  ;;  %vm1856_vm14 = vcmask 720552  }
 0x12c   :  { %v6039_v60 = vld [vmem:[%s11805_s0 + $0x28b] sm:$0x80]   ;;  %v3110_v1 = vsel %vm25_vm5, %v6038_v36, %v3106_v31  ;;  %v6003_v47 = vld [vmem:[%s11805_s0 + $0x13b] sm:$0x8]   ;;  %1457 = vst.msk [vmem:[#allocation0 + $0xb1] sm:$0x80] %vm1449_vm15, %v9229_v18   ;;  %v9612_v31 = vpop.permute.xlu0 %1773  }
 0x12d   :  { %v3114_v13 = vsel %vm29_vm6, %v6039_v60, %v3110_v1  ;;  %1451 = vst.msk [vmem:[#allocation0 + $0x40] ss:$-24 sm:$0x7] %vm1449_vm15, %v9229_v18   ;;  %v2935_v48 = vsel %vm13_vm2, %v6003_v47, %v2931_v17  ;;  %v6004_v49 = vld [vmem:[%s11805_s0 + $0x2ba] sm:$0x10]  }
 0x12e   :  { %3115 = vrot.lane.b32.xlu0 %v3114_v13, %s6686_s29  ;;  %1453 = vst.msk [vmem:[#allocation0 - $0x80] ss:$72 sm:$0x18] %vm1449_vm15, %v9229_v18   ;;  %v2939_v50 = vsel %vm17_vm3, %v6004_v49, %v2935_v48  ;;  %v6005_v51 = vld [vmem:[%s11805_s0 + $0x239] sm:$0x20]   ;;  %s6729_s29 = smov 16  }
 0x12f   :  { %1455 = vst.msk [vmem:[#allocation0 + $0x100] ss:$-24 sm:$0x60] %vm1449_vm15, %v9229_v18   ;;  %v2943_v55 = vsel %vm21_vm4, %v6005_v51, %v2939_v50  ;;  %v6006_v56 = vld [vmem:[%s11805_s0 + $0x3b8] sm:$0x40]   ;;  %vm1815_vm15 = vcmask 728752  }
 0x130   :  { %v2947_v18 = vsel %vm25_vm5, %v6006_v56, %v2943_v55  ;;  %v6007_v53 = vld [vmem:[%s11805_s0 + $0x337] sm:$0x80]   ;;  %v6064_v58 = vld [vmem:[%s11805_s0 + $0x166] sm:$0x1]   ;;  %v6056_v45 = vld [vmem:[%s11805_s0 + $0x11] sm:$0x1]  }
 0x131   :  { %1410 = vst.msk [vmem:[#allocation0] ss:$72 sm:$0x3] %vm1409_vm7, %v9243_v22   ;;  %v2951_v61 = vsel %vm29_vm6, %v6007_v53, %v2947_v18  ;;  %v6065_v62 = vld [vmem:[%s11805_s0 + $0xe5] sm:$0x2]  }
 0x132   :  { %1412 = vst.msk [vmem:[#allocation0 + $0x60] ss:$-24 sm:$0xc] %vm1409_vm7, %v9243_v22   ;;  %2952 = vrot.lane.b32.xlu2 %v2951_v61, %s6687_s11  ;;  %v3252_v26 = vsel %vm5_vm0, %v6065_v62, %v6064_v58  ;;  %v6066_v63 = vld [vmem:[%s11805_s0 + $0x64] sm:$0x4]   ;;  %s6688_s11 = smov 50  }
 0x133   :  { %1414 = vst.msk [vmem:[#allocation0 - $0xc0] ss:$72 sm:$0x30] %vm1409_vm7, %v9243_v22   ;;  %v3256_v2 = vsel %vm9_vm1, %v6066_v63, %v3252_v26  ;;  %v6067_v38 = vld [vmem:[%s11805_s0 + $0x1e3] sm:$0x8]  }
 0x134   :  { %1416 = vst.msk [vmem:[#allocation0 + $0x120] ss:$-24 sm:$0xc0] %vm1409_vm7, %v9243_v22   ;;  %v3260_v22 = vsel %vm13_vm2, %v6067_v38, %v3256_v2  ;;  %v6068_v5 = vld [vmem:[%s11805_s0 + $0x362] sm:$0x10]   ;;  %vm1775_vm7 = vcmask 736952  }
 0x135   :  { %v3264_v34 = vsel %vm17_vm3, %v6068_v5, %v3260_v22  ;;  %v6069_v6 = vld [vmem:[%s11805_s0 + $0x2e1] sm:$0x20]   ;;  %v6057_v11 = vld [vmem:[%s11805_s0 + $0x190] sm:$0x2]   ;;  %1579 = vst.msk [vmem:[#allocation0 + $0xb1] sm:$0x80] %vm1571_vm9, %v9352_v4  }
 0x136   :  { %v6070_v7 = vld [vmem:[%s11805_s0 + $0x260] sm:$0x40]   ;;  %v3268_v9 = vsel %vm21_vm4, %v6069_v6, %v3264_v34  ;;  %v6058_v15 = vld [vmem:[%s11805_s0 + $0x10f] sm:$0x4]   ;;  %v3212_v12 = vsel %vm5_vm0, %v6057_v11, %v6056_v45  ;;  %v6024_v59 = vld [vmem:[%s11805_s0 + $0xbd] sm:$0x1]  }
 0x137   :  { %v6071_v8 = vld [vmem:[%s11805_s0 + $0x3df] sm:$0x80]   ;;  %v3272_v16 = vsel %vm25_vm5, %v6070_v7, %v3268_v9  ;;  %v6059_v39 = vld [vmem:[%s11805_s0 + $0x8e] sm:$0x8]   ;;  %v3216_v0 = vsel %vm9_vm1, %v6058_v15, %v3212_v12  ;;  %v6025_v25 = vld [vmem:[%s11805_s0 + $0x3c] sm:$0x2]  }
 0x138   :  { %v6060_v20 = vld [vmem:[%s11805_s0 + $0x20d] sm:$0x10]   ;;  %v3276_v46 = vsel %vm29_vm6, %v6071_v8, %v3272_v16  ;;  %v3220_v43 = vsel %vm13_vm2, %v6059_v39, %v3216_v0  ;;  %1614 = vst.msk [vmem:[#allocation0 + $0x20] ss:$-24 sm:$0x3] %vm1612_vm8, %v9350_v3   ;;  %v3049_v10 = vsel %vm5_vm0, %v6025_v25, %v6024_v59  ;;  %v9729_v25 = vpop.permute.xlu0 %1895  }
 0x139   :  { %v6061_v21 = vld [vmem:[%s11805_s0 + $0x38c] sm:$0x20]   ;;  %3277 = vrot.lane.b32.xlu1 %v3276_v46, %s6688_s11  ;;  %v3224_v28 = vsel %vm17_vm3, %v6060_v20, %v3220_v43  ;;  %1616 = vst.msk [vmem:[#allocation0 + $0x80] ss:$-24 sm:$0xc] %vm1612_vm8, %v9350_v3   ;;  %v9721_v43 = vpop.permute.xlu1 %1935   ;;  %s6731_s11 = smov 9  }
 0x13a   :  { %v6062_v23 = vld [vmem:[%s11805_s0 + $0x30b] sm:$0x40]   ;;  %v3228_v54 = vsel %vm21_vm4, %v6061_v21, %v3224_v28  ;;  %1618 = vst.msk [vmem:[#allocation0 + $0xe0] ss:$-24 sm:$0x30] %vm1612_vm8, %v9350_v3  }
 0x13b   :  { %v6063_v27 = vld [vmem:[%s11805_s0 + $0x28a] sm:$0x80]   ;;  %v6026_v30 = vld [vmem:[%s11805_s0 + $0x1bb] sm:$0x4]   ;;  %v3232_v32 = vsel %vm25_vm5, %v6062_v23, %v3228_v54  ;;  %v6088_v17 = vld [vmem:[%s11805_s0 + $0x165] sm:$0x1]  }
 0x13c   :  { %1620 = vst.msk [vmem:[#allocation0 + $0x140] ss:$-24 sm:$0xc0] %vm1612_vm8, %v9350_v3   ;;  %v3053_v3 = vsel %vm9_vm1, %v6026_v30, %v3049_v10  ;;  %v6027_v33 = vld [vmem:[%s11805_s0 + $0x13a] sm:$0x8]   ;;  %v3236_v35 = vsel %vm29_vm6, %v6063_v27, %v3232_v32  ;;  %v9719_v27 = vpop.permute.xlu2 %1976   ;;  %vm1978_vm8 = vcmask 695952  }
 0x13d   :  { %1573 = vst.msk [vmem:[#allocation0 + $0x40] ss:$-24 sm:$0x7] %vm1571_vm9, %v9352_v4   ;;  %v3057_v36 = vsel %vm13_vm2, %v6027_v33, %v3053_v3  ;;  %v6028_v60 = vld [vmem:[%s11805_s0 + $0x2b9] sm:$0x10]   ;;  %3237 = vrot.lane.b32.xlu0 %v3236_v35, %s6689_s23  ;;  %s6709_s23 = smov 29  }
 0x13e   :  { %1575 = vst.msk [vmem:[#allocation0 - $0x80] ss:$72 sm:$0x18] %vm1571_vm9, %v9352_v4   ;;  %v3061_v40 = vsel %vm17_vm3, %v6028_v60, %v3057_v36  ;;  %v6029_v41 = vld [vmem:[%s11805_s0 + $0x238] sm:$0x20]  }
 0x13f   :  { %1577 = vst.msk [vmem:[#allocation0 + $0x100] ss:$-24 sm:$0x60] %vm1571_vm9, %v9352_v4   ;;  %v3065_v4 = vsel %vm21_vm4, %v6029_v41, %v3061_v40  ;;  %v6030_v19 = vld [vmem:[%s11805_s0 + $0x3b7] sm:$0x40]   ;;  %vm1937_vm9 = vcmask 704152  }
 0x140   :  { %1532 = vst.msk [vmem:[#allocation0] ss:$72 sm:$0x3] %vm1531_vm10, %v9360_v29   ;;  %v3069_v44 = vsel %vm25_vm5, %v6030_v19, %v3065_v4  ;;  %v6031_v42 = vld [vmem:[%s11805_s0 + $0x336] sm:$0x80]  }
 0x141   :  { %1534 = vst.msk [vmem:[#allocation0 + $0x60] ss:$-24 sm:$0xc] %vm1531_vm10, %v9360_v29   ;;  %v3073_v1 = vsel %vm29_vm6, %v6031_v42, %v3069_v44  ;;  %v6089_v47 = vld [vmem:[%s11805_s0 + $0xe4] sm:$0x2]  }
 0x142   :  { %1536 = vst.msk [vmem:[#allocation0 - $0xc0] ss:$72 sm:$0x30] %vm1531_vm10, %v9360_v29   ;;  %3074 = vrot.lane.b32.xlu2 %v3073_v1, %s6690_s2  ;;  %v6090_v13 = vld [vmem:[%s11805_s0 + $0x63] sm:$0x4]   ;;  %s6710_s2 = smov 30  }
 0x143   :  { %1538 = vst.msk [vmem:[#allocation0 + $0x120] ss:$-24 sm:$0xc0] %vm1531_vm10, %v9360_v29   ;;  %v3374_v29 = vsel %vm5_vm0, %v6089_v47, %v6088_v17  ;;  %v6091_v49 = vld [vmem:[%s11805_s0 + $0x1e2] sm:$0x8]   ;;  %vm1897_vm10 = vcmask 712352  }
 0x144   :  { %v3378_v48 = vsel %vm9_vm1, %v6090_v13, %v3374_v29  ;;  %v6092_v50 = vld [vmem:[%s11805_s0 + $0x361] sm:$0x10]   ;;  %v6080_v53 = vld [vmem:[%s11805_s0 + $0x10] sm:$0x1]   ;;  %v6048_v45 = vld [vmem:[%s11805_s0 + $0xbc] sm:$0x1]  }
 0x145   :  { %v6093_v51 = vld [vmem:[%s11805_s0 + $0x2e0] sm:$0x20]   ;;  %v3382_v55 = vsel %vm13_vm2, %v6091_v49, %v3378_v48  ;;  %v6081_v61 = vld [vmem:[%s11805_s0 + $0x18f] sm:$0x2]   ;;  %v6049_v15 = vld [vmem:[%s11805_s0 + $0x3b] sm:$0x2]  }
 0x146   :  { %v6094_v56 = vld [vmem:[%s11805_s0 + $0x25f] sm:$0x40]   ;;  %v3386_v58 = vsel %vm17_vm3, %v6092_v50, %v3382_v55  ;;  %v6082_v62 = vld [vmem:[%s11805_s0 + $0x10e] sm:$0x4]   ;;  %v3334_v2 = vsel %vm5_vm0, %v6081_v61, %v6080_v53  ;;  %v6050_v12 = vld [vmem:[%s11805_s0 + $0x1ba] sm:$0x4]  }
 0x147   :  { %v6095_v18 = vld [vmem:[%s11805_s0 + $0x3de] sm:$0x80]   ;;  %v6083_v26 = vld [vmem:[%s11805_s0 + $0x8d] sm:$0x8]   ;;  %v3390_v63 = vsel %vm21_vm4, %v6093_v51, %v3386_v58  ;;  %v3338_v6 = vsel %vm9_vm1, %v6082_v62, %v3334_v2  ;;  %v6051_v21 = vld [vmem:[%s11805_s0 + $0x139] sm:$0x8]  }
 0x148   :  { %v6084_v38 = vld [vmem:[%s11805_s0 + $0x20c] sm:$0x10]   ;;  %v3394_v34 = vsel %vm25_vm5, %v6094_v56, %v3390_v63  ;;  %1736 = vst.msk [vmem:[#allocation0 + $0x20] ss:$-24 sm:$0x3] %vm1734_vm11, %v9477_v24   ;;  %v3342_v9 = vsel %vm13_vm2, %v6083_v26, %v3338_v6 }
 0x149   :  { %v6085_v22 = vld [vmem:[%s11805_s0 + $0x38b] sm:$0x20]   ;;  %v3398_v8 = vsel %vm29_vm6, %v6095_v18, %v3394_v34  ;;  %1738 = vst.msk [vmem:[#allocation0 + $0x80] ss:$-24 sm:$0xc] %vm1734_vm11, %v9477_v24   ;;  %v3346_v11 = vsel %vm17_vm3, %v6084_v38, %v3342_v9 }
 0x14a   :  { %v6086_v5 = vld [vmem:[%s11805_s0 + $0x30a] sm:$0x40]   ;;  %3399 = vrot.lane.b32.xlu1 %v3398_v8, %s6691_s6  ;;  %1740 = vst.msk [vmem:[#allocation0 + $0xe0] ss:$-24 sm:$0x30] %vm1734_vm11, %v9477_v24   ;;  %v3350_v16 = vsel %vm21_vm4, %v6085_v22, %v3346_v11  ;;  %v9848_v11 = vpop.permute.xlu1 %2057   ;;  %s6714_s6 = smov 31  }
 0x14b   :  { %v6087_v7 = vld [vmem:[%s11805_s0 + $0x289] sm:$0x80]   ;;  %1742 = vst.msk [vmem:[#allocation0 + $0x140] ss:$-24 sm:$0xc0] %vm1734_vm11, %v9477_v24   ;;  %v3171_v24 = vsel %vm5_vm0, %v6049_v15, %v6048_v45  ;;  %v3354_v39 = vsel %vm25_vm5, %v6086_v5, %v3350_v16  ;;  %v9846_v45 = vpop.permute.xlu2 %2098   ;;  %vm2100_vm11 = vcmask 671352  }
 0x14c   :  { %1695 = vst.msk [vmem:[#allocation0 + $0x40] ss:$-24 sm:$0x7] %vm1693_vm12, %v9479_v52   ;;  %v3175_v20 = vsel %vm9_vm1, %v6050_v12, %v3171_v24  ;;  %v3358_v46 = vsel %vm29_vm6, %v6087_v7, %v3354_v39  ;;  %v6052_v23 = vld [vmem:[%s11805_s0 + $0x2b8] sm:$0x10]   ;;  %v9856_v24 = vpop.permute.xlu0 %2017  }
 0x14d   :  { %1697 = vst.msk [vmem:[#allocation0 - $0x80] ss:$72 sm:$0x18] %vm1693_vm12, %v9479_v52   ;;  %v3179_v0 = vsel %vm13_vm2, %v6051_v21, %v3175_v20  ;;  %3359 = vrot.lane.b32.xlu0 %v3358_v46, %s6692_s15  ;;  %v6053_v28 = vld [vmem:[%s11805_s0 + $0x237] sm:$0x20]   ;;  %s6712_s15 = smov 26  }
 0x14e   :  { %1699 = vst.msk [vmem:[#allocation0 + $0x100] ss:$-24 sm:$0x60] %vm1693_vm12, %v9479_v52   ;;  %v3183_v59 = vsel %vm17_vm3, %v6052_v23, %v3179_v0  ;;  %v6054_v54 = vld [vmem:[%s11805_s0 + $0x3b6] sm:$0x40]  }
 0x14f   :  { %1701 = vst.msk [vmem:[#allocation0 + $0xb1] sm:$0x80] %vm1693_vm12, %v9479_v52   ;;  %v3187_v52 = vsel %vm21_vm4, %v6053_v28, %v3183_v59  ;;  %v6055_v10 = vld [vmem:[%s11805_s0 + $0x335] sm:$0x80]   ;;  %v6112_v32 = vld [vmem:[%s11805_s0 + $0x164] sm:$0x1]  }
 0x150   :  { %1654 = vst.msk [vmem:[#allocation0] ss:$72 sm:$0x3] %vm1653_vm13, %v9487_v14   ;;  %v3191_v30 = vsel %vm25_vm5, %v6054_v54, %v3187_v52  ;;  %v6113_v33 = vld [vmem:[%s11805_s0 + $0xe3] sm:$0x2]   ;;  %vm2059_vm12 = vcmask 679552  }
 0x151   :  { %1656 = vst.msk [vmem:[#allocation0 + $0x60] ss:$-24 sm:$0xc] %vm1653_vm13, %v9487_v14   ;;  %v3195_v3 = vsel %vm29_vm6, %v6055_v10, %v3191_v30  ;;  %v3496_v35 = vsel %vm5_vm0, %v6113_v33, %v6112_v32  ;;  %v6114_v36 = vld [vmem:[%s11805_s0 + $0x62] sm:$0x4]  }
 0x152   :  { %1658 = vst.msk [vmem:[#allocation0 - $0xc0] ss:$72 sm:$0x30] %vm1653_vm13, %v9487_v14   ;;  %3196 = vrot.lane.b32.xlu2 %v3195_v3, %s6693_s9  ;;  %v6115_v60 = vld [vmem:[%s11805_s0 + $0x1e1] sm:$0x8]   ;;  %s6717_s9 = smov 28  }
 0x153   :  { %1660 = vst.msk [vmem:[#allocation0 + $0x120] ss:$-24 sm:$0xc0] %vm1653_vm13, %v9487_v14   ;;  %v3500_v14 = vsel %vm9_vm1, %v6114_v36, %v3496_v35  ;;  %v6116_v41 = vld [vmem:[%s11805_s0 + $0x360] sm:$0x10]   ;;  %vm2019_vm13 = vcmask 687752  }
 0x154   :  { %v3504_v40 = vsel %vm13_vm2, %v6115_v60, %v3500_v14  ;;  %v6117_v4 = vld [vmem:[%s11805_s0 + $0x2df] sm:$0x20]   ;;  %v6104_v1 = vld [vmem:[%s11805_s0 + $0xf] sm:$0x1]   ;;  %v6072_v61 = vld [vmem:[%s11805_s0 + $0xbb] sm:$0x1]  }
 0x155   :  { %v6118_v19 = vld [vmem:[%s11805_s0 + $0x25e] sm:$0x40]   ;;  %v3508_v44 = vsel %vm17_vm3, %v6116_v41, %v3504_v40  ;;  %v6105_v17 = vld [vmem:[%s11805_s0 + $0x18e] sm:$0x2]   ;;  %v6073_v26 = vld [vmem:[%s11805_s0 + $0x3a] sm:$0x2]  }
 0x156   :  { %v6119_v42 = vld [vmem:[%s11805_s0 + $0x3dd] sm:$0x80]   ;;  %v3512_v47 = vsel %vm21_vm4, %v6117_v4, %v3508_v44  ;;  %v3456_v29 = vsel %vm5_vm0, %v6105_v17, %v6104_v1  ;;  %v6106_v13 = vld [vmem:[%s11805_s0 + $0x10d] sm:$0x4]   ;;  %v3293_v2 = vsel %vm5_vm0, %v6073_v26, %v6072_v61  ;;  %v6074_v38 = vld [vmem:[%s11805_s0 + $0x1b9] sm:$0x4]  }
 0x157   :  { %v6107_v48 = vld [vmem:[%s11805_s0 + $0x8c] sm:$0x8]   ;;  %v3516_v50 = vsel %vm25_vm5, %v6118_v19, %v3512_v47  ;;  %v3460_v51 = vsel %vm9_vm1, %v6106_v13, %v3456_v29  ;;  %1858 = vst.msk [vmem:[#allocation0 + $0x20] ss:$-24 sm:$0x3] %vm1856_vm14, %v9596_v57  }
 0x158   :  { %v6108_v49 = vld [vmem:[%s11805_s0 + $0x20b] sm:$0x10]   ;;  %v3520_v53 = vsel %vm29_vm6, %v6119_v42, %v3516_v50  ;;  %v3464_v58 = vsel %vm13_vm2, %v6107_v48, %v3460_v51  ;;  %1860 = vst.msk [vmem:[#allocation0 + $0x80] ss:$-24 sm:$0xc] %vm1856_vm14, %v9596_v57  }
 0x159   :  { %v6109_v55 = vld [vmem:[%s11805_s0 + $0x38a] sm:$0x20]   ;;  %3521 = vrot.lane.b32.xlu1 %v3520_v53, %s6694_s28  ;;  %v3468_v62 = vsel %vm17_vm3, %v6108_v49, %v3464_v58  ;;  %1862 = vst.msk [vmem:[#allocation0 + $0xe0] ss:$-24 sm:$0x30] %vm1856_vm14, %v9596_v57   ;;  %v9965_v53 = vpop.permute.xlu2 %2220   ;;  %v9967_v58 = vpop.permute.xlu1 %2179  }
 0x15a   :  { %v6110_v56 = vld [vmem:[%s11805_s0 + $0x309] sm:$0x40]   ;;  %v3472_v63 = vsel %vm21_vm4, %v6109_v55, %v3468_v62  ;;  %1864 = vst.msk [vmem:[#allocation0 + $0x140] ss:$-24 sm:$0xc0] %vm1856_vm14, %v9596_v57   ;;  %v3297_v57 = vsel %vm9_vm1, %v6074_v38, %v3293_v2  ;;  %vm2222_vm14 = vcmask 646752  }
 0x15b   :  { %v6111_v18 = vld [vmem:[%s11805_s0 + $0x288] sm:$0x80]   ;;  %v3476_v22 = vsel %vm25_vm5, %v6110_v56, %v3472_v63  ;;  %v6075_v5 = vld [vmem:[%s11805_s0 + $0x138] sm:$0x8]   ;;  %1823 = vst.msk [vmem:[#allocation0 + $0xb1] sm:$0x80] %vm1815_vm15, %v9598_v37   ;;  %v9981_v63 = vpop.permute.xlu0 %2139  }
 0x15c   :  { %v3480_v34 = vsel %vm29_vm6, %v6111_v18, %v3476_v22  ;;  %1817 = vst.msk [vmem:[#allocation0 + $0x40] ss:$-24 sm:$0x7] %vm1815_vm15, %v9598_v37   ;;  %v3301_v6 = vsel %vm13_vm2, %v6075_v5, %v3297_v57  ;;  %v6076_v7 = vld [vmem:[%s11805_s0 + $0x2b7] sm:$0x10]  }
 0x15d   :  { %3481 = vrot.lane.b32.xlu0 %v3480_v34, %s6695_s8  ;;  %1819 = vst.msk [vmem:[#allocation0 - $0x80] ss:$72 sm:$0x18] %vm1815_vm15, %v9598_v37   ;;  %v3305_v8 = vsel %vm17_vm3, %v6076_v7, %v3301_v6  ;;  %v6077_v9 = vld [vmem:[%s11805_s0 + $0x236] sm:$0x20]   ;;  %s6738_s8 = smov 7  }
 0x15e   :  { %1821 = vst.msk [vmem:[#allocation0 + $0x100] ss:$-24 sm:$0x60] %vm1815_vm15, %v9598_v37   ;;  %v3309_v15 = vsel %vm21_vm4, %v6077_v9, %v3305_v8  ;;  %v6078_v16 = vld [vmem:[%s11805_s0 + $0x3b5] sm:$0x40]   ;;  %vm2181_vm15 = vcmask 654952  }
 0x15f   :  { %v3313_v37 = vsel %vm25_vm5, %v6078_v16, %v3309_v15  ;;  %v6079_v12 = vld [vmem:[%s11805_s0 + $0x334] sm:$0x80]   ;;  %v6136_v39 = vld [vmem:[%s11805_s0 + $0x163] sm:$0x1]   ;;  %v6128_v3 = vld [vmem:[%s11805_s0 + $0xe] sm:$0x1]  }
 0x160   :  { %1776 = vst.msk [vmem:[#allocation0] ss:$72 sm:$0x3] %vm1775_vm7, %v9612_v31   ;;  %v3317_v20 = vsel %vm29_vm6, %v6079_v12, %v3313_v37  ;;  %v6137_v21 = vld [vmem:[%s11805_s0 + $0xe2] sm:$0x2]  }
 0x161   :  { %1778 = vst.msk [vmem:[#allocation0 + $0x60] ss:$-24 sm:$0xc] %vm1775_vm7, %v9612_v31   ;;  %3318 = vrot.lane.b32.xlu2 %v3317_v20, %s6696_s20  ;;  %v3618_v46 = vsel %vm5_vm0, %v6137_v21, %v6136_v39  ;;  %v6138_v0 = vld [vmem:[%s11805_s0 + $0x61] sm:$0x4]   ;;  %s6697_s20 = smov 41  }
 0x162   :  { %1780 = vst.msk [vmem:[#allocation0 - $0xc0] ss:$72 sm:$0x30] %vm1775_vm7, %v9612_v31   ;;  %v3622_v23 = vsel %vm9_vm1, %v6138_v0, %v3618_v46  ;;  %v6139_v59 = vld [vmem:[%s11805_s0 + $0x1e0] sm:$0x8]  }
 0x163   :  { %1782 = vst.msk [vmem:[#allocation0 + $0x120] ss:$-24 sm:$0xc0] %vm1775_vm7, %v9612_v31   ;;  %v3626_v31 = vsel %vm13_vm2, %v6139_v59, %v3622_v23  ;;  %v6140_v28 = vld [vmem:[%s11805_s0 + $0x35f] sm:$0x10]   ;;  %vm2141_vm7 = vcmask 663152  }
 0x164   :  { %v3630_v52 = vsel %vm17_vm3, %v6140_v28, %v3626_v31  ;;  %v6141_v54 = vld [vmem:[%s11805_s0 + $0x2de] sm:$0x20]   ;;  %v6129_v33 = vld [vmem:[%s11805_s0 + $0x18d] sm:$0x2]   ;;  %1945 = vst.msk [vmem:[#allocation0 + $0xb1] sm:$0x80] %vm1937_vm9, %v9721_v43  }
 0x165   :  { %v6142_v10 = vld [vmem:[%s11805_s0 + $0x25d] sm:$0x40]   ;;  %v3634_v32 = vsel %vm21_vm4, %v6141_v54, %v3630_v52  ;;  %v6130_v35 = vld [vmem:[%s11805_s0 + $0x10c] sm:$0x4]   ;;  %v3578_v14 = vsel %vm5_vm0, %v6129_v33, %v6128_v3  ;;  %v6096_v17 = vld [vmem:[%s11805_s0 + $0xba] sm:$0x1]  }
 0x166   :  { %v6143_v30 = vld [vmem:[%s11805_s0 + $0x3dc] sm:$0x80]   ;;  %v3638_v36 = vsel %vm25_vm5, %v6142_v10, %v3634_v32  ;;  %v6131_v60 = vld [vmem:[%s11805_s0 + $0x8b] sm:$0x8]   ;;  %v3582_v19 = vsel %vm9_vm1, %v6130_v35, %v3578_v14  ;;  %v6097_v29 = vld [vmem:[%s11805_s0 + $0x39] sm:$0x2]  }
 0x167   :  { %v6132_v40 = vld [vmem:[%s11805_s0 + $0x20a] sm:$0x10]   ;;  %v3642_v4 = vsel %vm29_vm6, %v6143_v30, %v3638_v36  ;;  %v3586_v1 = vsel %vm13_vm2, %v6131_v60, %v3582_v19  ;;  %1980 = vst.msk [vmem:[#allocation0 + $0x20] ss:$-24 sm:$0x3] %vm1978_vm8, %v9719_v27   ;;  %v3415_v48 = vsel %vm5_vm0, %v6097_v29, %v6096_v17  ;;  %v10098_v29 = vpop.permute.xlu0 %2261  }
 0x168   :  { %v6133_v41 = vld [vmem:[%s11805_s0 + $0x389] sm:$0x20]   ;;  %3643 = vrot.lane.b32.xlu1 %v3642_v4, %s6697_s20  ;;  %v3590_v47 = vsel %vm17_vm3, %v6132_v40, %v3586_v1  ;;  %1982 = vst.msk [vmem:[#allocation0 + $0x80] ss:$-24 sm:$0xc] %vm1978_vm8, %v9719_v27   ;;  %v10090_v1 = vpop.permute.xlu1 %2301  }
 0x169   :  { %v6134_v44 = vld [vmem:[%s11805_s0 + $0x308] sm:$0x40]   ;;  %v3594_v13 = vsel %vm21_vm4, %v6133_v41, %v3590_v47  ;;  %1984 = vst.msk [vmem:[#allocation0 + $0xe0] ss:$-24 sm:$0x30] %vm1978_vm8, %v9719_v27  }
 0x16a   :  { %v6135_v42 = vld [vmem:[%s11805_s0 + $0x287] sm:$0x80]   ;;  %v6098_v49 = vld [vmem:[%s11805_s0 + $0x1b8] sm:$0x4]   ;;  %v3598_v50 = vsel %vm25_vm5, %v6134_v44, %v3594_v13  ;;  %v6160_v57 = vld [vmem:[%s11805_s0 + $0x162] sm:$0x1]  }
 0x16b   :  { %1986 = vst.msk [vmem:[#allocation0 + $0x140] ss:$-24 sm:$0xc0] %vm1978_vm8, %v9719_v27   ;;  %v3419_v27 = vsel %vm9_vm1, %v6098_v49, %v3415_v48  ;;  %v6099_v51 = vld [vmem:[%s11805_s0 + $0x137] sm:$0x8]   ;;  %v3602_v55 = vsel %vm29_vm6, %v6135_v42, %v3598_v50  ;;  %v10088_v42 = vpop.permute.xlu2 %2342   ;;  %vm2344_vm8 = vcmask 622152  }
 0x16c   :  { %1939 = vst.msk [vmem:[#allocation0 + $0x40] ss:$-24 sm:$0x7] %vm1937_vm9, %v9721_v43   ;;  %v3423_v56 = vsel %vm13_vm2, %v6099_v51, %v3419_v27  ;;  %v6100_v18 = vld [vmem:[%s11805_s0 + $0x2b6] sm:$0x10]   ;;  %3603 = vrot.lane.b32.xlu0 %v3602_v55, %s6698_s30  ;;  %s6718_s30 = smov 20  }
 0x16d   :  { %1941 = vst.msk [vmem:[#allocation0 - $0x80] ss:$72 sm:$0x18] %vm1937_vm9, %v9721_v43   ;;  %v3427_v61 = vsel %vm17_vm3, %v6100_v18, %v3423_v56  ;;  %v6101_v62 = vld [vmem:[%s11805_s0 + $0x235] sm:$0x20]  }
 0x16e   :  { %1943 = vst.msk [vmem:[#allocation0 + $0x100] ss:$-24 sm:$0x60] %vm1937_vm9, %v9721_v43   ;;  %v3431_v43 = vsel %vm21_vm4, %v6101_v62, %v3427_v61  ;;  %v6102_v26 = vld [vmem:[%s11805_s0 + $0x3b4] sm:$0x40]   ;;  %vm2303_vm9 = vcmask 630352  }
 0x16f   :  { %1898 = vst.msk [vmem:[#allocation0] ss:$72 sm:$0x3] %vm1897_vm10, %v9729_v25   ;;  %v3435_v2 = vsel %vm25_vm5, %v6102_v26, %v3431_v43  ;;  %v6103_v38 = vld [vmem:[%s11805_s0 + $0x333] sm:$0x80]  }
 0x170   :  { %1900 = vst.msk [vmem:[#allocation0 + $0x60] ss:$-24 sm:$0xc] %vm1897_vm10, %v9729_v25   ;;  %v3439_v22 = vsel %vm29_vm6, %v6103_v38, %v3435_v2  ;;  %v6161_v5 = vld [vmem:[%s11805_s0 + $0xe1] sm:$0x2]  }
 0x171   :  { %1902 = vst.msk [vmem:[#allocation0 - $0xc0] ss:$72 sm:$0x30] %vm1897_vm10, %v9729_v25   ;;  %3440 = vrot.lane.b32.xlu2 %v3439_v22, %s6699_s19  ;;  %v6162_v34 = vld [vmem:[%s11805_s0 + $0x60] sm:$0x4]   ;;  %s6719_s19 = smov 21  }
 0x172   :  { %1904 = vst.msk [vmem:[#allocation0 + $0x120] ss:$-24 sm:$0xc0] %vm1897_vm10, %v9729_v25   ;;  %v3740_v25 = vsel %vm5_vm0, %v6161_v5, %v6160_v57  ;;  %v6163_v7 = vld [vmem:[%s11805_s0 + $0x1df] sm:$0x8]   ;;  %vm2263_vm10 = vcmask 638552  }
 0x173   :  { %v3744_v6 = vsel %vm9_vm1, %v6162_v34, %v3740_v25  ;;  %v6164_v8 = vld [vmem:[%s11805_s0 + $0x35e] sm:$0x10]   ;;  %v6152_v12 = vld [vmem:[%s11805_s0 + $0xd] sm:$0x1]   ;;  %v6120_v3 = vld [vmem:[%s11805_s0 + $0xb9] sm:$0x1]  }
 0x174   :  { %v6165_v9 = vld [vmem:[%s11805_s0 + $0x2dd] sm:$0x20]   ;;  %v3748_v15 = vsel %vm13_vm2, %v6163_v7, %v3744_v6  ;;  %v6153_v20 = vld [vmem:[%s11805_s0 + $0x18c] sm:$0x2]   ;;  %v6121_v35 = vld [vmem:[%s11805_s0 + $0x38] sm:$0x2]  }
 0x175   :  { %v6166_v16 = vld [vmem:[%s11805_s0 + $0x25c] sm:$0x40]   ;;  %v3752_v39 = vsel %vm17_vm3, %v6164_v8, %v3748_v15  ;;  %v6154_v21 = vld [vmem:[%s11805_s0 + $0x10b] sm:$0x4]   ;;  %v3700_v23 = vsel %vm5_vm0, %v6153_v20, %v6152_v12  ;;  %v6122_v14 = vld [vmem:[%s11805_s0 + $0x1b7] sm:$0x4]  }
 0x176   :  { %v6167_v37 = vld [vmem:[%s11805_s0 + $0x3db] sm:$0x80]   ;;  %v6155_v46 = vld [vmem:[%s11805_s0 + $0x8a] sm:$0x8]   ;;  %v3756_v0 = vsel %vm21_vm4, %v6165_v9, %v3752_v39  ;;  %v3704_v54 = vsel %vm9_vm1, %v6154_v21, %v3700_v23  ;;  %v6123_v41 = vld [vmem:[%s11805_s0 + $0x136] sm:$0x8]  }
 0x177   :  { %v6156_v59 = vld [vmem:[%s11805_s0 + $0x209] sm:$0x10]   ;;  %v3760_v52 = vsel %vm25_vm5, %v6166_v16, %v3756_v0  ;;  %2102 = vst.msk [vmem:[#allocation0 + $0x20] ss:$-24 sm:$0x3] %vm2100_vm11, %v9846_v45   ;;  %v3708_v32 = vsel %vm13_vm2, %v6155_v46, %v3704_v54 }
 0x178   :  { %v6157_v31 = vld [vmem:[%s11805_s0 + $0x388] sm:$0x20]   ;;  %v3764_v30 = vsel %vm29_vm6, %v6167_v37, %v3760_v52  ;;  %2104 = vst.msk [vmem:[#allocation0 + $0x80] ss:$-24 sm:$0xc] %vm2100_vm11, %v9846_v45   ;;  %v3712_v33 = vsel %vm17_vm3, %v6156_v59, %v3708_v32 }
 0x179   :  { %v6158_v28 = vld [vmem:[%s11805_s0 + $0x307] sm:$0x40]   ;;  %3765 = vrot.lane.b32.xlu1 %v3764_v30, %s6700_s14  ;;  %2106 = vst.msk [vmem:[#allocation0 + $0xe0] ss:$-24 sm:$0x30] %vm2100_vm11, %v9846_v45   ;;  %v3716_v36 = vsel %vm21_vm4, %v6157_v31, %v3712_v33  ;;  %v10217_v33 = vpop.permute.xlu1 %2423   ;;  %s6723_s14 = smov 22  }
 0x17a   :  { %v6159_v10 = vld [vmem:[%s11805_s0 + $0x286] sm:$0x80]   ;;  %2108 = vst.msk [vmem:[#allocation0 + $0x140] ss:$-24 sm:$0xc0] %vm2100_vm11, %v9846_v45   ;;  %v3537_v45 = vsel %vm5_vm0, %v6121_v35, %v6120_v3  ;;  %v3720_v60 = vsel %vm25_vm5, %v6158_v28, %v3716_v36  ;;  %v10215_v3 = vpop.permute.xlu2 %2464   ;;  %vm2466_vm11 = vcmask 597552  }
 0x17b   :  { %2061 = vst.msk [vmem:[#allocation0 + $0x40] ss:$-24 sm:$0x7] %vm2059_vm12, %v9848_v11   ;;  %v3541_v40 = vsel %vm9_vm1, %v6122_v14, %v3537_v45  ;;  %v3724_v4 = vsel %vm29_vm6, %v6159_v10, %v3720_v60  ;;  %v6124_v44 = vld [vmem:[%s11805_s0 + $0x2b5] sm:$0x10]   ;;  %v10225_v45 = vpop.permute.xlu0 %2383  }
 0x17c   :  { %2063 = vst.msk [vmem:[#allocation0 - $0x80] ss:$72 sm:$0x18] %vm2059_vm12, %v9848_v11   ;;  %v3545_v19 = vsel %vm13_vm2, %v6123_v41, %v3541_v40  ;;  %3725 = vrot.lane.b32.xlu0 %v3724_v4, %s6701_s24  ;;  %v6125_v47 = vld [vmem:[%s11805_s0 + $0x234] sm:$0x20]   ;;  %s6721_s24 = smov 17  }
 0x17d   :  { %2065 = vst.msk [vmem:[#allocation0 + $0x100] ss:$-24 sm:$0x60] %vm2059_vm12, %v9848_v11   ;;  %v3549_v17 = vsel %vm17_vm3, %v6124_v44, %v3545_v19  ;;  %v6126_v13 = vld [vmem:[%s11805_s0 + $0x3b3] sm:$0x40]  }
 0x17e   :  { %2067 = vst.msk [vmem:[#allocation0 + $0xb1] sm:$0x80] %vm2059_vm12, %v9848_v11   ;;  %v3553_v11 = vsel %vm21_vm4, %v6125_v47, %v3549_v17  ;;  %v6127_v48 = vld [vmem:[%s11805_s0 + $0x332] sm:$0x80]   ;;  %v6184_v50 = vld [vmem:[%s11805_s0 + $0x161] sm:$0x1]  }
 0x17f   :  { %2020 = vst.msk [vmem:[#allocation0] ss:$72 sm:$0x3] %vm2019_vm13, %v9856_v24   ;;  %v3557_v49 = vsel %vm25_vm5, %v6126_v13, %v3553_v11  ;;  %v6185_v51 = vld [vmem:[%s11805_s0 + $0xe0] sm:$0x2]   ;;  %vm2425_vm12 = vcmask 605752  }
 0x180   :  { %2022 = vst.msk [vmem:[#allocation0 + $0x60] ss:$-24 sm:$0xc] %vm2019_vm13, %v9856_v24   ;;  %v3561_v27 = vsel %vm29_vm6, %v6127_v48, %v3557_v49  ;;  %v3862_v55 = vsel %vm5_vm0, %v6185_v51, %v6184_v50  ;;  %v6186_v56 = vld [vmem:[%s11805_s0 + $0x5f] sm:$0x4]  }
 0x181   :  { %2024 = vst.msk [vmem:[#allocation0 - $0xc0] ss:$72 sm:$0x30] %vm2019_vm13, %v9856_v24   ;;  %3562 = vrot.lane.b32.xlu2 %v3561_v27, %s6702_s5  ;;  %v6187_v18 = vld [vmem:[%s11805_s0 + $0x1de] sm:$0x8]   ;;  %s6726_s5 = smov 19  }
 0x182   :  { %2026 = vst.msk [vmem:[#allocation0 + $0x120] ss:$-24 sm:$0xc0] %vm2019_vm13, %v9856_v24   ;;  %v3866_v24 = vsel %vm9_vm1, %v6186_v56, %v3862_v55  ;;  %v6188_v62 = vld [vmem:[%s11805_s0 + $0x35d] sm:$0x10]   ;;  %vm2385_vm13 = vcmask 613952  }
 0x183   :  { %v3870_v61 = vsel %vm13_vm2, %v6187_v18, %v3866_v24  ;;  %v6189_v43 = vld [vmem:[%s11805_s0 + $0x2dc] sm:$0x20]   ;;  %v6176_v22 = vld [vmem:[%s11805_s0 + $0xc] sm:$0x1]   ;;  %v6144_v20 = vld [vmem:[%s11805_s0 + $0xb8] sm:$0x1]  }
 0x184   :  { %v6190_v26 = vld [vmem:[%s11805_s0 + $0x25b] sm:$0x40]   ;;  %v3874_v2 = vsel %vm17_vm3, %v6188_v62, %v3870_v61  ;;  %v6177_v57 = vld [vmem:[%s11805_s0 + $0x18b] sm:$0x2]   ;;  %v6145_v46 = vld [vmem:[%s11805_s0 + $0x37] sm:$0x2]  }
 0x185   :  { %v6191_v38 = vld [vmem:[%s11805_s0 + $0x3da] sm:$0x80]   ;;  %v3878_v5 = vsel %vm21_vm4, %v6189_v43, %v3874_v2  ;;  %v3822_v25 = vsel %vm5_vm0, %v6177_v57, %v6176_v22  ;;  %v6178_v34 = vld [vmem:[%s11805_s0 + $0x10a] sm:$0x4]   ;;  %v3659_v23 = vsel %vm5_vm0, %v6145_v46, %v6144_v20  ;;  %v6146_v59 = vld [vmem:[%s11805_s0 + $0x1b6] sm:$0x4]  }
 0x186   :  { %v6179_v6 = vld [vmem:[%s11805_s0 + $0x89] sm:$0x8]   ;;  %v3882_v8 = vsel %vm25_vm5, %v6190_v26, %v3878_v5  ;;  %v3826_v9 = vsel %vm9_vm1, %v6178_v34, %v3822_v25  ;;  %2224 = vst.msk [vmem:[#allocation0 + $0x20] ss:$-24 sm:$0x3] %vm2222_vm14, %v9965_v53  }
 0x187   :  { %v6180_v7 = vld [vmem:[%s11805_s0 + $0x208] sm:$0x10]   ;;  %v3886_v12 = vsel %vm29_vm6, %v6191_v38, %v3882_v8  ;;  %v3830_v39 = vsel %vm13_vm2, %v6179_v6, %v3826_v9  ;;  %2226 = vst.msk [vmem:[#allocation0 + $0x80] ss:$-24 sm:$0xc] %vm2222_vm14, %v9965_v53  }
 0x188   :  { %v6181_v15 = vld [vmem:[%s11805_s0 + $0x387] sm:$0x20]   ;;  %3887 = vrot.lane.b32.xlu1 %v3886_v12, %s6703_s7  ;;  %v3834_v21 = vsel %vm17_vm3, %v6180_v7, %v3830_v39  ;;  %2228 = vst.msk [vmem:[#allocation0 + $0xe0] ss:$-24 sm:$0x30] %vm2222_vm14, %v9965_v53   ;;  %v10334_v12 = vpop.permute.xlu2 %2586   ;;  %v10336_v39 = vpop.permute.xlu1 %2545  }
 0x189   :  { %v6182_v16 = vld [vmem:[%s11805_s0 + $0x306] sm:$0x40]   ;;  %v3838_v0 = vsel %vm21_vm4, %v6181_v15, %v3834_v21  ;;  %2230 = vst.msk [vmem:[#allocation0 + $0x140] ss:$-24 sm:$0xc0] %vm2222_vm14, %v9965_v53   ;;  %v3663_v53 = vsel %vm9_vm1, %v6146_v59, %v3659_v23  ;;  %vm2588_vm14 = vcmask 572952  }
 0x18a   :  { %v6183_v37 = vld [vmem:[%s11805_s0 + $0x285] sm:$0x80]   ;;  %v3842_v31 = vsel %vm25_vm5, %v6182_v16, %v3838_v0  ;;  %v6147_v28 = vld [vmem:[%s11805_s0 + $0x135] sm:$0x8]   ;;  %2189 = vst.msk [vmem:[#allocation0 + $0xb1] sm:$0x80] %vm2181_vm15, %v9967_v58   ;;  %v10350_v0 = vpop.permute.xlu0 %2505  }
 0x18b   :  { %v3846_v52 = vsel %vm29_vm6, %v6183_v37, %v3842_v31  ;;  %2183 = vst.msk [vmem:[#allocation0 + $0x40] ss:$-24 sm:$0x7] %vm2181_vm15, %v9967_v58   ;;  %v3667_v54 = vsel %vm13_vm2, %v6147_v28, %v3663_v53  ;;  %v6148_v10 = vld [vmem:[%s11805_s0 + $0x2b4] sm:$0x10]  }
 0x18c   :  { %3847 = vrot.lane.b32.xlu0 %v3846_v52, %s6704_s16  ;;  %2185 = vst.msk [vmem:[#allocation0 - $0x80] ss:$72 sm:$0x18] %vm2181_vm15, %v9967_v58   ;;  %v3671_v30 = vsel %vm17_vm3, %v6148_v10, %v3667_v54  ;;  %v6149_v32 = vld [vmem:[%s11805_s0 + $0x233] sm:$0x20]  }
 0x18d   :  { %2187 = vst.msk [vmem:[#allocation0 + $0x100] ss:$-24 sm:$0x60] %vm2181_vm15, %v9967_v58   ;;  %v3675_v35 = vsel %vm21_vm4, %v6149_v32, %v3671_v30  ;;  %v6150_v36 = vld [vmem:[%s11805_s0 + $0x3b2] sm:$0x40]   ;;  %vm2547_vm15 = vcmask 581152  }
 0x18e   :  { %v3679_v58 = vsel %vm25_vm5, %v6150_v36, %v3675_v35  ;;  %v6151_v14 = vld [vmem:[%s11805_s0 + $0x331] sm:$0x80]   ;;  %v6208_v60 = vld [vmem:[%s11805_s0 + $0x160] sm:$0x1]   ;;  %v6200_v27 = vld [vmem:[%s11805_s0 + $0xb] sm:$0x1]  }
 0x18f   :  { %2142 = vst.msk [vmem:[#allocation0] ss:$72 sm:$0x3] %vm2141_vm7, %v9981_v63   ;;  %v3683_v40 = vsel %vm29_vm6, %v6151_v14, %v3679_v58  ;;  %v6209_v41 = vld [vmem:[%s11805_s0 + $0xdf] sm:$0x2]  }
 0x190   :  { %2144 = vst.msk [vmem:[#allocation0 + $0x60] ss:$-24 sm:$0xc] %vm2141_vm7, %v9981_v63   ;;  %3684 = vrot.lane.b32.xlu2 %v3683_v40, %s6705_s27  ;;  %v3984_v4 = vsel %vm5_vm0, %v6209_v41, %v6208_v60  ;;  %v6210_v19 = vld [vmem:[%s11805_s0 + $0x5e] sm:$0x4]   ;;  %s6706_s27 = smov 32  }
 0x191   :  { %2146 = vst.msk [vmem:[#allocation0 - $0xc0] ss:$72 sm:$0x30] %vm2141_vm7, %v9981_v63   ;;  %v3988_v44 = vsel %vm9_vm1, %v6210_v19, %v3984_v4  ;;  %v6211_v17 = vld [vmem:[%s11805_s0 + $0x1dd] sm:$0x8]  }
 0x192   :  { %2148 = vst.msk [vmem:[#allocation0 + $0x120] ss:$-24 sm:$0xc0] %vm2141_vm7, %v9981_v63   ;;  %v3992_v63 = vsel %vm13_vm2, %v6211_v17, %v3988_v44  ;;  %v6212_v47 = vld [vmem:[%s11805_s0 + $0x35c] sm:$0x10]   ;;  %vm2507_vm7 = vcmask 589352  }
 0x193   :  { %v3996_v11 = vsel %vm17_vm3, %v6212_v47, %v3992_v63  ;;  %v6213_v13 = vld [vmem:[%s11805_s0 + $0x2db] sm:$0x20]   ;;  %v6201_v51 = vld [vmem:[%s11805_s0 + $0x18a] sm:$0x2]   ;;  %2311 = vst.msk [vmem:[#allocation0 + $0xb1] sm:$0x80] %vm2303_vm9, %v10090_v1  }
 0x194   :  { %v6214_v48 = vld [vmem:[%s11805_s0 + $0x25a] sm:$0x40]   ;;  %v4000_v50 = vsel %vm21_vm4, %v6213_v13, %v3996_v11  ;;  %v6202_v55 = vld [vmem:[%s11805_s0 + $0x109] sm:$0x4]   ;;  %v3944_v24 = vsel %vm5_vm0, %v6201_v51, %v6200_v27  ;;  %v6168_v57 = vld [vmem:[%s11805_s0 + $0xb7] sm:$0x1]  }
 0x195   :  { %v6215_v49 = vld [vmem:[%s11805_s0 + $0x3d9] sm:$0x80]   ;;  %v4004_v56 = vsel %vm25_vm5, %v6214_v48, %v4000_v50  ;;  %v6203_v18 = vld [vmem:[%s11805_s0 + $0x88] sm:$0x8]   ;;  %v3948_v26 = vsel %vm9_vm1, %v6202_v55, %v3944_v24  ;;  %v6169_v25 = vld [vmem:[%s11805_s0 + $0x36] sm:$0x2]  }
 0x196   :  { %v6204_v61 = vld [vmem:[%s11805_s0 + $0x207] sm:$0x10]   ;;  %v4008_v43 = vsel %vm29_vm6, %v6215_v49, %v4004_v56  ;;  %v3952_v22 = vsel %vm13_vm2, %v6203_v18, %v3948_v26  ;;  %2346 = vst.msk [vmem:[#allocation0 + $0x20] ss:$-24 sm:$0x3] %vm2344_vm8, %v10088_v42   ;;  %v3781_v6 = vsel %vm5_vm0, %v6169_v25, %v6168_v57  ;;  %v10467_v25 = vpop.permute.xlu0 %2627  }
 0x197   :  { %v6205_v62 = vld [vmem:[%s11805_s0 + $0x386] sm:$0x20]   ;;  %4009 = vrot.lane.b32.xlu1 %v4008_v43, %s6706_s27  ;;  %v3956_v5 = vsel %vm17_vm3, %v6204_v61, %v3952_v22  ;;  %2348 = vst.msk [vmem:[#allocation0 + $0x80] ss:$-24 sm:$0xc] %vm2344_vm8, %v10088_v42   ;;  %v10459_v22 = vpop.permute.xlu1 %2667  }
 0x198   :  { %v6206_v2 = vld [vmem:[%s11805_s0 + $0x305] sm:$0x40]   ;;  %v3960_v34 = vsel %vm21_vm4, %v6205_v62, %v3956_v5  ;;  %2350 = vst.msk [vmem:[#allocation0 + $0xe0] ss:$-24 sm:$0x30] %vm2344_vm8, %v10088_v42  }
 0x199   :  { %v6207_v38 = vld [vmem:[%s11805_s0 + $0x284] sm:$0x80]   ;;  %v6170_v7 = vld [vmem:[%s11805_s0 + $0x1b5] sm:$0x4]   ;;  %v3964_v8 = vsel %vm25_vm5, %v6206_v2, %v3960_v34  ;;  %v6232_v53 = vld [vmem:[%s11805_s0 + $0x15f] sm:$0x1]  }
 0x19a   :  { %2352 = vst.msk [vmem:[#allocation0 + $0x140] ss:$-24 sm:$0xc0] %vm2344_vm8, %v10088_v42   ;;  %v3785_v42 = vsel %vm9_vm1, %v6170_v7, %v3781_v6  ;;  %v6171_v9 = vld [vmem:[%s11805_s0 + $0x134] sm:$0x8]   ;;  %v3968_v15 = vsel %vm29_vm6, %v6207_v38, %v3964_v8  ;;  %v10457_v38 = vpop.permute.xlu2 %2708   ;;  %vm2710_vm8 = vcmask 548352  }
 0x19b   :  { %2305 = vst.msk [vmem:[#allocation0 + $0x40] ss:$-24 sm:$0x7] %vm2303_vm9, %v10090_v1   ;;  %v3789_v16 = vsel %vm13_vm2, %v6171_v9, %v3785_v42  ;;  %v6172_v37 = vld [vmem:[%s11805_s0 + $0x2b3] sm:$0x10]   ;;  %3969 = vrot.lane.b32.xlu0 %v3968_v15, %s6707_s10  ;;  %s6727_s10 = smov 11  }
 0x19c   :  { %2307 = vst.msk [vmem:[#allocation0 - $0x80] ss:$72 sm:$0x18] %vm2303_vm9, %v10090_v1   ;;  %v3793_v20 = vsel %vm17_vm3, %v6172_v37, %v3789_v16  ;;  %v6173_v21 = vld [vmem:[%s11805_s0 + $0x232] sm:$0x20]  }
 0x19d   :  { %2309 = vst.msk [vmem:[#allocation0 + $0x100] ss:$-24 sm:$0x60] %vm2303_vm9, %v10090_v1   ;;  %v3797_v1 = vsel %vm21_vm4, %v6173_v21, %v3793_v20  ;;  %v6174_v46 = vld [vmem:[%s11805_s0 + $0x3b1] sm:$0x40]   ;;  %vm2669_vm9 = vcmask 556552  }
 0x19e   :  { %2264 = vst.msk [vmem:[#allocation0] ss:$72 sm:$0x3] %vm2263_vm10, %v10098_v29   ;;  %v3801_v23 = vsel %vm25_vm5, %v6174_v46, %v3797_v1  ;;  %v6175_v59 = vld [vmem:[%s11805_s0 + $0x330] sm:$0x80]  }
 0x19f   :  { %2266 = vst.msk [vmem:[#allocation0 + $0x60] ss:$-24 sm:$0xc] %vm2263_vm10, %v10098_v29   ;;  %v3805_v31 = vsel %vm29_vm6, %v6175_v59, %v3801_v23  ;;  %v6233_v28 = vld [vmem:[%s11805_s0 + $0xde] sm:$0x2]  }
 0x1a0   :  { %2268 = vst.msk [vmem:[#allocation0 - $0xc0] ss:$72 sm:$0x30] %vm2263_vm10, %v10098_v29   ;;  %3806 = vrot.lane.b32.xlu2 %v3805_v31, %s6708_s18  ;;  %v6234_v52 = vld [vmem:[%s11805_s0 + $0x5d] sm:$0x4]   ;;  %s6728_s18 = smov 12  }
 0x1a1   :  { %2270 = vst.msk [vmem:[#allocation0 + $0x120] ss:$-24 sm:$0xc0] %vm2263_vm10, %v10098_v29   ;;  %v4106_v29 = vsel %vm5_vm0, %v6233_v28, %v6232_v53  ;;  %v6235_v10 = vld [vmem:[%s11805_s0 + $0x1dc] sm:$0x8]   ;;  %vm2629_vm10 = vcmask 564752  }
 0x1a2   :  { %v4110_v54 = vsel %vm9_vm1, %v6234_v52, %v4106_v29  ;;  %v6236_v30 = vld [vmem:[%s11805_s0 + $0x35b] sm:$0x10]   ;;  %v6224_v14 = vld [vmem:[%s11805_s0 + $0xa] sm:$0x1]   ;;  %v6192_v27 = vld [vmem:[%s11805_s0 + $0xb6] sm:$0x1]  }
 0x1a3   :  { %v6237_v32 = vld [vmem:[%s11805_s0 + $0x2da] sm:$0x20]   ;;  %v4114_v35 = vsel %vm13_vm2, %v6235_v10, %v4110_v54  ;;  %v6225_v40 = vld [vmem:[%s11805_s0 + $0x189] sm:$0x2]   ;;  %v6193_v55 = vld [vmem:[%s11805_s0 + $0x35] sm:$0x2]  }
 0x1a4   :  { %v6238_v36 = vld [vmem:[%s11805_s0 + $0x259] sm:$0x40]   ;;  %v4118_v60 = vsel %vm17_vm3, %v6236_v30, %v4114_v35  ;;  %v6226_v41 = vld [vmem:[%s11805_s0 + $0x108] sm:$0x4]   ;;  %v4066_v44 = vsel %vm5_vm0, %v6225_v40, %v6224_v14  ;;  %v6194_v24 = vld [vmem:[%s11805_s0 + $0x1b4] sm:$0x4]  }
 0x1a5   :  { %v6239_v58 = vld [vmem:[%s11805_s0 + $0x3d8] sm:$0x80]   ;;  %v6227_v4 = vld [vmem:[%s11805_s0 + $0x87] sm:$0x8]   ;;  %v4122_v19 = vsel %vm21_vm4, %v6237_v32, %v4118_v60  ;;  %v4070_v13 = vsel %vm9_vm1, %v6226_v41, %v4066_v44  ;;  %v6195_v62 = vld [vmem:[%s11805_s0 + $0x133] sm:$0x8]  }
 0x1a6   :  { %v6228_v17 = vld [vmem:[%s11805_s0 + $0x206] sm:$0x10]   ;;  %v4126_v11 = vsel %vm25_vm5, %v6238_v36, %v4122_v19  ;;  %2468 = vst.msk [vmem:[#allocation0 + $0x20] ss:$-24 sm:$0x3] %vm2466_vm11, %v10215_v3   ;;  %v4074_v50 = vsel %vm13_vm2, %v6227_v4, %v4070_v13 }
 0x1a7   :  { %v6229_v63 = vld [vmem:[%s11805_s0 + $0x385] sm:$0x20]   ;;  %v4130_v49 = vsel %vm29_vm6, %v6239_v58, %v4126_v11  ;;  %2470 = vst.msk [vmem:[#allocation0 + $0x80] ss:$-24 sm:$0xc] %vm2466_vm11, %v10215_v3   ;;  %v4078_v51 = vsel %vm17_vm3, %v6228_v17, %v4074_v50 }
 0x1a8   :  { %v6230_v47 = vld [vmem:[%s11805_s0 + $0x304] sm:$0x40]   ;;  %4131 = vrot.lane.b32.xlu1 %v4130_v49, %s6709_s23  ;;  %2472 = vst.msk [vmem:[#allocation0 + $0xe0] ss:$-24 sm:$0x30] %vm2466_vm11, %v10215_v3   ;;  %v4082_v56 = vsel %vm21_vm4, %v6229_v63, %v4078_v51  ;;  %v10586_v51 = vpop.permute.xlu1 %2789   ;;  %s6732_s23 = smov 13  }
 0x1a9   :  { %v6231_v48 = vld [vmem:[%s11805_s0 + $0x283] sm:$0x80]   ;;  %2474 = vst.msk [vmem:[#allocation0 + $0x140] ss:$-24 sm:$0xc0] %vm2466_vm11, %v10215_v3   ;;  %v3903_v3 = vsel %vm5_vm0, %v6193_v55, %v6192_v27  ;;  %v4086_v18 = vsel %vm25_vm5, %v6230_v47, %v4082_v56  ;;  %v10584_v27 = vpop.permute.xlu2 %2830   ;;  %vm2832_vm11 = vcmask 523752  }
 0x1aa   :  { %2427 = vst.msk [vmem:[#allocation0 + $0x40] ss:$-24 sm:$0x7] %vm2425_vm12, %v10217_v33   ;;  %v3907_v61 = vsel %vm9_vm1, %v6194_v24, %v3903_v3  ;;  %v4090_v43 = vsel %vm29_vm6, %v6231_v48, %v4086_v18  ;;  %v6196_v2 = vld [vmem:[%s11805_s0 + $0x2b2] sm:$0x10]   ;;  %v10594_v3 = vpop.permute.xlu0 %2749  }
 0x1ab   :  { %2429 = vst.msk [vmem:[#allocation0 - $0x80] ss:$72 sm:$0x18] %vm2425_vm12, %v10217_v33   ;;  %v3911_v26 = vsel %vm13_vm2, %v6195_v62, %v3907_v61  ;;  %4091 = vrot.lane.b32.xlu0 %v4090_v43, %s6710_s2  ;;  %v6197_v5 = vld [vmem:[%s11805_s0 + $0x231] sm:$0x20]   ;;  %s6730_s2 = smov 8  }
 0x1ac   :  { %2431 = vst.msk [vmem:[#allocation0 + $0x100] ss:$-24 sm:$0x60] %vm2425_vm12, %v10217_v33   ;;  %v3915_v57 = vsel %vm17_vm3, %v6196_v2, %v3911_v26  ;;  %v6198_v34 = vld [vmem:[%s11805_s0 + $0x3b0] sm:$0x40]  }
 0x1ad   :  { %2433 = vst.msk [vmem:[#allocation0 + $0xb1] sm:$0x80] %vm2425_vm12, %v10217_v33   ;;  %v3919_v33 = vsel %vm21_vm4, %v6197_v5, %v3915_v57  ;;  %v6199_v6 = vld [vmem:[%s11805_s0 + $0x32f] sm:$0x80]   ;;  %v6256_v8 = vld [vmem:[%s11805_s0 + $0x15e] sm:$0x1]  }
 0x1ae   :  { %2386 = vst.msk [vmem:[#allocation0] ss:$72 sm:$0x3] %vm2385_vm13, %v10225_v45   ;;  %v3923_v7 = vsel %vm25_vm5, %v6198_v34, %v3919_v33  ;;  %v6257_v9 = vld [vmem:[%s11805_s0 + $0xdd] sm:$0x2]   ;;  %vm2791_vm12 = vcmask 531952  }
 0x1af   :  { %2388 = vst.msk [vmem:[#allocation0 + $0x60] ss:$-24 sm:$0xc] %vm2385_vm13, %v10225_v45   ;;  %v3927_v42 = vsel %vm29_vm6, %v6199_v6, %v3923_v7  ;;  %v4228_v15 = vsel %vm5_vm0, %v6257_v9, %v6256_v8  ;;  %v6258_v16 = vld [vmem:[%s11805_s0 + $0x5c] sm:$0x4]  }
 0x1b0   :  { %2390 = vst.msk [vmem:[#allocation0 - $0xc0] ss:$72 sm:$0x30] %vm2385_vm13, %v10225_v45   ;;  %3928 = vrot.lane.b32.xlu2 %v3927_v42, %s6711_s13  ;;  %v6259_v37 = vld [vmem:[%s11805_s0 + $0x1db] sm:$0x8]   ;;  %s6735_s13 = smov 10  }
 0x1b1   :  { %2392 = vst.msk [vmem:[#allocation0 + $0x120] ss:$-24 sm:$0xc0] %vm2385_vm13, %v10225_v45   ;;  %v4232_v45 = vsel %vm9_vm1, %v6258_v16, %v4228_v15  ;;  %v6260_v21 = vld [vmem:[%s11805_s0 + $0x35a] sm:$0x10]   ;;  %vm2751_vm13 = vcmask 540152  }
 0x1b2   :  { %v4236_v20 = vsel %vm13_vm2, %v6259_v37, %v4232_v45  ;;  %v6261_v1 = vld [vmem:[%s11805_s0 + $0x2d9] sm:$0x20]   ;;  %v6248_v31 = vld [vmem:[%s11805_s0 + $0x9] sm:$0x1]   ;;  %v6216_v40 = vld [vmem:[%s11805_s0 + $0xb5] sm:$0x1]  }
 0x1b3   :  { %v6262_v46 = vld [vmem:[%s11805_s0 + $0x258] sm:$0x40]   ;;  %v4240_v23 = vsel %vm17_vm3, %v6260_v21, %v4236_v20  ;;  %v6249_v53 = vld [vmem:[%s11805_s0 + $0x188] sm:$0x2]   ;;  %v6217_v4 = vld [vmem:[%s11805_s0 + $0x34] sm:$0x2]  }
 0x1b4   :  { %v6263_v59 = vld [vmem:[%s11805_s0 + $0x3d7] sm:$0x80]   ;;  %v4244_v28 = vsel %vm21_vm4, %v6261_v1, %v4240_v23  ;;  %v4188_v29 = vsel %vm5_vm0, %v6249_v53, %v6248_v31  ;;  %v6250_v52 = vld [vmem:[%s11805_s0 + $0x107] sm:$0x4]   ;;  %v4025_v44 = vsel %vm5_vm0, %v6217_v4, %v6216_v40  ;;  %v6218_v17 = vld [vmem:[%s11805_s0 + $0x1b3] sm:$0x4]  }
 0x1b5   :  { %v6251_v54 = vld [vmem:[%s11805_s0 + $0x86] sm:$0x8]   ;;  %v4248_v30 = vsel %vm25_vm5, %v6262_v46, %v4244_v28  ;;  %v4192_v32 = vsel %vm9_vm1, %v6250_v52, %v4188_v29  ;;  %2590 = vst.msk [vmem:[#allocation0 + $0x20] ss:$-24 sm:$0x3] %vm2588_vm14, %v10334_v12  }
 0x1b6   :  { %v6252_v10 = vld [vmem:[%s11805_s0 + $0x205] sm:$0x10]   ;;  %v4252_v14 = vsel %vm29_vm6, %v6263_v59, %v4248_v30  ;;  %v4196_v60 = vsel %vm13_vm2, %v6251_v54, %v4192_v32  ;;  %2592 = vst.msk [vmem:[#allocation0 + $0x80] ss:$-24 sm:$0xc] %vm2588_vm14, %v10334_v12  }
 0x1b7   :  { %v6253_v35 = vld [vmem:[%s11805_s0 + $0x384] sm:$0x20]   ;;  %4253 = vrot.lane.b32.xlu1 %v4252_v14, %s6712_s15  ;;  %v4200_v41 = vsel %vm17_vm3, %v6252_v10, %v4196_v60  ;;  %2594 = vst.msk [vmem:[#allocation0 + $0xe0] ss:$-24 sm:$0x30] %vm2588_vm14, %v10334_v12   ;;  %v10703_v14 = vpop.permute.xlu2 %2952   ;;  %v10705_v60 = vpop.permute.xlu1 %2911  }
 0x1b8   :  { %v6254_v36 = vld [vmem:[%s11805_s0 + $0x303] sm:$0x40]   ;;  %v4204_v19 = vsel %vm21_vm4, %v6253_v35, %v4200_v41  ;;  %2596 = vst.msk [vmem:[#allocation0 + $0x140] ss:$-24 sm:$0xc0] %vm2588_vm14, %v10334_v12   ;;  %v4029_v12 = vsel %vm9_vm1, %v6218_v17, %v4025_v44  ;;  %vm2954_vm14 = vcmask 499152  }
 0x1b9   :  { %v6255_v58 = vld [vmem:[%s11805_s0 + $0x282] sm:$0x80]   ;;  %v4208_v63 = vsel %vm25_vm5, %v6254_v36, %v4204_v19  ;;  %v6219_v47 = vld [vmem:[%s11805_s0 + $0x132] sm:$0x8]   ;;  %2555 = vst.msk [vmem:[#allocation0 + $0xb1] sm:$0x80] %vm2547_vm15, %v10336_v39   ;;  %v10719_v19 = vpop.permute.xlu0 %2871  }
 0x1ba   :  { %v4212_v11 = vsel %vm29_vm6, %v6255_v58, %v4208_v63  ;;  %2549 = vst.msk [vmem:[#allocation0 + $0x40] ss:$-24 sm:$0x7] %vm2547_vm15, %v10336_v39   ;;  %v4033_v13 = vsel %vm13_vm2, %v6219_v47, %v4029_v12  ;;  %v6220_v48 = vld [vmem:[%s11805_s0 + $0x2b1] sm:$0x10]  }
 0x1bb   :  { %4213 = vrot.lane.b32.xlu0 %v4212_v11, %s6713_s25  ;;  %2551 = vst.msk [vmem:[#allocation0 - $0x80] ss:$72 sm:$0x18] %vm2547_vm15, %v10336_v39   ;;  %v4037_v49 = vsel %vm17_vm3, %v6220_v48, %v4033_v13  ;;  %v6221_v50 = vld [vmem:[%s11805_s0 + $0x230] sm:$0x20]  }
 0x1bc   :  { %2553 = vst.msk [vmem:[#allocation0 + $0x100] ss:$-24 sm:$0x60] %vm2547_vm15, %v10336_v39   ;;  %v4041_v55 = vsel %vm21_vm4, %v6221_v50, %v4037_v49  ;;  %v6222_v56 = vld [vmem:[%s11805_s0 + $0x3af] sm:$0x40]   ;;  %vm2913_vm15 = vcmask 507352  }
 0x1bd   :  { %v4045_v39 = vsel %vm25_vm5, %v6222_v56, %v4041_v55  ;;  %v6223_v24 = vld [vmem:[%s11805_s0 + $0x32e] sm:$0x80]   ;;  %v6280_v18 = vld [vmem:[%s11805_s0 + $0x15d] sm:$0x1]   ;;  %v6272_v42 = vld [vmem:[%s11805_s0 + $0x8] sm:$0x1]  }
 0x1be   :  { %2508 = vst.msk [vmem:[#allocation0] ss:$72 sm:$0x3] %vm2507_vm7, %v10350_v0   ;;  %v4049_v61 = vsel %vm29_vm6, %v6223_v24, %v4045_v39  ;;  %v6281_v62 = vld [vmem:[%s11805_s0 + $0xdc] sm:$0x2]  }
 0x1bf   :  { %2510 = vst.msk [vmem:[#allocation0 + $0x60] ss:$-24 sm:$0xc] %vm2507_vm7, %v10350_v0   ;;  %4050 = vrot.lane.b32.xlu2 %v4049_v61, %s6714_s6  ;;  %v4350_v43 = vsel %vm5_vm0, %v6281_v62, %v6280_v18  ;;  %v6282_v26 = vld [vmem:[%s11805_s0 + $0x5b] sm:$0x4]   ;;  %s6715_s6 = smov 23  }
 0x1c0   :  { %2512 = vst.msk [vmem:[#allocation0 - $0xc0] ss:$72 sm:$0x30] %vm2507_vm7, %v10350_v0   ;;  %v4354_v2 = vsel %vm9_vm1, %v6282_v26, %v4350_v43  ;;  %v6283_v57 = vld [vmem:[%s11805_s0 + $0x1da] sm:$0x8]  }
 0x1c1   :  { %2514 = vst.msk [vmem:[#allocation0 + $0x120] ss:$-24 sm:$0xc0] %vm2507_vm7, %v10350_v0   ;;  %v4358_v0 = vsel %vm13_vm2, %v6283_v57, %v4354_v2  ;;  %v6284_v5 = vld [vmem:[%s11805_s0 + $0x359] sm:$0x10]   ;;  %vm2873_vm7 = vcmask 515552  }
 0x1c2   :  { %v4362_v33 = vsel %vm17_vm3, %v6284_v5, %v4358_v0  ;;  %v6285_v34 = vld [vmem:[%s11805_s0 + $0x2d8] sm:$0x20]   ;;  %v6273_v9 = vld [vmem:[%s11805_s0 + $0x187] sm:$0x2]   ;;  %2677 = vst.msk [vmem:[#allocation0 + $0xb1] sm:$0x80] %vm2669_vm9, %v10459_v22  }
 0x1c3   :  { %v6286_v6 = vld [vmem:[%s11805_s0 + $0x257] sm:$0x40]   ;;  %v4366_v8 = vsel %vm21_vm4, %v6285_v34, %v4362_v33  ;;  %v6274_v15 = vld [vmem:[%s11805_s0 + $0x106] sm:$0x4]   ;;  %v4310_v45 = vsel %vm5_vm0, %v6273_v9, %v6272_v42  ;;  %v6240_v53 = vld [vmem:[%s11805_s0 + $0xb4] sm:$0x1]  }
 0x1c4   :  { %v6287_v7 = vld [vmem:[%s11805_s0 + $0x3d6] sm:$0x80]   ;;  %v4370_v16 = vsel %vm25_vm5, %v6286_v6, %v4366_v8  ;;  %v6275_v37 = vld [vmem:[%s11805_s0 + $0x85] sm:$0x8]   ;;  %v4314_v46 = vsel %vm9_vm1, %v6274_v15, %v4310_v45  ;;  %v6241_v29 = vld [vmem:[%s11805_s0 + $0x33] sm:$0x2]  }
 0x1c5   :  { %v6276_v20 = vld [vmem:[%s11805_s0 + $0x204] sm:$0x10]   ;;  %v4374_v1 = vsel %vm29_vm6, %v6287_v7, %v4370_v16  ;;  %v4318_v31 = vsel %vm13_vm2, %v6275_v37, %v4314_v46  ;;  %2712 = vst.msk [vmem:[#allocation0 + $0x20] ss:$-24 sm:$0x3] %vm2710_vm8, %v10457_v38   ;;  %v4147_v54 = vsel %vm5_vm0, %v6241_v29, %v6240_v53  ;;  %v10836_v29 = vpop.permute.xlu0 %2993  }
 0x1c6   :  { %v6277_v21 = vld [vmem:[%s11805_s0 + $0x383] sm:$0x20]   ;;  %4375 = vrot.lane.b32.xlu1 %v4374_v1, %s6715_s6  ;;  %v4322_v28 = vsel %vm17_vm3, %v6276_v20, %v4318_v31  ;;  %2714 = vst.msk [vmem:[#allocation0 + $0x80] ss:$-24 sm:$0xc] %vm2710_vm8, %v10457_v38   ;;  %v10828_v31 = vpop.permute.xlu1 %3033  }
 0x1c7   :  { %v6278_v23 = vld [vmem:[%s11805_s0 + $0x302] sm:$0x40]   ;;  %v4326_v52 = vsel %vm21_vm4, %v6277_v21, %v4322_v28  ;;  %2716 = vst.msk [vmem:[#allocation0 + $0xe0] ss:$-24 sm:$0x30] %vm2710_vm8, %v10457_v38  }
 0x1c8   :  { %v6279_v59 = vld [vmem:[%s11805_s0 + $0x281] sm:$0x80]   ;;  %v6242_v10 = vld [vmem:[%s11805_s0 + $0x1b2] sm:$0x4]   ;;  %v4330_v30 = vsel %vm25_vm5, %v6278_v23, %v4326_v52  ;;  %v6304_v12 = vld [vmem:[%s11805_s0 + $0x15c] sm:$0x1]  }
 0x1c9   :  { %2718 = vst.msk [vmem:[#allocation0 + $0x140] ss:$-24 sm:$0xc0] %vm2710_vm8, %v10457_v38   ;;  %v4151_v38 = vsel %vm9_vm1, %v6242_v10, %v4147_v54  ;;  %v6243_v32 = vld [vmem:[%s11805_s0 + $0x131] sm:$0x8]   ;;  %v4334_v35 = vsel %vm29_vm6, %v6279_v59, %v4330_v30  ;;  %v10826_v59 = vpop.permute.xlu2 %3074   ;;  %vm3076_vm8 = vcmask 474552  }
 0x1ca   :  { %2671 = vst.msk [vmem:[#allocation0 + $0x40] ss:$-24 sm:$0x7] %vm2669_vm9, %v10459_v22   ;;  %v4155_v36 = vsel %vm13_vm2, %v6243_v32, %v4151_v38  ;;  %v6244_v58 = vld [vmem:[%s11805_s0 + $0x2b0] sm:$0x10]   ;;  %4335 = vrot.lane.b32.xlu0 %v4334_v35, %s6716_s17  ;;  %s6736_s17 = smov 2  }
 0x1cb   :  { %2673 = vst.msk [vmem:[#allocation0 - $0x80] ss:$72 sm:$0x18] %vm2669_vm9, %v10459_v22   ;;  %v4159_v40 = vsel %vm17_vm3, %v6244_v58, %v4155_v36  ;;  %v6245_v41 = vld [vmem:[%s11805_s0 + $0x22f] sm:$0x20]  }
 0x1cc   :  { %2675 = vst.msk [vmem:[#allocation0 + $0x100] ss:$-24 sm:$0x60] %vm2669_vm9, %v10459_v22   ;;  %v4163_v22 = vsel %vm21_vm4, %v6245_v41, %v4159_v40  ;;  %v6246_v4 = vld [vmem:[%s11805_s0 + $0x3ae] sm:$0x40]   ;;  %vm3035_vm9 = vcmask 482752  }
 0x1cd   :  { %2630 = vst.msk [vmem:[#allocation0] ss:$72 sm:$0x3] %vm2629_vm10, %v10467_v25   ;;  %v4167_v44 = vsel %vm25_vm5, %v6246_v4, %v4163_v22  ;;  %v6247_v17 = vld [vmem:[%s11805_s0 + $0x32d] sm:$0x80]  }
 0x1ce   :  { %2632 = vst.msk [vmem:[#allocation0 + $0x60] ss:$-24 sm:$0xc] %vm2629_vm10, %v10467_v25   ;;  %v4171_v63 = vsel %vm29_vm6, %v6247_v17, %v4167_v44  ;;  %v6305_v47 = vld [vmem:[%s11805_s0 + $0xdb] sm:$0x2]  }
 0x1cf   :  { %2634 = vst.msk [vmem:[#allocation0 - $0xc0] ss:$72 sm:$0x30] %vm2629_vm10, %v10467_v25   ;;  %4172 = vrot.lane.b32.xlu2 %v4171_v63, %s6717_s9  ;;  %v6306_v11 = vld [vmem:[%s11805_s0 + $0x5a] sm:$0x4]   ;;  %s6737_s9 = smov 3  }
 0x1d0   :  { %2636 = vst.msk [vmem:[#allocation0 + $0x120] ss:$-24 sm:$0xc0] %vm2629_vm10, %v10467_v25   ;;  %v4472_v25 = vsel %vm5_vm0, %v6305_v47, %v6304_v12  ;;  %v6307_v48 = vld [vmem:[%s11805_s0 + $0x1d9] sm:$0x8]   ;;  %vm2995_vm10 = vcmask 490952  }
 0x1d1   :  { %v4476_v13 = vsel %vm9_vm1, %v6306_v11, %v4472_v25  ;;  %v6308_v49 = vld [vmem:[%s11805_s0 + $0x358] sm:$0x10]   ;;  %v6296_v24 = vld [vmem:[%s11805_s0 + $0x7] sm:$0x1]   ;;  %v6264_v42 = vld [vmem:[%s11805_s0 + $0xb3] sm:$0x1]  }
 0x1d2   :  { %v6309_v50 = vld [vmem:[%s11805_s0 + $0x2d7] sm:$0x20]   ;;  %v4480_v55 = vsel %vm13_vm2, %v6307_v48, %v4476_v13  ;;  %v6297_v61 = vld [vmem:[%s11805_s0 + $0x186] sm:$0x2]   ;;  %v6265_v15 = vld [vmem:[%s11805_s0 + $0x32] sm:$0x2]  }
 0x1d3   :  { %v6310_v56 = vld [vmem:[%s11805_s0 + $0x256] sm:$0x40]   ;;  %v4484_v18 = vsel %vm17_vm3, %v6308_v49, %v4480_v55  ;;  %v6298_v62 = vld [vmem:[%s11805_s0 + $0x105] sm:$0x4]   ;;  %v4432_v2 = vsel %vm5_vm0, %v6297_v61, %v6296_v24  ;;  %v6266_v45 = vld [vmem:[%s11805_s0 + $0x1b1] sm:$0x4]  }
 0x1d4   :  { %v6311_v39 = vld [vmem:[%s11805_s0 + $0x3d5] sm:$0x80]   ;;  %v6299_v43 = vld [vmem:[%s11805_s0 + $0x84] sm:$0x8]   ;;  %v4488_v26 = vsel %vm21_vm4, %v6309_v50, %v4484_v18  ;;  %v4436_v34 = vsel %vm9_vm1, %v6298_v62, %v4432_v2  ;;  %v6267_v21 = vld [vmem:[%s11805_s0 + $0x130] sm:$0x8]  }
 0x1d5   :  { %v6300_v57 = vld [vmem:[%s11805_s0 + $0x203] sm:$0x10]   ;;  %v4492_v33 = vsel %vm25_vm5, %v6310_v56, %v4488_v26  ;;  %2834 = vst.msk [vmem:[#allocation0 + $0x20] ss:$-24 sm:$0x3] %vm2832_vm11, %v10584_v27   ;;  %v4440_v8 = vsel %vm13_vm2, %v6299_v43, %v4436_v34 }
 0x1d6   :  { %v6301_v0 = vld [vmem:[%s11805_s0 + $0x382] sm:$0x20]   ;;  %v4496_v7 = vsel %vm29_vm6, %v6311_v39, %v4492_v33  ;;  %2836 = vst.msk [vmem:[#allocation0 + $0x80] ss:$-24 sm:$0xc] %vm2832_vm11, %v10584_v27   ;;  %v4444_v9 = vsel %vm17_vm3, %v6300_v57, %v4440_v8 }
 0x1d7   :  { %v6302_v5 = vld [vmem:[%s11805_s0 + $0x301] sm:$0x40]   ;;  %4497 = vrot.lane.b32.xlu1 %v4496_v7, %s6718_s30  ;;  %2838 = vst.msk [vmem:[#allocation0 + $0xe0] ss:$-24 sm:$0x30] %vm2832_vm11, %v10584_v27   ;;  %v4448_v16 = vsel %vm21_vm4, %v6301_v0, %v4444_v9  ;;  %v10955_v9 = vpop.permute.xlu1 %3155  }
 0x1d8   :  { %v6303_v6 = vld [vmem:[%s11805_s0 + $0x280] sm:$0x80]   ;;  %2840 = vst.msk [vmem:[#allocation0 + $0x140] ss:$-24 sm:$0xc0] %vm2832_vm11, %v10584_v27   ;;  %v4269_v27 = vsel %vm5_vm0, %v6265_v15, %v6264_v42  ;;  %v4452_v37 = vsel %vm25_vm5, %v6302_v5, %v4448_v16  ;;  %v10953_v42 = vpop.permute.xlu2 %3196   ;;  %vm3198_vm11 = vcmask 449952  }
 0x1d9   :  { %2793 = vst.msk [vmem:[#allocation0 + $0x40] ss:$-24 sm:$0x7] %vm2791_vm12, %v10586_v51   ;;  %v4273_v20 = vsel %vm9_vm1, %v6266_v45, %v4269_v27  ;;  %v4456_v1 = vsel %vm29_vm6, %v6303_v6, %v4452_v37  ;;  %v6268_v23 = vld [vmem:[%s11805_s0 + $0x2af] sm:$0x10]   ;;  %v10963_v27 = vpop.permute.xlu0 %3115  }
 0x1da   :  { %2795 = vst.msk [vmem:[#allocation0 - $0x80] ss:$72 sm:$0x18] %vm2791_vm12, %v10586_v51   ;;  %v4277_v46 = vsel %vm13_vm2, %v6267_v21, %v4273_v20  ;;  %4457 = vrot.lane.b32.xlu0 %v4456_v1, %s6719_s19  ;;  %v6269_v28 = vld [vmem:[%s11805_s0 + $0x22e] sm:$0x20]  }
 0x1db   :  { %2797 = vst.msk [vmem:[#allocation0 + $0x100] ss:$-24 sm:$0x60] %vm2791_vm12, %v10586_v51   ;;  %v4281_v53 = vsel %vm17_vm3, %v6268_v23, %v4277_v46  ;;  %v6270_v52 = vld [vmem:[%s11805_s0 + $0x3ad] sm:$0x40]  }
 0x1dc   :  { %2799 = vst.msk [vmem:[#allocation0 + $0xb1] sm:$0x80] %vm2791_vm12, %v10586_v51   ;;  %v4285_v51 = vsel %vm21_vm4, %v6269_v28, %v4281_v53  ;;  %v6271_v54 = vld [vmem:[%s11805_s0 + $0x32c] sm:$0x80]   ;;  %v6328_v30 = vld [vmem:[%s11805_s0 + $0x15b] sm:$0x1]  }
 0x1dd   :  { %2752 = vst.msk [vmem:[#allocation0] ss:$72 sm:$0x3] %vm2751_vm13, %v10594_v3   ;;  %v4289_v10 = vsel %vm25_vm5, %v6270_v52, %v4285_v51  ;;  %v6329_v32 = vld [vmem:[%s11805_s0 + $0xda] sm:$0x2]   ;;  %vm3157_vm12 = vcmask 458152  }
 0x1de   :  { %2754 = vst.msk [vmem:[#allocation0 + $0x60] ss:$-24 sm:$0xc] %vm2751_vm13, %v10594_v3   ;;  %v4293_v38 = vsel %vm29_vm6, %v6271_v54, %v4289_v10  ;;  %v4594_v35 = vsel %vm5_vm0, %v6329_v32, %v6328_v30  ;;  %v6330_v36 = vld [vmem:[%s11805_s0 + $0x59] sm:$0x4]  }
 0x1df   :  { %2756 = vst.msk [vmem:[#allocation0 - $0xc0] ss:$72 sm:$0x30] %vm2751_vm13, %v10594_v3   ;;  %4294 = vrot.lane.b32.xlu2 %v4293_v38, %s6720_s22  ;;  %v6331_v58 = vld [vmem:[%s11805_s0 + $0x1d8] sm:$0x8]  }
 0x1e0   :  { %2758 = vst.msk [vmem:[#allocation0 + $0x120] ss:$-24 sm:$0xc0] %vm2751_vm13, %v10594_v3   ;;  %v4598_v3 = vsel %vm9_vm1, %v6330_v36, %v4594_v35  ;;  %v6332_v41 = vld [vmem:[%s11805_s0 + $0x357] sm:$0x10]   ;;  %vm3117_vm13 = vcmask 466352  }
 0x1e1   :  { %v4602_v40 = vsel %vm13_vm2, %v6331_v58, %v4598_v3  ;;  %v6333_v22 = vld [vmem:[%s11805_s0 + $0x2d6] sm:$0x20]   ;;  %v6320_v63 = vld [vmem:[%s11805_s0 + $0x6] sm:$0x1]   ;;  %v6288_v61 = vld [vmem:[%s11805_s0 + $0xb2] sm:$0x1]  }
 0x1e2   :  { %v6334_v4 = vld [vmem:[%s11805_s0 + $0x255] sm:$0x40]   ;;  %v4606_v44 = vsel %vm17_vm3, %v6332_v41, %v4602_v40  ;;  %v6321_v12 = vld [vmem:[%s11805_s0 + $0x185] sm:$0x2]   ;;  %v6289_v43 = vld [vmem:[%s11805_s0 + $0x31] sm:$0x2]  }
 0x1e3   :  { %v6335_v17 = vld [vmem:[%s11805_s0 + $0x3d4] sm:$0x80]   ;;  %v4610_v47 = vsel %vm21_vm4, %v6333_v22, %v4606_v44  ;;  %v4554_v25 = vsel %vm5_vm0, %v6321_v12, %v6320_v63  ;;  %v6322_v11 = vld [vmem:[%s11805_s0 + $0x104] sm:$0x4]   ;;  %v4391_v2 = vsel %vm5_vm0, %v6289_v43, %v6288_v61  ;;  %v6290_v57 = vld [vmem:[%s11805_s0 + $0x1b0] sm:$0x4]  }
 0x1e4   :  { %v6323_v13 = vld [vmem:[%s11805_s0 + $0x83] sm:$0x8]   ;;  %v4614_v49 = vsel %vm25_vm5, %v6334_v4, %v4610_v47  ;;  %v4558_v50 = vsel %vm9_vm1, %v6322_v11, %v4554_v25  ;;  %2956 = vst.msk [vmem:[#allocation0 + $0x20] ss:$-24 sm:$0x3] %vm2954_vm14, %v10703_v14  }
 0x1e5   :  { %v6324_v48 = vld [vmem:[%s11805_s0 + $0x202] sm:$0x10]   ;;  %v4618_v24 = vsel %vm29_vm6, %v6335_v17, %v4614_v49  ;;  %v4562_v18 = vsel %vm13_vm2, %v6323_v13, %v4558_v50  ;;  %2958 = vst.msk [vmem:[#allocation0 + $0x80] ss:$-24 sm:$0xc] %vm2954_vm14, %v10703_v14  }
 0x1e6   :  { %v6325_v55 = vld [vmem:[%s11805_s0 + $0x381] sm:$0x20]   ;;  %4619 = vrot.lane.b32.xlu1 %v4618_v24, %s6721_s24  ;;  %v4566_v62 = vsel %vm17_vm3, %v6324_v48, %v4562_v18  ;;  %2960 = vst.msk [vmem:[#allocation0 + $0xe0] ss:$-24 sm:$0x30] %vm2954_vm14, %v10703_v14   ;;  %v11072_v24 = vpop.permute.xlu2 %3318   ;;  %v11074_v18 = vpop.permute.xlu1 %3277  }
 0x1e7   :  { %v6326_v56 = vld [vmem:[%s11805_s0 + $0x300] sm:$0x40]   ;;  %v4570_v26 = vsel %vm21_vm4, %v6325_v55, %v4566_v62  ;;  %2962 = vst.msk [vmem:[#allocation0 + $0x140] ss:$-24 sm:$0xc0] %vm2954_vm14, %v10703_v14   ;;  %v4395_v14 = vsel %vm9_vm1, %v6290_v57, %v4391_v2  ;;  %vm3320_vm14 = vcmask 425352  }
 0x1e8   :  { %v6327_v39 = vld [vmem:[%s11805_s0 + $0x27f] sm:$0x80]   ;;  %v4574_v0 = vsel %vm25_vm5, %v6326_v56, %v4570_v26  ;;  %v6291_v5 = vld [vmem:[%s11805_s0 + $0x12f] sm:$0x8]   ;;  %2921 = vst.msk [vmem:[#allocation0 + $0xb1] sm:$0x80] %vm2913_vm15, %v10705_v60   ;;  %v11088_v26 = vpop.permute.xlu0 %3237  }
 0x1e9   :  { %v4578_v33 = vsel %vm29_vm6, %v6327_v39, %v4574_v0  ;;  %2915 = vst.msk [vmem:[#allocation0 + $0x40] ss:$-24 sm:$0x7] %vm2913_vm15, %v10705_v60   ;;  %v4399_v34 = vsel %vm13_vm2, %v6291_v5, %v4395_v14  ;;  %v6292_v6 = vld [vmem:[%s11805_s0 + $0x2ae] sm:$0x10]  }
 0x1ea   :  { %4579 = vrot.lane.b32.xlu0 %v4578_v33, %s6722_s3  ;;  %2917 = vst.msk [vmem:[#allocation0 - $0x80] ss:$72 sm:$0x18] %vm2913_vm15, %v10705_v60   ;;  %v4403_v7 = vsel %vm17_vm3, %v6292_v6, %v4399_v34  ;;  %v6293_v8 = vld [vmem:[%s11805_s0 + $0x22d] sm:$0x20]  }
 0x1eb   :  { %2919 = vst.msk [vmem:[#allocation0 + $0x100] ss:$-24 sm:$0x60] %vm2913_vm15, %v10705_v60   ;;  %v4407_v15 = vsel %vm21_vm4, %v6293_v8, %v4403_v7  ;;  %v6294_v16 = vld [vmem:[%s11805_s0 + $0x3ac] sm:$0x40]   ;;  %vm3279_vm15 = vcmask 433552  }
 0x1ec   :  { %v4411_v60 = vsel %vm25_vm5, %v6294_v16, %v4407_v15  ;;  %v6295_v45 = vld [vmem:[%s11805_s0 + $0x32b] sm:$0x80]   ;;  %v6352_v37 = vld [vmem:[%s11805_s0 + $0x15a] sm:$0x1]   ;;  %v6344_v38 = vld [vmem:[%s11805_s0 + $0x5] sm:$0x1]  }
 0x1ed   :  { %2874 = vst.msk [vmem:[#allocation0] ss:$72 sm:$0x3] %vm2873_vm7, %v10719_v19   ;;  %v4415_v20 = vsel %vm29_vm6, %v6295_v45, %v4411_v60  ;;  %v6353_v21 = vld [vmem:[%s11805_s0 + $0xd9] sm:$0x2]  }
 0x1ee   :  { %2876 = vst.msk [vmem:[#allocation0 + $0x60] ss:$-24 sm:$0xc] %vm2873_vm7, %v10719_v19   ;;  %4416 = vrot.lane.b32.xlu2 %v4415_v20, %s6723_s14  ;;  %v4716_v1 = vsel %vm5_vm0, %v6353_v21, %v6352_v37  ;;  %v6354_v46 = vld [vmem:[%s11805_s0 + $0x58] sm:$0x4]   ;;  %s6724_s14 = smov 14  }
 0x1ef   :  { %2878 = vst.msk [vmem:[#allocation0 - $0xc0] ss:$72 sm:$0x30] %vm2873_vm7, %v10719_v19   ;;  %v4720_v23 = vsel %vm9_vm1, %v6354_v46, %v4716_v1  ;;  %v6355_v53 = vld [vmem:[%s11805_s0 + $0x1d7] sm:$0x8]  }
 0x1f0   :  { %2880 = vst.msk [vmem:[#allocation0 + $0x120] ss:$-24 sm:$0xc0] %vm2873_vm7, %v10719_v19   ;;  %v4724_v19 = vsel %vm13_vm2, %v6355_v53, %v4720_v23  ;;  %v6356_v28 = vld [vmem:[%s11805_s0 + $0x356] sm:$0x10]   ;;  %vm3239_vm7 = vcmask 441752  }
 0x1f1   :  { %v4728_v51 = vsel %vm17_vm3, %v6356_v28, %v4724_v19  ;;  %v6357_v52 = vld [vmem:[%s11805_s0 + $0x2d5] sm:$0x20]   ;;  %v6345_v32 = vld [vmem:[%s11805_s0 + $0x184] sm:$0x2]   ;;  %3043 = vst.msk [vmem:[#allocation0 + $0xb1] sm:$0x80] %vm3035_vm9, %v10828_v31  }
 0x1f2   :  { %v6358_v54 = vld [vmem:[%s11805_s0 + $0x254] sm:$0x40]   ;;  %v4732_v30 = vsel %vm21_vm4, %v6357_v52, %v4728_v51  ;;  %v6346_v35 = vld [vmem:[%s11805_s0 + $0x103] sm:$0x4]   ;;  %v4676_v3 = vsel %vm5_vm0, %v6345_v32, %v6344_v38  ;;  %v6312_v12 = vld [vmem:[%s11805_s0 + $0xb1] sm:$0x1]  }
 0x1f3   :  { %v6359_v10 = vld [vmem:[%s11805_s0 + $0x3d3] sm:$0x80]   ;;  %v4736_v36 = vsel %vm25_vm5, %v6358_v54, %v4732_v30  ;;  %v6347_v58 = vld [vmem:[%s11805_s0 + $0x82] sm:$0x8]   ;;  %v4680_v4 = vsel %vm9_vm1, %v6346_v35, %v4676_v3  ;;  %v6313_v25 = vld [vmem:[%s11805_s0 + $0x30] sm:$0x2]  }
 0x1f4   :  { %v6348_v40 = vld [vmem:[%s11805_s0 + $0x201] sm:$0x10]   ;;  %v4740_v22 = vsel %vm29_vm6, %v6359_v10, %v4736_v36  ;;  %v4684_v63 = vsel %vm13_vm2, %v6347_v58, %v4680_v4  ;;  %3078 = vst.msk [vmem:[#allocation0 + $0x20] ss:$-24 sm:$0x3] %vm3076_vm8, %v10826_v59   ;;  %v4513_v13 = vsel %vm5_vm0, %v6313_v25, %v6312_v12  ;;  %v11205_v25 = vpop.permute.xlu0 %3359  }
 0x1f5   :  { %v6349_v41 = vld [vmem:[%s11805_s0 + $0x380] sm:$0x20]   ;;  %4741 = vrot.lane.b32.xlu1 %v4740_v22, %s6724_s14  ;;  %v4688_v47 = vsel %vm17_vm3, %v6348_v40, %v4684_v63  ;;  %3080 = vst.msk [vmem:[#allocation0 + $0x80] ss:$-24 sm:$0xc] %vm3076_vm8, %v10826_v59   ;;  %v11197_v63 = vpop.permute.xlu1 %3399  }
 0x1f6   :  { %v6350_v44 = vld [vmem:[%s11805_s0 + $0x2ff] sm:$0x40]   ;;  %v4692_v11 = vsel %vm21_vm4, %v6349_v41, %v4688_v47  ;;  %3082 = vst.msk [vmem:[#allocation0 + $0xe0] ss:$-24 sm:$0x30] %vm3076_vm8, %v10826_v59  }
 0x1f7   :  { %v6351_v17 = vld [vmem:[%s11805_s0 + $0x27e] sm:$0x80]   ;;  %v6314_v48 = vld [vmem:[%s11805_s0 + $0x1af] sm:$0x4]   ;;  %v4696_v49 = vsel %vm25_vm5, %v6350_v44, %v4692_v11  ;;  %v6376_v14 = vld [vmem:[%s11805_s0 + $0x159] sm:$0x1]  }
 0x1f8   :  { %3084 = vst.msk [vmem:[#allocation0 + $0x140] ss:$-24 sm:$0xc0] %vm3076_vm8, %v10826_v59   ;;  %v4517_v59 = vsel %vm9_vm1, %v6314_v48, %v4513_v13  ;;  %v6315_v50 = vld [vmem:[%s11805_s0 + $0x12e] sm:$0x8]   ;;  %v4700_v55 = vsel %vm29_vm6, %v6351_v17, %v4696_v49  ;;  %v11195_v17 = vpop.permute.xlu2 %3440   ;;  %vm3442_vm8 = vcmask 400752  }
 0x1f9   :  { %3037 = vst.msk [vmem:[#allocation0 + $0x40] ss:$-24 sm:$0x7] %vm3035_vm9, %v10828_v31   ;;  %v4521_v56 = vsel %vm13_vm2, %v6315_v50, %v4517_v59  ;;  %v6316_v39 = vld [vmem:[%s11805_s0 + $0x2ad] sm:$0x10]   ;;  %4701 = vrot.lane.b32.xlu0 %v4700_v55, %s6725_s26  ;;  %s6739_s26 = smov 4  }
 0x1fa   :  { %3039 = vst.msk [vmem:[#allocation0 - $0x80] ss:$72 sm:$0x18] %vm3035_vm9, %v10828_v31   ;;  %v4525_v61 = vsel %vm17_vm3, %v6316_v39, %v4521_v56  ;;  %v6317_v62 = vld [vmem:[%s11805_s0 + $0x22c] sm:$0x20]  }
 0x1fb   :  { %3041 = vst.msk [vmem:[#allocation0 + $0x100] ss:$-24 sm:$0x60] %vm3035_vm9, %v10828_v31   ;;  %v4529_v31 = vsel %vm21_vm4, %v6317_v62, %v4525_v61  ;;  %v6318_v43 = vld [vmem:[%s11805_s0 + $0x3ab] sm:$0x40]   ;;  %vm3401_vm9 = vcmask 408952  }
 0x1fc   :  { %2996 = vst.msk [vmem:[#allocation0] ss:$72 sm:$0x3] %vm2995_vm10, %v10836_v29   ;;  %v4533_v2 = vsel %vm25_vm5, %v6318_v43, %v4529_v31  ;;  %v6319_v57 = vld [vmem:[%s11805_s0 + $0x32a] sm:$0x80]  }
 0x1fd   :  { %2998 = vst.msk [vmem:[#allocation0 + $0x60] ss:$-24 sm:$0xc] %vm2995_vm10, %v10836_v29   ;;  %v4537_v0 = vsel %vm29_vm6, %v6319_v57, %v4533_v2  ;;  %v6377_v5 = vld [vmem:[%s11805_s0 + $0xd8] sm:$0x2]  }
 0x1fe   :  { %3000 = vst.msk [vmem:[#allocation0 - $0xc0] ss:$72 sm:$0x30] %vm2995_vm10, %v10836_v29   ;;  %4538 = vrot.lane.b32.xlu2 %v4537_v0, %s6726_s5  ;;  %v6378_v33 = vld [vmem:[%s11805_s0 + $0x57] sm:$0x4]  }
 0x1ff   :  { %3002 = vst.msk [vmem:[#allocation0 + $0x120] ss:$-24 sm:$0xc0] %vm2995_vm10, %v10836_v29   ;;  %v4838_v29 = vsel %vm5_vm0, %v6377_v5, %v6376_v14  ;;  %v6379_v6 = vld [vmem:[%s11805_s0 + $0x1d6] sm:$0x8]   ;;  %vm3361_vm10 = vcmask 417152  }
 0x200   :  { %v4842_v34 = vsel %vm9_vm1, %v6378_v33, %v4838_v29  ;;  %v6380_v7 = vld [vmem:[%s11805_s0 + $0x355] sm:$0x10]   ;;  %v6368_v45 = vld [vmem:[%s11805_s0 + $0x4] sm:$0x1]   ;;  %v6336_v38 = vld [vmem:[%s11805_s0 + $0xb0] sm:$0x1]  }
 0x201   :  { %v6381_v8 = vld [vmem:[%s11805_s0 + $0x2d4] sm:$0x20]   ;;  %v4846_v15 = vsel %vm13_vm2, %v6379_v6, %v4842_v34  ;;  %v6369_v20 = vld [vmem:[%s11805_s0 + $0x183] sm:$0x2]   ;;  %v6337_v35 = vld [vmem:[%s11805_s0 + $0x2f] sm:$0x2]  }
 0x202   :  { %v6382_v16 = vld [vmem:[%s11805_s0 + $0x253] sm:$0x40]   ;;  %v4850_v37 = vsel %vm17_vm3, %v6380_v7, %v4846_v15  ;;  %v6370_v21 = vld [vmem:[%s11805_s0 + $0x102] sm:$0x4]   ;;  %v4798_v23 = vsel %vm5_vm0, %v6369_v20, %v6368_v45  ;;  %v6338_v3 = vld [vmem:[%s11805_s0 + $0x1ae] sm:$0x4]  }
 0x203   :  { %v6383_v60 = vld [vmem:[%s11805_s0 + $0x3d2] sm:$0x80]   ;;  %v6371_v1 = vld [vmem:[%s11805_s0 + $0x81] sm:$0x8]   ;;  %v4854_v46 = vsel %vm21_vm4, %v6381_v8, %v4850_v37  ;;  %v4802_v52 = vsel %vm9_vm1, %v6370_v21, %v4798_v23  ;;  %v6339_v41 = vld [vmem:[%s11805_s0 + $0x12d] sm:$0x8]  }
 0x204   :  { %v6372_v53 = vld [vmem:[%s11805_s0 + $0x200] sm:$0x10]   ;;  %v4858_v51 = vsel %vm25_vm5, %v6382_v16, %v4854_v46  ;;  %3200 = vst.msk [vmem:[#allocation0 + $0x20] ss:$-24 sm:$0x3] %vm3198_vm11, %v10953_v42   ;;  %v4806_v30 = vsel %vm13_vm2, %v6371_v1, %v4802_v52 }
 0x205   :  { %v6373_v19 = vld [vmem:[%s11805_s0 + $0x37f] sm:$0x20]   ;;  %v4862_v10 = vsel %vm29_vm6, %v6383_v60, %v4858_v51  ;;  %3202 = vst.msk [vmem:[#allocation0 + $0x80] ss:$-24 sm:$0xc] %vm3198_vm11, %v10953_v42   ;;  %v4810_v32 = vsel %vm17_vm3, %v6372_v53, %v4806_v30 }
 0x206   :  { %v6374_v28 = vld [vmem:[%s11805_s0 + $0x2fe] sm:$0x40]   ;;  %4863 = vrot.lane.b32.xlu1 %v4862_v10, %s6727_s10  ;;  %3204 = vst.msk [vmem:[#allocation0 + $0xe0] ss:$-24 sm:$0x30] %vm3198_vm11, %v10953_v42   ;;  %v4814_v36 = vsel %vm21_vm4, %v6373_v19, %v4810_v32  ;;  %v11324_v32 = vpop.permute.xlu1 %3521  }
 0x207   :  { %v6375_v54 = vld [vmem:[%s11805_s0 + $0x27d] sm:$0x80]   ;;  %3206 = vst.msk [vmem:[#allocation0 + $0x140] ss:$-24 sm:$0xc0] %vm3198_vm11, %v10953_v42   ;;  %v4635_v42 = vsel %vm5_vm0, %v6337_v35, %v6336_v38  ;;  %v4818_v58 = vsel %vm25_vm5, %v6374_v28, %v4814_v36  ;;  %v11322_v38 = vpop.permute.xlu2 %3562   ;;  %vm3564_vm11 = vcmask 376152  }
 0x208   :  { %3159 = vst.msk [vmem:[#allocation0 + $0x40] ss:$-24 sm:$0x7] %vm3157_vm12, %v10955_v9   ;;  %v4639_v40 = vsel %vm9_vm1, %v6338_v3, %v4635_v42  ;;  %v4822_v22 = vsel %vm29_vm6, %v6375_v54, %v4818_v58  ;;  %v6340_v44 = vld [vmem:[%s11805_s0 + $0x2ac] sm:$0x10]   ;;  %v11332_v42 = vpop.permute.xlu0 %3481  }
 0x209   :  { %3161 = vst.msk [vmem:[#allocation0 - $0x80] ss:$72 sm:$0x18] %vm3157_vm12, %v10955_v9   ;;  %v4643_v4 = vsel %vm13_vm2, %v6339_v41, %v4639_v40  ;;  %4823 = vrot.lane.b32.xlu0 %v4822_v22, %s6728_s18  ;;  %v6341_v47 = vld [vmem:[%s11805_s0 + $0x22b] sm:$0x20]  }
 0x20a   :  { %3163 = vst.msk [vmem:[#allocation0 + $0x100] ss:$-24 sm:$0x60] %vm3157_vm12, %v10955_v9   ;;  %v4647_v12 = vsel %vm17_vm3, %v6340_v44, %v4643_v4  ;;  %v6342_v11 = vld [vmem:[%s11805_s0 + $0x3aa] sm:$0x40]  }
 0x20b   :  { %3165 = vst.msk [vmem:[#allocation0 + $0xb1] sm:$0x80] %vm3157_vm12, %v10955_v9   ;;  %v4651_v9 = vsel %vm21_vm4, %v6341_v47, %v4647_v12  ;;  %v6343_v13 = vld [vmem:[%s11805_s0 + $0x329] sm:$0x80]   ;;  %v6400_v49 = vld [vmem:[%s11805_s0 + $0x158] sm:$0x1]  }
 0x20c   :  { %3118 = vst.msk [vmem:[#allocation0] ss:$72 sm:$0x3] %vm3117_vm13, %v10963_v27   ;;  %v4655_v48 = vsel %vm25_vm5, %v6342_v11, %v4651_v9  ;;  %v6401_v50 = vld [vmem:[%s11805_s0 + $0xd7] sm:$0x2]   ;;  %vm3523_vm12 = vcmask 384352  }
 0x20d   :  { %3120 = vst.msk [vmem:[#allocation0 + $0x60] ss:$-24 sm:$0xc] %vm3117_vm13, %v10963_v27   ;;  %v4659_v59 = vsel %vm29_vm6, %v6343_v13, %v4655_v48  ;;  %v4960_v55 = vsel %vm5_vm0, %v6401_v50, %v6400_v49  ;;  %v6402_v56 = vld [vmem:[%s11805_s0 + $0x56] sm:$0x4]  }
 0x20e   :  { %3122 = vst.msk [vmem:[#allocation0 - $0xc0] ss:$72 sm:$0x30] %vm3117_vm13, %v10963_v27   ;;  %4660 = vrot.lane.b32.xlu2 %v4659_v59, %s6729_s29  ;;  %v6403_v39 = vld [vmem:[%s11805_s0 + $0x1d5] sm:$0x8]  }
 0x20f   :  { %3124 = vst.msk [vmem:[#allocation0 + $0x120] ss:$-24 sm:$0xc0] %vm3117_vm13, %v10963_v27   ;;  %v4964_v27 = vsel %vm9_vm1, %v6402_v56, %v4960_v55  ;;  %v6404_v62 = vld [vmem:[%s11805_s0 + $0x354] sm:$0x10]   ;;  %v11387_v56 = vpop.permute.xlu2 %3684   ;;  %vm3483_vm13 = vcmask 392552  }
 0x210   :  { %v4968_v61 = vsel %vm13_vm2, %v6403_v39, %v4964_v27  ;;  %v6405_v31 = vld [vmem:[%s11805_s0 + $0x2d3] sm:$0x20]   ;;  %v6392_v0 = vld [vmem:[%s11805_s0 + $0x3] sm:$0x1]   ;;  %v6360_v20 = vld [vmem:[%s11805_s0 + $0xaf] sm:$0x1]  }
 0x211   :  { %v6406_v43 = vld [vmem:[%s11805_s0 + $0x252] sm:$0x40]   ;;  %v4972_v2 = vsel %vm17_vm3, %v6404_v62, %v4968_v61  ;;  %v6393_v14 = vld [vmem:[%s11805_s0 + $0x182] sm:$0x2]   ;;  %v6361_v1 = vld [vmem:[%s11805_s0 + $0x2e] sm:$0x2]  }
 0x212   :  { %v6407_v57 = vld [vmem:[%s11805_s0 + $0x3d1] sm:$0x80]   ;;  %v4976_v5 = vsel %vm21_vm4, %v6405_v31, %v4972_v2  ;;  %v4920_v29 = vsel %vm5_vm0, %v6393_v14, %v6392_v0  ;;  %v6394_v33 = vld [vmem:[%s11805_s0 + $0x101] sm:$0x4]   ;;  %v4757_v23 = vsel %vm5_vm0, %v6361_v1, %v6360_v20  ;;  %v6362_v53 = vld [vmem:[%s11805_s0 + $0x1ad] sm:$0x4]  }
 0x213   :  { %v6395_v34 = vld [vmem:[%s11805_s0 + $0x80] sm:$0x8]   ;;  %v4980_v7 = vsel %vm25_vm5, %v6406_v43, %v4976_v5  ;;  %v4924_v8 = vsel %vm9_vm1, %v6394_v33, %v4920_v29  ;;  %3322 = vst.msk [vmem:[#allocation0 + $0x20] ss:$-24 sm:$0x3] %vm3320_vm14, %v11072_v24   ;;  %v11400_v43 = vpop.permute.xlu1 %3643  }
 0x214   :  { %v6396_v6 = vld [vmem:[%s11805_s0 + $0x1ff] sm:$0x10]   ;;  %v4984_v45 = vsel %vm29_vm6, %v6407_v57, %v4980_v7  ;;  %v4928_v37 = vsel %vm13_vm2, %v6395_v34, %v4924_v8  ;;  %3324 = vst.msk [vmem:[#allocation0 + $0x80] ss:$-24 sm:$0xc] %vm3320_vm14, %v11072_v24  }
 0x215   :  { %v6397_v15 = vld [vmem:[%s11805_s0 + $0x37e] sm:$0x20]   ;;  %4985 = vrot.lane.b32.xlu1 %v4984_v45, %s6730_s2  ;;  %v4932_v21 = vsel %vm17_vm3, %v6396_v6, %v4928_v37  ;;  %3326 = vst.msk [vmem:[#allocation0 + $0xe0] ss:$-24 sm:$0x30] %vm3320_vm14, %v11072_v24   ;;  %v11424_v6 = vpop.permute.xlu0 %3603  }
 0x216   :  { %v6398_v16 = vld [vmem:[%s11805_s0 + $0x2fd] sm:$0x40]   ;;  %v4936_v46 = vsel %vm21_vm4, %v6397_v15, %v4932_v21  ;;  %3328 = vst.msk [vmem:[#allocation0 + $0x140] ss:$-24 sm:$0xc0] %vm3320_vm14, %v11072_v24   ;;  %v4761_v24 = vsel %vm9_vm1, %v6362_v53, %v4757_v23  ;;  %vm3686_vm14 = vcmask 351552  }
 0x217   :  { %v6399_v60 = vld [vmem:[%s11805_s0 + $0x27c] sm:$0x80]   ;;  %v4940_v19 = vsel %vm25_vm5, %v6398_v16, %v4936_v46  ;;  %v6363_v28 = vld [vmem:[%s11805_s0 + $0x12c] sm:$0x8]   ;;  %3287 = vst.msk [vmem:[#allocation0 + $0xb1] sm:$0x80] %vm3279_vm15, %v11074_v18   ;;  %v11459_v23 = vpop.permute.xlu2 %3806  }
 0x218   :  { %v4944_v51 = vsel %vm29_vm6, %v6399_v60, %v4940_v19  ;;  %3281 = vst.msk [vmem:[#allocation0 + $0x40] ss:$-24 sm:$0x7] %vm3279_vm15, %v11074_v18   ;;  %v4765_v52 = vsel %vm13_vm2, %v6363_v28, %v4761_v24  ;;  %v6364_v54 = vld [vmem:[%s11805_s0 + $0x2ab] sm:$0x10]  }
 0x219   :  { %4945 = vrot.lane.b32.xlu0 %v4944_v51, %s6731_s11  ;;  %3283 = vst.msk [vmem:[#allocation0 - $0x80] ss:$72 sm:$0x18] %vm3279_vm15, %v11074_v18   ;;  %v4769_v10 = vsel %vm17_vm3, %v6364_v54, %v4765_v52  ;;  %v6365_v30 = vld [vmem:[%s11805_s0 + $0x22a] sm:$0x20]  }
 0x21a   :  { %3285 = vst.msk [vmem:[#allocation0 + $0x100] ss:$-24 sm:$0x60] %vm3279_vm15, %v11074_v18   ;;  %v4773_v35 = vsel %vm21_vm4, %v6365_v30, %v4769_v10  ;;  %v6366_v36 = vld [vmem:[%s11805_s0 + $0x3a9] sm:$0x40]   ;;  %vm3645_vm15 = vcmask 359752  }
 0x21b   :  { %v4777_v18 = vsel %vm25_vm5, %v6366_v36, %v4773_v35  ;;  %v6367_v3 = vld [vmem:[%s11805_s0 + $0x328] sm:$0x80]   ;;  %v6424_v58 = vld [vmem:[%s11805_s0 + $0x157] sm:$0x1]   ;;  %v6416_v59 = vld [vmem:[%s11805_s0 + $0x2] sm:$0x1]   ;;  %v11484_v54 = vpop.permute.xlu1 %3765  }
 0x21c   :  { %3240 = vst.msk [vmem:[#allocation0] ss:$72 sm:$0x3] %vm3239_vm7, %v11088_v26   ;;  %v4781_v40 = vsel %vm29_vm6, %v6367_v3, %v4777_v18  ;;  %v6425_v41 = vld [vmem:[%s11805_s0 + $0xd6] sm:$0x2]  }
 0x21d   :  { %3242 = vst.msk [vmem:[#allocation0 + $0x60] ss:$-24 sm:$0xc] %vm3239_vm7, %v11088_v26   ;;  %4782 = vrot.lane.b32.xlu2 %v4781_v40, %s6732_s23  ;;  %v5082_v22 = vsel %vm5_vm0, %v6425_v41, %v6424_v58  ;;  %v6426_v4 = vld [vmem:[%s11805_s0 + $0x55] sm:$0x4]   ;;  %s6733_s23 = smov 5  }
 0x21e   :  { %3244 = vst.msk [vmem:[#allocation0 - $0xc0] ss:$72 sm:$0x30] %vm3239_vm7, %v11088_v26   ;;  %v5086_v44 = vsel %vm9_vm1, %v6426_v4, %v5082_v22  ;;  %v6427_v12 = vld [vmem:[%s11805_s0 + $0x1d4] sm:$0x8]  }
 0x21f   :  { %3246 = vst.msk [vmem:[#allocation0 + $0x120] ss:$-24 sm:$0xc0] %vm3239_vm7, %v11088_v26   ;;  %v5090_v26 = vsel %vm13_vm2, %v6427_v12, %v5086_v44  ;;  %v6428_v47 = vld [vmem:[%s11805_s0 + $0x353] sm:$0x10]   ;;  %v11516_v12 = vpop.permute.xlu0 %3725   ;;  %vm3605_vm7 = vcmask 367952  }
 0x220   :  { %v5094_v9 = vsel %vm17_vm3, %v6428_v47, %v5090_v26  ;;  %v6429_v11 = vld [vmem:[%s11805_s0 + $0x2d2] sm:$0x20]   ;;  %v6417_v50 = vld [vmem:[%s11805_s0 + $0x181] sm:$0x2]   ;;  %3409 = vst.msk [vmem:[#allocation0 + $0xb1] sm:$0x80] %vm3401_vm9, %v11197_v63  }
 0x221   :  { %v6430_v13 = vld [vmem:[%s11805_s0 + $0x251] sm:$0x40]   ;;  %v5098_v49 = vsel %vm21_vm4, %v6429_v11, %v5094_v9  ;;  %v6418_v55 = vld [vmem:[%s11805_s0 + $0x100] sm:$0x4]   ;;  %v5042_v39 = vsel %vm5_vm0, %v6417_v50, %v6416_v59  ;;  %v6384_v29 = vld [vmem:[%s11805_s0 + $0xae] sm:$0x1]  }
 0x222   :  { %v6431_v48 = vld [vmem:[%s11805_s0 + $0x3d0] sm:$0x80]   ;;  %v5102_v27 = vsel %vm25_vm5, %v6430_v13, %v5098_v49  ;;  %v6419_v61 = vld [vmem:[%s11805_s0 + $0x7f] sm:$0x8]   ;;  %v5046_v57 = vsel %vm9_vm1, %v6418_v55, %v5042_v39  ;;  %v6385_v34 = vld [vmem:[%s11805_s0 + $0x2d] sm:$0x2]  }
 0x223   :  { %v6420_v62 = vld [vmem:[%s11805_s0 + $0x1fe] sm:$0x10]   ;;  %v5106_v2 = vsel %vm29_vm6, %v6431_v48, %v5102_v27  ;;  %v5050_v5 = vsel %vm13_vm2, %v6419_v61, %v5046_v57  ;;  %3444 = vst.msk [vmem:[#allocation0 + $0x20] ss:$-24 sm:$0x3] %vm3442_vm8, %v11195_v17   ;;  %v4879_v8 = vsel %vm5_vm0, %v6385_v34, %v6384_v29 }
 0x224   :  { %v6421_v31 = vld [vmem:[%s11805_s0 + $0x37d] sm:$0x20]   ;;  %5107 = vrot.lane.b32.xlu1 %v5106_v2, %s6733_s23  ;;  %v5054_v33 = vsel %vm17_vm3, %v6420_v62, %v5050_v5  ;;  %3446 = vst.msk [vmem:[#allocation0 + $0x80] ss:$-24 sm:$0xc] %vm3442_vm8, %v11195_v17   ;;  %v11556_v2 = vpop.permute.xlu2 %3928  }
 0x225   :  { %v6422_v0 = vld [vmem:[%s11805_s0 + $0x2fc] sm:$0x40]   ;;  %v5058_v7 = vsel %vm21_vm4, %v6421_v31, %v5054_v33  ;;  %3448 = vst.msk [vmem:[#allocation0 + $0xe0] ss:$-24 sm:$0x30] %vm3442_vm8, %v11195_v17  }
 0x226   :  { %v6423_v14 = vld [vmem:[%s11805_s0 + $0x27b] sm:$0x80]   ;;  %v6386_v15 = vld [vmem:[%s11805_s0 + $0x1ac] sm:$0x4]   ;;  %v5062_v16 = vsel %vm25_vm5, %v6422_v0, %v5058_v7  ;;  %v6448_v28 = vld [vmem:[%s11805_s0 + $0x156] sm:$0x1]  }
 0x227   :  { %3450 = vst.msk [vmem:[#allocation0 + $0x140] ss:$-24 sm:$0xc0] %vm3442_vm8, %v11195_v17   ;;  %v4883_v17 = vsel %vm9_vm1, %v6386_v15, %v4879_v8  ;;  %v6387_v60 = vld [vmem:[%s11805_s0 + $0x12b] sm:$0x8]   ;;  %v5066_v45 = vsel %vm29_vm6, %v6423_v14, %v5062_v16  ;;  %v11587_v16 = vpop.permute.xlu1 %3887   ;;  %vm4011_vm8 = vcmask 285952  }
 0x228   :  { %3403 = vst.msk [vmem:[#allocation0 + $0x40] ss:$-24 sm:$0x7] %vm3401_vm9, %v11197_v63   ;;  %v4887_v37 = vsel %vm13_vm2, %v6387_v60, %v4883_v17  ;;  %v6388_v20 = vld [vmem:[%s11805_s0 + $0x2aa] sm:$0x10]   ;;  %5067 = vrot.lane.b32.xlu0 %v5066_v45, %s6734_s4 }
 0x229   :  { %3405 = vst.msk [vmem:[#allocation0 - $0x80] ss:$72 sm:$0x18] %vm3401_vm9, %v11197_v63   ;;  %v4891_v21 = vsel %vm17_vm3, %v6388_v20, %v4887_v37  ;;  %v6389_v1 = vld [vmem:[%s11805_s0 + $0x229] sm:$0x20]  }
 0x22a   :  { %3407 = vst.msk [vmem:[#allocation0 + $0x100] ss:$-24 sm:$0x60] %vm3401_vm9, %v11197_v63   ;;  %v4895_v63 = vsel %vm21_vm4, %v6389_v1, %v4891_v21  ;;  %v6390_v46 = vld [vmem:[%s11805_s0 + $0x3a8] sm:$0x40]   ;;  %v11607_v1 = vpop.permute.xlu0 %3847   ;;  %vm3971_vm9 = vcmask 294152  }
 0x22b   :  { %3362 = vst.msk [vmem:[#allocation0] ss:$72 sm:$0x3] %vm3361_vm10, %v11205_v25   ;;  %v4899_v53 = vsel %vm25_vm5, %v6390_v46, %v4895_v63  ;;  %v6391_v19 = vld [vmem:[%s11805_s0 + $0x327] sm:$0x80]  }
 0x22c   :  { %3364 = vst.msk [vmem:[#allocation0 + $0x60] ss:$-24 sm:$0xc] %vm3361_vm10, %v11205_v25   ;;  %v4903_v24 = vsel %vm29_vm6, %v6391_v19, %v4899_v53  ;;  %v6449_v51 = vld [vmem:[%s11805_s0 + $0xd5] sm:$0x2]  }
 0x22d   :  { %3366 = vst.msk [vmem:[#allocation0 - $0xc0] ss:$72 sm:$0x30] %vm3361_vm10, %v11205_v25   ;;  %4904 = vrot.lane.b32.xlu2 %v4903_v24, %s6735_s13  ;;  %v6450_v52 = vld [vmem:[%s11805_s0 + $0x54] sm:$0x4]  }
 0x22e   :  { %3368 = vst.msk [vmem:[#allocation0 + $0x120] ss:$-24 sm:$0xc0] %vm3361_vm10, %v11205_v25   ;;  %v5204_v25 = vsel %vm5_vm0, %v6449_v51, %v6448_v28  ;;  %v6451_v30 = vld [vmem:[%s11805_s0 + $0x1d3] sm:$0x8]   ;;  %vm4174_vm10 = vcmask 253152  }
 0x22f   :  { %v5208_v10 = vsel %vm9_vm1, %v6450_v52, %v5204_v25  ;;  %v6452_v35 = vld [vmem:[%s11805_s0 + $0x352] sm:$0x10]   ;;  %v6440_v40 = vld [vmem:[%s11805_s0 + $0x1] sm:$0x1]   ;;  %v6408_v27 = vld [vmem:[%s11805_s0 + $0xad] sm:$0x1]   ;;  %v11639_v52 = vpop.permute.xlu2 %4050  }
 0x230   :  { %v6453_v36 = vld [vmem:[%s11805_s0 + $0x2d1] sm:$0x20]   ;;  %v5212_v18 = vsel %vm13_vm2, %v6451_v30, %v5208_v10  ;;  %v6441_v22 = vld [vmem:[%s11805_s0 + $0x180] sm:$0x2]   ;;  %v6409_v61 = vld [vmem:[%s11805_s0 + $0x2c] sm:$0x2]  }
 0x231   :  { %v6454_v3 = vld [vmem:[%s11805_s0 + $0x250] sm:$0x40]   ;;  %v5216_v41 = vsel %vm17_vm3, %v6452_v35, %v5212_v18  ;;  %v6442_v4 = vld [vmem:[%s11805_s0 + $0xff] sm:$0x4]   ;;  %v5164_v47 = vsel %vm5_vm0, %v6441_v22, %v6440_v40  ;;  %v6410_v31 = vld [vmem:[%s11805_s0 + $0x1ab] sm:$0x4]   ;;  %v11667_v40 = vpop.permute.xlu1 %4009  }
 0x232   :  { %v6455_v58 = vld [vmem:[%s11805_s0 + $0x3cf] sm:$0x80]   ;;  %v6443_v44 = vld [vmem:[%s11805_s0 + $0x7e] sm:$0x8]   ;;  %v5220_v26 = vsel %vm21_vm4, %v6453_v36, %v5216_v41  ;;  %v5168_v49 = vsel %vm9_vm1, %v6442_v4, %v5164_v47  ;;  %v6411_v14 = vld [vmem:[%s11805_s0 + $0x12a] sm:$0x8]  }
 0x233   :  { %v6444_v9 = vld [vmem:[%s11805_s0 + $0x1fd] sm:$0x10]   ;;  %v5224_v48 = vsel %vm25_vm5, %v6454_v3, %v5220_v26  ;;  %3566 = vst.msk [vmem:[#allocation0 + $0x20] ss:$-24 sm:$0x3] %vm3564_vm11, %v11322_v38   ;;  %v5172_v55 = vsel %vm13_vm2, %v6443_v44, %v5168_v49 }
 0x234   :  { %v6445_v11 = vld [vmem:[%s11805_s0 + $0x37c] sm:$0x20]   ;;  %v5228_v50 = vsel %vm29_vm6, %v6455_v58, %v5224_v48  ;;  %3568 = vst.msk [vmem:[#allocation0 + $0x80] ss:$-24 sm:$0xc] %vm3564_vm11, %v11322_v38   ;;  %v5176_v39 = vsel %vm17_vm3, %v6444_v9, %v5172_v55  ;;  %v3970_v9 = vpop.permute.xlu0 %3969  }
 0x235   :  { %v6446_v13 = vld [vmem:[%s11805_s0 + $0x2fb] sm:$0x40]   ;;  %5229 = vrot.lane.b32.xlu1 %v5228_v50, %s6736_s17  ;;  %3570 = vst.msk [vmem:[#allocation0 + $0xe0] ss:$-24 sm:$0x30] %vm3564_vm11, %v11322_v38   ;;  %v5180_v62 = vsel %vm21_vm4, %v6445_v11, %v5176_v39 }
 0x236   :  { %v6447_v59 = vld [vmem:[%s11805_s0 + $0x27a] sm:$0x80]   ;;  %3572 = vst.msk [vmem:[#allocation0 + $0x140] ss:$-24 sm:$0xc0] %vm3564_vm11, %v11322_v38   ;;  %v5001_v38 = vsel %vm5_vm0, %v6409_v61, %v6408_v27  ;;  %v5184_v57 = vsel %vm25_vm5, %v6446_v13, %v5180_v62  ;;  %vm4133_vm11 = vcmask 261352  }
 0x237   :  { %3525 = vst.msk [vmem:[#allocation0 + $0x40] ss:$-24 sm:$0x7] %vm3523_vm12, %v11324_v32   ;;  %v5005_v0 = vsel %vm9_vm1, %v6410_v31, %v5001_v38  ;;  %v5188_v5 = vsel %vm29_vm6, %v6447_v59, %v5184_v57  ;;  %v6412_v33 = vld [vmem:[%s11805_s0 + $0x2a9] sm:$0x10]  }
 0x238   :  { %3527 = vst.msk [vmem:[#allocation0 - $0x80] ss:$72 sm:$0x18] %vm3523_vm12, %v11324_v32   ;;  %v5009_v29 = vsel %vm13_vm2, %v6411_v14, %v5005_v0  ;;  %5189 = vrot.lane.b32.xlu0 %v5188_v5, %s6737_s9  ;;  %v6413_v7 = vld [vmem:[%s11805_s0 + $0x228] sm:$0x20]  }
 0x239   :  { %3529 = vst.msk [vmem:[#allocation0 + $0x100] ss:$-24 sm:$0x60] %vm3523_vm12, %v11324_v32   ;;  %v5013_v34 = vsel %vm17_vm3, %v6412_v33, %v5009_v29  ;;  %v6414_v8 = vld [vmem:[%s11805_s0 + $0x3a7] sm:$0x40]  }
 0x23a   :  { %3531 = vst.msk [vmem:[#allocation0 + $0xb1] sm:$0x80] %vm3523_vm12, %v11324_v32   ;;  %v5017_v32 = vsel %vm21_vm4, %v6413_v7, %v5013_v34  ;;  %v6415_v15 = vld [vmem:[%s11805_s0 + $0x326] sm:$0x80]   ;;  %v6432_v60 = vld [vmem:[%s11805_s0 + $0xac] sm:$0x1]  }
 0x23b   :  { %3484 = vst.msk [vmem:[#allocation0] ss:$72 sm:$0x3] %vm3483_vm13, %v11332_v42   ;;  %v5021_v17 = vsel %vm25_vm5, %v6414_v8, %v5017_v32  ;;  %v6433_v37 = vld [vmem:[%s11805_s0 + $0x2b] sm:$0x2]   ;;  %vm4093_vm12 = vcmask 269552  }
 0x23c   :  { %3486 = vst.msk [vmem:[#allocation0 + $0x60] ss:$-24 sm:$0xc] %vm3483_vm13, %v11332_v42   ;;  %v5025_v45 = vsel %vm29_vm6, %v6415_v15, %v5021_v17  ;;  %v5123_v20 = vsel %vm5_vm0, %v6433_v37, %v6432_v60  ;;  %v6434_v21 = vld [vmem:[%s11805_s0 + $0x1aa] sm:$0x4]   ;;  %v4092_v13 = vpop.permute.xlu0 %4091  }
 0x23d   :  { %3488 = vst.msk [vmem:[#allocation0 - $0xc0] ss:$72 sm:$0x30] %vm3483_vm13, %v11332_v42   ;;  %5026 = vrot.lane.b32.xlu2 %v5025_v45, %s6738_s8  ;;  %v6435_v63 = vld [vmem:[%s11805_s0 + $0x129] sm:$0x8]  }
 0x23e   :  { %3490 = vst.msk [vmem:[#allocation0 + $0x120] ss:$-24 sm:$0xc0] %vm3483_vm13, %v11332_v42   ;;  %v5127_v42 = vsel %vm9_vm1, %v6434_v21, %v5123_v20  ;;  %v6436_v53 = vld [vmem:[%s11805_s0 + $0x2a8] sm:$0x10]   ;;  %vm4296_vm13 = vcmask 228552  }
 0x23f   :  { %3688 = vst.msk [vmem:[#allocation0 + $0x20] ss:$-24 sm:$0x3] %vm3686_vm14, %v11387_v56   ;;  %v5131_v46 = vsel %vm13_vm2, %v6435_v63, %v5127_v42  ;;  %v6437_v24 = vld [vmem:[%s11805_s0 + $0x227] sm:$0x20]  }
 0x240   :  { %3690 = vst.msk [vmem:[#allocation0 + $0x80] ss:$-24 sm:$0xc] %vm3686_vm14, %v11387_v56   ;;  %v5135_v19 = vsel %vm17_vm3, %v6436_v53, %v5131_v46  ;;  %v6438_v51 = vld [vmem:[%s11805_s0 + $0x3a6] sm:$0x40]  }
 0x241   :  { %3692 = vst.msk [vmem:[#allocation0 + $0xe0] ss:$-24 sm:$0x30] %vm3686_vm14, %v11387_v56   ;;  %v5139_v28 = vsel %vm21_vm4, %v6437_v24, %v5135_v19  ;;  %v6439_v25 = vld [vmem:[%s11805_s0 + $0x325] sm:$0x80]  }
 0x242   :  { %3694 = vst.msk [vmem:[#allocation0 + $0x140] ss:$-24 sm:$0xc0] %vm3686_vm14, %v11387_v56   ;;  %v5143_v56 = vsel %vm25_vm5, %v6438_v51, %v5139_v28  ;;  %v6456_v30 = vld [vmem:[%s11805_s0 + $0xab] sm:$0x1]   ;;  %vm4255_vm14 = vcmask 236752  }
 0x243   :  { %3647 = vst.msk [vmem:[#allocation0 + $0x40] ss:$-24 sm:$0x7] %vm3645_vm15, %v11400_v43   ;;  %v5147_v10 = vsel %vm29_vm6, %v6439_v25, %v5143_v56  ;;  %v6457_v35 = vld [vmem:[%s11805_s0 + $0x2a] sm:$0x2]  }
 0x244   :  { %3649 = vst.msk [vmem:[#allocation0 - $0x80] ss:$72 sm:$0x18] %vm3645_vm15, %v11400_v43   ;;  %v5245_v36 = vsel %vm5_vm0, %v6457_v35, %v6456_v30  ;;  %v6458_v18 = vld [vmem:[%s11805_s0 + $0x1a9] sm:$0x4]   ;;  %vm3808_vm0 = vcmask 326952   ;;  %v4214_v49 = vpop.permute.xlu0 %4213  }
 0x245   :  { %3651 = vst.msk [vmem:[#allocation0 + $0x100] ss:$-24 sm:$0x60] %vm3645_vm15, %v11400_v43   ;;  %5148 = vrot.lane.b32.xlu2 %v5147_v10, %s6739_s26  ;;  %v6459_v3 = vld [vmem:[%s11805_s0 + $0x128] sm:$0x8]  }
 0x246   :  { %3653 = vst.msk [vmem:[#allocation0 + $0xb1] sm:$0x80] %vm3645_vm15, %v11400_v43   ;;  %v5249_v43 = vsel %vm9_vm1, %v6458_v18, %v5245_v36  ;;  %v6460_v58 = vld [vmem:[%s11805_s0 + $0x2a7] sm:$0x10]   ;;  %vm3767_vm1 = vcmask 335152   ;;  %vm4215_vm15 = vcmask 244952  }
 0x247   :  { %3606 = vst.msk [vmem:[#allocation0] ss:$72 sm:$0x3] %vm3605_vm7, %v11424_v6   ;;  %v5253_v41 = vsel %vm13_vm2, %v6459_v3, %v5249_v43  ;;  %v6461_v22 = vld [vmem:[%s11805_s0 + $0x226] sm:$0x20]   ;;  %vm3727_vm2 = vcmask 343352  }
 0x248   :  { %3608 = vst.msk [vmem:[#allocation0 + $0x60] ss:$-24 sm:$0xc] %vm3605_vm7, %v11424_v6   ;;  %v5257_v4 = vsel %vm17_vm3, %v6460_v58, %v5253_v41  ;;  %v6462_v44 = vld [vmem:[%s11805_s0 + $0x3a5] sm:$0x40]   ;;  %vm3930_vm3 = vcmask 302352  }
 0x249   :  { %3610 = vst.msk [vmem:[#allocation0 - $0xc0] ss:$72 sm:$0x30] %vm3605_vm7, %v11424_v6   ;;  %v5261_v26 = vsel %vm21_vm4, %v6461_v22, %v5257_v4  ;;  %v6463_v47 = vld [vmem:[%s11805_s0 + $0x324] sm:$0x80]   ;;  %s6740_s0 = smov 1  }
 0x24a   :  { %3612 = vst.msk [vmem:[#allocation0 + $0x120] ss:$-24 sm:$0xc0] %vm3605_vm7, %v11424_v6   ;;  %v5265_v6 = vsel %vm25_vm5, %v6462_v44, %v5261_v26  ;;  %vm3889_vm4 = vcmask 310552   ;;  %vm3849_vm5 = vcmask 318752   ;;  %vm4418_vm7 = vcmask 203952  }
 0x24b   :  { %3810 = vst.msk [vmem:[#allocation0 + $0x20] ss:$-24 sm:$0x3] %vm3808_vm0, %v11459_v23   ;;  %v5269_v11 = vsel %vm29_vm6, %v6463_v47, %v5265_v6  ;;  %vm4052_vm6 = vcmask 277752  }
 0x24c   :  { %3812 = vst.msk [vmem:[#allocation0 + $0x80] ss:$-24 sm:$0xc] %vm3808_vm0, %v11459_v23   ;;  %v4336_v55 = vpop.permute.xlu0 %4335  }
 0x24d   :  { %3814 = vst.msk [vmem:[#allocation0 + $0xe0] ss:$-24 sm:$0x30] %vm3808_vm0, %v11459_v23   ;;  %5270 = vrot.lane.b32.xlu2 %v5269_v11, %s6740_s0 }
 0x24e   :  { %3816 = vst.msk [vmem:[#allocation0 + $0x140] ss:$-24 sm:$0xc0] %vm3808_vm0, %v11459_v23   ;;  %v4173_v23 = vpop.permute.xlu2 %4172   ;;  %vm4377_vm0 = vcmask 212152  }
 0x24f   :  { %3769 = vst.msk [vmem:[#allocation0 + $0x40] ss:$-24 sm:$0x7] %vm3767_vm1, %v11484_v54  }
 0x250   :  { %3771 = vst.msk [vmem:[#allocation0 - $0x80] ss:$72 sm:$0x18] %vm3767_vm1, %v11484_v54  }
 0x251   :  { %3773 = vst.msk [vmem:[#allocation0 + $0x100] ss:$-24 sm:$0x60] %vm3767_vm1, %v11484_v54  }
 0x252   :  { %3775 = vst.msk [vmem:[#allocation0 + $0xb1] sm:$0x80] %vm3767_vm1, %v11484_v54   ;;  %v4132_v54 = vpop.permute.xlu1 %4131   ;;  %vm4337_vm1 = vcmask 220352  }
 0x253   :  { %3728 = vst.msk [vmem:[#allocation0] ss:$72 sm:$0x3] %vm3727_vm2, %v11516_v12  }
 0x254   :  { %3730 = vst.msk [vmem:[#allocation0 + $0x60] ss:$-24 sm:$0xc] %vm3727_vm2, %v11516_v12   ;;  %v4458_v61 = vpop.permute.xlu0 %4457  }
 0x255   :  { %3732 = vst.msk [vmem:[#allocation0 - $0xc0] ss:$72 sm:$0x30] %vm3727_vm2, %v11516_v12  }
 0x256   :  { %3734 = vst.msk [vmem:[#allocation0 + $0x120] ss:$-24 sm:$0xc0] %vm3727_vm2, %v11516_v12   ;;  %v4295_v12 = vpop.permute.xlu2 %4294   ;;  %vm4540_vm2 = vcmask 179352  }
 0x257   :  { %3932 = vst.msk [vmem:[#allocation0 + $0x20] ss:$-24 sm:$0x3] %vm3930_vm3, %v11556_v2  }
 0x258   :  { %3934 = vst.msk [vmem:[#allocation0 + $0x80] ss:$-24 sm:$0xc] %vm3930_vm3, %v11556_v2  }
 0x259   :  { %3936 = vst.msk [vmem:[#allocation0 + $0xe0] ss:$-24 sm:$0x30] %vm3930_vm3, %v11556_v2  }
 0x25a   :  { %3938 = vst.msk [vmem:[#allocation0 + $0x140] ss:$-24 sm:$0xc0] %vm3930_vm3, %v11556_v2   ;;  %v4254_v48 = vpop.permute.xlu1 %4253   ;;  %vm4499_vm3 = vcmask 187552  }
 0x25b   :  { %3891 = vst.msk [vmem:[#allocation0 + $0x40] ss:$-24 sm:$0x7] %vm3889_vm4, %v11587_v16  }
 0x25c   :  { %3893 = vst.msk [vmem:[#allocation0 - $0x80] ss:$72 sm:$0x18] %vm3889_vm4, %v11587_v16   ;;  %v4580_v31 = vpop.permute.xlu0 %4579  }
 0x25d   :  { %3895 = vst.msk [vmem:[#allocation0 + $0x100] ss:$-24 sm:$0x60] %vm3889_vm4, %v11587_v16  }
 0x25e   :  { %3897 = vst.msk [vmem:[#allocation0 + $0xb1] sm:$0x80] %vm3889_vm4, %v11587_v16   ;;  %v4417_v59 = vpop.permute.xlu2 %4416   ;;  %vm4459_vm4 = vcmask 195752  }
 0x25f   :  { %3850 = vst.msk [vmem:[#allocation0] ss:$72 sm:$0x3] %vm3849_vm5, %v11607_v1  }
 0x260   :  { %3852 = vst.msk [vmem:[#allocation0 + $0x60] ss:$-24 sm:$0xc] %vm3849_vm5, %v11607_v1  }
 0x261   :  { %3854 = vst.msk [vmem:[#allocation0 - $0xc0] ss:$72 sm:$0x30] %vm3849_vm5, %v11607_v1  }
 0x262   :  { %3856 = vst.msk [vmem:[#allocation0 + $0x120] ss:$-24 sm:$0xc0] %vm3849_vm5, %v11607_v1   ;;  %v4376_v50 = vpop.permute.xlu1 %4375   ;;  %vm4662_vm5 = vcmask 154752  }
 0x263   :  { %4054 = vst.msk [vmem:[#allocation0 + $0x20] ss:$-24 sm:$0x3] %vm4052_vm6, %v11639_v52  }
 0x264   :  { %4056 = vst.msk [vmem:[#allocation0 + $0x80] ss:$-24 sm:$0xc] %vm4052_vm6, %v11639_v52  }
 0x265   :  { %4058 = vst.msk [vmem:[#allocation0 + $0xe0] ss:$-24 sm:$0x30] %vm4052_vm6, %v11639_v52  }
 0x266   :  { %4060 = vst.msk [vmem:[#allocation0 + $0x140] ss:$-24 sm:$0xc0] %vm4052_vm6, %v11639_v52   ;;  %v4539_v27 = vpop.permute.xlu2 %4538   ;;  %vm4621_vm6 = vcmask 162952  }
 0x267   :  { %4013 = vst.msk [vmem:[#allocation0 + $0x40] ss:$-24 sm:$0x7] %vm4011_vm8, %v11667_v40  }
 0x268   :  { %4015 = vst.msk [vmem:[#allocation0 - $0x80] ss:$72 sm:$0x18] %vm4011_vm8, %v11667_v40  }
 0x269   :  { %4017 = vst.msk [vmem:[#allocation0 + $0x100] ss:$-24 sm:$0x60] %vm4011_vm8, %v11667_v40  }
 0x26a   :  { %4019 = vst.msk [vmem:[#allocation0 + $0xb1] sm:$0x80] %vm4011_vm8, %v11667_v40   ;;  %v4498_v39 = vpop.permute.xlu1 %4497   ;;  %vm4581_vm8 = vcmask 171152  }
 0x26b   :  { %3972 = vst.msk [vmem:[#allocation0] ss:$72 sm:$0x3] %vm3971_vm9, %v3970_v9   ;;  %v4702_v0 = vpop.permute.xlu0 %4701  }
 0x26c   :  { %3974 = vst.msk [vmem:[#allocation0 + $0x60] ss:$-24 sm:$0xc] %vm3971_vm9, %v3970_v9  }
 0x26d   :  { %3976 = vst.msk [vmem:[#allocation0 - $0xc0] ss:$72 sm:$0x30] %vm3971_vm9, %v3970_v9  }
 0x26e   :  { %3978 = vst.msk [vmem:[#allocation0 + $0x120] ss:$-24 sm:$0xc0] %vm3971_vm9, %v3970_v9   ;;  %v4661_v62 = vpop.permute.xlu2 %4660   ;;  %vm4784_vm9 = vcmask 130152  }
 0x26f   :  { %4176 = vst.msk [vmem:[#allocation0 + $0x20] ss:$-24 sm:$0x3] %vm4174_vm10, %v4173_v23  }
 0x270   :  { %4178 = vst.msk [vmem:[#allocation0 + $0x80] ss:$-24 sm:$0xc] %vm4174_vm10, %v4173_v23  }
 0x271   :  { %4180 = vst.msk [vmem:[#allocation0 + $0xe0] ss:$-24 sm:$0x30] %vm4174_vm10, %v4173_v23  }
 0x272   :  { %4182 = vst.msk [vmem:[#allocation0 + $0x140] ss:$-24 sm:$0xc0] %vm4174_vm10, %v4173_v23   ;;  %v4620_v38 = vpop.permute.xlu1 %4619   ;;  %vm4743_vm10 = vcmask 138352  }
 0x273   :  { %4135 = vst.msk [vmem:[#allocation0 + $0x40] ss:$-24 sm:$0x7] %vm4133_vm11, %v4132_v54  }
 0x274   :  { %4137 = vst.msk [vmem:[#allocation0 - $0x80] ss:$72 sm:$0x18] %vm4133_vm11, %v4132_v54  }
 0x275   :  { %4139 = vst.msk [vmem:[#allocation0 + $0x100] ss:$-24 sm:$0x60] %vm4133_vm11, %v4132_v54  }
 0x276   :  { %4141 = vst.msk [vmem:[#allocation0 + $0xb1] sm:$0x80] %vm4133_vm11, %v4132_v54   ;;  %vm4703_vm11 = vcmask 146552  }
 0x277   :  { %4094 = vst.msk [vmem:[#allocation0] ss:$72 sm:$0x3] %vm4093_vm12, %v4092_v13   ;;  %v4783_v2 = vpop.permute.xlu2 %4782  }
 0x278   :  { %4096 = vst.msk [vmem:[#allocation0 + $0x60] ss:$-24 sm:$0xc] %vm4093_vm12, %v4092_v13  }
 0x279   :  { %4098 = vst.msk [vmem:[#allocation0 - $0xc0] ss:$72 sm:$0x30] %vm4093_vm12, %v4092_v13  }
 0x27a   :  { %4100 = vst.msk [vmem:[#allocation0 + $0x120] ss:$-24 sm:$0xc0] %vm4093_vm12, %v4092_v13   ;;  %v4742_v57 = vpop.permute.xlu1 %4741   ;;  %vm4906_vm12 = vcmask 105552  }
 0x27b   :  { %4298 = vst.msk [vmem:[#allocation0 + $0x20] ss:$-24 sm:$0x3] %vm4296_vm13, %v4295_v12   ;;  %v4824_v29 = vpop.permute.xlu0 %4823  }
 0x27c   :  { %4300 = vst.msk [vmem:[#allocation0 + $0x80] ss:$-24 sm:$0xc] %vm4296_vm13, %v4295_v12  }
 0x27d   :  { %4302 = vst.msk [vmem:[#allocation0 + $0xe0] ss:$-24 sm:$0x30] %vm4296_vm13, %v4295_v12  }
 0x27e   :  { %4304 = vst.msk [vmem:[#allocation0 + $0x140] ss:$-24 sm:$0xc0] %vm4296_vm13, %v4295_v12   ;;  %vm4865_vm13 = vcmask 113752  }
 0x27f   :  { %4257 = vst.msk [vmem:[#allocation0 + $0x40] ss:$-24 sm:$0x7] %vm4255_vm14, %v4254_v48  }
 0x280   :  { %4259 = vst.msk [vmem:[#allocation0 - $0x80] ss:$72 sm:$0x18] %vm4255_vm14, %v4254_v48  }
 0x281   :  { %4261 = vst.msk [vmem:[#allocation0 + $0x100] ss:$-24 sm:$0x60] %vm4255_vm14, %v4254_v48  }
 0x282   :  { %4263 = vst.msk [vmem:[#allocation0 + $0xb1] sm:$0x80] %vm4255_vm14, %v4254_v48   ;;  %v4864_v5 = vpop.permute.xlu1 %4863   ;;  %vm4825_vm14 = vcmask 121952  }
 0x283   :  { %4216 = vst.msk [vmem:[#allocation0] ss:$72 sm:$0x3] %vm4215_vm15, %v4214_v49  }
 0x284   :  { %4218 = vst.msk [vmem:[#allocation0 + $0x60] ss:$-24 sm:$0xc] %vm4215_vm15, %v4214_v49  }
 0x285   :  { %4220 = vst.msk [vmem:[#allocation0 - $0xc0] ss:$72 sm:$0x30] %vm4215_vm15, %v4214_v49  }
 0x286   :  { %4222 = vst.msk [vmem:[#allocation0 + $0x120] ss:$-24 sm:$0xc0] %vm4215_vm15, %v4214_v49   ;;  %vm5028_vm15 = vcmask 80952  }
 0x287   :  { %4420 = vst.msk [vmem:[#allocation0 + $0x20] ss:$-24 sm:$0x3] %vm4418_vm7, %v4417_v59   ;;  %v4905_v14 = vpop.permute.xlu2 %4904  }
 0x288   :  { %4422 = vst.msk [vmem:[#allocation0 + $0x80] ss:$-24 sm:$0xc] %vm4418_vm7, %v4417_v59  }
 0x289   :  { %4424 = vst.msk [vmem:[#allocation0 + $0xe0] ss:$-24 sm:$0x30] %vm4418_vm7, %v4417_v59  }
 0x28a   :  { %4426 = vst.msk [vmem:[#allocation0 + $0x140] ss:$-24 sm:$0xc0] %vm4418_vm7, %v4417_v59   ;;  %v4986_v34 = vpop.permute.xlu1 %4985   ;;  %vm4987_vm7 = vcmask 89152  }
 0x28b   :  { %4379 = vst.msk [vmem:[#allocation0 + $0x40] ss:$-24 sm:$0x7] %vm4377_vm0, %v4376_v50   ;;  %v4946_v7 = vpop.permute.xlu0 %4945  }
 0x28c   :  { %4381 = vst.msk [vmem:[#allocation0 - $0x80] ss:$72 sm:$0x18] %vm4377_vm0, %v4376_v50  }
 0x28d   :  { %4383 = vst.msk [vmem:[#allocation0 + $0x100] ss:$-24 sm:$0x60] %vm4377_vm0, %v4376_v50  }
 0x28e   :  { %4385 = vst.msk [vmem:[#allocation0 + $0xb1] sm:$0x80] %vm4377_vm0, %v4376_v50   ;;  %vm4947_vm0 = vcmask 97352  }
 0x28f   :  { %4338 = vst.msk [vmem:[#allocation0] ss:$72 sm:$0x3] %vm4337_vm1, %v4336_v55  }
 0x290   :  { %4340 = vst.msk [vmem:[#allocation0 + $0x60] ss:$-24 sm:$0xc] %vm4337_vm1, %v4336_v55  }
 0x291   :  { %4342 = vst.msk [vmem:[#allocation0 - $0xc0] ss:$72 sm:$0x30] %vm4337_vm1, %v4336_v55  }
 0x292   :  { %4344 = vst.msk [vmem:[#allocation0 + $0x120] ss:$-24 sm:$0xc0] %vm4337_vm1, %v4336_v55   ;;  %vm5150_vm1 = vcmask 56352  }
 0x293   :  { %4542 = vst.msk [vmem:[#allocation0 + $0x20] ss:$-24 sm:$0x3] %vm4540_vm2, %v4539_v27  }
 0x294   :  { %4544 = vst.msk [vmem:[#allocation0 + $0x80] ss:$-24 sm:$0xc] %vm4540_vm2, %v4539_v27  }
 0x295   :  { %4546 = vst.msk [vmem:[#allocation0 + $0xe0] ss:$-24 sm:$0x30] %vm4540_vm2, %v4539_v27  }
 0x296   :  { %4548 = vst.msk [vmem:[#allocation0 + $0x140] ss:$-24 sm:$0xc0] %vm4540_vm2, %v4539_v27   ;;  %v5108_v8 = vpop.permute.xlu1 %5107   ;;  %vm5109_vm2 = vcmask 64552  }
 0x297   :  { %4501 = vst.msk [vmem:[#allocation0 + $0x40] ss:$-24 sm:$0x7] %vm4499_vm3, %v4498_v39   ;;  %v5027_v33 = vpop.permute.xlu2 %5026  }
 0x298   :  { %4503 = vst.msk [vmem:[#allocation0 - $0x80] ss:$72 sm:$0x18] %vm4499_vm3, %v4498_v39  }
 0x299   :  { %4505 = vst.msk [vmem:[#allocation0 + $0x100] ss:$-24 sm:$0x60] %vm4499_vm3, %v4498_v39  }
 0x29a   :  { %4507 = vst.msk [vmem:[#allocation0 + $0xb1] sm:$0x80] %vm4499_vm3, %v4498_v39   ;;  %v5068_v15 = vpop.permute.xlu0 %5067   ;;  %vm5069_vm3 = vcmask 72752  }
 0x29b   :  { %4460 = vst.msk [vmem:[#allocation0] ss:$72 sm:$0x3] %vm4459_vm4, %v4458_v61  }
 0x29c   :  { %4462 = vst.msk [vmem:[#allocation0 + $0x60] ss:$-24 sm:$0xc] %vm4459_vm4, %v4458_v61  }
 0x29d   :  { %4464 = vst.msk [vmem:[#allocation0 - $0xc0] ss:$72 sm:$0x30] %vm4459_vm4, %v4458_v61  }
 0x29e   :  { %4466 = vst.msk [vmem:[#allocation0 + $0x120] ss:$-24 sm:$0xc0] %vm4459_vm4, %v4458_v61   ;;  %vm5272_vm4 = vcmask 31752  }
 0x29f   :  { %4664 = vst.msk [vmem:[#allocation0 + $0x20] ss:$-24 sm:$0x3] %vm4662_vm5, %v4661_v62   ;;  %v5149_v32 = vpop.permute.xlu2 %5148  }
 0x2a0   :  { %4666 = vst.msk [vmem:[#allocation0 + $0x80] ss:$-24 sm:$0xc] %vm4662_vm5, %v4661_v62  }
 0x2a1   :  { %4668 = vst.msk [vmem:[#allocation0 + $0xe0] ss:$-24 sm:$0x30] %vm4662_vm5, %v4661_v62  }
 0x2a2   :  { %4670 = vst.msk [vmem:[#allocation0 + $0x140] ss:$-24 sm:$0xc0] %vm4662_vm5, %v4661_v62   ;;  %vm5231_vm5 = vcmask 39952  }
 0x2a3   :  { %4623 = vst.msk [vmem:[#allocation0 + $0x40] ss:$-24 sm:$0x7] %vm4621_vm6, %v4620_v38  }
 0x2a4   :  { %4625 = vst.msk [vmem:[#allocation0 - $0x80] ss:$72 sm:$0x18] %vm4621_vm6, %v4620_v38  }
 0x2a5   :  { %4627 = vst.msk [vmem:[#allocation0 + $0x100] ss:$-24 sm:$0x60] %vm4621_vm6, %v4620_v38  }
 0x2a6   :  { %4629 = vst.msk [vmem:[#allocation0 + $0xb1] sm:$0x80] %vm4621_vm6, %v4620_v38   ;;  %vm5191_vm6 = vcmask 48152  }
 0x2a7   :  { %4582 = vst.msk [vmem:[#allocation0] ss:$72 sm:$0x3] %vm4581_vm8, %v4580_v31   ;;  %v5271_v16 = vpop.permute.xlu2 %5270   ;;  %v5230_v17 = vpop.permute.xlu1 %5229  }
 0x2a8   :  { %4584 = vst.msk [vmem:[#allocation0 + $0x60] ss:$-24 sm:$0xc] %vm4581_vm8, %v4580_v31  }
 0x2a9   :  { %4586 = vst.msk [vmem:[#allocation0 - $0xc0] ss:$72 sm:$0x30] %vm4581_vm8, %v4580_v31  }
 0x2aa   :  { %4588 = vst.msk [vmem:[#allocation0 + $0x120] ss:$-24 sm:$0xc0] %vm4581_vm8, %v4580_v31   ;;  %v11727_v60 = vpop.permute.xlu0 %5189  }
 0x2ab   :  { %4786 = vst.msk [vmem:[#allocation0 + $0x20] ss:$-24 sm:$0x3] %vm4784_vm9, %v4783_v2  }
 0x2ac   :  { %4788 = vst.msk [vmem:[#allocation0 + $0x80] ss:$-24 sm:$0xc] %vm4784_vm9, %v4783_v2  }
 0x2ad   :  { %4790 = vst.msk [vmem:[#allocation0 + $0xe0] ss:$-24 sm:$0x30] %vm4784_vm9, %v4783_v2  }
 0x2ae   :  { %4792 = vst.msk [vmem:[#allocation0 + $0x140] ss:$-24 sm:$0xc0] %vm4784_vm9, %v4783_v2  }
 0x2af   :  { %4745 = vst.msk [vmem:[#allocation0 + $0x40] ss:$-24 sm:$0x7] %vm4743_vm10, %v4742_v57  }
 0x2b0   :  { %4747 = vst.msk [vmem:[#allocation0 - $0x80] ss:$72 sm:$0x18] %vm4743_vm10, %v4742_v57  }
 0x2b1   :  { %4749 = vst.msk [vmem:[#allocation0 + $0x100] ss:$-24 sm:$0x60] %vm4743_vm10, %v4742_v57  }
 0x2b2   :  { %4751 = vst.msk [vmem:[#allocation0 + $0xb1] sm:$0x80] %vm4743_vm10, %v4742_v57  }
 0x2b3   :  { %4704 = vst.msk [vmem:[#allocation0] ss:$72 sm:$0x3] %vm4703_vm11, %v4702_v0  }
 0x2b4   :  { %4706 = vst.msk [vmem:[#allocation0 + $0x60] ss:$-24 sm:$0xc] %vm4703_vm11, %v4702_v0  }
 0x2b5   :  { %4708 = vst.msk [vmem:[#allocation0 - $0xc0] ss:$72 sm:$0x30] %vm4703_vm11, %v4702_v0  }
 0x2b6   :  { %4710 = vst.msk [vmem:[#allocation0 + $0x120] ss:$-24 sm:$0xc0] %vm4703_vm11, %v4702_v0  }
 0x2b7   :  { %4908 = vst.msk [vmem:[#allocation0 + $0x20] ss:$-24 sm:$0x3] %vm4906_vm12, %v4905_v14  }
 0x2b8   :  { %4910 = vst.msk [vmem:[#allocation0 + $0x80] ss:$-24 sm:$0xc] %vm4906_vm12, %v4905_v14  }
 0x2b9   :  { %4912 = vst.msk [vmem:[#allocation0 + $0xe0] ss:$-24 sm:$0x30] %vm4906_vm12, %v4905_v14  }
 0x2ba   :  { %4914 = vst.msk [vmem:[#allocation0 + $0x140] ss:$-24 sm:$0xc0] %vm4906_vm12, %v4905_v14  }
 0x2bb   :  { %4867 = vst.msk [vmem:[#allocation0 + $0x40] ss:$-24 sm:$0x7] %vm4865_vm13, %v4864_v5  }
 0x2bc   :  { %4869 = vst.msk [vmem:[#allocation0 - $0x80] ss:$72 sm:$0x18] %vm4865_vm13, %v4864_v5  }
 0x2bd   :  { %4871 = vst.msk [vmem:[#allocation0 + $0x100] ss:$-24 sm:$0x60] %vm4865_vm13, %v4864_v5  }
 0x2be   :  { %4873 = vst.msk [vmem:[#allocation0 + $0xb1] sm:$0x80] %vm4865_vm13, %v4864_v5  }
 0x2bf   :  { %4826 = vst.msk [vmem:[#allocation0] ss:$72 sm:$0x3] %vm4825_vm14, %v4824_v29  }
 0x2c0   :  { %4828 = vst.msk [vmem:[#allocation0 + $0x60] ss:$-24 sm:$0xc] %vm4825_vm14, %v4824_v29  }
 0x2c1   :  { %4830 = vst.msk [vmem:[#allocation0 - $0xc0] ss:$72 sm:$0x30] %vm4825_vm14, %v4824_v29  }
 0x2c2   :  { %4832 = vst.msk [vmem:[#allocation0 + $0x120] ss:$-24 sm:$0xc0] %vm4825_vm14, %v4824_v29  }
 0x2c3   :  { %5030 = vst.msk [vmem:[#allocation0 + $0x20] ss:$-24 sm:$0x3] %vm5028_vm15, %v5027_v33  }
 0x2c4   :  { %5032 = vst.msk [vmem:[#allocation0 + $0x80] ss:$-24 sm:$0xc] %vm5028_vm15, %v5027_v33  }
 0x2c5   :  { %5034 = vst.msk [vmem:[#allocation0 + $0xe0] ss:$-24 sm:$0x30] %vm5028_vm15, %v5027_v33  }
 0x2c6   :  { %5036 = vst.msk [vmem:[#allocation0 + $0x140] ss:$-24 sm:$0xc0] %vm5028_vm15, %v5027_v33  }
 0x2c7   :  { %4989 = vst.msk [vmem:[#allocation0 + $0x40] ss:$-24 sm:$0x7] %vm4987_vm7, %v4986_v34  }
 0x2c8   :  { %4991 = vst.msk [vmem:[#allocation0 - $0x80] ss:$72 sm:$0x18] %vm4987_vm7, %v4986_v34  }
 0x2c9   :  { %4993 = vst.msk [vmem:[#allocation0 + $0x100] ss:$-24 sm:$0x60] %vm4987_vm7, %v4986_v34  }
 0x2ca   :  { %4995 = vst.msk [vmem:[#allocation0 + $0xb1] sm:$0x80] %vm4987_vm7, %v4986_v34  }
 0x2cb   :  { %4948 = vst.msk [vmem:[#allocation0] ss:$72 sm:$0x3] %vm4947_vm0, %v4946_v7  }
 0x2cc   :  { %4950 = vst.msk [vmem:[#allocation0 + $0x60] ss:$-24 sm:$0xc] %vm4947_vm0, %v4946_v7  }
 0x2cd   :  { %4952 = vst.msk [vmem:[#allocation0 - $0xc0] ss:$72 sm:$0x30] %vm4947_vm0, %v4946_v7  }
 0x2ce   :  { %4954 = vst.msk [vmem:[#allocation0 + $0x120] ss:$-24 sm:$0xc0] %vm4947_vm0, %v4946_v7  }
 0x2cf   :  { %5152 = vst.msk [vmem:[#allocation0 + $0x20] ss:$-24 sm:$0x3] %vm5150_vm1, %v5149_v32  }
 0x2d0   :  { %5154 = vst.msk [vmem:[#allocation0 + $0x80] ss:$-24 sm:$0xc] %vm5150_vm1, %v5149_v32  }
 0x2d1   :  { %5156 = vst.msk [vmem:[#allocation0 + $0xe0] ss:$-24 sm:$0x30] %vm5150_vm1, %v5149_v32  }
 0x2d2   :  { %5158 = vst.msk [vmem:[#allocation0 + $0x140] ss:$-24 sm:$0xc0] %vm5150_vm1, %v5149_v32  }
 0x2d3   :  { %5111 = vst.msk [vmem:[#allocation0 + $0x40] ss:$-24 sm:$0x7] %vm5109_vm2, %v5108_v8  }
 0x2d4   :  { %5113 = vst.msk [vmem:[#allocation0 - $0x80] ss:$72 sm:$0x18] %vm5109_vm2, %v5108_v8  }
 0x2d5   :  { %5115 = vst.msk [vmem:[#allocation0 + $0x100] ss:$-24 sm:$0x60] %vm5109_vm2, %v5108_v8  }
 0x2d6   :  { %5117 = vst.msk [vmem:[#allocation0 + $0xb1] sm:$0x80] %vm5109_vm2, %v5108_v8  }
 0x2d7   :  { %5070 = vst.msk [vmem:[#allocation0] ss:$72 sm:$0x3] %vm5069_vm3, %v5068_v15  }
 0x2d8   :  { %5072 = vst.msk [vmem:[#allocation0 + $0x60] ss:$-24 sm:$0xc] %vm5069_vm3, %v5068_v15  }
 0x2d9   :  { %5074 = vst.msk [vmem:[#allocation0 - $0xc0] ss:$72 sm:$0x30] %vm5069_vm3, %v5068_v15  }
 0x2da   :  { %5076 = vst.msk [vmem:[#allocation0 + $0x120] ss:$-24 sm:$0xc0] %vm5069_vm3, %v5068_v15  }
 0x2db   :  { %5274 = vst.msk [vmem:[#allocation0 + $0x20] ss:$-24 sm:$0x3] %vm5272_vm4, %v5271_v16  }
 0x2dc   :  { %5276 = vst.msk [vmem:[#allocation0 + $0x80] ss:$-24 sm:$0xc] %vm5272_vm4, %v5271_v16  }
 0x2dd   :  { %5278 = vst.msk [vmem:[#allocation0 + $0xe0] ss:$-24 sm:$0x30] %vm5272_vm4, %v5271_v16  }
 0x2de   :  { %5280 = vst.msk [vmem:[#allocation0 + $0x140] ss:$-24 sm:$0xc0] %vm5272_vm4, %v5271_v16  }
 0x2df   :  { %5233 = vst.msk [vmem:[#allocation0 + $0x40] ss:$-24 sm:$0x7] %vm5231_vm5, %v5230_v17  }
 0x2e0   :  { %5235 = vst.msk [vmem:[#allocation0 - $0x80] ss:$72 sm:$0x18] %vm5231_vm5, %v5230_v17  }
 0x2e1   :  { %5237 = vst.msk [vmem:[#allocation0 + $0x100] ss:$-24 sm:$0x60] %vm5231_vm5, %v5230_v17  }
 0x2e2   :  { %v5288_v45 = vld [vmem:[#allocation0 + $0x8] sm:$0x1]  ;;  %v5306_v37 = vld [vmem:[#allocation0 + $0x20] sm:$0x1]  ;;  %5239 = vst.msk [vmem:[#allocation0 + $0xb1] sm:$0x80] %vm5231_vm5, %v5230_v17  }
 0x2e3   :  { %6464 = vst [vmem:[%s11806_s1 + $0x1] sm:$0x1] %v5288_v45  ;;  %v5324_v20 = vld [vmem:[#allocation0 + $0x38] sm:$0x1]  ;;  %v5342_v21 = vld [vmem:[#allocation0 + $0x50] sm:$0x1] }
 0x2e4   :  { %6467 = vst [vmem:[%s11806_s1 + $0x4] sm:$0x1] %v5306_v37  ;;  %v5360_v1 = vld [vmem:[#allocation0 + $0x68] sm:$0x1]  ;;  %v5378_v42 = vld [vmem:[#allocation0 + $0x80] sm:$0x1] }
 0x2e5   :  { %6470 = vst [vmem:[%s11806_s1 + $0x7] sm:$0x1] %v5324_v20  ;;  %v5396_v63 = vld [vmem:[#allocation0 + $0x98] sm:$0x1]  ;;  %v5414_v46 = vld [vmem:[#allocation0 + $0xb0] sm:$0x1] }
 0x2e6   :  { %6473 = vst [vmem:[%s11806_s1 + $0xa] sm:$0x1] %v5342_v21  ;;  %v5294_v53 = vld [vmem:[#allocation0 + $0x10] sm:$0x1]  ;;  %v5312_v19 = vld [vmem:[#allocation0 + $0x28] sm:$0x1] }
 0x2e7   :  { %6476 = vst [vmem:[%s11806_s1 + $0xd] sm:$0x1] %v5360_v1  ;;  %v5330_v24 = vld [vmem:[#allocation0 + $0x40] sm:$0x1]  ;;  %v5348_v28 = vld [vmem:[#allocation0 + $0x58] sm:$0x1] }
 0x2e8   :  { %6479 = vst [vmem:[%s11806_s1 + $0x10] sm:$0x1] %v5378_v42  ;;  %v5366_v51 = vld [vmem:[#allocation0 + $0x70] sm:$0x1]  ;;  %v5384_v56 = vld [vmem:[#allocation0 + $0x88] sm:$0x1] }
 0x2e9   :  { %6482 = vst [vmem:[%s11806_s1 + $0x13] sm:$0x1] %v5396_v63  ;;  %v5402_v25 = vld [vmem:[#allocation0 + $0xa0] sm:$0x1]  ;;  %v5420_v52 = vld [vmem:[#allocation0 + $0xb8] sm:$0x1] }
 0x2ea   :  { %6485 = vst [vmem:[%s11806_s1 + $0x16] sm:$0x1] %v5414_v46 }
 0x2eb   :  { %6465 = vst [vmem:[%s11806_s1 + $0x2] sm:$0x1] %v5294_v53 }
 0x2ec   :  { %6468 = vst [vmem:[%s11806_s1 + $0x5] sm:$0x1] %v5312_v19 }
 0x2ed   :  { %6471 = vst [vmem:[%s11806_s1 + $0x8] sm:$0x1] %v5330_v24 }
 0x2ee   :  { %6474 = vst [vmem:[%s11806_s1 + $0xb] sm:$0x1] %v5348_v28 }
 0x2ef   :  { %6477 = vst [vmem:[%s11806_s1 + $0xe] sm:$0x1] %v5366_v51 }
 0x2f0   :  { %6480 = vst [vmem:[%s11806_s1 + $0x11] sm:$0x1] %v5384_v56 }
 0x2f1   :  { %6483 = vst [vmem:[%s11806_s1 + $0x14] sm:$0x1] %v5402_v25 }
 0x2f2   :  { %6486 = vst [vmem:[%s11806_s1 + $0x17] sm:$0x1] %v5420_v52 }
 0x2f3   :  { %5192 = vst.msk [vmem:[#allocation0] ss:$72 sm:$0x3] %vm5191_vm6, %v11727_v60  }
 0x2f4   :  { %5194 = vst.msk [vmem:[#allocation0 + $0x60] ss:$-24 sm:$0xc] %vm5191_vm6, %v11727_v60  }
 0x2f5   :  { %5196 = vst.msk [vmem:[#allocation0 - $0xc0] ss:$72 sm:$0x30] %vm5191_vm6, %v11727_v60  }
 0x2f6   :  { %5198 = vst.msk [vmem:[#allocation0 + $0x120] ss:$-24 sm:$0xc0] %vm5191_vm6, %v11727_v60  }
 0x2fa   :  { %v5283_v10 = vld [vmem:[#allocation0] sm:$0x1]  ;;  %v5336_v30 = vld [vmem:[#allocation0 + $0x48] sm:$0x1] }
 0x2fb   :  { %5286 = vst [vmem:[%s11806_s1] sm:$0x1] %v5283_v10  ;;  %v5300_v35 = vld [vmem:[#allocation0 + $0x18] sm:$0x1]  ;;  %v5318_v36 = vld [vmem:[#allocation0 + $0x30] sm:$0x1] }
 0x2fc   :  { %6466 = vst [vmem:[%s11806_s1 + $0x3] sm:$0x1] %v5300_v35  ;;  %v5354_v18 = vld [vmem:[#allocation0 + $0x60] sm:$0x1]  ;;  %v5408_v58 = vld [vmem:[#allocation0 + $0xa8] sm:$0x1] }
 0x2fd   :  { %6469 = vst [vmem:[%s11806_s1 + $0x6] sm:$0x1] %v5318_v36  ;;  %v5372_v43 = vld [vmem:[#allocation0 + $0x78] sm:$0x1]  ;;  %v5390_v3 = vld [vmem:[#allocation0 + $0x90] sm:$0x1] }
 0x2fe   :  { %6472 = vst [vmem:[%s11806_s1 + $0x9] sm:$0x1] %v5336_v30 }
 0x2ff   :  { %6475 = vst [vmem:[%s11806_s1 + $0xc] sm:$0x1] %v5354_v18 }
 0x300   :  { %6478 = vst [vmem:[%s11806_s1 + $0xf] sm:$0x1] %v5372_v43 }
 0x301   :  { %6481 = vst [vmem:[%s11806_s1 + $0x12] sm:$0x1] %v5390_v3 }
 0x302   :  { %6484 = vst [vmem:[%s11806_s1 + $0x15] sm:$0x1] %v5408_v58 }

// kernel: _fwd.23
= control target key start
LH: loop header
LB: loop body
LE: loop exit
PB: predicated region body
PF: predicated region fallthrough
CT: control target
= control target key end

     0   :  { %s1040_s0 = inlined_call_operand.vmem [shape: f32[16,3072], index: 0, kind: input, shape index: {}]   ;;  %s1041_s1 = inlined_call_operand.vmem [shape: f32[1,3072], index: 1, kind: input, shape index: {}]   ;;  %s1042_s2 = inlined_call_operand.vmem [shape: f32[1,3072], index: 2, kind: input, shape index: {}]   ;;  %s1043_s3 = inlined_call_operand.vmem [shape: f32[16,3072], index: 3, kind: output, shape index: {}]  }
   0x1   :  { %v14_v0 = vld [vmem:[%s1040_s0] sm:$0xff]  ;;  %v15_v5 = vld [vmem:[%s1040_s0 + $0x8] sm:$0xff]  ;;  %v16_v8 = vld [vmem:[%s1040_s0 + $0x10] sm:$0xff] }
   0x2   :  { %v488_v1 = vld [vmem:[%s1041_s1] sm:$0xff]  ;;  %v17_v11 = vld [vmem:[%s1040_s0 + $0x18] sm:$0xff]  ;;  %v19_v19 = vld [vmem:[%s1040_s0 + $0x28] sm:$0xff] }
   0x3   :  { %v493_v2 = vld [vmem:[%s1042_s2] sm:$0xff]  ;;  %v68_v3 = vperm.slane %v488_v1, 0  ;;  %v69_v6 = vperm.slane %v488_v1, 1  ;;  %v70_v9 = vperm.slane %v488_v1, 2  ;;  %v71_v12 = vperm.slane %v488_v1, 3  ;;  %v20_v24 = vld [vmem:[%s1040_s0 + $0x30] sm:$0xff] }
   0x4   :  { %v170_v4 = vperm.slane %v493_v2, 0  ;;  %v171_v7 = vperm.slane %v493_v2, 1  ;;  %v172_v10 = vperm.slane %v493_v2, 2  ;;  %v173_v13 = vperm.slane %v493_v2, 3  ;;  %v18_v14 = vld [vmem:[%s1040_s0 + $0x20] sm:$0xff]  ;;  %v543_v29 = vld [vmem:[%s1041_s1 + $0x8] sm:$0xff] }
   0x5   :  { %v116_v15 = vmul.f32 %v68_v3, %v14_v0  ;;  %v117_v16 = vmul.f32 %v69_v6, %v15_v5  ;;  %v72_v17 = vperm.slane %v488_v1, 4  ;;  %v174_v18 = vperm.slane %v493_v2, 4  ;;  %v21_v34 = vld [vmem:[%s1040_s0 + $0x38] sm:$0xff]  ;;  %v558_v35 = vld [vmem:[%s1042_s2 + $0x8] sm:$0xff]  ;;  %v22_v39 = vld [vmem:[%s1040_s0 + $0x40] sm:$0xff] }
   0x6   :  { %v118_v20 = vmul.f32 %v70_v9, %v16_v8  ;;  %v119_v21 = vmul.f32 %v71_v12, %v17_v11  ;;  %v73_v22 = vperm.slane %v488_v1, 5  ;;  %v175_v23 = vperm.slane %v493_v2, 5  ;;  %v23_v46 = vld [vmem:[%s1040_s0 + $0x48] sm:$0xff]  ;;  %v24_v50 = vld [vmem:[%s1040_s0 + $0x50] sm:$0xff]  ;;  %v25_v54 = vld [vmem:[%s1040_s0 + $0x58] sm:$0xff] }
   0x7   :  { %v218_v25 = vadd.f32 %v170_v4, %v116_v15  ;;  %v219_v26 = vadd.f32 %v171_v7, %v117_v16  ;;  %v120_v27 = vmul.f32 %v72_v17, %v18_v14  ;;  %v74_v28 = vperm.slane %v488_v1, 6  ;;  %v26_v58 = vld [vmem:[%s1040_s0 + $0x60] sm:$0xff]  ;;  %v27_v11 = vld [vmem:[%s1040_s0 + $0x68] sm:$0xff] }
   0x8   :  { %v220_v30 = vadd.f32 %v172_v10, %v118_v20  ;;  %v221_v31 = vadd.f32 %v173_v13, %v119_v21  ;;  %v121_v32 = vmul.f32 %v73_v22, %v19_v19  ;;  %v176_v33 = vperm.slane %v493_v2, 6  ;;  %v28_v20 = vld [vmem:[%s1040_s0 + $0x70] sm:$0xff] }
   0x9   :  { %366 = vtanh.f32 %v218_v25  ;;  %v222_v36 = vadd.f32 %v174_v18, %v120_v27  ;;  %v122_v37 = vmul.f32 %v74_v28, %v20_v24  ;;  %v75_v38 = vperm.slane %v488_v1, 7  ;;  %v638_v27 = vld [vmem:[%s1041_s1 + $0x10] sm:$0xff] }
   0xa   :  { %368 = vtanh.f32 %v219_v26  ;;  %v223_v40 = vadd.f32 %v175_v23, %v121_v32  ;;  %v177_v41 = vperm.slane %v493_v2, 7  ;;  %v76_v42 = vperm.slane %v543_v29, 0 }
   0xb   :  { %370 = vtanh.f32 %v220_v30  ;;  %v224_v43 = vadd.f32 %v176_v33, %v122_v37  ;;  %v123_v44 = vmul.f32 %v75_v38, %v21_v34  ;;  %v178_v45 = vperm.slane %v558_v35, 0  ;;  %v643_v30 = vld [vmem:[%s1042_s2 + $0x10] sm:$0xff]  ;;  %v29_v37 = vld [vmem:[%s1040_s0 + $0x78] sm:$0xff] }
   0xc   :  { %372 = vtanh.f32 %v221_v31  ;;  %v124_v47 = vmul.f32 %v76_v42, %v22_v39  ;;  %v77_v48 = vperm.slane %v543_v29, 1  ;;  %v179_v49 = vperm.slane %v558_v35, 1 }
   0xd   :  { %374 = vtanh.f32 %v222_v36  ;;  %v225_v51 = vadd.f32 %v177_v41, %v123_v44  ;;  %v78_v52 = vperm.slane %v543_v29, 2  ;;  %v180_v53 = vperm.slane %v558_v35, 2 }
   0xe   :  { %376 = vtanh.f32 %v223_v40  ;;  %v226_v55 = vadd.f32 %v178_v45, %v124_v47  ;;  %v125_v56 = vmul.f32 %v77_v48, %v23_v46  ;;  %v79_v57 = vperm.slane %v543_v29, 3  ;;  %v30_v46 = vld [vmem:[%s1040_s0 + $0x80] sm:$0xff] }
   0xf   :  { %v367_v59 = vpop.eup %366  ;;  %378 = vtanh.f32 %v224_v43  ;;  %v126_v60 = vmul.f32 %v78_v52, %v24_v50  ;;  %v181_v61 = vperm.slane %v558_v35, 3  ;;  %v80_v62 = vperm.slane %v543_v29, 4 }
  0x10   :  { %v369_v63 = vpop.eup %368  ;;  %314 = vst [vmem:[%s1043_s3] sm:$0xff] %v367_v59  ;;  %380 = vtanh.f32 %v225_v51  ;;  %v227_v0 = vadd.f32 %v179_v49, %v125_v56  ;;  %v127_v5 = vmul.f32 %v79_v57, %v25_v54  ;;  %v182_v8 = vperm.slane %v558_v35, 4 }
  0x11   :  { %v371_v14 = vpop.eup %370  ;;  %315 = vst [vmem:[%s1043_s3 + $0x8] sm:$0xff] %v369_v63  ;;  %382 = vtanh.f32 %v226_v55  ;;  %v228_v15 = vadd.f32 %v180_v53, %v126_v60  ;;  %v128_v16 = vmul.f32 %v80_v62, %v26_v58  ;;  %v81_v19 = vperm.slane %v543_v29, 5  ;;  %v31_v55 = vld [vmem:[%s1040_s0 + $0x88] sm:$0xff] }
  0x12   :  { %v373_v21 = vpop.eup %372  ;;  %316 = vst [vmem:[%s1043_s3 + $0x10] sm:$0xff] %v371_v14  ;;  %384 = vtanh.f32 %v227_v0  ;;  %v229_v24 = vadd.f32 %v181_v61, %v127_v5  ;;  %v183_v25 = vperm.slane %v558_v35, 5  ;;  %v82_v26 = vperm.slane %v543_v29, 6  ;;  %v32_v0 = vld [vmem:[%s1040_s0 + $0x90] sm:$0xff] }
  0x13   :  { %v375_v31 = vpop.eup %374  ;;  %317 = vst [vmem:[%s1043_s3 + $0x18] sm:$0xff] %v373_v21  ;;  %386 = vtanh.f32 %v228_v15  ;;  %v230_v32 = vadd.f32 %v182_v8, %v128_v16  ;;  %v129_v34 = vmul.f32 %v81_v19, %v27_v11  ;;  %v184_v36 = vperm.slane %v558_v35, 6  ;;  %v33_v16 = vld [vmem:[%s1040_s0 + $0x98] sm:$0xff] }
  0x14   :  { %v377_v39 = vpop.eup %376  ;;  %318 = vst [vmem:[%s1043_s3 + $0x20] sm:$0xff] %v375_v31  ;;  %388 = vtanh.f32 %v229_v24  ;;  %v130_v40 = vmul.f32 %v82_v26, %v28_v20  ;;  %v83_v43 = vperm.slane %v543_v29, 7  ;;  %v185_v44 = vperm.slane %v558_v35, 7  ;;  %v57_v29 = vld [vmem:[%s1040_s0 + $0x158] sm:$0xff] }
  0x15   :  { %v379_v47 = vpop.eup %378  ;;  %319 = vst [vmem:[%s1043_s3 + $0x28] sm:$0xff] %v377_v39  ;;  %390 = vtanh.f32 %v230_v32  ;;  %v231_v50 = vadd.f32 %v183_v25, %v129_v34  ;;  %v84_v51 = vperm.slane %v638_v27, 0  ;;  %v186_v54 = vperm.slane %v643_v30, 0  ;;  %v34_v32 = vld [vmem:[%s1040_s0 + $0xa0] sm:$0xff] }
  0x16   :  { %v381_v56 = vpop.eup %380  ;;  %320 = vst [vmem:[%s1043_s3 + $0x30] sm:$0xff] %v379_v47  ;;  %v232_v58 = vadd.f32 %v184_v36, %v130_v40  ;;  %v131_v59 = vmul.f32 %v83_v43, %v29_v37  ;;  %v85_v60 = vperm.slane %v638_v27, 1  ;;  %v1049_v63 = vperm.slane %v643_v30, 1 }
  0x17   :  { %v383_v5 = vpop.eup %382  ;;  %321 = vst [vmem:[%s1043_s3 + $0x38] sm:$0xff] %v381_v56  ;;  %392 = vtanh.f32 %v231_v50  ;;  %v132_v11 = vmul.f32 %v84_v51, %v30_v46  ;;  %v86_v14 = vperm.slane %v638_v27, 2  ;;  %v1046_v15 = vperm.slane %v643_v30, 2 }
  0x18   :  { %v385_v20 = vpop.eup %384  ;;  %322 = vst [vmem:[%s1043_s3 + $0x40] sm:$0xff] %v383_v5  ;;  %394 = vtanh.f32 %v232_v58  ;;  %v233_v21 = vadd.f32 %v185_v44, %v131_v59  ;;  %v133_v24 = vmul.f32 %v85_v60, %v31_v55  ;;  %v87_v31 = vperm.slane %v638_v27, 3  ;;  %v35_v58 = vld [vmem:[%s1040_s0 + $0xa8] sm:$0xff] }
  0x19   :  { %v387_v34 = vpop.eup %386  ;;  %323 = vst [vmem:[%s1043_s3 + $0x48] sm:$0xff] %v385_v20  ;;  %v234_v37 = vadd.f32 %v186_v54, %v132_v11  ;;  %v134_v39 = vmul.f32 %v86_v14, %v32_v0  ;;  %v1044_v40 = vperm.slane %v643_v30, 3  ;;  %v88_v46 = vperm.slane %v638_v27, 4 }
  0x1a   :  { %v389_v47 = vpop.eup %388  ;;  %324 = vst [vmem:[%s1043_s3 + $0x50] sm:$0xff] %v387_v34  ;;  %396 = vtanh.f32 %v233_v21  ;;  %v235_v50 = vadd.f32 %v1049_v63, %v133_v24  ;;  %v135_v55 = vmul.f32 %v87_v31, %v33_v16  ;;  %v1045_v56 = vperm.slane %v643_v30, 4  ;;  %v36_v16 = vld [vmem:[%s1040_s0 + $0xb0] sm:$0xff]  ;;  %v39_v34 = vld [vmem:[%s1040_s0 + $0xc8] sm:$0xff] }
  0x1b   :  { %v391_v59 = vpop.eup %390  ;;  %325 = vst [vmem:[%s1043_s3 + $0x58] sm:$0xff] %v389_v47  ;;  %398 = vtanh.f32 %v234_v37  ;;  %v236_v0 = vadd.f32 %v1046_v15, %v134_v39  ;;  %v136_v5 = vmul.f32 %v88_v46, %v34_v32  ;;  %v1048_v11 = vperm.slane %v638_v27, 5  ;;  %v38_v32 = vld [vmem:[%s1040_s0 + $0xc0] sm:$0xff] }
  0x1c   :  { %326 = vst [vmem:[%s1043_s3 + $0x60] sm:$0xff] %v391_v59  ;;  %400 = vtanh.f32 %v235_v50  ;;  %v237_v20 = vadd.f32 %v1044_v40, %v135_v55  ;;  %v191_v21 = vperm.slane %v643_v30, 5  ;;  %v1047_v24 = vperm.slane %v638_v27, 6  ;;  %v37_v55 = vld [vmem:[%s1040_s0 + $0xb8] sm:$0xff]  ;;  %v40_v59 = vld [vmem:[%s1040_s0 + $0xd0] sm:$0xff]  ;;  %v42_v15 = vld [vmem:[%s1040_s0 + $0xe0] sm:$0xff] }
  0x1d   :  { %v393_v37 = vpop.eup %392  ;;  %402 = vtanh.f32 %v236_v0  ;;  %v238_v39 = vadd.f32 %v1045_v56, %v136_v5  ;;  %v137_v47 = vmul.f32 %v1048_v11, %v35_v58  ;;  %v192_v50 = vperm.slane %v643_v30, 6  ;;  %v41_v0 = vld [vmem:[%s1040_s0 + $0xd8] sm:$0xff] }
  0x1e   :  { %v395_v40 = vpop.eup %394  ;;  %327 = vst [vmem:[%s1043_s3 + $0x68] sm:$0xff] %v393_v37  ;;  %404 = vtanh.f32 %v237_v20  ;;  %v138_v58 = vmul.f32 %v1047_v24, %v36_v16  ;;  %v91_v5 = vperm.slane %v638_v27, 7  ;;  %v193_v56 = vperm.slane %v643_v30, 7 }
  0x1f   :  { %328 = vst [vmem:[%s1043_s3 + $0x70] sm:$0xff] %v395_v40  ;;  %406 = vtanh.f32 %v238_v39  ;;  %v239_v37 = vadd.f32 %v191_v21, %v137_v47  ;;  %v140_v20 = vmul.f32 %v68_v3, %v38_v32  ;;  %v141_v16 = vmul.f32 %v69_v6, %v39_v34  ;;  %v43_v3 = vld [vmem:[%s1040_s0 + $0xe8] sm:$0xff]  ;;  %v44_v6 = vld [vmem:[%s1040_s0 + $0xf0] sm:$0xff]  ;;  %v45_v47 = vld [vmem:[%s1040_s0 + $0xf8] sm:$0xff] }
  0x20   :  { %v397_v24 = vpop.eup %396  ;;  %v240_v11 = vadd.f32 %v192_v50, %v138_v58  ;;  %v139_v63 = vmul.f32 %v91_v5, %v37_v55  ;;  %v142_v40 = vmul.f32 %v70_v9, %v40_v59  ;;  %v143_v39 = vmul.f32 %v71_v12, %v41_v0  ;;  %v46_v55 = vld [vmem:[%s1040_s0 + $0x100] sm:$0xff] }
  0x21   :  { %v399_v32 = vpop.eup %398  ;;  %329 = vst [vmem:[%s1043_s3 + $0x78] sm:$0xff] %v397_v24  ;;  %408 = vtanh.f32 %v239_v37  ;;  %v242_v9 = vadd.f32 %v170_v4, %v140_v20  ;;  %v243_v12 = vadd.f32 %v171_v7, %v141_v16  ;;  %v144_v34 = vmul.f32 %v72_v17, %v42_v15  ;;  %v47_v17 = vld [vmem:[%s1040_s0 + $0x108] sm:$0xff] }
  0x22   :  { %v401_v59 = vpop.eup %400  ;;  %330 = vst [vmem:[%s1043_s3 + $0x80] sm:$0xff] %v399_v32  ;;  %410 = vtanh.f32 %v240_v11  ;;  %v241_v4 = vadd.f32 %v193_v56, %v139_v63  ;;  %v244_v7 = vadd.f32 %v172_v10, %v142_v40  ;;  %v245_v24 = vadd.f32 %v173_v13, %v143_v39  ;;  %v48_v10 = vld [vmem:[%s1040_s0 + $0x110] sm:$0xff] }
  0x23   :  { %v403_v15 = vpop.eup %402  ;;  %331 = vst [vmem:[%s1043_s3 + $0x88] sm:$0xff] %v401_v59  ;;  %412 = vtanh.f32 %v242_v9  ;;  %v145_v11 = vmul.f32 %v73_v22, %v43_v3  ;;  %v146_v63 = vmul.f32 %v74_v28, %v44_v6  ;;  %v246_v58 = vadd.f32 %v174_v18, %v144_v34  ;;  %v49_v28 = vld [vmem:[%s1040_s0 + $0x118] sm:$0xff]  ;;  %v50_v18 = vld [vmem:[%s1040_s0 + $0x120] sm:$0xff]  ;;  %v52_v39 = vld [vmem:[%s1040_s0 + $0x130] sm:$0xff] }
  0x24   :  { %v405_v0 = vpop.eup %404  ;;  %332 = vst [vmem:[%s1043_s3 + $0x90] sm:$0xff] %v403_v15  ;;  %414 = vtanh.f32 %v241_v4  ;;  %v147_v13 = vmul.f32 %v75_v38, %v45_v47  ;;  %v148_v22 = vmul.f32 %v76_v42, %v46_v55  ;;  %v149_v1 = vmul.f32 %v77_v48, %v47_v17 }
  0x25   :  { %v407_v37 = vpop.eup %406  ;;  %333 = vst [vmem:[%s1043_s3 + $0x98] sm:$0xff] %v405_v0  ;;  %416 = vtanh.f32 %v243_v12  ;;  %v247_v20 = vadd.f32 %v175_v23, %v145_v11  ;;  %v248_v38 = vadd.f32 %v176_v33, %v146_v63  ;;  %v150_v42 = vmul.f32 %v78_v52, %v48_v10  ;;  %v51_v23 = vld [vmem:[%s1040_s0 + $0x128] sm:$0xff] }
  0x26   :  { %334 = vst [vmem:[%s1043_s3 + $0xa0] sm:$0xff] %v407_v37  ;;  %418 = vtanh.f32 %v244_v7  ;;  %v249_v16 = vadd.f32 %v177_v41, %v147_v13  ;;  %v151_v40 = vmul.f32 %v79_v57, %v49_v28  ;;  %v250_v52 = vadd.f32 %v178_v45, %v148_v22  ;;  %v53_v41 = vld [vmem:[%s1040_s0 + $0x138] sm:$0xff]  ;;  %v54_v45 = vld [vmem:[%s1040_s0 + $0x140] sm:$0xff] }
  0x27   :  { %v409_v48 = vpop.eup %408  ;;  %420 = vtanh.f32 %v245_v24  ;;  %v152_v2 = vmul.f32 %v80_v62, %v50_v18  ;;  %v251_v3 = vadd.f32 %v179_v49, %v149_v1  ;;  %v153_v6 = vmul.f32 %v81_v19, %v51_v23  ;;  %v55_v49 = vld [vmem:[%s1040_s0 + $0x148] sm:$0xff] }
  0x28   :  { %v411_v33 = vpop.eup %410  ;;  %335 = vst [vmem:[%s1043_s3 + $0xa8] sm:$0xff] %v409_v48  ;;  %422 = vtanh.f32 %v246_v58  ;;  %v252_v32 = vadd.f32 %v180_v53, %v150_v42  ;;  %v154_v9 = vmul.f32 %v82_v26, %v52_v39  ;;  %v253_v12 = vadd.f32 %v181_v61, %v151_v40  ;;  %v56_v53 = vld [vmem:[%s1040_s0 + $0x150] sm:$0xff] }
  0x29   :  { %v413_v57 = vpop.eup %412  ;;  %336 = vst [vmem:[%s1043_s3 + $0xb0] sm:$0xff] %v411_v33  ;;  %424 = vtanh.f32 %v247_v20  ;;  %v155_v34 = vmul.f32 %v83_v43, %v53_v41  ;;  %v254_v47 = vadd.f32 %v182_v8, %v152_v2  ;;  %v156_v55 = vmul.f32 %v84_v51, %v54_v45  ;;  %v58_v8 = vld [vmem:[%s1040_s0 + $0x160] sm:$0xff] }
  0x2a   :  { %v415_v62 = vpop.eup %414  ;;  %338 = vst [vmem:[%s1043_s3 + $0xc0] sm:$0xff] %v413_v57  ;;  %426 = vtanh.f32 %v248_v38  ;;  %v255_v43 = vadd.f32 %v183_v25, %v153_v6  ;;  %v157_v59 = vmul.f32 %v85_v60, %v55_v49  ;;  %v256_v4 = vadd.f32 %v184_v36, %v154_v9  ;;  %v59_v25 = vld [vmem:[%s1040_s0 + $0x168] sm:$0xff]  ;;  %v60_v36 = vld [vmem:[%s1040_s0 + $0x170] sm:$0xff] }
  0x2b   :  { %v417_v19 = vpop.eup %416  ;;  %337 = vst [vmem:[%s1043_s3 + $0xb8] sm:$0xff] %v415_v62  ;;  %428 = vtanh.f32 %v249_v16  ;;  %v158_v7 = vmul.f32 %v86_v14, %v56_v53  ;;  %v257_v17 = vadd.f32 %v185_v44, %v155_v34  ;;  %v159_v15 = vmul.f32 %v87_v31, %v57_v29  ;;  %v61_v44 = vld [vmem:[%s1040_s0 + $0x178] sm:$0xff] }
  0x2c   :  { %v419_v26 = vpop.eup %418  ;;  %339 = vst [vmem:[%s1043_s3 + $0xc8] sm:$0xff] %v417_v19  ;;  %430 = vtanh.f32 %v250_v52  ;;  %v258_v24 = vadd.f32 %v186_v54, %v156_v55  ;;  %v160_v35 = vmul.f32 %v88_v46, %v58_v8  ;;  %v1050_v11 = vperm.slane %v643_v30, 1 }
  0x2d   :  { %v421_v61 = vpop.eup %420  ;;  %340 = vst [vmem:[%s1043_s3 + $0xd0] sm:$0xff] %v419_v26  ;;  %432 = vtanh.f32 %v251_v3  ;;  %v1051_v10 = vperm.slane %v638_v27, 5  ;;  %v1052_v46 = vperm.slane %v643_v30, 2  ;;  %v1053_v13 = vperm.slane %v638_v27, 6 }
  0x2e   :  { %v423_v51 = vpop.eup %422  ;;  %341 = vst [vmem:[%s1043_s3 + $0xd8] sm:$0xff] %v421_v61  ;;  %434 = vtanh.f32 %v252_v32  ;;  %v259_v63 = vadd.f32 %v1050_v11, %v157_v59  ;;  %v1054_v37 = vperm.slane %v643_v30, 3  ;;  %v163_v1 = vmul.f32 %v91_v5, %v61_v44 }
  0x2f   :  { %v425_v60 = vpop.eup %424  ;;  %342 = vst [vmem:[%s1043_s3 + $0xe0] sm:$0xff] %v423_v51  ;;  %436 = vtanh.f32 %v253_v12  ;;  %v161_v0 = vmul.f32 %v1051_v10, %v59_v25  ;;  %v260_v58 = vadd.f32 %v1052_v46, %v158_v7  ;;  %v162_v22 = vmul.f32 %v1053_v13, %v60_v36 }
  0x30   :  { %v427_v14 = vpop.eup %426  ;;  %343 = vst [vmem:[%s1043_s3 + $0xe8] sm:$0xff] %v425_v60  ;;  %438 = vtanh.f32 %v254_v47  ;;  %v261_v20 = vadd.f32 %v1054_v37, %v159_v15  ;;  %v1055_v38 = vperm.slane %v643_v30, 4  ;;  %v265_v40 = vadd.f32 %v193_v56, %v163_v1 }
  0x31   :  { %v429_v31 = vpop.eup %428  ;;  %344 = vst [vmem:[%s1043_s3 + $0xf0] sm:$0xff] %v427_v14  ;;  %440 = vtanh.f32 %v255_v43  ;;  %v263_v48 = vadd.f32 %v191_v21, %v161_v0  ;;  %v264_v5 = vadd.f32 %v192_v50, %v162_v22 }
  0x32   :  { %v431_v54 = vpop.eup %430  ;;  %345 = vst [vmem:[%s1043_s3 + $0xf8] sm:$0xff] %v429_v31  ;;  %442 = vtanh.f32 %v256_v4  ;;  %v262_v42 = vadd.f32 %v1055_v38, %v160_v35 }
  0x33   :  { %v433_v28 = vpop.eup %432  ;;  %346 = vst [vmem:[%s1043_s3 + $0x100] sm:$0xff] %v431_v54  ;;  %444 = vtanh.f32 %v257_v17 }
  0x34   :  { %v435_v18 = vpop.eup %434  ;;  %347 = vst [vmem:[%s1043_s3 + $0x108] sm:$0xff] %v433_v28  ;;  %446 = vtanh.f32 %v258_v24 }
  0x35   :  { %v437_v23 = vpop.eup %436  ;;  %348 = vst [vmem:[%s1043_s3 + $0x110] sm:$0xff] %v435_v18  ;;  %448 = vtanh.f32 %v259_v63 }
  0x36   :  { %v439_v27 = vpop.eup %438  ;;  %349 = vst [vmem:[%s1043_s3 + $0x118] sm:$0xff] %v437_v23  ;;  %450 = vtanh.f32 %v260_v58 }
  0x37   :  { %v441_v16 = vpop.eup %440  ;;  %350 = vst [vmem:[%s1043_s3 + $0x120] sm:$0xff] %v439_v27  ;;  %452 = vtanh.f32 %v261_v20 }
  0x38   :  { %v443_v39 = vpop.eup %442  ;;  %351 = vst [vmem:[%s1043_s3 + $0x128] sm:$0xff] %v441_v16  ;;  %454 = vtanh.f32 %v262_v42 }
  0x39   :  { %v445_v21 = vpop.eup %444  ;;  %352 = vst [vmem:[%s1043_s3 + $0x130] sm:$0xff] %v443_v39  ;;  %456 = vtanh.f32 %v263_v48 }
  0x3a   :  { %v447_v50 = vpop.eup %446  ;;  %353 = vst [vmem:[%s1043_s3 + $0x138] sm:$0xff] %v445_v21  ;;  %458 = vtanh.f32 %v264_v5 }
  0x3b   :  { %v449_v30 = vpop.eup %448  ;;  %354 = vst [vmem:[%s1043_s3 + $0x140] sm:$0xff] %v447_v50  ;;  %460 = vtanh.f32 %v265_v40 }
  0x3c   :  { %v451_v56 = vpop.eup %450  ;;  %355 = vst [vmem:[%s1043_s3 + $0x148] sm:$0xff] %v449_v30 }
  0x3d   :  { %v453_v33 = vpop.eup %452  ;;  %356 = vst [vmem:[%s1043_s3 + $0x150] sm:$0xff] %v451_v56 }
  0x3e   :  { %v455_v52 = vpop.eup %454  ;;  %357 = vst [vmem:[%s1043_s3 + $0x158] sm:$0xff] %v453_v33 }
  0x3f   :  { %v457_v2 = vpop.eup %456  ;;  %358 = vst [vmem:[%s1043_s3 + $0x160] sm:$0xff] %v455_v52 }
  0x40   :  { %v459_v41 = vpop.eup %458  ;;  %359 = vst [vmem:[%s1043_s3 + $0x168] sm:$0xff] %v457_v2 }
  0x41   :  { %v461_v57 = vpop.eup %460  ;;  %360 = vst [vmem:[%s1043_s3 + $0x170] sm:$0xff] %v459_v41 }
  0x42   :  { %361 = vst [vmem:[%s1043_s3 + $0x178] sm:$0xff] %v461_v57 }

</bundles_post_ra>
